<compile_context>
chip_gen: v7x
topology: tpu7x:2x2x1
jax: 0.10.0
libtpu: 0.0.40
codegen_flags: <defaults>
</compile_context>

<pallas_src>
import functools

import jax
import jax.numpy as jnp
import numpy as np
from jax import lax
from jax.experimental import pallas as pl
from jax.experimental.pallas import tpu as pltpu


# For output row parity r (and column parity s), the contributing
# (kernel_tap, phase-grid shift) pairs of the k=4, s=2, p=1 ConvTranspose2d.
_CONVT_TERMS = {0: ((1, 0), (3, -1)), 1: ((0, 1), (2, 0))}


# ----------------------------- Pallas kernel ------------------------------ #
def _adapter_kernel(xp_ref, w1_ref, w2_ref, wc_ref, wt_ref, g_ref, b_ref,
                    o_ref, y1p_ref, a_ref, *, H2, W2, C, eps, fold_lanes):
    n_pix = 4 * H2 * W2
    n_pad = 4 * (H2 + 1) * (W2 + 1)

    # One-time zeroing of the conv-output halo scratch: the border is never
    # overwritten and VMEM scratch persists across grid iterations.
    @pl.when(pl.program_id(0) == 0)
    def _():
        y1p_ref[...] = jnp.zeros_like(y1p_ref)

    x_pad = xp_ref[...]                                  # (4, H2+1, W2+1, C) bf16

    # ---- channel attention: global average pool as an MXU matmul over the
    # zero-padded block (pad rows/cols add nothing to the sum) + MLP + sigmoid
    ones_row = jnp.ones((1, n_pad), jnp.bfloat16)
    pooled = jnp.dot(ones_row, x_pad.reshape(n_pad, C),
                     preferred_element_type=jnp.float32) * (1.0 / n_pix)  # (1,C)
    h = jnp.maximum(jnp.dot(pooled, w1_ref[...],
                            preferred_element_type=jnp.float32), 0.0)
    scale = jax.nn.sigmoid(jnp.dot(h, w2_ref[...],
                                   preferred_element_type=jnp.float32))   # (1,C)

    # channel-scaled bf16 copy used only as the MXU operand; x_pad is reused
    # (pre-attention) for the skip connection / LayerNorm.
    x_bf = x_pad * scale.astype(jnp.bfloat16).reshape(1, 1, 1, C)

    # ---- Conv2d(C, C, k=3, s=2, p=1, bias=False) + ReLU as ONE fused matmul.
    # tap (kh, kw): input row 2*i + kh - 1 = 2*(i+qh) + rh -> phase 2*rh + rw
    # shifted by (qh, qw) in {-1, 0}; the 1-px front halo is already in x_pad.
    # Each tap is stored straight into the bf16 LHS slab (no concatenate).
    t = 0
    for kh in range(3):
        qh, rh = divmod(kh - 1, 2)
        for kw in range(3):
            qw, rw = divmod(kw - 1, 2)
            p = 2 * rh + rw
            a_ref[:, t * C:(t + 1) * C] = (
                x_bf[p, 1 + qh:1 + qh + H2, 1 + qw:1 + qw + W2, :]
                .reshape(H2 * W2, C))
            t += 1
    y1 = jnp.maximum(
        jnp.dot(a_ref[...], wc_ref[...], preferred_element_type=jnp.float32),
        0.0)
    # ReLU'd conv output stored as bf16 into the zero-bordered halo scratch.
    y1p_ref[1:H2 + 1, 1:W2 + 1, :] = y1.astype(jnp.bfloat16).reshape(H2, W2, C)

    # ---- ConvTranspose2d(C, C, k=4, s=2, p=1, bias=False) + ReLU: one fused
    # (H2*W2, 4*C) @ (4*C, C) matmul per output phase.  The 16 tap slices
    # collapse to 9 distinct (dh, dw) shifts of y1 -- load each view once.
    views = {}
    for dh in (-1, 0, 1):
        for dw in (-1, 0, 1):
            views[(dh, dw)] = (
                y1p_ref[1 + dh:1 + dh + H2, 1 + dw:1 + dw + W2, :]
                .reshape(H2 * W2, C))                    # bf16, no cast needed

    gamma = g_ref[...]                                   # (1, C) f32
    beta = b_ref[...]                                    # (1, C) f32
    inv_c = 1.0 / C

    phase_out = []
    for r in range(2):
        for s in range(2):
            p = 2 * r + s
            t = 0
            for _, dh in _CONVT_TERMS[r]:
                for _, dw in _CONVT_TERMS[s]:
                    a_ref[:, t * C:(t + 1) * C] = views[(dh, dw)]
                    t += 1
            x_sp = jnp.maximum(
                jnp.dot(a_ref[:, :4 * C], wt_ref[p],
                        preferred_element_type=jnp.float32), 0.0)

            # skip connection (pre-attention x) + LayerNorm over channels,
            # one-pass statistics (sum / sum-of-squares).
            v = x_pad[p, 1:, 1:, :].reshape(H2 * W2, C).astype(jnp.float32) + x_sp
            mu = jnp.sum(v, axis=-1, keepdims=True) * inv_c
            var = jnp.sum(v * v, axis=-1, keepdims=True) * inv_c - mu * mu
            out = (v - mu) * lax.rsqrt(var + eps) * gamma + beta
            if fold_lanes:
                phase_out.append(out)
            else:
                o_ref[p, :, :, :] = out.reshape(H2, W2, C)

    if fold_lanes:
        # one lane-dense (H2*W2, 4*C) store instead of 4 masked C-wide stores
        o_ref[0, :, :] = jnp.concatenate(phase_out, axis=-1)


# ------------------------------ wrapper ----------------------------------- #
def _vmem_limit_bytes():
    # Generation-aware VMEM budget: ~5/8 of physical (40 MiB on v7x's 64 MiB,
    # 80 MiB on the 128 MiB v5e/v6e parts), capped at 96 MiB.
    try:
        cap = pltpu.get_tpu_info().vmem_capacity_bytes
    except Exception:
        cap = 128 * 1024 * 1024
    return int(min(cap * 5 // 8, 96 * 1024 * 1024))


def adapter_layer(x_nhwc, params, *, eps=1e-5):
    """x_nhwc: (B, H, W, C) float32, H and W even. Returns (B, H, W, C) f32."""
    B, H, W, C = x_nhwc.shape
    H2, W2 = H // 2, W // 2
    hd = params["w_lin1"].shape[0]

    # space-to-depth to the phase layout + 1-px zero halo at the front of H/W,
    # cast to bf16 (transpose + pad + convert fuse into one XLA pass; halves
    # the kernel's input HBM->VMEM DMA).
    x_ph = (x_nhwc.astype(jnp.bfloat16)
            .reshape(B, H2, 2, W2, 2, C)
            .transpose(0, 2, 4, 1, 3, 5)
            .reshape(B * 4, H2, W2, C))
    x_ph = jnp.pad(x_ph, ((0, 0), (1, 0), (1, 0), (0, 0)))

    # weight repacking (glue): per-tap (Cin, Cout) blocks stacked along the
    # contraction dim; bf16 for the MXU (accumulation stays f32 in the kernel)
    w1 = params["w_lin1"].T.astype(jnp.float32)                 # (C, hd)
    w2 = params["w_lin2"].T.astype(jnp.float32)                 # (hd, C)
    wc = (jnp.transpose(params["w_conv"], (2, 3, 1, 0))         # (3,3,Cin,Cout)
          .reshape(9 * C, C).astype(jnp.bfloat16))              # (9*C, C)
    wt_taps = jnp.transpose(params["w_convt"], (2, 3, 0, 1))    # (4,4,Cin,Cout)
    blocks = []
    for r in range(2):
        for s in range(2):
            blocks.append(jnp.concatenate(
                [wt_taps[kh, kw]
                 for kh, _ in _CONVT_TERMS[r] for kw, _ in _CONVT_TERMS[s]],
                axis=0))                                        # (4*C, C)
    wt = jnp.stack(blocks, axis=0).astype(jnp.bfloat16)         # (4, 4*C, C)
    gamma = params["ln_gamma"].reshape(1, C).astype(jnp.float32)
    beta = params["ln_beta"].reshape(1, C).astype(jnp.float32)

    # lane-dense output slab when C alone is not a multiple of 128
    fold_lanes = (C % 128 != 0) and ((4 * C) % 128 == 0)
    if fold_lanes:
        out_shape = jax.ShapeDtypeStruct((B, H2 * W2, 4 * C), jnp.float32)
        out_spec = pl.BlockSpec((1, H2 * W2, 4 * C), lambda b: (b, 0, 0))
    else:
        out_shape = jax.ShapeDtypeStruct((B * 4, H2, W2, C), jnp.float32)
        out_spec = pl.BlockSpec((4, H2, W2, C), lambda b: (b, 0, 0, 0))

    kernel = functools.partial(_adapter_kernel, H2=H2, W2=W2, C=C, eps=eps,
                               fold_lanes=fold_lanes)

    # Constant-index operands are single-buffered: their block index never
    # changes across the batch grid, so a second pipeline buffer is pure waste.
    one_buf = pl.Buffered(1)

    out_ph = pl.pallas_call(
        kernel,
        out_shape=out_shape,
        grid=(B,),
        in_specs=[
            pl.BlockSpec((4, H2 + 1, W2 + 1, C), lambda b: (b, 0, 0, 0)),
            pl.BlockSpec((C, hd), lambda b: (0, 0), pipeline_mode=one_buf),
            pl.BlockSpec((hd, C), lambda b: (0, 0), pipeline_mode=one_buf),
            pl.BlockSpec((9 * C, C), lambda b: (0, 0), pipeline_mode=one_buf),
            pl.BlockSpec((4, 4 * C, C), lambda b: (0, 0, 0), pipeline_mode=one_buf),
            pl.BlockSpec((1, C), lambda b: (0, 0), pipeline_mode=one_buf),
            pl.BlockSpec((1, C), lambda b: (0, 0), pipeline_mode=one_buf),
        ],
        out_specs=out_spec,
        scratch_shapes=[
            pltpu.VMEM((H2 + 2, W2 + 2, C), jnp.bfloat16),   # y1 + zero halo
            pltpu.VMEM((H2 * W2, 9 * C), jnp.bfloat16),      # shared LHS slab
        ],
        compiler_params=pltpu.CompilerParams(
            dimension_semantics=("parallel",),   # batch sharded across TCs (v7x)
            vmem_limit_bytes=_vmem_limit_bytes()),
    )(x_ph, w1, w2, wc, wt, gamma, beta)

    # depth-to-space back to NHWC
    if fold_lanes:
        out = out_ph.reshape(B, H2, W2, 2, 2, C).transpose(0, 1, 3, 2, 4, 5)
    else:
        out = out_ph.reshape(B, 2, 2, H2, W2, C).transpose(0, 3, 1, 4, 2, 5)
    return out.reshape(B, H, W, C)


# --------------------- deterministic parameter init ----------------------- #
def init_params(key, embed_dim, mlp_ratio=0.25):
    C = embed_dim
    hd = int(C * mlp_ratio)
    k1, k2, k3, k4 = jax.random.split(key, 4)
    # kaiming_normal_(mode='fan_out', nonlinearity='relu'): std = sqrt(2/fan_out)
    w_lin1 = jax.random.normal(k1, (hd, C), jnp.float32) * jnp.sqrt(2.0 / hd)
    w_lin2 = jax.random.normal(k2, (C, hd), jnp.float32) * jnp.sqrt(2.0 / C)
    w_conv = jax.random.normal(k3, (C, C, 3, 3), jnp.float32) * jnp.sqrt(2.0 / (C * 9))
    w_convt = jax.random.normal(k4, (C, C, 4, 4), jnp.float32) * jnp.sqrt(2.0 / (C * 16))
    return dict(
        w_lin1=w_lin1, w_lin2=w_lin2, w_conv=w_conv, w_convt=w_convt,
        ln_gamma=jnp.ones((C,), jnp.float32), ln_beta=jnp.zeros((C,), jnp.float32),
    )


# --------------------------- pure-JAX reference ---------------------------- #
def adapter_ref(x_nhwc, params):
    x = jnp.transpose(x_nhwc, (0, 3, 1, 2))                  # NCHW
    pooled = jnp.mean(x, axis=(2, 3))                        # (B, C)
    h = jax.nn.relu(pooled @ params["w_lin1"].T)
    s = jax.nn.sigmoid(h @ params["w_lin2"].T)
    x_ch = x * s[:, :, None, None]
    y1 = jax.nn.relu(lax.conv_general_dilated(
        x_ch, params["w_conv"], (2, 2), ((1, 1), (1, 1)),
        dimension_numbers=("NCHW", "OIHW", "NCHW")))
    w_eq = jnp.flip(jnp.transpose(params["w_convt"], (1, 0, 2, 3)), axis=(2, 3))
    y2 = jax.nn.relu(lax.conv_general_dilated(
        y1, w_eq, (1, 1), ((2, 2), (2, 2)), lhs_dilation=(2, 2),
        dimension_numbers=("NCHW", "OIHW", "NCHW")))
    out = jnp.transpose(x + y2, (0, 2, 3, 1))                # NHWC
    mu = out.mean(-1, keepdims=True)
    var = ((out - mu) ** 2).mean(-1, keepdims=True)
    return (out - mu) / jnp.sqrt(var + 1e-5) * params["ln_gamma"] + params["ln_beta"]


if __name__ == "__main__":
    B, H, W, C = 2, 16, 16, 128                              # embed_dim = 128
    key = jax.random.PRNGKey(0)
    kx, kp = jax.random.split(key)
    x = jax.random.normal(kx, (B, H, W, C), jnp.float32)     # NHWC input
    params = init_params(kp, C)

    out = jax.block_until_ready(adapter_layer(x, params))
    assert out.shape == (B, H, W, C)

    # bf16 activations + bf16 MXU operands set the accuracy floor (~1e-2)
    ref = adapter_ref(x, params)
    np.testing.assert_allclose(np.asarray(out), np.asarray(ref),
                               atol=5e-2, rtol=5e-2)
    print("KERNEL_OK")
</pallas_src>

<mosaic_0001>
module attributes {stable_mosaic.version = 11 : i64} {
  func.func @_adapter_kernel(%arg0: i32, %arg1: memref<4x9x9x128xbf16, #tpu.memory_space<vmem>>, %arg2: memref<128x32xf32, #tpu.memory_space<vmem>>, %arg3: memref<32x128xf32, #tpu.memory_space<vmem>>, %arg4: memref<1152x128xbf16, #tpu.memory_space<vmem>>, %arg5: memref<4x512x128xbf16, #tpu.memory_space<vmem>>, %arg6: memref<1x128xf32, #tpu.memory_space<vmem>>, %arg7: memref<1x128xf32, #tpu.memory_space<vmem>>, %arg8: memref<4x8x8x128xf32, #tpu.memory_space<vmem>>, %arg9: memref<10x10x128xbf16, #tpu.memory_space<vmem>>, %arg10: memref<64x1152xbf16, #tpu.memory_space<vmem>>) attributes {dimension_semantics = [#tpu.dimension_semantics<parallel>], iteration_bounds = array<i64: 2>, scalar_prefetch = 0 : i64, scratch_operands = 2 : i64, tpu.core_type = #tpu.core_type<tc>, window_params = [{transform_indices = @transform_0, window_bounds = array<i64: 4, 9, 9, 128>}, {pipeline_mode = #tpu.pipeline_mode<synchronous>, transform_indices = @transform_1, window_bounds = array<i64: 128, 32>}, {pipeline_mode = #tpu.pipeline_mode<synchronous>, transform_indices = @transform_2, window_bounds = array<i64: 32, 128>}, {pipeline_mode = #tpu.pipeline_mode<synchronous>, transform_indices = @transform_3, window_bounds = array<i64: 1152, 128>}, {pipeline_mode = #tpu.pipeline_mode<synchronous>, transform_indices = @transform_4, window_bounds = array<i64: 4, 512, 128>}, {pipeline_mode = #tpu.pipeline_mode<synchronous>, transform_indices = @transform_5, window_bounds = array<i64: 1, 128>}, {pipeline_mode = #tpu.pipeline_mode<synchronous>, transform_indices = @transform_6, window_bounds = array<i64: 1, 128>}, {transform_indices = @transform_7, window_bounds = array<i64: 4, 8, 8, 128>}]} {
    %c0_i32 = arith.constant 0 : i32
    %0 = arith.cmpi eq, %arg0, %c0_i32 : i32
    %1 = arith.extui %0 : i1 to i32
    %c0_i32_0 = arith.constant 0 : i32
    %2 = arith.cmpi ne, %1, %c0_i32_0 : i32
    scf.if %2 {
      %cst_157 = arith.constant 0.000000e+00 : bf16
      %252 = vector.broadcast %cst_157 : bf16 to vector<10x10x128xbf16>
      %c0_158 = arith.constant 0 : index
      %c0_159 = arith.constant 0 : index
      %c0_160 = arith.constant 0 : index
      %253 = vector.load %arg9[%c0_158, %c0_159, %c0_160] : memref<10x10x128xbf16, #tpu.memory_space<vmem>>, vector<10x10x128xbf16>
      tpu.vector_store %arg9[%c0_158, %c0_159, %c0_160], %252 {strides = array<i32>} : memref<10x10x128xbf16, #tpu.memory_space<vmem>>, vector<10x10x128xbf16>,
    } else {
    }
    %c0 = arith.constant 0 : index
    %c0_1 = arith.constant 0 : index
    %c0_2 = arith.constant 0 : index
    %c0_3 = arith.constant 0 : index
    %3 = vector.load %arg1[%c0, %c0_1, %c0_2, %c0_3] : memref<4x9x9x128xbf16, #tpu.memory_space<vmem>>, vector<4x9x9x128xbf16>
    %cst = arith.constant 1.000000e+00 : bf16
    %4 = vector.broadcast %cst : bf16 to vector<1x324xbf16>
    %5 = vector.shape_cast %3 : vector<4x9x9x128xbf16> to vector<324x128xbf16>
    %cst_4 = arith.constant dense<0.000000e+00> : vector<1x128xf32>
    %6 = tpu.matmul %4, %5, %cst_4 {dimension_numbers = #tpu.dot_dimension_numbers<[1], [0], [0], [1], [0, 0, 1, 1], [], []>} : vector<1x324xbf16>, vector<324x128xbf16>, vector<1x128xf32> -> vector<1x128xf32>
    %cst_5 = arith.constant 3.906250e-03 : f32
    %7 = vector.broadcast %cst_5 : f32 to vector<1x128xf32>
    %8 = arith.mulf %6, %7 : vector<1x128xf32>
    %c0_6 = arith.constant 0 : index
    %c0_7 = arith.constant 0 : index
    %9 = vector.load %arg2[%c0_6, %c0_7] : memref<128x32xf32, #tpu.memory_space<vmem>>, vector<128x32xf32>
    %cst_8 = arith.constant dense<0.000000e+00> : vector<1x32xf32>
    %10 = tpu.matmul %8, %9, %cst_8 {dimension_numbers = #tpu.dot_dimension_numbers<[1], [0], [0], [1], [0, 0, 1, 1], [], []>} : vector<1x128xf32>, vector<128x32xf32>, vector<1x32xf32> -> vector<1x32xf32>
    %cst_9 = arith.constant 0.000000e+00 : f32
    %11 = vector.broadcast %cst_9 : f32 to vector<1x32xf32>
    %12 = arith.maximumf %10, %11 : vector<1x32xf32>
    %c0_10 = arith.constant 0 : index
    %c0_11 = arith.constant 0 : index
    %13 = vector.load %arg3[%c0_10, %c0_11] : memref<32x128xf32, #tpu.memory_space<vmem>>, vector<32x128xf32>
    %cst_12 = arith.constant dense<0.000000e+00> : vector<1x128xf32>
    %14 = tpu.matmul %12, %13, %cst_12 {dimension_numbers = #tpu.dot_dimension_numbers<[1], [0], [0], [1], [0, 0, 1, 1], [], []>} : vector<1x32xf32>, vector<32x128xf32>, vector<1x128xf32> -> vector<1x128xf32>
    %15 = arith.negf %14 : vector<1x128xf32>
    %16 = math.exp %15 : vector<1x128xf32>
    %cst_13 = arith.constant 1.000000e+00 : f32
    %17 = vector.broadcast %cst_13 : f32 to vector<1x128xf32>
    %18 = arith.addf %17, %16 : vector<1x128xf32>
    %19 = arith.divf %17, %18 : vector<1x128xf32>
    %20 = arith.truncf %19 : vector<1x128xf32> to vector<1x128xbf16>
    %21 = vector.shape_cast %20 : vector<1x128xbf16> to vector<1x1x1x128xbf16>
    %22 = vector.broadcast %21 : vector<1x1x1x128xbf16> to vector<4x9x9x128xbf16>
    %23 = arith.mulf %3, %22 : vector<4x9x9x128xbf16>
    %24 = vector.extract_strided_slice %23 {offsets = [3, 0, 0, 0], sizes = [1, 8, 8, 128], strides = [1, 1, 1, 1]} : vector<4x9x9x128xbf16> to vector<1x8x8x128xbf16>
    %25 = vector.shape_cast %24 : vector<1x8x8x128xbf16> to vector<8x8x128xbf16>
    %26 = vector.shape_cast %25 : vector<8x8x128xbf16> to vector<64x128xbf16>
    %c0_14 = arith.constant 0 : index
    %c0_15 = arith.constant 0 : index
    %27 = vector.load %arg10[%c0_14, %c0_15] : memref<64x1152xbf16, #tpu.memory_space<vmem>>, vector<64x128xbf16>
    tpu.vector_store %arg10[%c0_14, %c0_15], %26 {strides = array<i32>} : memref<64x1152xbf16, #tpu.memory_space<vmem>>, vector<64x128xbf16>,
    %28 = vector.extract_strided_slice %23 {offsets = [2, 0, 1, 0], sizes = [1, 8, 8, 128], strides = [1, 1, 1, 1]} : vector<4x9x9x128xbf16> to vector<1x8x8x128xbf16>
    %29 = vector.shape_cast %28 : vector<1x8x8x128xbf16> to vector<8x8x128xbf16>
    %30 = vector.shape_cast %29 : vector<8x8x128xbf16> to vector<64x128xbf16>
    %c0_16 = arith.constant 0 : index
    %c128 = arith.constant 128 : index
    %31 = vector.load %arg10[%c0_16, %c128] : memref<64x1152xbf16, #tpu.memory_space<vmem>>, vector<64x128xbf16>
    tpu.vector_store %arg10[%c0_16, %c128], %30 {strides = array<i32>} : memref<64x1152xbf16, #tpu.memory_space<vmem>>, vector<64x128xbf16>,
    %32 = vector.extract_strided_slice %23 {offsets = [3, 0, 1, 0], sizes = [1, 8, 8, 128], strides = [1, 1, 1, 1]} : vector<4x9x9x128xbf16> to vector<1x8x8x128xbf16>
    %33 = vector.shape_cast %32 : vector<1x8x8x128xbf16> to vector<8x8x128xbf16>
    %34 = vector.shape_cast %33 : vector<8x8x128xbf16> to vector<64x128xbf16>
    %c0_17 = arith.constant 0 : index
    %c256 = arith.constant 256 : index
    %35 = vector.load %arg10[%c0_17, %c256] : memref<64x1152xbf16, #tpu.memory_space<vmem>>, vector<64x128xbf16>
    tpu.vector_store %arg10[%c0_17, %c256], %34 {strides = array<i32>} : memref<64x1152xbf16, #tpu.memory_space<vmem>>, vector<64x128xbf16>,
    %36 = vector.extract_strided_slice %23 {offsets = [1, 1, 0, 0], sizes = [1, 8, 8, 128], strides = [1, 1, 1, 1]} : vector<4x9x9x128xbf16> to vector<1x8x8x128xbf16>
    %37 = vector.shape_cast %36 : vector<1x8x8x128xbf16> to vector<8x8x128xbf16>
    %38 = vector.shape_cast %37 : vector<8x8x128xbf16> to vector<64x128xbf16>
    %c0_18 = arith.constant 0 : index
    %c384 = arith.constant 384 : index
    %39 = vector.load %arg10[%c0_18, %c384] : memref<64x1152xbf16, #tpu.memory_space<vmem>>, vector<64x128xbf16>
    tpu.vector_store %arg10[%c0_18, %c384], %38 {strides = array<i32>} : memref<64x1152xbf16, #tpu.memory_space<vmem>>, vector<64x128xbf16>,
    %40 = vector.extract_strided_slice %23 {offsets = [0, 1, 1, 0], sizes = [1, 8, 8, 128], strides = [1, 1, 1, 1]} : vector<4x9x9x128xbf16> to vector<1x8x8x128xbf16>
    %41 = vector.shape_cast %40 : vector<1x8x8x128xbf16> to vector<8x8x128xbf16>
    %42 = vector.shape_cast %41 : vector<8x8x128xbf16> to vector<64x128xbf16>
    %c0_19 = arith.constant 0 : index
    %c512 = arith.constant 512 : index
    %43 = vector.load %arg10[%c0_19, %c512] : memref<64x1152xbf16, #tpu.memory_space<vmem>>, vector<64x128xbf16>
    tpu.vector_store %arg10[%c0_19, %c512], %42 {strides = array<i32>} : memref<64x1152xbf16, #tpu.memory_space<vmem>>, vector<64x128xbf16>,
    %44 = vector.extract_strided_slice %23 {offsets = [1, 1, 1, 0], sizes = [1, 8, 8, 128], strides = [1, 1, 1, 1]} : vector<4x9x9x128xbf16> to vector<1x8x8x128xbf16>
    %45 = vector.shape_cast %44 : vector<1x8x8x128xbf16> to vector<8x8x128xbf16>
    %46 = vector.shape_cast %45 : vector<8x8x128xbf16> to vector<64x128xbf16>
    %c0_20 = arith.constant 0 : index
    %c640 = arith.constant 640 : index
    %47 = vector.load %arg10[%c0_20, %c640] : memref<64x1152xbf16, #tpu.memory_space<vmem>>, vector<64x128xbf16>
    tpu.vector_store %arg10[%c0_20, %c640], %46 {strides = array<i32>} : memref<64x1152xbf16, #tpu.memory_space<vmem>>, vector<64x128xbf16>,
    %48 = vector.extract_strided_slice %23 {offsets = [3, 1, 0, 0], sizes = [1, 8, 8, 128], strides = [1, 1, 1, 1]} : vector<4x9x9x128xbf16> to vector<1x8x8x128xbf16>
    %49 = vector.shape_cast %48 : vector<1x8x8x128xbf16> to vector<8x8x128xbf16>
    %50 = vector.shape_cast %49 : vector<8x8x128xbf16> to vector<64x128xbf16>
    %c0_21 = arith.constant 0 : index
    %c768 = arith.constant 768 : index
    %51 = vector.load %arg10[%c0_21, %c768] : memref<64x1152xbf16, #tpu.memory_space<vmem>>, vector<64x128xbf16>
    tpu.vector_store %arg10[%c0_21, %c768], %50 {strides = array<i32>} : memref<64x1152xbf16, #tpu.memory_space<vmem>>, vector<64x128xbf16>,
    %52 = vector.extract_strided_slice %23 {offsets = [2, 1, 1, 0], sizes = [1, 8, 8, 128], strides = [1, 1, 1, 1]} : vector<4x9x9x128xbf16> to vector<1x8x8x128xbf16>
    %53 = vector.shape_cast %52 : vector<1x8x8x128xbf16> to vector<8x8x128xbf16>
    %54 = vector.shape_cast %53 : vector<8x8x128xbf16> to vector<64x128xbf16>
    %c0_22 = arith.constant 0 : index
    %c896 = arith.constant 896 : index
    %55 = vector.load %arg10[%c0_22, %c896] : memref<64x1152xbf16, #tpu.memory_space<vmem>>, vector<64x128xbf16>
    tpu.vector_store %arg10[%c0_22, %c896], %54 {strides = array<i32>} : memref<64x1152xbf16, #tpu.memory_space<vmem>>, vector<64x128xbf16>,
    %56 = vector.extract_strided_slice %23 {offsets = [3, 1, 1, 0], sizes = [1, 8, 8, 128], strides = [1, 1, 1, 1]} : vector<4x9x9x128xbf16> to vector<1x8x8x128xbf16>
    %57 = vector.shape_cast %56 : vector<1x8x8x128xbf16> to vector<8x8x128xbf16>
    %58 = vector.shape_cast %57 : vector<8x8x128xbf16> to vector<64x128xbf16>
    %c0_23 = arith.constant 0 : index
    %c1024 = arith.constant 1024 : index
    %59 = vector.load %arg10[%c0_23, %c1024] : memref<64x1152xbf16, #tpu.memory_space<vmem>>, vector<64x128xbf16>
    tpu.vector_store %arg10[%c0_23, %c1024], %58 {strides = array<i32>} : memref<64x1152xbf16, #tpu.memory_space<vmem>>, vector<64x128xbf16>,
    %c0_24 = arith.constant 0 : index
    %c0_25 = arith.constant 0 : index
    %60 = vector.load %arg10[%c0_24, %c0_25] : memref<64x1152xbf16, #tpu.memory_space<vmem>>, vector<64x1152xbf16>
    %c0_26 = arith.constant 0 : index
    %c0_27 = arith.constant 0 : index
    %61 = vector.load %arg4[%c0_26, %c0_27] : memref<1152x128xbf16, #tpu.memory_space<vmem>>, vector<1152x128xbf16>
    %cst_28 = arith.constant dense<0.000000e+00> : vector<64x128xf32>
    %62 = tpu.matmul %60, %61, %cst_28 {dimension_numbers = #tpu.dot_dimension_numbers<[1], [0], [0], [1], [0, 0, 1, 1], [], []>} : vector<64x1152xbf16>, vector<1152x128xbf16>, vector<64x128xf32> -> vector<64x128xf32>
    %cst_29 = arith.constant 0.000000e+00 : f32
    %63 = vector.broadcast %cst_29 : f32 to vector<64x128xf32>
    %64 = arith.maximumf %62, %63 : vector<64x128xf32>
    %65 = arith.truncf %64 : vector<64x128xf32> to vector<64x128xbf16>
    %66 = vector.shape_cast %65 : vector<64x128xbf16> to vector<8x8x128xbf16>
    %c1 = arith.constant 1 : index
    %c1_30 = arith.constant 1 : index
    %c0_31 = arith.constant 0 : index
    %67 = vector.load %arg9[%c1, %c1_30, %c0_31] : memref<10x10x128xbf16, #tpu.memory_space<vmem>>, vector<8x8x128xbf16>
    tpu.vector_store %arg9[%c1, %c1_30, %c0_31], %66 {strides = array<i32>} : memref<10x10x128xbf16, #tpu.memory_space<vmem>>, vector<8x8x128xbf16>,
    %c0_32 = arith.constant 0 : index
    %c0_33 = arith.constant 0 : index
    %c0_34 = arith.constant 0 : index
    %68 = vector.load %arg9[%c0_32, %c0_33, %c0_34] : memref<10x10x128xbf16, #tpu.memory_space<vmem>>, vector<8x8x128xbf16>
    %69 = vector.shape_cast %68 : vector<8x8x128xbf16> to vector<64x128xbf16>
    %c0_35 = arith.constant 0 : index
    %c1_36 = arith.constant 1 : index
    %c0_37 = arith.constant 0 : index
    %70 = vector.load %arg9[%c0_35, %c1_36, %c0_37] : memref<10x10x128xbf16, #tpu.memory_space<vmem>>, vector<8x8x128xbf16>
    %71 = vector.shape_cast %70 : vector<8x8x128xbf16> to vector<64x128xbf16>
    %c0_38 = arith.constant 0 : index
    %c2 = arith.constant 2 : index
    %c0_39 = arith.constant 0 : index
    %72 = vector.load %arg9[%c0_38, %c2, %c0_39] : memref<10x10x128xbf16, #tpu.memory_space<vmem>>, vector<8x8x128xbf16>
    %73 = vector.shape_cast %72 : vector<8x8x128xbf16> to vector<64x128xbf16>
    %c1_40 = arith.constant 1 : index
    %c0_41 = arith.constant 0 : index
    %c0_42 = arith.constant 0 : index
    %74 = vector.load %arg9[%c1_40, %c0_41, %c0_42] : memref<10x10x128xbf16, #tpu.memory_space<vmem>>, vector<8x8x128xbf16>
    %75 = vector.shape_cast %74 : vector<8x8x128xbf16> to vector<64x128xbf16>
    %c1_43 = arith.constant 1 : index
    %c1_44 = arith.constant 1 : index
    %c0_45 = arith.constant 0 : index
    %76 = vector.load %arg9[%c1_43, %c1_44, %c0_45] : memref<10x10x128xbf16, #tpu.memory_space<vmem>>, vector<8x8x128xbf16>
    %77 = vector.shape_cast %76 : vector<8x8x128xbf16> to vector<64x128xbf16>
    %c1_46 = arith.constant 1 : index
    %c2_47 = arith.constant 2 : index
    %c0_48 = arith.constant 0 : index
    %78 = vector.load %arg9[%c1_46, %c2_47, %c0_48] : memref<10x10x128xbf16, #tpu.memory_space<vmem>>, vector<8x8x128xbf16>
    %79 = vector.shape_cast %78 : vector<8x8x128xbf16> to vector<64x128xbf16>
    %c2_49 = arith.constant 2 : index
    %c0_50 = arith.constant 0 : index
    %c0_51 = arith.constant 0 : index
    %80 = vector.load %arg9[%c2_49, %c0_50, %c0_51] : memref<10x10x128xbf16, #tpu.memory_space<vmem>>, vector<8x8x128xbf16>
    %81 = vector.shape_cast %80 : vector<8x8x128xbf16> to vector<64x128xbf16>
    %c2_52 = arith.constant 2 : index
    %c1_53 = arith.constant 1 : index
    %c0_54 = arith.constant 0 : index
    %82 = vector.load %arg9[%c2_52, %c1_53, %c0_54] : memref<10x10x128xbf16, #tpu.memory_space<vmem>>, vector<8x8x128xbf16>
    %83 = vector.shape_cast %82 : vector<8x8x128xbf16> to vector<64x128xbf16>
    %c2_55 = arith.constant 2 : index
    %c2_56 = arith.constant 2 : index
    %c0_57 = arith.constant 0 : index
    %84 = vector.load %arg9[%c2_55, %c2_56, %c0_57] : memref<10x10x128xbf16, #tpu.memory_space<vmem>>, vector<8x8x128xbf16>
    %85 = vector.shape_cast %84 : vector<8x8x128xbf16> to vector<64x128xbf16>
    %c0_58 = arith.constant 0 : index
    %c0_59 = arith.constant 0 : index
    %86 = vector.load %arg6[%c0_58, %c0_59] : memref<1x128xf32, #tpu.memory_space<vmem>>, vector<1x128xf32>
    %c0_60 = arith.constant 0 : index
    %c0_61 = arith.constant 0 : index
    %87 = vector.load %arg7[%c0_60, %c0_61] : memref<1x128xf32, #tpu.memory_space<vmem>>, vector<1x128xf32>
    %c0_62 = arith.constant 0 : index
    %c0_63 = arith.constant 0 : index
    %88 = vector.load %arg10[%c0_62, %c0_63] : memref<64x1152xbf16, #tpu.memory_space<vmem>>, vector<64x128xbf16>
    tpu.vector_store %arg10[%c0_62, %c0_63], %77 {strides = array<i32>} : memref<64x1152xbf16, #tpu.memory_space<vmem>>, vector<64x128xbf16>,
    %c0_64 = arith.constant 0 : index
    %c128_65 = arith.constant 128 : index
    %89 = vector.load %arg10[%c0_64, %c128_65] : memref<64x1152xbf16, #tpu.memory_space<vmem>>, vector<64x128xbf16>
    tpu.vector_store %arg10[%c0_64, %c128_65], %75 {strides = array<i32>} : memref<64x1152xbf16, #tpu.memory_space<vmem>>, vector<64x128xbf16>,
    %c0_66 = arith.constant 0 : index
    %c256_67 = arith.constant 256 : index
    %90 = vector.load %arg10[%c0_66, %c256_67] : memref<64x1152xbf16, #tpu.memory_space<vmem>>, vector<64x128xbf16>
    tpu.vector_store %arg10[%c0_66, %c256_67], %71 {strides = array<i32>} : memref<64x1152xbf16, #tpu.memory_space<vmem>>, vector<64x128xbf16>,
    %c0_68 = arith.constant 0 : index
    %c384_69 = arith.constant 384 : index
    %91 = vector.load %arg10[%c0_68, %c384_69] : memref<64x1152xbf16, #tpu.memory_space<vmem>>, vector<64x128xbf16>
    tpu.vector_store %arg10[%c0_68, %c384_69], %69 {strides = array<i32>} : memref<64x1152xbf16, #tpu.memory_space<vmem>>, vector<64x128xbf16>,
    %c0_70 = arith.constant 0 : index
    %c0_71 = arith.constant 0 : index
    %92 = vector.load %arg10[%c0_70, %c0_71] : memref<64x1152xbf16, #tpu.memory_space<vmem>>, vector<64x512xbf16>
    %c0_72 = arith.constant 0 : index
    %c0_73 = arith.constant 0 : index
    %c0_74 = arith.constant 0 : index
    %93 = vector.load %arg5[%c0_72, %c0_73, %c0_74] : memref<4x512x128xbf16, #tpu.memory_space<vmem>>, vector<1x512x128xbf16>
    %94 = vector.shape_cast %93 : vector<1x512x128xbf16> to vector<512x128xbf16>
    %cst_75 = arith.constant dense<0.000000e+00> : vector<64x128xf32>
    %95 = tpu.matmul %92, %94, %cst_75 {dimension_numbers = #tpu.dot_dimension_numbers<[1], [0], [0], [1], [0, 0, 1, 1], [], []>} : vector<64x512xbf16>, vector<512x128xbf16>, vector<64x128xf32> -> vector<64x128xf32>
    %cst_76 = arith.constant 0.000000e+00 : f32
    %96 = vector.broadcast %cst_76 : f32 to vector<64x128xf32>
    %97 = arith.maximumf %95, %96 : vector<64x128xf32>
    %98 = vector.extract_strided_slice %3 {offsets = [0, 1, 1, 0], sizes = [1, 8, 8, 128], strides = [1, 1, 1, 1]} : vector<4x9x9x128xbf16> to vector<1x8x8x128xbf16>
    %99 = vector.shape_cast %98 : vector<1x8x8x128xbf16> to vector<8x8x128xbf16>
    %100 = vector.shape_cast %99 : vector<8x8x128xbf16> to vector<64x128xbf16>
    %101 = arith.extf %100 : vector<64x128xbf16> to vector<64x128xf32>
    %102 = arith.addf %101, %97 : vector<64x128xf32>
    %cst_77 = arith.constant dense<0.000000e+00> : vector<64xf32>
    %103 = vector.multi_reduction <add>, %102, %cst_77 [1] : vector<64x128xf32> to vector<64xf32>
    %104 = vector.shape_cast %103 : vector<64xf32> to vector<64x1xf32>
    %cst_78 = arith.constant 7.812500e-03 : f32
    %105 = vector.broadcast %cst_78 : f32 to vector<64x1xf32>
    %106 = arith.mulf %104, %105 : vector<64x1xf32>
    %107 = arith.mulf %102, %102 : vector<64x128xf32>
    %cst_79 = arith.constant dense<0.000000e+00> : vector<64xf32>
    %108 = vector.multi_reduction <add>, %107, %cst_79 [1] : vector<64x128xf32> to vector<64xf32>
    %109 = vector.shape_cast %108 : vector<64xf32> to vector<64x1xf32>
    %cst_80 = arith.constant 7.812500e-03 : f32
    %110 = vector.broadcast %cst_80 : f32 to vector<64x1xf32>
    %111 = arith.mulf %109, %110 : vector<64x1xf32>
    %112 = arith.mulf %106, %106 : vector<64x1xf32>
    %113 = arith.subf %111, %112 : vector<64x1xf32>
    %114 = vector.broadcast %106 : vector<64x1xf32> to vector<64x128xf32>
    %115 = arith.subf %102, %114 : vector<64x128xf32>
    %cst_81 = arith.constant 9.99999974E-6 : f32
    %116 = vector.broadcast %cst_81 : f32 to vector<64x1xf32>
    %117 = arith.addf %113, %116 : vector<64x1xf32>
    %118 = math.rsqrt %117 : vector<64x1xf32>
    %119 = vector.broadcast %118 : vector<64x1xf32> to vector<64x128xf32>
    %120 = arith.mulf %115, %119 : vector<64x128xf32>
    %121 = vector.broadcast %86 : vector<1x128xf32> to vector<64x128xf32>
    %122 = arith.mulf %120, %121 : vector<64x128xf32>
    %123 = vector.broadcast %87 : vector<1x128xf32> to vector<64x128xf32>
    %124 = arith.addf %122, %123 : vector<64x128xf32>
    %125 = vector.shape_cast %124 : vector<64x128xf32> to vector<8x8x128xf32>
    %c0_82 = arith.constant 0 : index
    %c0_83 = arith.constant 0 : index
    %c0_84 = arith.constant 0 : index
    %c0_85 = arith.constant 0 : index
    %126 = vector.load %arg8[%c0_82, %c0_83, %c0_84, %c0_85] : memref<4x8x8x128xf32, #tpu.memory_space<vmem>>, vector<1x8x8x128xf32>
    %127 = vector.shape_cast %126 : vector<1x8x8x128xf32> to vector<8x8x128xf32>
    %128 = vector.shape_cast %125 : vector<8x8x128xf32> to vector<1x8x8x128xf32>
    tpu.vector_store %arg8[%c0_82, %c0_83, %c0_84, %c0_85], %128 {strides = array<i32>} : memref<4x8x8x128xf32, #tpu.memory_space<vmem>>, vector<1x8x8x128xf32>,
    %c0_86 = arith.constant 0 : index
    %c0_87 = arith.constant 0 : index
    %129 = vector.load %arg10[%c0_86, %c0_87] : memref<64x1152xbf16, #tpu.memory_space<vmem>>, vector<64x128xbf16>
    tpu.vector_store %arg10[%c0_86, %c0_87], %79 {strides = array<i32>} : memref<64x1152xbf16, #tpu.memory_space<vmem>>, vector<64x128xbf16>,
    %c0_88 = arith.constant 0 : index
    %c128_89 = arith.constant 128 : index
    %130 = vector.load %arg10[%c0_88, %c128_89] : memref<64x1152xbf16, #tpu.memory_space<vmem>>, vector<64x128xbf16>
    tpu.vector_store %arg10[%c0_88, %c128_89], %77 {strides = array<i32>} : memref<64x1152xbf16, #tpu.memory_space<vmem>>, vector<64x128xbf16>,
    %c0_90 = arith.constant 0 : index
    %c256_91 = arith.constant 256 : index
    %131 = vector.load %arg10[%c0_90, %c256_91] : memref<64x1152xbf16, #tpu.memory_space<vmem>>, vector<64x128xbf16>
    tpu.vector_store %arg10[%c0_90, %c256_91], %73 {strides = array<i32>} : memref<64x1152xbf16, #tpu.memory_space<vmem>>, vector<64x128xbf16>,
    %c0_92 = arith.constant 0 : index
    %c384_93 = arith.constant 384 : index
    %132 = vector.load %arg10[%c0_92, %c384_93] : memref<64x1152xbf16, #tpu.memory_space<vmem>>, vector<64x128xbf16>
    tpu.vector_store %arg10[%c0_92, %c384_93], %71 {strides = array<i32>} : memref<64x1152xbf16, #tpu.memory_space<vmem>>, vector<64x128xbf16>,
    %c0_94 = arith.constant 0 : index
    %c0_95 = arith.constant 0 : index
    %133 = vector.load %arg10[%c0_94, %c0_95] : memref<64x1152xbf16, #tpu.memory_space<vmem>>, vector<64x512xbf16>
    %c1_96 = arith.constant 1 : index
    %c0_97 = arith.constant 0 : index
    %c0_98 = arith.constant 0 : index
    %134 = vector.load %arg5[%c1_96, %c0_97, %c0_98] : memref<4x512x128xbf16, #tpu.memory_space<vmem>>, vector<1x512x128xbf16>
    %135 = vector.shape_cast %134 : vector<1x512x128xbf16> to vector<512x128xbf16>
    %cst_99 = arith.constant dense<0.000000e+00> : vector<64x128xf32>
    %136 = tpu.matmul %133, %135, %cst_99 {dimension_numbers = #tpu.dot_dimension_numbers<[1], [0], [0], [1], [0, 0, 1, 1], [], []>} : vector<64x512xbf16>, vector<512x128xbf16>, vector<64x128xf32> -> vector<64x128xf32>
    %cst_100 = arith.constant 0.000000e+00 : f32
    %137 = vector.broadcast %cst_100 : f32 to vector<64x128xf32>
    %138 = arith.maximumf %136, %137 : vector<64x128xf32>
    %139 = vector.extract_strided_slice %3 {offsets = [1, 1, 1, 0], sizes = [1, 8, 8, 128], strides = [1, 1, 1, 1]} : vector<4x9x9x128xbf16> to vector<1x8x8x128xbf16>
    %140 = vector.shape_cast %139 : vector<1x8x8x128xbf16> to vector<8x8x128xbf16>
    %141 = vector.shape_cast %140 : vector<8x8x128xbf16> to vector<64x128xbf16>
    %142 = arith.extf %141 : vector<64x128xbf16> to vector<64x128xf32>
    %143 = arith.addf %142, %138 : vector<64x128xf32>
    %cst_101 = arith.constant dense<0.000000e+00> : vector<64xf32>
    %144 = vector.multi_reduction <add>, %143, %cst_101 [1] : vector<64x128xf32> to vector<64xf32>
    %145 = vector.shape_cast %144 : vector<64xf32> to vector<64x1xf32>
    %cst_102 = arith.constant 7.812500e-03 : f32
    %146 = vector.broadcast %cst_102 : f32 to vector<64x1xf32>
    %147 = arith.mulf %145, %146 : vector<64x1xf32>
    %148 = arith.mulf %143, %143 : vector<64x128xf32>
    %cst_103 = arith.constant dense<0.000000e+00> : vector<64xf32>
    %149 = vector.multi_reduction <add>, %148, %cst_103 [1] : vector<64x128xf32> to vector<64xf32>
    %150 = vector.shape_cast %149 : vector<64xf32> to vector<64x1xf32>
    %cst_104 = arith.constant 7.812500e-03 : f32
    %151 = vector.broadcast %cst_104 : f32 to vector<64x1xf32>
    %152 = arith.mulf %150, %151 : vector<64x1xf32>
    %153 = arith.mulf %147, %147 : vector<64x1xf32>
    %154 = arith.subf %152, %153 : vector<64x1xf32>
    %155 = vector.broadcast %147 : vector<64x1xf32> to vector<64x128xf32>
    %156 = arith.subf %143, %155 : vector<64x128xf32>
    %cst_105 = arith.constant 9.99999974E-6 : f32
    %157 = vector.broadcast %cst_105 : f32 to vector<64x1xf32>
    %158 = arith.addf %154, %157 : vector<64x1xf32>
    %159 = math.rsqrt %158 : vector<64x1xf32>
    %160 = vector.broadcast %159 : vector<64x1xf32> to vector<64x128xf32>
    %161 = arith.mulf %156, %160 : vector<64x128xf32>
    %162 = vector.broadcast %86 : vector<1x128xf32> to vector<64x128xf32>
    %163 = arith.mulf %161, %162 : vector<64x128xf32>
    %164 = vector.broadcast %87 : vector<1x128xf32> to vector<64x128xf32>
    %165 = arith.addf %163, %164 : vector<64x128xf32>
    %166 = vector.shape_cast %165 : vector<64x128xf32> to vector<8x8x128xf32>
    %c1_106 = arith.constant 1 : index
    %c0_107 = arith.constant 0 : index
    %c0_108 = arith.constant 0 : index
    %c0_109 = arith.constant 0 : index
    %167 = vector.load %arg8[%c1_106, %c0_107, %c0_108, %c0_109] : memref<4x8x8x128xf32, #tpu.memory_space<vmem>>, vector<1x8x8x128xf32>
    %168 = vector.shape_cast %167 : vector<1x8x8x128xf32> to vector<8x8x128xf32>
    %169 = vector.shape_cast %166 : vector<8x8x128xf32> to vector<1x8x8x128xf32>
    tpu.vector_store %arg8[%c1_106, %c0_107, %c0_108, %c0_109], %169 {strides = array<i32>} : memref<4x8x8x128xf32, #tpu.memory_space<vmem>>, vector<1x8x8x128xf32>,
    %c0_110 = arith.constant 0 : index
    %c0_111 = arith.constant 0 : index
    %170 = vector.load %arg10[%c0_110, %c0_111] : memref<64x1152xbf16, #tpu.memory_space<vmem>>, vector<64x128xbf16>
    tpu.vector_store %arg10[%c0_110, %c0_111], %83 {strides = array<i32>} : memref<64x1152xbf16, #tpu.memory_space<vmem>>, vector<64x128xbf16>,
    %c0_112 = arith.constant 0 : index
    %c128_113 = arith.constant 128 : index
    %171 = vector.load %arg10[%c0_112, %c128_113] : memref<64x1152xbf16, #tpu.memory_space<vmem>>, vector<64x128xbf16>
    tpu.vector_store %arg10[%c0_112, %c128_113], %81 {strides = array<i32>} : memref<64x1152xbf16, #tpu.memory_space<vmem>>, vector<64x128xbf16>,
    %c0_114 = arith.constant 0 : index
    %c256_115 = arith.constant 256 : index
    %172 = vector.load %arg10[%c0_114, %c256_115] : memref<64x1152xbf16, #tpu.memory_space<vmem>>, vector<64x128xbf16>
    tpu.vector_store %arg10[%c0_114, %c256_115], %77 {strides = array<i32>} : memref<64x1152xbf16, #tpu.memory_space<vmem>>, vector<64x128xbf16>,
    %c0_116 = arith.constant 0 : index
    %c384_117 = arith.constant 384 : index
    %173 = vector.load %arg10[%c0_116, %c384_117] : memref<64x1152xbf16, #tpu.memory_space<vmem>>, vector<64x128xbf16>
    tpu.vector_store %arg10[%c0_116, %c384_117], %75 {strides = array<i32>} : memref<64x1152xbf16, #tpu.memory_space<vmem>>, vector<64x128xbf16>,
    %c0_118 = arith.constant 0 : index
    %c0_119 = arith.constant 0 : index
    %174 = vector.load %arg10[%c0_118, %c0_119] : memref<64x1152xbf16, #tpu.memory_space<vmem>>, vector<64x512xbf16>
    %c2_120 = arith.constant 2 : index
    %c0_121 = arith.constant 0 : index
    %c0_122 = arith.constant 0 : index
    %175 = vector.load %arg5[%c2_120, %c0_121, %c0_122] : memref<4x512x128xbf16, #tpu.memory_space<vmem>>, vector<1x512x128xbf16>
    %176 = vector.shape_cast %175 : vector<1x512x128xbf16> to vector<512x128xbf16>
    %cst_123 = arith.constant dense<0.000000e+00> : vector<64x128xf32>
    %177 = tpu.matmul %174, %176, %cst_123 {dimension_numbers = #tpu.dot_dimension_numbers<[1], [0], [0], [1], [0, 0, 1, 1], [], []>} : vector<64x512xbf16>, vector<512x128xbf16>, vector<64x128xf32> -> vector<64x128xf32>
    %cst_124 = arith.constant 0.000000e+00 : f32
    %178 = vector.broadcast %cst_124 : f32 to vector<64x128xf32>
    %179 = arith.maximumf %177, %178 : vector<64x128xf32>
    %180 = vector.extract_strided_slice %3 {offsets = [2, 1, 1, 0], sizes = [1, 8, 8, 128], strides = [1, 1, 1, 1]} : vector<4x9x9x128xbf16> to vector<1x8x8x128xbf16>
    %181 = vector.shape_cast %180 : vector<1x8x8x128xbf16> to vector<8x8x128xbf16>
    %182 = vector.shape_cast %181 : vector<8x8x128xbf16> to vector<64x128xbf16>
    %183 = arith.extf %182 : vector<64x128xbf16> to vector<64x128xf32>
    %184 = arith.addf %183, %179 : vector<64x128xf32>
    %cst_125 = arith.constant dense<0.000000e+00> : vector<64xf32>
    %185 = vector.multi_reduction <add>, %184, %cst_125 [1] : vector<64x128xf32> to vector<64xf32>
    %186 = vector.shape_cast %185 : vector<64xf32> to vector<64x1xf32>
    %cst_126 = arith.constant 7.812500e-03 : f32
    %187 = vector.broadcast %cst_126 : f32 to vector<64x1xf32>
    %188 = arith.mulf %186, %187 : vector<64x1xf32>
    %189 = arith.mulf %184, %184 : vector<64x128xf32>
    %cst_127 = arith.constant dense<0.000000e+00> : vector<64xf32>
    %190 = vector.multi_reduction <add>, %189, %cst_127 [1] : vector<64x128xf32> to vector<64xf32>
    %191 = vector.shape_cast %190 : vector<64xf32> to vector<64x1xf32>
    %cst_128 = arith.constant 7.812500e-03 : f32
    %192 = vector.broadcast %cst_128 : f32 to vector<64x1xf32>
    %193 = arith.mulf %191, %192 : vector<64x1xf32>
    %194 = arith.mulf %188, %188 : vector<64x1xf32>
    %195 = arith.subf %193, %194 : vector<64x1xf32>
    %196 = vector.broadcast %188 : vector<64x1xf32> to vector<64x128xf32>
    %197 = arith.subf %184, %196 : vector<64x128xf32>
    %cst_129 = arith.constant 9.99999974E-6 : f32
    %198 = vector.broadcast %cst_129 : f32 to vector<64x1xf32>
    %199 = arith.addf %195, %198 : vector<64x1xf32>
    %200 = math.rsqrt %199 : vector<64x1xf32>
    %201 = vector.broadcast %200 : vector<64x1xf32> to vector<64x128xf32>
    %202 = arith.mulf %197, %201 : vector<64x128xf32>
    %203 = vector.broadcast %86 : vector<1x128xf32> to vector<64x128xf32>
    %204 = arith.mulf %202, %203 : vector<64x128xf32>
    %205 = vector.broadcast %87 : vector<1x128xf32> to vector<64x128xf32>
    %206 = arith.addf %204, %205 : vector<64x128xf32>
    %207 = vector.shape_cast %206 : vector<64x128xf32> to vector<8x8x128xf32>
    %c2_130 = arith.constant 2 : index
    %c0_131 = arith.constant 0 : index
    %c0_132 = arith.constant 0 : index
    %c0_133 = arith.constant 0 : index
    %208 = vector.load %arg8[%c2_130, %c0_131, %c0_132, %c0_133] : memref<4x8x8x128xf32, #tpu.memory_space<vmem>>, vector<1x8x8x128xf32>
    %209 = vector.shape_cast %208 : vector<1x8x8x128xf32> to vector<8x8x128xf32>
    %210 = vector.shape_cast %207 : vector<8x8x128xf32> to vector<1x8x8x128xf32>
    tpu.vector_store %arg8[%c2_130, %c0_131, %c0_132, %c0_133], %210 {strides = array<i32>} : memref<4x8x8x128xf32, #tpu.memory_space<vmem>>, vector<1x8x8x128xf32>,
    %c0_134 = arith.constant 0 : index
    %c0_135 = arith.constant 0 : index
    %211 = vector.load %arg10[%c0_134, %c0_135] : memref<64x1152xbf16, #tpu.memory_space<vmem>>, vector<64x128xbf16>
    tpu.vector_store %arg10[%c0_134, %c0_135], %85 {strides = array<i32>} : memref<64x1152xbf16, #tpu.memory_space<vmem>>, vector<64x128xbf16>,
    %c0_136 = arith.constant 0 : index
    %c128_137 = arith.constant 128 : index
    %212 = vector.load %arg10[%c0_136, %c128_137] : memref<64x1152xbf16, #tpu.memory_space<vmem>>, vector<64x128xbf16>
    tpu.vector_store %arg10[%c0_136, %c128_137], %83 {strides = array<i32>} : memref<64x1152xbf16, #tpu.memory_space<vmem>>, vector<64x128xbf16>,
    %c0_138 = arith.constant 0 : index
    %c256_139 = arith.constant 256 : index
    %213 = vector.load %arg10[%c0_138, %c256_139] : memref<64x1152xbf16, #tpu.memory_space<vmem>>, vector<64x128xbf16>
    tpu.vector_store %arg10[%c0_138, %c256_139], %79 {strides = array<i32>} : memref<64x1152xbf16, #tpu.memory_space<vmem>>, vector<64x128xbf16>,
    %c0_140 = arith.constant 0 : index
    %c384_141 = arith.constant 384 : index
    %214 = vector.load %arg10[%c0_140, %c384_141] : memref<64x1152xbf16, #tpu.memory_space<vmem>>, vector<64x128xbf16>
    tpu.vector_store %arg10[%c0_140, %c384_141], %77 {strides = array<i32>} : memref<64x1152xbf16, #tpu.memory_space<vmem>>, vector<64x128xbf16>,
    %c0_142 = arith.constant 0 : index
    %c0_143 = arith.constant 0 : index
    %215 = vector.load %arg10[%c0_142, %c0_143] : memref<64x1152xbf16, #tpu.memory_space<vmem>>, vector<64x512xbf16>
    %c3 = arith.constant 3 : index
    %c0_144 = arith.constant 0 : index
    %c0_145 = arith.constant 0 : index
    %216 = vector.load %arg5[%c3, %c0_144, %c0_145] : memref<4x512x128xbf16, #tpu.memory_space<vmem>>, vector<1x512x128xbf16>
    %217 = vector.shape_cast %216 : vector<1x512x128xbf16> to vector<512x128xbf16>
    %cst_146 = arith.constant dense<0.000000e+00> : vector<64x128xf32>
    %218 = tpu.matmul %215, %217, %cst_146 {dimension_numbers = #tpu.dot_dimension_numbers<[1], [0], [0], [1], [0, 0, 1, 1], [], []>} : vector<64x512xbf16>, vector<512x128xbf16>, vector<64x128xf32> -> vector<64x128xf32>
    %cst_147 = arith.constant 0.000000e+00 : f32
    %219 = vector.broadcast %cst_147 : f32 to vector<64x128xf32>
    %220 = arith.maximumf %218, %219 : vector<64x128xf32>
    %221 = vector.extract_strided_slice %3 {offsets = [3, 1, 1, 0], sizes = [1, 8, 8, 128], strides = [1, 1, 1, 1]} : vector<4x9x9x128xbf16> to vector<1x8x8x128xbf16>
    %222 = vector.shape_cast %221 : vector<1x8x8x128xbf16> to vector<8x8x128xbf16>
    %223 = vector.shape_cast %222 : vector<8x8x128xbf16> to vector<64x128xbf16>
    %224 = arith.extf %223 : vector<64x128xbf16> to vector<64x128xf32>
    %225 = arith.addf %224, %220 : vector<64x128xf32>
    %cst_148 = arith.constant dense<0.000000e+00> : vector<64xf32>
    %226 = vector.multi_reduction <add>, %225, %cst_148 [1] : vector<64x128xf32> to vector<64xf32>
    %227 = vector.shape_cast %226 : vector<64xf32> to vector<64x1xf32>
    %cst_149 = arith.constant 7.812500e-03 : f32
    %228 = vector.broadcast %cst_149 : f32 to vector<64x1xf32>
    %229 = arith.mulf %227, %228 : vector<64x1xf32>
    %230 = arith.mulf %225, %225 : vector<64x128xf32>
    %cst_150 = arith.constant dense<0.000000e+00> : vector<64xf32>
    %231 = vector.multi_reduction <add>, %230, %cst_150 [1] : vector<64x128xf32> to vector<64xf32>
    %232 = vector.shape_cast %231 : vector<64xf32> to vector<64x1xf32>
    %cst_151 = arith.constant 7.812500e-03 : f32
    %233 = vector.broadcast %cst_151 : f32 to vector<64x1xf32>
    %234 = arith.mulf %232, %233 : vector<64x1xf32>
    %235 = arith.mulf %229, %229 : vector<64x1xf32>
    %236 = arith.subf %234, %235 : vector<64x1xf32>
    %237 = vector.broadcast %229 : vector<64x1xf32> to vector<64x128xf32>
    %238 = arith.subf %225, %237 : vector<64x128xf32>
    %cst_152 = arith.constant 9.99999974E-6 : f32
    %239 = vector.broadcast %cst_152 : f32 to vector<64x1xf32>
    %240 = arith.addf %236, %239 : vector<64x1xf32>
    %241 = math.rsqrt %240 : vector<64x1xf32>
    %242 = vector.broadcast %241 : vector<64x1xf32> to vector<64x128xf32>
    %243 = arith.mulf %238, %242 : vector<64x128xf32>
    %244 = vector.broadcast %86 : vector<1x128xf32> to vector<64x128xf32>
    %245 = arith.mulf %243, %244 : vector<64x128xf32>
    %246 = vector.broadcast %87 : vector<1x128xf32> to vector<64x128xf32>
    %247 = arith.addf %245, %246 : vector<64x128xf32>
    %248 = vector.shape_cast %247 : vector<64x128xf32> to vector<8x8x128xf32>
    %c3_153 = arith.constant 3 : index
    %c0_154 = arith.constant 0 : index
    %c0_155 = arith.constant 0 : index
    %c0_156 = arith.constant 0 : index
    %249 = vector.load %arg8[%c3_153, %c0_154, %c0_155, %c0_156] : memref<4x8x8x128xf32, #tpu.memory_space<vmem>>, vector<1x8x8x128xf32>
    %250 = vector.shape_cast %249 : vector<1x8x8x128xf32> to vector<8x8x128xf32>
    %251 = vector.shape_cast %248 : vector<8x8x128xf32> to vector<1x8x8x128xf32>
    tpu.vector_store %arg8[%c3_153, %c0_154, %c0_155, %c0_156], %251 {strides = array<i32>} : memref<4x8x8x128xf32, #tpu.memory_space<vmem>>, vector<1x8x8x128xf32>,
    return
  }
  func.func @transform_0(%arg0: i32) -> (i32, i32, i32, i32) {
    %c0_i32 = arith.constant 0 : i32
    %c0_i32_0 = arith.constant 0 : i32
    %c0_i32_1 = arith.constant 0 : i32
    %c0_i32_2 = arith.constant 0 : i32
    return %arg0, %c0_i32, %c0_i32_0, %c0_i32_1 : i32, i32, i32, i32
  }
  func.func @transform_1(%arg0: i32) -> (i32, i32) {
    %c0_i32 = arith.constant 0 : i32
    %c0_i32_0 = arith.constant 0 : i32
    %c0_i32_1 = arith.constant 0 : i32
    return %c0_i32, %c0_i32_0 : i32, i32
  }
  func.func @transform_2(%arg0: i32) -> (i32, i32) {
    %c0_i32 = arith.constant 0 : i32
    %c0_i32_0 = arith.constant 0 : i32
    %c0_i32_1 = arith.constant 0 : i32
    return %c0_i32, %c0_i32_0 : i32, i32
  }
  func.func @transform_3(%arg0: i32) -> (i32, i32) {
    %c0_i32 = arith.constant 0 : i32
    %c0_i32_0 = arith.constant 0 : i32
    %c0_i32_1 = arith.constant 0 : i32
    return %c0_i32, %c0_i32_0 : i32, i32
  }
  func.func @transform_4(%arg0: i32) -> (i32, i32, i32) {
    %c0_i32 = arith.constant 0 : i32
    %c0_i32_0 = arith.constant 0 : i32
    %c0_i32_1 = arith.constant 0 : i32
    %c0_i32_2 = arith.constant 0 : i32
    return %c0_i32, %c0_i32_0, %c0_i32_1 : i32, i32, i32
  }
  func.func @transform_5(%arg0: i32) -> (i32, i32) {
    %c0_i32 = arith.constant 0 : i32
    %c0_i32_0 = arith.constant 0 : i32
    %c0_i32_1 = arith.constant 0 : i32
    return %c0_i32, %c0_i32_0 : i32, i32
  }
  func.func @transform_6(%arg0: i32) -> (i32, i32) {
    %c0_i32 = arith.constant 0 : i32
    %c0_i32_0 = arith.constant 0 : i32
    %c0_i32_1 = arith.constant 0 : i32
    return %c0_i32, %c0_i32_0 : i32, i32
  }
  func.func @transform_7(%arg0: i32) -> (i32, i32, i32, i32) {
    %c0_i32 = arith.constant 0 : i32
    %c0_i32_0 = arith.constant 0 : i32
    %c0_i32_1 = arith.constant 0 : i32
    %c0_i32_2 = arith.constant 0 : i32
    return %arg0, %c0_i32, %c0_i32_0, %c0_i32_1 : i32, i32, i32, i32
  }
}

</mosaic_0001>

<bundles_post_ra>
// kernel: tpu_custom_call.1
= control target key start
LH: loop header
LB: loop body
LE: loop exit
PB: predicated region body
PF: predicated region fallthrough
CT: control target
= control target key end

     0   :  { %s13394_s0 = inlined_call_operand.hbm [shape: bf16[8,9,9,128], index: 0, kind: input, shape index: {}]   ;;  %s13395_s1 = inlined_call_operand.hbm [shape: f32[128,32], index: 1, kind: input, shape index: {}]   ;;  %s13396_s2 = inlined_call_operand.hbm [shape: f32[32,128], index: 2, kind: input, shape index: {}]   ;;  %s13397_s3 = inlined_call_operand.hbm [shape: bf16[1152,128], index: 3, kind: input, shape index: {}]   ;;  %s13398_s4 = inlined_call_operand.hbm [shape: bf16[4,512,128], index: 4, kind: input, shape index: {}]   ;;  %s13399_s5 = inlined_call_operand.hbm [shape: f32[1,128], index: 5, kind: input, shape index: {}]   ;;  %s13400_s6 = inlined_call_operand.hbm [shape: f32[1,128], index: 6, kind: input, shape index: {}]   ;;  %s13401_s7 = inlined_call_operand.hbm [shape: f32[8,8,8,128], index: 7, kind: output, shape index: {}]  }
   0x1   :  { %13409 = sst [smem:[#allocation22_spill]] %s13395_s1 }
   0x2   :  { %13410 = sst [smem:[#allocation23_spill]] %s13396_s2 }
   0x3   :  { %13411 = sst [smem:[#allocation24_spill]] %s13397_s3 }
   0x4   :  { %12 = vsyncpa [#allocation5], 0 }
   0x5   :  { %14 = vsyncpa [#allocation5 + $0x1], 0 }
   0x6   :  { %15 = vsyncpa [#allocation8], 0 }
   0x7   :  { %16 = vsyncpa [#allocation11], 0 }
   0x8   :  { %17 = vsyncpa [#allocation14], 0 }
   0x9   :  { %18 = vsyncpa [#allocation6], 0 }
   0xa   :  { %20 = vsyncpa [#allocation6 + $0x1], 0  ;;  %s11230_s24 = smov 0   ;;  %s11232_s25 = smov 0  }
   0xb   :  { %s11234_s26 = smov 0   ;;  %s11236_s27 = smov 0  }
   0xc LB: > { %s11170_s28 = smov [#allocation7]   ;;  %s11251_s30 = sadd.s32 4294967295, %s11168_s27   ;;  %s11168_s27 = sphi %s11236_s27, %s13447_s27   ;;  %s11164_s26 = sphi %s11234_s26, %s13446_s26   ;;  %s11160_s25 = sphi %s11232_s25, %s13445_s25   ;;  %s11156_s24 = sphi %s11230_s24, %s13444_s24  }
   0xd   : > { %s221_s29 = sshll.u32 %s11170_s28, 4  ;;  %p9171_p0 = scmp.ge.s32.totalorder %s11168_s27, 1  ;;  %s11257_s29 = int_to_ptr.vmem [resolvable:$true] %s221_s29 }
   0xe   : > { %p13402_p1 = scmp.eq.s32.totalorder %s11251_s30, 0  ;;  %p209_p2 = scmp.lt.s32.totalorder %s11168_s27, 3 }
   0xf   : > { %s11171_s9 = smov [#allocation10]   ;;  %s11172_s12 = smov [#allocation13]  }
  0x10   : > { %p11259_p4 = pnand %p9171_p0, %p209_p2  ;;  %s247_s10 = sshll.u32 %s11171_s9, 4  ;;  %s11272_s10 = int_to_ptr.vmem [resolvable:$true] %s247_s10 }
  0x11   : > { %s11274_s13 = sshll.u32 %s11172_s12, 4  ;;  %s13414_s1 = sld [smem:[#allocation22_spill]]  ;;  %s275_s13 = int_to_ptr.vmem [resolvable:$true] %s11274_s13 }
  0x12   : > { %s13412_s8 = scalar_select %p11259_p4, 1, 0 }
  0x13   : > { %p10331_p6 = pneg %p11259_p4 }
  0x15   : > { %p11268_p7 = pnand %p10331_p6, %p13402_p1 }
  0x17   : > { %s10892_s16 = scalar_lea.hbm %s13414_s1, 2048  ;;  %p11284_p9 = pneg %p11268_p7 }
  0x18   : > { %p10893_p8 = scmp.ne.s32.totalorder %s13414_s1, %s10892_s16  ;;  %p10899_p12 = scmp.lt.u32.totalorder %s10892_s16, %s13414_s1 }
  0x1a   : > { %p10895_p10 = pnand %p11284_p9, %p10893_p8 }
  0x1c   : > { %p10896_p11 = pneg %p10895_p10 }
  0x1e   : > { %p10901_p13 = pnand %p10899_p12, %p10896_p11 }
  0x20   : > { %10904 = shalt.err (!%p10901_p13)
}
  0x21   : > { %s10905_s22 = scalar_lea.vmem %s11257_s29, 2048  ;;  %p10913_p5 = scmp.lt.s32.totalorder %s11257_s29, %s11257_s29 }
  0x22   : > { %p10906_p0 = scmp.ne.s32.totalorder %s11257_s29, %s10905_s22  ;;  %p10914_p3 = scmp.lt.s32.totalorder %s10905_s22, %s10905_s22 }
  0x24   : > { %p10908_p2 = pnand %p10906_p0, %p11284_p9  ;;  %p10915_p8 = por %p10914_p3, %p10913_p5 }
  0x26   : > { %p10909_p6 = pneg %p10908_p2 }
  0x28   : > { %p10916_p10 = pnand %p10915_p8, %p10909_p6 }
  0x2a   : > { %10919 = shalt.err (!%p10916_p10)
}
  0x2b   : > { %s11173_s23 = smov 128   ;;  %s11174_s28 = smov 8  }
  0x2c   : > { %10334 = dma.hbm_to_vmem [thread:$0]  (!%p11268_p7), %s13414_s1, 2048, %s11257_s29, [#allocation8], %s11173_s23, %s11173_s23, %s11174_s28  }
  0x2d   : > { %s13416_s3 = sld [smem:[#allocation24_spill]] }
  0x33   : > { %s10920_s16 = scalar_lea.hbm %s13416_s3, 9216 }
  0x34   : > { %p10921_p3 = scmp.ne.s32.totalorder %s13416_s3, %s10920_s16  ;;  %p10927_p12 = scmp.lt.u32.totalorder %s10920_s16, %s13416_s3 }
  0x36   : > { %p10923_p5 = pnand %p10921_p3, %p11284_p9 }
  0x38   : > { %p10924_p11 = pneg %p10923_p5 }
  0x3a   : > { %p10929_p13 = pnand %p10927_p12, %p10924_p11 }
  0x3c   : > { %10932 = shalt.err (!%p10929_p13)
}
  0x3d   : > { %s10933_s29 = scalar_lea.vmem %s11272_s10, 9216  ;;  %p10941_p8 = scmp.lt.s32.totalorder %s11272_s10, %s11272_s10 }
  0x3e   : > { %p10934_p0 = scmp.ne.s32.totalorder %s11272_s10, %s10933_s29  ;;  %p10942_p10 = scmp.lt.s32.totalorder %s10933_s29, %s10933_s29 }
  0x40   : > { %p10936_p2 = pnand %p10934_p0, %p11284_p9  ;;  %p10943_p3 = por %p10942_p10, %p10941_p8 }
  0x42   : > { %p10937_p6 = pneg %p10936_p2 }
  0x44   : > { %p10944_p5 = pnand %p10943_p3, %p10937_p6 }
  0x46   : > { %10947 = shalt.err (!%p10944_p5)
}
  0x47   : > { %s13404_s22 = smov 64   ;;  %s13406_s9 = smov 4  }
  0x48   : > { %10340 = dma.hbm_to_vmem [thread:$0]  (!%p11268_p7), %s13416_s3, 9216, %s11272_s10, [#allocation11], %s13404_s22, %s13404_s22, %s13406_s9  }
  0x49   : > { %s10948_s17 = scalar_lea.hbm %s13399_s5, 16 }
  0x4a   : > { %p10949_p11 = scmp.ne.s32.totalorder %s13399_s5, %s10948_s17  ;;  %p10955_p0 = scmp.lt.u32.totalorder %s10948_s17, %s13399_s5 }
  0x4c   : > { %p10951_p12 = pnand %p10949_p11, %p11284_p9 }
  0x4e   : > { %p10952_p13 = pneg %p10951_p12 }
  0x50   : > { %p10957_p2 = pnand %p10955_p0, %p10952_p13 }
  0x52   : > { %10960 = shalt.err (!%p10957_p2)
}
  0x53   : > { %s10961_s12 = scalar_lea.vmem %s275_s13, 16  ;;  %s10968_s10 = scalar_lea.vmem %s275_s13, 32 }
  0x54   : > { %p10962_p6 = scmp.ne.s32.totalorder %s275_s13, %s10961_s12  ;;  %p10969_p3 = scmp.lt.s32.totalorder %s275_s13, %s275_s13 }
  0x55   : > { %p10970_p5 = scmp.lt.s32.totalorder %s10968_s10, %s10961_s12 }
  0x56   : > { %p10964_p8 = pnand %p10962_p6, %p11284_p9 }
  0x57   : > { %p10971_p1 = por %p10970_p5, %p10969_p3 }
  0x58   : > { %p10965_p10 = pneg %p10964_p8 }
  0x5a   : > { %p10972_p4 = pnand %p10971_p1, %p10965_p10 }
  0x5c   : > { %10975 = shalt.err (!%p10972_p4)
}
  0x5d   : > { %10346 = dma.hbm_to_vmem [thread:$0]  (!%p11268_p7), %s13399_s5, 16, %s275_s13, [#allocation14]  }
  0x5e   : > { %s11177_s16 = smov [#allocation9]   ;;  %s11178_s18 = smov [#allocation12]  }
  0x5f   : > { %s234_s17 = sshll.u32 %s11177_s16, 4  ;;  %s260_s20 = sshll.u32 %s11178_s18, 4  ;;  %s235_s17 = int_to_ptr.vmem [resolvable:$true] %s234_s17  ;;  %s261_s20 = int_to_ptr.vmem [resolvable:$true] %s260_s20 }
  0x60   : > { %s13417_s2 = sld [smem:[#allocation23_spill]] }
  0x66   : > { %s10976_s22 = scalar_lea.hbm %s13417_s2, 512 }
  0x67   : > { %p10977_p1 = scmp.ne.s32.totalorder %s13417_s2, %s10976_s22  ;;  %p10983_p12 = scmp.lt.u32.totalorder %s10976_s22, %s13417_s2 }
  0x69   : > { %p10979_p4 = pnand %p10977_p1, %p11284_p9 }
  0x6b   : > { %p10980_p11 = pneg %p10979_p4 }
  0x6d   : > { %p10985_p13 = pnand %p10983_p12, %p10980_p11 }
  0x6f   : > { %10988 = shalt.err (!%p10985_p13)
}
  0x70   : > { %s10989_s13 = scalar_lea.vmem %s235_s17, 512  ;;  %p10997_p8 = scmp.lt.s32.totalorder %s235_s17, %s235_s17 }
  0x71   : > { %p10990_p0 = scmp.ne.s32.totalorder %s235_s17, %s10989_s13  ;;  %p10998_p10 = scmp.lt.s32.totalorder %s10989_s13, %s10989_s13 }
  0x73   : > { %p10992_p2 = pnand %p10990_p0, %p11284_p9  ;;  %p10999_p3 = por %p10998_p10, %p10997_p8 }
  0x75   : > { %p10993_p6 = pneg %p10992_p2 }
  0x77   : > { %p11000_p5 = pnand %p10999_p3, %p10993_p6 }
  0x79   : > { %11003 = shalt.err (!%p11000_p5)
}
  0x7a   : > { %10337 = dma.hbm_to_vmem [thread:$0]  (!%p11268_p7), %s13417_s2, 512, %s235_s17, [#allocation8], %s11173_s23, %s11173_s23, %s11174_s28  }
  0x7b   : > { %s11004_s18 = scalar_lea.hbm %s13398_s4, 16384 }
  0x7c   : > { %p11005_p1 = scmp.ne.s32.totalorder %s13398_s4, %s11004_s18  ;;  %p11011_p12 = scmp.lt.u32.totalorder %s11004_s18, %s13398_s4 }
  0x7e   : > { %p11007_p4 = pnand %p11005_p1, %p11284_p9 }
  0x80   : > { %p11008_p11 = pneg %p11007_p4 }
  0x82   : > { %p11013_p13 = pnand %p11011_p12, %p11008_p11 }
  0x84   : > { %11016 = shalt.err (!%p11013_p13)
}
  0x85   : > { %s11017_s14 = scalar_lea.vmem %s261_s20, 16384  ;;  %p11025_p8 = scmp.lt.s32.totalorder %s261_s20, %s261_s20 }
  0x86   : > { %p11018_p0 = scmp.ne.s32.totalorder %s261_s20, %s11017_s14  ;;  %p11026_p10 = scmp.lt.s32.totalorder %s11017_s14, %s11017_s14 }
  0x88   : > { %p11020_p2 = pnand %p11018_p0, %p11284_p9  ;;  %p11027_p3 = por %p11026_p10, %p11025_p8 }
  0x8a   : > { %p11021_p6 = pneg %p11020_p2 }
  0x8c   : > { %p11028_p5 = pnand %p11027_p3, %p11021_p6 }
  0x8e   : > { %11031 = shalt.err (!%p11028_p5)
}
  0x8f   : > { %s13418_s23 = smov 4   ;;  %s13419_s28 = smov 64  }
  0x90   : > { %10343 = dma.hbm_to_vmem [thread:$0]  (!%p11268_p7), %s13398_s4, 16384, %s261_s20, [#allocation11], %s13419_s28, %s13419_s28, %s13418_s23  }
  0x91   : > { %s11179_s9 = smov [#allocation15]   ;;  %s11032_s18 = scalar_lea.hbm %s13400_s6, 16 }
  0x92   : > { %s285_s22 = sshll.u32 %s11179_s9, 4  ;;  %p11033_p1 = scmp.ne.s32.totalorder %s13400_s6, %s11032_s18  ;;  %s286_s22 = int_to_ptr.vmem [resolvable:$true] %s285_s22 }
  0x93   : > { %p11039_p12 = scmp.lt.u32.totalorder %s11032_s18, %s13400_s6 }
  0x94   : > { %p11035_p4 = pnand %p11033_p1, %p11284_p9 }
  0x96   : > { %p11036_p11 = pneg %p11035_p4 }
  0x98   : > { %p11041_p13 = pnand %p11039_p12, %p11036_p11 }
  0x9a   : > { %11044 = shalt.err (!%p11041_p13)
}
  0x9b   : > { %s11045_s20 = scalar_lea.vmem %s286_s22, 16  ;;  %s11052_s14 = scalar_lea.vmem %s286_s22, 32 }
  0x9c   : > { %p11046_p0 = scmp.ne.s32.totalorder %s286_s22, %s11045_s20  ;;  %p11053_p8 = scmp.lt.s32.totalorder %s286_s22, %s286_s22 }
  0x9d   : > { %p11054_p10 = scmp.lt.s32.totalorder %s11052_s14, %s11045_s20 }
  0x9e   : > { %p11048_p2 = pnand %p11046_p0, %p11284_p9 }
  0x9f   : > { %p11055_p3 = por %p11054_p10, %p11053_p8 }
  0xa0   : > { %p11049_p6 = pneg %p11048_p2 }
  0xa2   : > { %p11056_p5 = pnand %p11055_p3, %p11049_p6 }
  0xa4   : > { %11059 = shalt.err (!%p11056_p5)
}
  0xa5   : > { %10349 = dma.hbm_to_vmem [thread:$0]  (!%p11268_p7), %s13400_s6, 16, %s286_s22, [#allocation14]  }
  0xa6   : > { %s9170_s19 = sadd.s32 4294967294, %s11168_s27   ;;  %s11415_s11 = sadd.s32 1, %s11168_s27  }
  0xa7   : > { %s30_s9 = ssub.s32 %s11168_s27, %s11415_s11  ;;  %s33_s15 = sadd.s32 1, %s11164_s26 }
  0xa8   : > { %p31_p9 = scmp.eq.s32.totalorder %s30_s9, 0  ;;  %p40_p1 = scmp.ne.s32.totalorder %s11164_s26, %s11160_s25 }
  0xa9   : > { %p41_p4 = scmp.eq.s32.totalorder %s11168_s27, 0  ;;  %p46_p11 = scmp.ne.s32.totalorder %s11160_s25, %s11156_s24 }
  0xaa   : > { %s11426_s16 = scalar_select %p31_p9, %s11164_s26, %s33_s15  }
  0xab   : > { %p42_p12 = por %p41_p4, %p40_p1  ;;  %p13420_p13 = scmp.eq.s32.totalorder %s11251_s30, 0 }
  0xac   : > { %p196_p7 = scmp.eq.s32.totalorder %s11251_s30, 1  ;;  %p202_p2 = scmp.eq.s32.totalorder %s9170_s19, 1 }
  0xad   : > { %p11430_p0 = por %p13420_p13, %p46_p11  ;;  %p10364_p6 = scmp.lt.s32.totalorder %s11168_s27, 2 }
  0xae   : > { %s296_s22 = sand.u32 1, %s11164_s26   ;;  %p11437_p8 = por %p196_p7, %p40_p1 }
  0xaf   : > { %p11441_p10 = por %p202_p2, %p46_p11  ;;  %s10300_s12 = smul.u32 288, %s296_s22 }
  0xb0   : > { %s13422_s21 = scalar_select %p11437_p8, 1, 0 }
  0xb1   : > { %s13423_s29 = scalar_select %p11441_p10, 1, 0 }
  0xb2   : > { %s10301_s10 = smul.u32 4608, %s11168_s27  ;;  %p11446_p3 = pnand %p10364_p6, %p42_p12 }
  0xb3   : > { %s300_s19 = scalar_lea.vmem [#allocation4], %s10300_s12  ;;  %s11457_s15 = scalar_lea.sflag [#allocation5], %s296_s22 }
  0xb4   : > { %s11453_s13 = scalar_lea.hbm %s13394_s0, %s10301_s10  ;;  %s308_s9 = sshll.u32 %s300_s19, 4  ;;  %s11455_s9 = int_to_ptr.vmem [resolvable:$true] %s308_s9 }
  0xb5   : > { %s11060_s1 = scalar_lea.hbm %s11453_s13, 4608  ;;  %p11062_p9 = pneg %p11446_p3 }
  0xb6   : > { %p11061_p5 = scmp.ne.s32.totalorder %s11453_s13, %s11060_s1  ;;  %s11065_s17 = scalar_lea.hbm %s13394_s0, 9216 }
  0xb7   : > { %p11066_p11 = scmp.lt.u32.totalorder %s11453_s13, %s13394_s0  ;;  %p11067_p12 = scmp.lt.u32.totalorder %s11065_s17, %s11060_s1 }
  0xb8   : > { %p11063_p1 = pnand %p11062_p9, %p11061_p5  ;;  %p11069_p7 = scmp.lt.u32.totalorder %s11060_s1, %s11453_s13 }
  0xb9   : > { %p11068_p13 = por %p11067_p12, %p11066_p11 }
  0xba   : > { %p11064_p4 = pneg %p11063_p1 }
  0xbb   : > { %p11070_p2 = por %p11069_p7, %p11068_p13 }
  0xbd   : > { %p11071_p6 = pnand %p11070_p2, %p11064_p4 }
  0xbf   : > { %11074 = shalt.err (!%p11071_p6)
}
  0xc0   : > { %s11075_s22 = scalar_lea.vmem %s11455_s9, 4608  ;;  %s11180_s12 = smov [#allocation4]  }
  0xc1   : > { %p11076_p5 = scmp.ne.s32.totalorder %s11455_s9, %s11075_s22  ;;  %s11080_s19 = sshll.u32 %s11180_s12, 4  ;;  %s11081_s19 = int_to_ptr.vmem [resolvable:$false] %s11080_s19 }
  0xc2   : > { %s11082_s2 = scalar_lea.vmem %s11081_s19, 9216  ;;  %p11083_p8 = scmp.lt.s32.totalorder %s11455_s9, %s11081_s19 }
  0xc3   : > { %p11078_p1 = pnand %p11076_p5, %p11062_p9  ;;  %p11084_p11 = scmp.lt.s32.totalorder %s11082_s2, %s11075_s22 }
  0xc5   : > { %p11079_p10 = pneg %p11078_p1  ;;  %p11085_p12 = por %p11084_p11, %p11083_p8 }
  0xc7   : > { %p11086_p13 = pnand %p11085_p12, %p11079_p10 }
  0xc9   : > { %11089 = shalt.err (!%p11086_p13)
}
  0xca   : > { %10353 = dma.hbm_to_vmem [thread:$0]  (!%p11446_p3), %s11453_s13, 4608, %s11455_s9, %s11457_s15, %s13419_s28, %s13419_s28, %s13418_s23  }
  0xcb   : > { %p13425_p9 = scmp.ne.s32.totalorder %s13412_s8, 0 }
  0xcc   : > { %s11491_s1 = sand.u32 (!%p13425_p9), 1, %s11160_s25  }
  0xcd   : > { %320 = sbr.rel (%p13425_p9) target bundleno = 1984 (0x7c0), region = 48  ;;  %s323_s10 = scalar_lea.sflag (!%p13425_p9), [#allocation5], %s11491_s1 }
  0xce   : > { %s10302_s3 = smul.u32 (!%p13425_p9), 288, %s11491_s1 }
  0xd0   : > { %s11495_s14 = scalar_lea.vmem (!%p13425_p9), [#allocation4], %s10302_s3 }
  0xd4   : > { %11135 = dma.done.wait (%p11430_p0), %s323_s10, 4608  }
  0xd5   : > { %11137 = vsyncadd (%p11430_p0), %s323_s10, 4294962688  ;;  %p13426_p8 = scmp.eq.s32.totalorder %s11251_s30, 0 }
  0xd7   : > { %11139 = dma.done.wait (%p13426_p8), [#allocation8], 2560   ;;  %p13427_p10 = pmov %p13426_p8 }
  0xd8   : > { %p13428_p3 = pmov %p13426_p8 }
  0xd9   : > { %11141 = vsyncadd (%p13427_p10), [#allocation8], 4294964736 }
  0xda   : > { %11143 = dma.done.wait (%p13428_p3), [#allocation11], 25600   ;;  %p13429_p4 = pmov %p13428_p3 }
  0xdb   : > { %p13430_p7 = pmov %p13428_p3 }
  0xdc   : > { %11145 = vsyncadd (%p13429_p4), [#allocation11], 4294941696 }
  0xdd   : > { %11147 = dma.done.wait (%p13430_p7), [#allocation14], 32   ;;  %p13431_p2 = pmov %p13428_p3 }
  0xde   : > { %s9189_s8 = sshll.u32 %s11491_s1, 8  ;;  %p13432_p0 = scmp.ne.s32.totalorder %s11251_s30, 0 }
  0xdf   : > { %11149 = vsyncadd (%p13431_p2), [#allocation14], 4294967264  ;;  %s11514_s23 = scalar_lea.vmem [#allocation16], %s9189_s8  ;;  %v11181_v0 = vmov (!%p13432_p0), 0  }
  0xe0   : > { %388 = sbr.rel (%p13432_p0) target bundleno = 234 (0xea), region = 80  ;;  %389 = vst [vmem:[#allocation2] sm:$0xf] (!%p13432_p0), %v11181_v0  ;;  %390 = vst [vmem:[#allocation2 + $0x4] sm:$0x1] (!%p13432_p0), %v11181_v0 }
  0xe1   : > { %391 = vst [vmem:[#allocation2 + $0x8] sm:$0xf] (!%p13432_p0), %v11181_v0  ;;  %392 = vst [vmem:[#allocation2 + $0xc] sm:$0x1] (!%p13432_p0), %v11181_v0 }
  0xe2   : > { %393 = vst [vmem:[#allocation2 + $0x10] sm:$0xf] (!%p13432_p0), %v11181_v0  ;;  %394 = vst [vmem:[#allocation2 + $0x14] sm:$0x1] (!%p13432_p0), %v11181_v0 }
  0xe3   : > { %395 = vst [vmem:[#allocation2 + $0x18] sm:$0xf] (!%p13432_p0), %v11181_v0  ;;  %396 = vst [vmem:[#allocation2 + $0x1c] sm:$0x1] (!%p13432_p0), %v11181_v0 }
  0xe4   : > { %397 = vst [vmem:[#allocation2 + $0x20] sm:$0xf] (!%p13432_p0), %v11181_v0  ;;  %398 = vst [vmem:[#allocation2 + $0x24] sm:$0x1] (!%p13432_p0), %v11181_v0 }
  0xe5   : > { %399 = vst [vmem:[#allocation2 + $0x28] sm:$0xf] (!%p13432_p0), %v11181_v0  ;;  %400 = vst [vmem:[#allocation2 + $0x2c] sm:$0x1] (!%p13432_p0), %v11181_v0 }
  0xe6   : > { %401 = vst [vmem:[#allocation2 + $0x30] sm:$0xf] (!%p13432_p0), %v11181_v0  ;;  %402 = vst [vmem:[#allocation2 + $0x34] sm:$0x1] (!%p13432_p0), %v11181_v0 }
  0xe7   : > { %403 = vst [vmem:[#allocation2 + $0x38] sm:$0xf] %v11181_v0  ;;  %404 = vst [vmem:[#allocation2 + $0x3c] sm:$0x1] %v11181_v0 }
  0xe8   : > { %405 = vst [vmem:[#allocation2 + $0x40] sm:$0xf] %v11181_v0  ;;  %406 = vst [vmem:[#allocation2 + $0x44] sm:$0x1] %v11181_v0 }
  0xe9   : > { %407 = vst [vmem:[#allocation2 + $0x48] sm:$0xf] %v11181_v0  ;;  %408 = vst [vmem:[#allocation2 + $0x4c] sm:$0x1] %v11181_v0 }
  0xea PF: > { %v564_v1 = vlaneseq  ;;  %v11182_v2 = vmov 1966171168   ;;  %v9191_v5 = vld.sshfl [vmem:[%s11495_s14] sm:$0x33 pattern:$0x75316420] }
  0xeb   : > { %v562_v3 = vunpack.c.l.s4 %v11182_v2  ;;  %v11183_v6 = vmov 0.0   ;;  %v10829_v7 = vld.sshfl [vmem:[%s11495_s14 + $0x70] sm:$0x33 pattern:$0x75316420]  ;;  %v560_v12 = vcombine.high %v9191_v5, %v9191_v5  ;;  %vm11185_vm0 = vmmov 0  }
  0xec   : > { %v11518_v4 = vshrl.u32 %v564_v1, 7  ;;  %10186 = vmatprep.subr.bf16.mxu1 %v11183_v6  ;;  %v10830_v9 = vld.sshfl [vmem:[%s11495_s14 + $0x74] sm:$0x1 pattern:$0x75316420]  ;;  %v1092_v19 = vcombine.high %v10829_v7, %v10829_v7  ;;  %10196 = vmatprep.mubr.msk.bf16.mxu1 %vm11185_vm0, %v11183_v6  ;;  %vm3426_vm1 = vcmask 1041408  }
  0xed   : > { %v563_v8 = vunpack.c.0.s8 %v562_v3  ;;  %v10831_v10 = vld.sshfl [vmem:[%s11495_s14 + $0x78] sm:$0x33 pattern:$0x75316420]  ;;  %vm3422_vm2 = vcmask 556032   ;;  %vm3602_vm3 = vcmask 261120  }
  0xee   : > { %v10832_v11 = vld.sshfl [vmem:[%s11495_s14 + $0x7c] sm:$0x1 pattern:$0x75316420]  ;;  %v1130_v22 = vcombine.high %v10831_v10, %v10831_v10  ;;  %vm3790_vm4 = vsmask.f32 3328 }
  0xef   : > { %v11527_v13 = vsub.s32 %v563_v8, %v11518_v4  ;;  %v9192_v14 = vld.sshfl [vmem:[%s11495_s14 + $0x4] sm:$0x1 pattern:$0x75316420]  ;;  %vm3791_vm5 = vsmask.f32 7440 }
  0xf0   : > { %v10833_v15 = vld.sshfl [vmem:[%s11495_s14 + $0x8] sm:$0x33 pattern:$0x75316420]  ;;  %vm12021_vm6 = vmor %vm3790_vm4, %vm3791_vm5  ;;  %vm5467_vm7 = vcmask 1043456   ;;  %vm5473_vm9 = vcmask 1040384  }
  0xf1   : > { %v567_v16 = vrot.slane %v9191_v5, %v11527_v13  ;;  %v574_v17 = vrot.slane %v560_v12, %v11527_v13  ;;  %v590_v18 = vrot.slane %v9192_v14, %v11527_v13  ;;  %v11535_v20 = vrot.slane %v10829_v7, %v11527_v13  ;;  %v10834_v55 = vld.sshfl [vmem:[%s11495_s14 + $0x80] sm:$0x33 pattern:$0x75316420]  ;;  %s9643_s28 = sshll.u32 %s11251_s30, 12  ;;  %s9040_s18 = sshll.u32 %s11514_s23, 4  ;;  %s13347_s18 = int_to_ptr.vmem [resolvable:$true] %s9040_s18 }
  0xf2   : > { %v1122_v21 = vrot.slane %v10830_v9, %v11527_v13  ;;  %v1137_v23 = vrot.slane %v10831_v10, %v11527_v13  ;;  %v1160_v24 = vrot.slane %v10832_v11, %v11527_v13  ;;  %v598_v25 = vcombine.high %v10833_v15, %v10833_v15  ;;  %v10835_v60 = vld.sshfl [vmem:[%s11495_s14 + $0x84] sm:$0x1 pattern:$0x75316420]  ;;  %s13345_s9 = scalar_lea.hbm %s13401_s7, %s9643_s28  ;;  %s9026_s30 = scalar_lea.sflag [#allocation6], %s11491_s1 }
  0xf3   : > { %v605_v26 = vrot.slane %v10833_v15, %v11527_v13  ;;  %v1106_v27 = vrot.slane %v1092_v19, %v11527_v13  ;;  %v1107_v28 = vcombine.high %v11535_v20, %v11535_v20  ;;  %v1144_v29 = vrot.slane %v1130_v22, %v11527_v13  ;;  %v10836_v5 = vld.sshfl [vmem:[%s11495_s14 + $0x88] sm:$0x33 pattern:$0x75316420]  ;;  %s11090_s15 = scalar_lea.vmem %s13347_s18, 4096  ;;  %p13441_p5 = scmp.ne.s32.totalorder %s13422_s21, 0 }
  0xf4   : > { %v2407_v30 = vcombine.low %v567_v16, %v574_v17  ;;  %v1145_v31 = vcombine.high %v1137_v23, %v1137_v23  ;;  %v2057_v32 = vunpack.i.h.s16 %v1137_v23  ;;  %v9230_v33 = vpack.i.b16 %v1137_v23, %v1122_v21  ;;  %v10837_v10 = vld.sshfl [vmem:[%s11495_s14 + $0xc] sm:$0x1 pattern:$0x75316420]  ;;  %p11091_p6 = scmp.ne.s32.totalorder %s13347_s18, %s11090_s15  ;;  %s11187_s17 = smov [#allocation16]  }
  0xf5   : > { %v612_v34 = vrot.slane %v598_v25, %v11527_v13  ;;  %v1108_v35 = vcombine.high %v1106_v27, %v1106_v27  ;;  %v1146_v36 = vcombine.high %v1144_v29, %v1144_v29  ;;  %v2059_v37 = vunpack.i.h.s16 %v1144_v29  ;;  %v10838_v11 = vld.sshfl [vmem:[%s11495_s14 + $0x10] sm:$0x33 pattern:$0x75316420]  ;;  %s11094_s22 = sshll.u32 %s11187_s17, 4  ;;  %s11095_s22 = int_to_ptr.vmem [resolvable:$false] %s11094_s22 }
  0xf6   : > { %v2799_v38 = vcombine.low %v1106_v27, %v1107_v28  ;;  %v2061_v39 = vunpack.i.h.s16 %v1145_v31  ;;  %v9231_v40 = vpack.i.b16 %v1144_v29, %v2057_v32  ;;  %v613_v41 = vcombine.high %v605_v26, %v605_v26  ;;  %v10839_v27 = vld.sshfl [vmem:[%s11495_s14 + $0x14] sm:$0x1 pattern:$0x75316420]  ;;  %p11092_p1 = pnand %p11091_p6, %p13441_p5  ;;  %s11096_s12 = scalar_lea.vmem %s11095_s22, 8192 }
  0xf7   : > { %v11546_v42 = vcombine.high %v612_v34, %v612_v34  ;;  %v2063_v43 = vunpack.i.h.s16 %v1146_v36  ;;  %v9232_v44 = vpack.i.b16 %v1145_v31, %v2059_v37  ;;  %v2800_v45 = vcombine.low %v1108_v35, %v9230_v33  ;;  %v10840_v31 = vld.sshfl [vmem:[%s11495_s14 + $0x18] sm:$0x33 pattern:$0x75316420]  ;;  %p11097_p12 = scmp.lt.s32.totalorder %s13347_s18, %s11095_s22  ;;  %p11098_p13 = scmp.lt.s32.totalorder %s11096_s12, %s11090_s15 }
  0xf8   : > { %v2809_v46 = vrot.slane %v2799_v38, %v11527_v13  ;;  %v9233_v47 = vpack.i.b16 %v1146_v36, %v2061_v39  ;;  %v1931_v48 = vunpack.i.h.s16 %v605_v26  ;;  %v1933_v49 = vunpack.i.h.s16 %v612_v34  ;;  %p11093_p11 = pneg %p11092_p1 }
  0xf9   : > { %v1935_v50 = vunpack.i.h.s16 %v613_v41  ;;  %v9234_v51 = vpack.i.b16 %v1160_v24, %v2063_v43  ;;  %v2801_v52 = vcombine.low %v9231_v40, %v9232_v44  ;;  %v2816_v53 = vrot.slane %v2800_v45, %v11527_v13  ;;  %p11099_p9 = por %p11098_p13, %p11097_p12 }
  0xfa   : > { %v1937_v54 = vunpack.i.h.s16 %v11546_v42  ;;  %v9195_v56 = vpack.i.b16 %v605_v26, %v590_v18  ;;  %v9196_v57 = vpack.i.b16 %v612_v34, %v1931_v48  ;;  %v9197_v58 = vpack.i.b16 %v613_v41, %v1933_v49  ;;  %v10841_v49 = vld.sshfl [vmem:[%s11495_s14 + $0x8c] sm:$0x1 pattern:$0x75316420] }
  0xfb   : > { %v9198_v59 = vpack.i.b16 %v11546_v42, %v1935_v50  ;;  %v2802_v61 = vcombine.low %v9233_v47, %v9234_v51  ;;  %v2823_v62 = vrot.slane %v2801_v52, %v11527_v13  ;;  %v2831_v63 = vcombine.low %v2809_v46, %v2816_v53  ;;  %p11100_p8 = pnand %p11099_p9, %p11093_p11 }
  0xfc   : > { %v9285_v0 = vcombine.high %v567_v16, %v574_v17  ;;  %v2409_v1 = vcombine.low %v9195_v56, %v9196_v57  ;;  %v2417_v3 = vrot.slane %v2407_v30, %v11527_v13  ;;  %v1168_v15 = vcombine.high %v10834_v55, %v10834_v55 }
  0xfd   : > { %v2410_v2 = vcombine.low %v9197_v58, %v9198_v59  ;;  %v2830_v7 = vrot.slane %v2802_v61, %v11527_v13  ;;  %v2839_v8 = vrot.slane %v2831_v63, %v11527_v13  ;;  %v1175_v16 = vrot.slane %v10834_v55, %v11527_v13  ;;  %v10842_v58 = vld.sshfl [vmem:[%s11495_s14 + $0x90] sm:$0x33 pattern:$0x75316420] }
  0xfe   : > { %v2424_v9 = vrot.slane %v9285_v0, %v11527_v13  ;;  %v2431_v12 = vrot.slane %v2409_v1, %v11527_v13  ;;  %v1198_v19 = vrot.slane %v10835_v60, %v11527_v13  ;;  %v1182_v22 = vrot.slane %v1168_v15, %v11527_v13  ;;  %v10843_v63 = vld.sshfl [vmem:[%s11495_s14 + $0x94] sm:$0x1 pattern:$0x75316420] }
  0xff   : > { %v2438_v14 = vrot.slane %v2410_v2, %v11527_v13  ;;  %v2832_v17 = vcombine.low %v2823_v62, %v2830_v7  ;;  %v1206_v25 = vcombine.high %v10836_v5, %v10836_v5  ;;  %v1213_v26 = vrot.slane %v10836_v5, %v11527_v13  ;;  %v10844_v0 = vld.sshfl [vmem:[%s11495_s14 + $0x98] sm:$0x33 pattern:$0x75316420] }
 0x100   : > { %v2439_v18 = vcombine.low %v2417_v3, %v2424_v9  ;;  %v2848_v29 = vcombine.low %v1175_v16, %v1182_v22  ;;  %v9289_v30 = vcombine.high %v1175_v16, %v1182_v22  ;;  %v628_v32 = vrot.slane %v10837_v10, %v11527_v13 }
 0x101   : > { %v2440_v21 = vcombine.low %v2431_v12, %v2438_v14  ;;  %v2846_v23 = vrot.slane %v2832_v17, %v11527_v13  ;;  %v1220_v34 = vrot.slane %v1206_v25, %v11527_v13  ;;  %v1221_v35 = vcombine.high %v1213_v26, %v1213_v26 }
 0x102   : > { %v2447_v24 = vrot.slane %v2439_v18, %v11527_v13  ;;  %v2075_v36 = vunpack.i.h.s16 %v1213_v26  ;;  %v9235_v38 = vpack.i.b16 %v1213_v26, %v1198_v19  ;;  %v2858_v39 = vrot.slane %v2848_v29, %v11527_v13 }
 0x103   : > { %v2454_v28 = vrot.slane %v2440_v21, %v11527_v13  ;;  %v2847_v33 = vcombine.low %v2839_v8, %v2846_v23  ;;  %v2865_v40 = vrot.slane %v9289_v30, %v11527_v13  ;;  %v11577_v41 = vcombine.high %v1220_v34, %v1220_v34 }
 0x104   : > { %v2077_v43 = vunpack.i.h.s16 %v1220_v34  ;;  %v2079_v44 = vunpack.i.h.s16 %v1221_v35  ;;  %v9236_v45 = vpack.i.b16 %v1220_v34, %v2075_v36  ;;  %v636_v47 = vcombine.high %v10838_v11, %v10838_v11 }
 0x105   : > { %v2455_v37 = vcombine.low %v2447_v24, %v2454_v28  ;;  %9644 = vmatprep.subr.bf16.mxu0 %v2847_v33  ;;  %v2880_v46 = vcombine.low %v2858_v39, %v2865_v40  ;;  %v643_v48 = vrot.slane %v10838_v11, %v11527_v13  ;;  %v666_v57 = vrot.slane %v10839_v27, %v11527_v13  ;;  %v10845_v27 = vld.sshfl [vmem:[%s11495_s14 + $0x1c] sm:$0x1 pattern:$0x75316420] }
 0x106   : > { %v9237_v50 = vpack.i.b16 %v1221_v35, %v2077_v43  ;;  %v9238_v51 = vpack.i.b16 %v11577_v41, %v2079_v44  ;;  %v2850_v52 = vcombine.low %v9235_v38, %v9236_v45  ;;  %v650_v55 = vrot.slane %v636_v47, %v11527_v13 }
 0x107   : > { %9645 = vmatpush3.bf16.msra.mxu0 %v2455_v37  ;;  %v2888_v53 = vrot.slane %v2880_v46, %v11527_v13  ;;  %v651_v56 = vcombine.high %v643_v48, %v643_v48  ;;  %v674_v61 = vcombine.high %v10840_v31, %v10840_v31  ;;  %v681_v62 = vrot.slane %v10840_v31, %v11527_v13  ;;  %v10847_v37 = vld.sshfl [vmem:[%s11495_s14 + $0x24] sm:$0x1 pattern:$0x75316420] }
 0x108   : > { %v2851_v59 = vcombine.low %v9237_v50, %v9238_v51  ;;  %v2872_v60 = vrot.slane %v2850_v52, %v11527_v13  ;;  %v652_v1 = vcombine.high %v650_v55, %v650_v55  ;;  %v9199_v2 = vpack.i.b16 %v628_v32, %v1937_v54  ;;  %v10846_v32 = vld.sshfl [vmem:[%s11495_s14 + $0x20] sm:$0x33 pattern:$0x75316420] }
 0x109   : > { %v2457_v3 = vcombine.low %v650_v55, %v651_v56  ;;  %v688_v7 = vrot.slane %v674_v61, %v11527_v13  ;;  %v11594_v8 = vcombine.high %v681_v62, %v681_v62  ;;  %v1949_v9 = vunpack.i.h.s16 %v681_v62 }
 0x10a   : > { %v2879_v5 = vrot.slane %v2851_v59, %v11527_v13  ;;  %v9200_v10 = vpack.i.b16 %v681_v62, %v666_v57  ;;  %v2456_v11 = vcombine.low %v9199_v2, %v643_v48  ;;  %v1236_v14 = vrot.slane %v10841_v49, %v11527_v13  ;;  %v10848_v48 = vld.sshfl [vmem:[%s11495_s14 + $0x28] sm:$0x33 pattern:$0x75316420] }
 0x10b   : > { %v2473_v12 = vrot.slane %v2457_v3, %v11527_v13  ;;  %v1951_v16 = vunpack.i.h.s16 %v688_v7  ;;  %v9201_v17 = vpack.i.b16 %v688_v7, %v1949_v9  ;;  %v1244_v21 = vcombine.high %v10842_v58, %v10842_v58  ;;  %v10850_v9 = vld.sshfl [vmem:[%s11495_s14 + $0xa0] sm:$0x33 pattern:$0x75316420] }
 0x10c   : > { %v2881_v15 = vcombine.low %v2872_v60, %v2879_v5  ;;  %v2458_v42 = vcombine.low %v652_v1, %v9200_v10  ;;  %v2466_v54 = vrot.slane %v2456_v11, %v11527_v13  ;;  %v1251_v22 = vrot.slane %v10842_v58, %v11527_v13  ;;  %v10849_v1 = vld.sshfl [vmem:[%s11495_s14 + $0x9c] sm:$0x1 pattern:$0x75316420] }
 0x10d   : > { %v9202_v19 = vpack.i.b16 %v11594_v8, %v1951_v16  ;;  %v1274_v25 = vrot.slane %v10843_v63, %v11527_v13  ;;  %v1282_v26 = vcombine.high %v10844_v0, %v10844_v0  ;;  %v1258_v30 = vrot.slane %v1244_v21, %v11527_v13  ;;  %v10851_v10 = vld.sshfl [vmem:[%s11495_s14 + $0xa4] sm:$0x1 pattern:$0x75316420] }
 0x10e   : > { %v2895_v18 = vrot.slane %v2881_v15, %v11527_v13  ;;  %v2480_v23 = vrot.slane %v2458_v42, %v11527_v13  ;;  %v2488_v24 = vcombine.low %v2466_v54, %v2473_v12  ;;  %v1259_v31 = vcombine.high %v1251_v22, %v1251_v22  ;;  %v10852_v15 = vld.sshfl [vmem:[%s11495_s14 + $0xa8] sm:$0x33 pattern:$0x75316420] }
 0x10f   : > { %v2459_v29 = vcombine.low %v9201_v17, %v9202_v19  ;;  %v1289_v34 = vrot.slane %v10844_v0, %v11527_v13  ;;  %v1296_v35 = vrot.slane %v1282_v26, %v11527_v13  ;;  %v2081_v36 = vunpack.i.h.s16 %v11577_v41 }
 0x110   : > { %v2896_v28 = vcombine.low %v2888_v53, %v2895_v18  ;;  %v2496_v33 = vrot.slane %v2488_v24, %v11527_v13  ;;  %v1260_v39 = vcombine.high %v1258_v30, %v1258_v30  ;;  %v2898_v40 = vcombine.low %v1258_v30, %v1259_v31 }
 0x111   : > { %v2487_v38 = vrot.slane %v2459_v29, %v11527_v13  ;;  %v690_v43 = vcombine.high %v688_v7, %v688_v7  ;;  %v11613_v44 = vcombine.high %v1289_v34, %v1289_v34  ;;  %v2093_v45 = vunpack.i.h.s16 %v1289_v34 }
 0x112   : > { %9646 = vmatprep.subr.bf16.mxu0 %v2896_v28  ;;  %v2095_v46 = vunpack.i.h.s16 %v1296_v35  ;;  %v9239_v47 = vpack.i.b16 %v1236_v14, %v2081_v36  ;;  %v9240_v50 = vpack.i.b16 %v1289_v34, %v1274_v25  ;;  %v2914_v51 = vrot.slane %v2898_v40, %v11527_v13 }
 0x113   : > { %v2489_v49 = vcombine.low %v2480_v23, %v2487_v38  ;;  %v9241_v52 = vpack.i.b16 %v1296_v35, %v2093_v45  ;;  %v704_v57 = vrot.slane %v10845_v27, %v11527_v13  ;;  %v712_v60 = vcombine.high %v10846_v32, %v10846_v32 }
 0x114   : > { %v9242_v41 = vpack.i.b16 %v11613_v44, %v2095_v46  ;;  %v2897_v53 = vcombine.low %v9239_v47, %v1251_v22  ;;  %v2899_v56 = vcombine.low %v1260_v39, %v9240_v50  ;;  %v719_v61 = vrot.slane %v10846_v32, %v11527_v13  ;;  %v10853_v39 = vld.sshfl [vmem:[%s11495_s14 + $0x2c] sm:$0x1 pattern:$0x75316420] }
 0x115   : > { %v2503_v55 = vrot.slane %v2489_v49, %v11527_v13  ;;  %v742_v0 = vrot.slane %v10847_v37, %v11527_v13  ;;  %v726_v5 = vrot.slane %v712_v60, %v11527_v13  ;;  %v1953_v7 = vunpack.i.h.s16 %v11594_v8  ;;  %v10854_v47 = vld.sshfl [vmem:[%s11495_s14 + $0x30] sm:$0x33 pattern:$0x75316420] }
 0x116   : > { %v2900_v58 = vcombine.low %v9241_v52, %v9242_v41  ;;  %v2907_v59 = vrot.slane %v2897_v53, %v11527_v13  ;;  %v2921_v63 = vrot.slane %v2899_v56, %v11527_v13  ;;  %v750_v11 = vcombine.high %v10848_v48, %v10848_v48  ;;  %v11660_v56 = vld.sshfl [vmem:[%s11495_s14 + $0x38] sm:$0x33 pattern:$0x75316420] }
 0x117   : > { %v2504_v62 = vcombine.low %v2496_v33, %v2503_v55  ;;  %v757_v12 = vrot.slane %v10848_v48, %v11527_v13  ;;  %v1955_v14 = vunpack.i.h.s16 %v690_v43  ;;  %v1298_v16 = vcombine.high %v1296_v35, %v1296_v35  ;;  %v10855_v55 = vld.sshfl [vmem:[%s11495_s14 + $0x34] sm:$0x1 pattern:$0x75316420] }
 0x118   : > { %v2928_v2 = vrot.slane %v2900_v58, %v11527_v13  ;;  %v2929_v3 = vcombine.low %v2907_v59, %v2914_v51  ;;  %v9203_v54 = vpack.i.b16 %v690_v43, %v1953_v7  ;;  %v2506_v18 = vcombine.low %v719_v61, %v726_v5 }
 0x119   : > { %9647 = vmatpush3.bf16.msra.mxu0 %v2504_v62  ;;  %v11634_v19 = vrot.slane %v750_v11, %v11527_v13  ;;  %v1967_v21 = vunpack.i.h.s16 %v757_v12  ;;  %v9204_v22 = vpack.i.b16 %v704_v57, %v1955_v14  ;;  %v9205_v8 = vpack.i.b16 %v757_v12, %v742_v0 }
 0x11a   : > { %v2930_v17 = vcombine.low %v2921_v63, %v2928_v2  ;;  %v2937_v42 = vrot.slane %v2929_v3, %v11527_v13  ;;  %v9286_v24 = vcombine.high %v719_v61, %v726_v5  ;;  %v2522_v25 = vrot.slane %v2506_v18, %v11527_v13 }
 0x11b   : > { %v9206_v26 = vpack.i.b16 %v11634_v19, %v1967_v21  ;;  %v2505_v27 = vcombine.low %v9203_v54, %v9204_v22  ;;  %v1312_v30 = vrot.slane %v10849_v1, %v11527_v13  ;;  %v1320_v33 = vcombine.high %v10850_v9, %v10850_v9  ;;  %v10859_v54 = vld.sshfl [vmem:[%s11495_s14 + $0xe8] sm:$0x33 pattern:$0x75316420] }
 0x11c   : > { %v2944_v23 = vrot.slane %v2930_v17, %v11527_v13  ;;  %v2529_v29 = vrot.slane %v9286_v24, %v11527_v13  ;;  %v1327_v34 = vrot.slane %v10850_v9, %v11527_v13  ;;  %v1350_v35 = vrot.slane %v10851_v10, %v11527_v13 }
 0x11d   : > { %v2508_v31 = vcombine.low %v9205_v8, %v9206_v26  ;;  %v2515_v32 = vrot.slane %v2505_v27, %v11527_v13  ;;  %v1358_v36 = vcombine.high %v10852_v15, %v10852_v15  ;;  %v11645_v37 = vrot.slane %v10852_v15, %v11527_v13 }
 0x11e   : > { %v2945_v28 = vcombine.low %v2937_v42, %v2944_v23  ;;  %v2097_v38 = vunpack.i.h.s16 %v11613_v44  ;;  %v1334_v45 = vrot.slane %v1320_v33, %v11527_v13  ;;  %v2099_v46 = vunpack.i.h.s16 %v1298_v16  ;;  %v10858_v42 = vld.sshfl [vmem:[%s11495_s14 + $0xe4] sm:$0x1 pattern:$0x75316420] }
 0x11f   : > { %v2536_v40 = vrot.slane %v2508_v31, %v11527_v13  ;;  %v2537_v43 = vcombine.low %v2515_v32, %v2522_v25  ;;  %v11653_v48 = vrot.slane %v1358_v36, %v11527_v13  ;;  %v2111_v49 = vunpack.i.h.s16 %v11645_v37  ;;  %v10860_v31 = vld.sshfl [vmem:[%s11495_s14 + $0xec] sm:$0x1 pattern:$0x75316420] }
 0x120   : > { %9648 = vmatprep.subr.bf16.mxu0 %v2945_v28  ;;  %v9243_v50 = vpack.i.b16 %v1298_v16, %v2097_v38  ;;  %v9245_v51 = vpack.i.b16 %v11645_v37, %v1350_v35  ;;  %v9244_v41 = vpack.i.b16 %v1312_v30, %v2099_v46  ;;  %v2947_v53 = vcombine.low %v1327_v34, %v1334_v45  ;;  %v11687_v32 = vld.sshfl [vmem:[%s11495_s14 + $0xf0] sm:$0x33 pattern:$0x75316420] }
 0x121   : > { %v2538_v52 = vcombine.low %v2529_v29, %v2536_v40  ;;  %v2545_v44 = vrot.slane %v2537_v43, %v11527_v13  ;;  %v9246_v57 = vpack.i.b16 %v11653_v48, %v2111_v49  ;;  %v9290_v58 = vcombine.high %v1327_v34, %v1334_v45 }
 0x122   : > { %v765_v59 = vcombine.high %v757_v12, %v757_v12  ;;  %v766_v60 = vcombine.high %v11634_v19, %v11634_v19  ;;  %v2946_v62 = vcombine.low %v9243_v50, %v9244_v41  ;;  %v2963_v63 = vrot.slane %v2947_v53, %v11527_v13  ;;  %v10857_v12 = vld.sshfl [vmem:[%s11495_s14 + $0xe0] sm:$0x33 pattern:$0x75316420] }
 0x123   : > { %v2552_v61 = vrot.slane %v2538_v52, %v11527_v13  ;;  %v2949_v0 = vcombine.low %v9245_v51, %v9246_v57  ;;  %v2970_v1 = vrot.slane %v9290_v58, %v11527_v13  ;;  %v780_v5 = vrot.slane %v10853_v39, %v11527_v13 }
 0x124   : > { %v2956_v3 = vrot.slane %v2946_v62, %v11527_v13  ;;  %v788_v9 = vcombine.high %v10854_v47, %v10854_v47  ;;  %v795_v10 = vrot.slane %v10854_v47, %v11527_v13  ;;  %v818_v11 = vrot.slane %v10855_v55, %v11527_v13  ;;  %v10862_v55 = vld.sshfl [vmem:[%s11495_s14 + $0xac] sm:$0x1 pattern:$0x75316420] }
 0x125   : > { %v2553_v2 = vcombine.low %v2545_v44, %v2552_v61  ;;  %v2977_v7 = vrot.slane %v2949_v0, %v11527_v13  ;;  %v11676_v15 = vrot.slane %v11660_v56, %v11527_v13  ;;  %v1969_v16 = vunpack.i.h.s16 %v11634_v19  ;;  %v10863_v61 = vld.sshfl [vmem:[%s11495_s14 + $0xb0] sm:$0x33 pattern:$0x75316420] }
 0x126   : > { %v2978_v14 = vcombine.low %v2956_v3, %v2963_v63  ;;  %v1971_v17 = vunpack.i.h.s16 %v765_v59  ;;  %v802_v21 = vrot.slane %v788_v9, %v11527_v13  ;;  %v803_v22 = vcombine.high %v795_v10, %v795_v10  ;;  %v11719_v9 = vld.sshfl [vmem:[%s11495_s14 + $0xb8] sm:$0x33 pattern:$0x75316420] }
 0x127   : > { %9649 = vmatpush3.bf16.msra.mxu0 %v2553_v2  ;;  %v2979_v18 = vcombine.low %v2970_v1, %v2977_v7  ;;  %v1973_v8 = vunpack.i.h.s16 %v766_v60  ;;  %v9207_v24 = vpack.i.b16 %v765_v59, %v1969_v16  ;;  %v9210_v26 = vpack.i.b16 %v11676_v15, %v818_v11  ;;  %v10864_v7 = vld.sshfl [vmem:[%s11495_s14 + $0xb4] sm:$0x1 pattern:$0x75316420] }
 0x128   : > { %v2986_v23 = vrot.slane %v2978_v14, %v11527_v13  ;;  %v9208_v25 = vpack.i.b16 %v766_v60, %v1971_v17  ;;  %v804_v28 = vcombine.high %v802_v21, %v802_v21  ;;  %v2556_v29 = vcombine.low %v802_v21, %v803_v22 }
 0x129   : > { %v2993_v27 = vrot.slane %v2979_v18, %v11527_v13  ;;  %v9209_v19 = vpack.i.b16 %v780_v5, %v1973_v8  ;;  %v1624_v39 = vcombine.high %v10857_v12, %v10857_v12  ;;  %v11692_v40 = vrot.slane %v10857_v12, %v11527_v13 }
 0x12a   : > { %v2554_v30 = vcombine.low %v9207_v24, %v9208_v25  ;;  %v2557_v35 = vcombine.low %v804_v28, %v9210_v26  ;;  %v2578_v36 = vrot.slane %v2556_v29, %v11527_v13  ;;  %v1654_v43 = vrot.slane %v10858_v42, %v11527_v13 }
 0x12b   : > { %v2994_v33 = vcombine.low %v2986_v23, %v2993_v27  ;;  %v2555_v34 = vcombine.low %v9209_v19, %v795_v10  ;;  %v1662_v47 = vcombine.high %v10859_v54, %v10859_v54  ;;  %v1669_v49 = vrot.slane %v10859_v54, %v11527_v13  ;;  %v10866_v27 = vld.sshfl [vmem:[%s11495_s14 + $0x3c] sm:$0x1 pattern:$0x75316420] }
 0x12c   : > { %v2564_v38 = vrot.slane %v2554_v30, %v11527_v13  ;;  %v2585_v46 = vrot.slane %v2557_v35, %v11527_v13  ;;  %v11699_v50 = vrot.slane %v1624_v39, %v11527_v13  ;;  %v1373_v51 = vcombine.high %v11645_v37, %v11645_v37 }
 0x12d   : > { %9650 = vmatprep.subr.bf16.mxu0 %v2994_v33  ;;  %v2571_v45 = vrot.slane %v2555_v34, %v11527_v13  ;;  %v1676_v41 = vrot.slane %v1662_v47, %v11527_v13  ;;  %v1677_v53 = vcombine.high %v1669_v49, %v1669_v49  ;;  %v1692_v57 = vrot.slane %v10860_v31, %v11527_v13 }
 0x12e   : > { %v2587_v44 = vcombine.low %v2578_v36, %v2585_v46  ;;  %v1700_v58 = vcombine.high %v11687_v32, %v11687_v32  ;;  %v11710_v59 = vrot.slane %v11687_v32, %v11527_v13  ;;  %v2183_v60 = vunpack.i.h.s16 %v1669_v49  ;;  %v10867_v36 = vld.sshfl [vmem:[%s11495_s14 + $0x40] sm:$0x33 pattern:$0x75316420] }
 0x12f   : > { %v2586_v52 = vcombine.low %v2564_v38, %v2571_v45  ;;  %v1678_v63 = vcombine.high %v1676_v41, %v1676_v41  ;;  %v2185_v0 = vunpack.i.h.s16 %v1676_v41  ;;  %v2187_v2 = vunpack.i.h.s16 %v1677_v53 }
 0x130   : > { %v2601_v62 = vrot.slane %v2587_v44, %v11527_v13  ;;  %v1715_v1 = vcombine.high %v11710_v59, %v11710_v59  ;;  %v9265_v3 = vpack.i.b16 %v1669_v49, %v1654_v43  ;;  %v9266_v5 = vpack.i.b16 %v1676_v41, %v2183_v60 }
 0x131   : > { %v2594_v37 = vrot.slane %v2586_v52, %v11527_v13  ;;  %v2189_v11 = vunpack.i.h.s16 %v1678_v63  ;;  %v9267_v12 = vpack.i.b16 %v1677_v53, %v2185_v0  ;;  %v9292_v14 = vcombine.high %v11692_v40, %v11699_v50 }
 0x132   : > { %v9268_v16 = vpack.i.b16 %v1678_v63, %v2187_v2  ;;  %v3192_v17 = vcombine.low %v9265_v3, %v9266_v5  ;;  %v1374_v42 = vcombine.high %v11653_v48, %v11653_v48  ;;  %v1388_v8 = vrot.slane %v10862_v55, %v11527_v13 }
 0x133   : > { %v2602_v10 = vcombine.low %v2594_v37, %v2601_v62  ;;  %v9269_v54 = vpack.i.b16 %v1692_v57, %v2189_v11  ;;  %v3201_v18 = vrot.slane %v9292_v14, %v11527_v13  ;;  %v1396_v24 = vcombine.high %v10863_v61, %v10863_v61  ;;  %v10868_v62 = vld.sshfl [vmem:[%s11495_s14 + $0xf4] sm:$0x1 pattern:$0x75316420] }
 0x134   : > { %v3193_v21 = vcombine.low %v9267_v12, %v9268_v16  ;;  %v3208_v22 = vrot.slane %v3192_v17, %v11527_v13  ;;  %v1403_v25 = vrot.slane %v10863_v61, %v11527_v13  ;;  %v1426_v26 = vrot.slane %v10864_v7, %v11527_v13  ;;  %v10869_v11 = vld.sshfl [vmem:[%s11495_s14 + $0xf8] sm:$0x33 pattern:$0x75316420] }
 0x135   : > { %9651 = vmatpush3.bf16.msra.mxu0 %v2602_v10  ;;  %v3194_v23 = vcombine.low %v9269_v54, %v11710_v59  ;;  %v11735_v29 = vrot.slane %v11719_v9, %v11527_v13  ;;  %v2113_v30 = vunpack.i.h.s16 %v11653_v48  ;;  %v1410_v33 = vrot.slane %v1396_v24, %v11527_v13 }
 0x136   : > { %v3215_v28 = vrot.slane %v3193_v21, %v11527_v13  ;;  %v3223_v19 = vcombine.low %v3201_v18, %v3208_v22  ;;  %v1411_v34 = vcombine.high %v1403_v25, %v1403_v25  ;;  %v2115_v35 = vunpack.i.h.s16 %v1373_v51  ;;  %v10870_v21 = vld.sshfl [vmem:[%s11495_s14 + $0xfc] sm:$0x1 pattern:$0x75316420] }
 0x137   : > { %v3222_v31 = vrot.slane %v3194_v23, %v11527_v13  ;;  %v2117_v39 = vunpack.i.h.s16 %v1374_v42  ;;  %v9247_v43 = vpack.i.b16 %v1373_v51, %v2113_v30  ;;  %v9250_v45 = vpack.i.b16 %v11735_v29, %v1426_v26 }
 0x138   : > { %v3231_v38 = vrot.slane %v3223_v19, %v11527_v13  ;;  %v1412_v47 = vcombine.high %v1410_v33, %v1410_v33  ;;  %v9248_v49 = vpack.i.b16 %v1374_v42, %v2115_v35  ;;  %v2997_v52 = vcombine.low %v1410_v33, %v1411_v34 }
 0x139   : > { %v3224_v46 = vcombine.low %v3215_v28, %v3222_v31  ;;  %v9249_v44 = vpack.i.b16 %v1388_v8, %v2117_v39  ;;  %v826_v48 = vcombine.high %v11660_v56, %v11660_v56  ;;  %v841_v41 = vcombine.high %v11676_v15, %v11676_v15 }
 0x13a   : > { %v2995_v55 = vcombine.low %v9247_v43, %v9248_v49  ;;  %v2998_v57 = vcombine.low %v1412_v47, %v9250_v45  ;;  %v3019_v51 = vrot.slane %v2997_v52, %v11527_v13  ;;  %v856_v37 = vrot.slane %v10866_v27, %v11527_v13  ;;  %v10871_v45 = vld.sshfl [vmem:[%s11495_s14 + $0xbc] sm:$0x1 pattern:$0x75316420] }
 0x13b   : > { %v3238_v53 = vrot.slane %v3224_v46, %v11527_v13  ;;  %v2996_v60 = vcombine.low %v9249_v44, %v1403_v25  ;;  %v840_v61 = vrot.slane %v826_v48, %v11527_v13  ;;  %v1985_v2 = vunpack.i.h.s16 %v11676_v15  ;;  %v10872_v48 = vld.sshfl [vmem:[%s11495_s14 + $0xc0] sm:$0x33 pattern:$0x75316420] }
 0x13c   : > { %v3005_v0 = vrot.slane %v2995_v55, %v11527_v13  ;;  %v3026_v56 = vrot.slane %v2998_v57, %v11527_v13  ;;  %v864_v7 = vcombine.high %v10867_v36, %v10867_v36  ;;  %v871_v10 = vrot.slane %v10867_v36, %v11527_v13 }
 0x13d   : > { %v3239_v63 = vcombine.low %v3231_v38, %v3238_v53  ;;  %v3012_v3 = vrot.slane %v2996_v60, %v11527_v13  ;;  %v842_v5 = vcombine.high %v840_v61, %v840_v61  ;;  %v1987_v14 = vunpack.i.h.s16 %v840_v61 }
 0x13e   : > { %v3028_v12 = vcombine.low %v3019_v51, %v3026_v56  ;;  %v1989_v16 = vunpack.i.h.s16 %v841_v41  ;;  %v9211_v17 = vpack.i.b16 %v840_v61, %v1985_v2  ;;  %v878_v54 = vrot.slane %v864_v7, %v11527_v13  ;;  %v10873_v7 = vld.sshfl [vmem:[%s11495_s14 + $0x44] sm:$0x1 pattern:$0x75316420] }
 0x13f   : > { %10187 = vmatpush3.bf16.msra.mxu1 %v3239_v63  ;;  %v3027_v42 = vcombine.low %v3005_v0, %v3012_v3  ;;  %v1991_v18 = vunpack.i.h.s16 %v842_v5  ;;  %v1714_v15 = vrot.slane %v1700_v58, %v11527_v13  ;;  %v9212_v8 = vpack.i.b16 %v841_v41, %v1987_v14 }
 0x140   : > { %10188 = vmatprep.subr.bf16.mxu1 %v11183_v6  ;;  %v3042_v22 = vrot.slane %v3028_v12, %v11527_v13  ;;  %v9213_v23 = vpack.i.b16 %v842_v5, %v1989_v16  ;;  %v2605_v26 = vcombine.low %v871_v10, %v878_v54  ;;  %v9287_v27 = vcombine.high %v871_v10, %v878_v54  ;;  %v9193_v16 = vld.sshfl [vmem:[%s11495_s14 + $0x48] sm:$0x33 pattern:$0x75316420] }
 0x141   : > { %v3035_v24 = vrot.slane %v3027_v42, %v11527_v13  ;;  %v9214_v25 = vpack.i.b16 %v856_v37, %v1991_v18  ;;  %v2603_v28 = vcombine.low %v9211_v17, %v9212_v8  ;;  %v1716_v19 = vcombine.high %v1714_v15, %v1714_v15 }
 0x142   : > { %v1730_v30 = vrot.slane %v10868_v62, %v11527_v13  ;;  %v2627_v32 = vrot.slane %v2605_v26, %v11527_v13  ;;  %v2634_v58 = vrot.slane %v9287_v27, %v11527_v13  ;;  %v1738_v35 = vcombine.high %v10869_v11, %v10869_v11 }
 0x143   : > { %v3043_v31 = vcombine.low %v3035_v24, %v3042_v22  ;;  %v2604_v33 = vcombine.low %v9213_v23, %v9214_v25  ;;  %v2613_v34 = vrot.slane %v2603_v28, %v11527_v13  ;;  %v1745_v36 = vrot.slane %v10869_v11, %v11527_v13 }
 0x144   : > { %v2636_v39 = vcombine.low %v2627_v32, %v2634_v58  ;;  %v3240_v43 = vcombine.low %v1714_v15, %v1715_v1  ;;  %v1434_v46 = vcombine.high %v11719_v9, %v11719_v9  ;;  %v1752_v47 = vrot.slane %v1738_v35, %v11527_v13 }
 0x145   : > { %9652 = vmatprep.subr.bf16.mxu0 %v3043_v31  ;;  %v2620_v38 = vrot.slane %v2604_v33, %v11527_v13  ;;  %v1753_v49 = vcombine.high %v1745_v36, %v1745_v36  ;;  %v1768_v52 = vrot.slane %v10870_v21, %v11527_v13  ;;  %v2201_v44 = vunpack.i.h.s16 %v1745_v36 }
 0x146   : > { %v2650_v53 = vrot.slane %v2636_v39, %v11527_v13  ;;  %v9270_v55 = vpack.i.b16 %v1745_v36, %v1730_v30  ;;  %v3250_v57 = vrot.slane %v3240_v43, %v11527_v13  ;;  %v1754_v59 = vcombine.high %v1752_v47, %v1752_v47  ;;  %v10874_v30 = vld.sshfl [vmem:[%s11495_s14 + $0x50] sm:$0x33 pattern:$0x75316420] }
 0x147   : > { %v2635_v41 = vcombine.low %v2613_v34, %v2620_v38  ;;  %v2203_v1 = vunpack.i.h.s16 %v1752_v47  ;;  %v2205_v51 = vunpack.i.h.s16 %v1753_v49  ;;  %v9271_v60 = vpack.i.b16 %v1752_v47, %v2201_v44 }
 0x148   : > { %v3241_v61 = vcombine.low %v1716_v19, %v9270_v55  ;;  %v1448_v37 = vrot.slane %v1434_v46, %v11527_v13  ;;  %v1449_v62 = vcombine.high %v11735_v29, %v11735_v29  ;;  %v2207_v63 = vunpack.i.h.s16 %v1754_v59  ;;  %v10875_v55 = vld.sshfl [vmem:[%s11495_s14 + $0x100] sm:$0x33 pattern:$0x75316420] }
 0x149   : > { %v2643_v9 = vrot.slane %v2635_v41, %v11527_v13  ;;  %v9272_v0 = vpack.i.b16 %v1753_v49, %v2203_v1  ;;  %v9273_v56 = vpack.i.b16 %v1754_v59, %v2205_v51  ;;  %v1464_v12 = vrot.slane %v10871_v45, %v11527_v13 }
 0x14a   : > { %v3257_v3 = vrot.slane %v3241_v61, %v11527_v13  ;;  %v1450_v5 = vcombine.high %v1448_v37, %v1448_v37  ;;  %v9274_v10 = vpack.i.b16 %v1768_v52, %v2207_v63  ;;  %v2129_v14 = vunpack.i.h.s16 %v11735_v29  ;;  %v9194_v29 = vld.sshfl [vmem:[%s11495_s14 + $0x4c] sm:$0x1 pattern:$0x75316420] }
 0x14b   : > { %v2651_v2 = vcombine.low %v2643_v9, %v2650_v53  ;;  %v3242_v11 = vcombine.low %v9271_v60, %v9272_v0  ;;  %v1472_v42 = vcombine.high %v10872_v48, %v10872_v48  ;;  %v1479_v54 = vrot.slane %v10872_v48, %v11527_v13  ;;  %v10877_v9 = vld.sshfl [vmem:[%s11495_s14 + $0x108] sm:$0x33 pattern:$0x75316420] }
 0x14c   : > { %v3272_v17 = vcombine.low %v3250_v57, %v3257_v3  ;;  %v2131_v18 = vunpack.i.h.s16 %v1448_v37  ;;  %v3243_v21 = vcombine.low %v9273_v56, %v9274_v10  ;;  %v2133_v22 = vunpack.i.h.s16 %v1449_v62  ;;  %v10876_v57 = vld.sshfl [vmem:[%s11495_s14 + $0x104] sm:$0x1 pattern:$0x75316420] }
 0x14d   : > { %9653 = vmatpush3.bf16.msra.mxu0 %v2651_v2  ;;  %v3264_v15 = vrot.slane %v3242_v11, %v11527_v13  ;;  %v2135_v8 = vunpack.i.h.s16 %v1450_v5  ;;  %v1486_v24 = vrot.slane %v1472_v42, %v11527_v13  ;;  %v9251_v25 = vpack.i.b16 %v1448_v37, %v2129_v14  ;;  %v10879_v14 = vld.sshfl [vmem:[%s11495_s14 + $0xc8] sm:$0x33 pattern:$0x75316420] }
 0x14e   : > { %v3280_v23 = vrot.slane %v3272_v17, %v11527_v13  ;;  %v9252_v26 = vpack.i.b16 %v1449_v62, %v2131_v18  ;;  %v3271_v27 = vrot.slane %v3243_v21, %v11527_v13  ;;  %v9253_v28 = vpack.i.b16 %v1450_v5, %v2133_v22  ;;  %v11824_v42 = vld.sshfl [vmem:[%s11495_s14 + $0xcc] sm:$0x1 pattern:$0x75316420] }
 0x14f   : > { %v9254_v19 = vpack.i.b16 %v1464_v12, %v2135_v8  ;;  %v3046_v33 = vcombine.low %v1479_v54, %v1486_v24  ;;  %v9291_v32 = vcombine.high %v1479_v54, %v1486_v24  ;;  %v902_v58 = vcombine.high %v9193_v16, %v9193_v16  ;;  %v11820_v12 = vld.sshfl [vmem:[%s11495_s14 + $0xc4] sm:$0x1 pattern:$0x75316420] }
 0x150   : > { %v3044_v31 = vcombine.low %v9251_v25, %v9252_v26  ;;  %v3273_v34 = vcombine.low %v3264_v15, %v3271_v27  ;;  %v894_v36 = vrot.slane %v10873_v7, %v11527_v13  ;;  %v909_v38 = vrot.slane %v9193_v16, %v11527_v13 }
 0x151   : > { %v3045_v35 = vcombine.low %v9253_v28, %v9254_v19  ;;  %v3068_v43 = vrot.slane %v3046_v33, %v11527_v13  ;;  %v3075_v45 = vrot.slane %v9291_v32, %v11527_v13  ;;  %v916_v46 = vrot.slane %v902_v58, %v11527_v13 }
 0x152   : > { %v3054_v39 = vrot.slane %v3044_v31, %v11527_v13  ;;  %v3287_v47 = vrot.slane %v3273_v34, %v11527_v13  ;;  %v917_v52 = vcombine.high %v909_v38, %v909_v38  ;;  %v932_v44 = vrot.slane %v9194_v29, %v11527_v13 }
 0x153   : > { %v3061_v49 = vrot.slane %v3045_v35, %v11527_v13  ;;  %v3077_v48 = vcombine.low %v3068_v43, %v3075_v45  ;;  %v918_v41 = vcombine.high %v916_v46, %v916_v46  ;;  %v2003_v53 = vunpack.i.h.s16 %v909_v38  ;;  %v10881_v35 = vld.sshfl [vmem:[%s11495_s14 + $0xd0] sm:$0x33 pattern:$0x75316420] }
 0x154   : > { %v3288_v59 = vcombine.low %v3280_v23, %v3287_v47  ;;  %v2005_v51 = vunpack.i.h.s16 %v916_v46  ;;  %v2007_v60 = vunpack.i.h.s16 %v917_v52  ;;  %v940_v37 = vcombine.high %v10874_v30, %v10874_v30 }
 0x155   : > { %v3076_v1 = vcombine.low %v3054_v39, %v3061_v49  ;;  %v3091_v61 = vrot.slane %v3077_v48, %v11527_v13  ;;  %v947_v62 = vrot.slane %v10874_v30, %v11527_v13  ;;  %v2009_v63 = vunpack.i.h.s16 %v918_v41 }
 0x156   : > { %10189 = vmatpush3.bf16.msra.mxu1 %v3288_v59  ;;  %v9215_v56 = vpack.i.b16 %v909_v38, %v894_v36  ;;  %v9216_v2 = vpack.i.b16 %v916_v46, %v2003_v53  ;;  %v9217_v3 = vpack.i.b16 %v917_v52, %v2005_v51  ;;  %v11817_v5 = vrot.slane %v940_v37, %v11527_v13 }
 0x157   : > { %v3084_v0 = vrot.slane %v3076_v1, %v11527_v13  ;;  %10190 = vmatprep.subr.bf16.mxu1 %v11183_v6  ;;  %v955_v7 = vcombine.high %v947_v62, %v947_v62  ;;  %v9218_v10 = vpack.i.b16 %v918_v41, %v2007_v60  ;;  %v9219_v11 = vpack.i.b16 %v932_v44, %v2009_v63  ;;  %v10882_v63 = vld.sshfl [vmem:[%s11495_s14 + $0x54] sm:$0x1 pattern:$0x75316420] }
 0x158   : > { %v2652_v17 = vcombine.low %v9215_v56, %v9216_v2  ;;  %v1776_v22 = vcombine.high %v10875_v55, %v10875_v55  ;;  %v1783_v8 = vrot.slane %v10875_v55, %v11527_v13  ;;  %v1806_v23 = vrot.slane %v10876_v57, %v11527_v13 }
 0x159   : > { %v3092_v16 = vcombine.low %v3084_v0, %v3091_v61  ;;  %v2653_v54 = vcombine.low %v9217_v3, %v9218_v10  ;;  %v2654_v18 = vcombine.low %v9219_v11, %v947_v62  ;;  %v2655_v21 = vcombine.low %v11817_v5, %v955_v7  ;;  %v11855_v0 = vld [vmem:[%s11495_s14 + $0x58] sm:$0xf]  ;;  %v10883_v10 = vld.sshfl [vmem:[%s11495_s14 + $0x5c] sm:$0x1 pattern:$0x75316420] }
 0x15a   : > { %v2662_v15 = vrot.slane %v2652_v17, %v11527_v13  ;;  %v1814_v29 = vcombine.high %v10877_v9, %v10877_v9  ;;  %v1790_v27 = vrot.slane %v1776_v22, %v11527_v13  ;;  %v1821_v28 = vrot.slane %v10877_v9, %v11527_v13 }
 0x15b   : > { %9654 = vmatprep.subr.bf16.mxu0 %v3092_v16  ;;  %v2669_v24 = vrot.slane %v2653_v54, %v11527_v13  ;;  %v2676_v25 = vrot.slane %v2654_v18, %v11527_v13  ;;  %v2683_v26 = vrot.slane %v2655_v21, %v11527_v13  ;;  %v1502_v48 = vrot.slane %v11820_v12, %v11527_v13 }
 0x15c   : > { %v1828_v31 = vrot.slane %v1814_v29, %v11527_v13  ;;  %v1829_v33 = vcombine.high %v1821_v28, %v1821_v28  ;;  %v2219_v32 = vunpack.i.h.s16 %v1821_v28  ;;  %v9275_v58 = vpack.i.b16 %v1821_v28, %v1806_v23  ;;  %v11865_v23 = vld [vmem:[%s11495_s14 + $0x60] sm:$0xf] }
 0x15d   : > { %v2684_v19 = vcombine.low %v2662_v15, %v2669_v24  ;;  %v2685_v30 = vcombine.low %v2676_v25, %v2683_v26  ;;  %v3289_v34 = vcombine.low %v1783_v8, %v1790_v27  ;;  %v9293_v47 = vcombine.high %v1783_v8, %v1790_v27 }
 0x15e   : > { %v11839_v39 = vcombine.high %v1828_v31, %v1828_v31  ;;  %v2221_v43 = vunpack.i.h.s16 %v1828_v31  ;;  %v2223_v45 = vunpack.i.h.s16 %v1829_v33  ;;  %v9276_v46 = vpack.i.b16 %v1828_v31, %v2219_v32 }
 0x15f   : > { %v2692_v36 = vrot.slane %v2684_v19, %v11527_v13  ;;  %v2699_v38 = vrot.slane %v2685_v30, %v11527_v13  ;;  %v3299_v49 = vrot.slane %v3289_v34, %v11527_v13  ;;  %v1510_v41 = vcombine.high %v10879_v14, %v10879_v14 }
 0x160   : > { %v9277_v44 = vpack.i.b16 %v1829_v33, %v2221_v43  ;;  %v9278_v53 = vpack.i.b16 %v11839_v39, %v2223_v45  ;;  %v3291_v55 = vcombine.low %v9275_v58, %v9276_v46  ;;  %v3306_v57 = vrot.slane %v9293_v47, %v11527_v13  ;;  %v10884_v46 = vld.sshfl [vmem:[%s11495_s14 + $0x10c] sm:$0x1 pattern:$0x75316420] }
 0x161   : > { %v2700_v52 = vcombine.low %v2692_v36, %v2699_v38  ;;  %v1517_v59 = vrot.slane %v10879_v14, %v11527_v13  ;;  %v1524_v1 = vrot.slane %v1510_v41, %v11527_v13  ;;  %v1540_v51 = vrot.slane %v11824_v42, %v11527_v13  ;;  %v10885_v47 = vld.sshfl [vmem:[%s11495_s14 + $0x110] sm:$0x33 pattern:$0x75316420] }
 0x162   : > { %v956_v60 = vcombine.high %v11817_v5, %v11817_v5  ;;  %v3292_v9 = vcombine.low %v9277_v44, %v9278_v53  ;;  %v3313_v61 = vrot.slane %v3291_v55, %v11527_v13  ;;  %v3321_v37 = vcombine.low %v3299_v49, %v3306_v57 }
 0x163   : > { %9655 = vmatpush3.bf16.msra.mxu0 %v2700_v52  ;;  %v1525_v62 = vcombine.high %v1517_v59, %v1517_v59  ;;  %v1526_v56 = vcombine.high %v1524_v1, %v1524_v1  ;;  %v1548_v2 = vcombine.high %v10881_v35, %v10881_v35  ;;  %v1555_v3 = vrot.slane %v10881_v35, %v11527_v13 }
 0x164   : > { %v2147_v7 = vunpack.i.h.s16 %v1517_v59  ;;  %v3320_v11 = vrot.slane %v3292_v9, %v11527_v13  ;;  %v3329_v12 = vrot.slane %v3321_v37, %v11527_v13  ;;  %v2149_v14 = vunpack.i.h.s16 %v1524_v1  ;;  %v10887_v37 = vld.sshfl [vmem:[%s11495_s14 + $0x118] sm:$0x33 pattern:$0x75316420] }
 0x165   : > { %v2151_v16 = vunpack.i.h.s16 %v1525_v62  ;;  %v11862_v17 = vrot.slane %v1548_v2, %v11527_v13  ;;  %v1563_v42 = vcombine.high %v1555_v3, %v1555_v3  ;;  %v2153_v54 = vunpack.i.h.s16 %v1526_v56 }
 0x166   : > { %v9255_v18 = vpack.i.b16 %v1517_v59, %v1502_v48  ;;  %v3322_v21 = vcombine.low %v3313_v61, %v3320_v11  ;;  %v9256_v15 = vpack.i.b16 %v1524_v1, %v2147_v7  ;;  %v9257_v22 = vpack.i.b16 %v1525_v62, %v2149_v14  ;;  %v10886_v61 = vld.sshfl [vmem:[%s11495_s14 + $0x114] sm:$0x1 pattern:$0x75316420] }
 0x167   : > { %v9258_v8 = vpack.i.b16 %v1526_v56, %v2151_v16  ;;  %v9259_v24 = vpack.i.b16 %v1540_v51, %v2153_v54  ;;  %v3096_v25 = vcombine.low %v11862_v17, %v1563_v42  ;;  %v977_v26 = vrot.slane %v11855_v0, %v11527_v13 }
 0x168   : > { %v3336_v29 = vrot.slane %v3322_v21, %v11527_v13  ;;  %v3093_v27 = vcombine.low %v9255_v18, %v9256_v15  ;;  %v970_v31 = vrot.slane %v10882_v63, %v11527_v13  ;;  %v1008_v43 = vrot.slane %v10883_v10, %v11527_v13 }
 0x169   : > { %v3094_v28 = vcombine.low %v9257_v22, %v9258_v8  ;;  %v3095_v19 = vcombine.low %v9259_v24, %v1555_v3  ;;  %v3124_v30 = vrot.slane %v3096_v25, %v11527_v13  ;;  %v978_v33 = vcombine.high %v977_v26, %v977_v26 }
 0x16a   : > { %v3337_v32 = vcombine.low %v3329_v12, %v3336_v29  ;;  %v3103_v58 = vrot.slane %v3093_v27, %v11527_v13  ;;  %v985_v35 = vrot.slane %v977_v26, %v11527_v13  ;;  %v1015_v45 = vrot.slane %v11865_v23, %v11527_v13  ;;  %v10888_v27 = vld.sshfl [vmem:[%s11495_s14 + $0xd4] sm:$0x1 pattern:$0x75316420] }
 0x16b   : > { %v3110_v34 = vrot.slane %v3094_v28, %v11527_v13  ;;  %v3117_v36 = vrot.slane %v3095_v19, %v11527_v13  ;;  %v992_v38 = vrot.slane %v978_v33, %v11527_v13  ;;  %v1844_v42 = vrot.slane %v10884_v46, %v11527_v13  ;;  %v11911_v28 = vld [vmem:[%s11495_s14 + $0xd8] sm:$0xf] }
 0x16c   : > { %10191 = vmatpush3.bf16.msra.mxu1 %v3337_v32  ;;  %v993_v52 = vcombine.high %v985_v35, %v985_v35  ;;  %v2021_v44 = vunpack.i.h.s16 %v985_v35  ;;  %v9220_v48 = vpack.i.b16 %v985_v35, %v970_v31  ;;  %v1016_v55 = vcombine.high %v1015_v45, %v1015_v45  ;;  %v11914_v32 = vld [vmem:[%s11495_s14 + $0xdc] sm:$0x1] }
 0x16d   : > { %v3125_v49 = vcombine.low %v3103_v58, %v3110_v34  ;;  %v3126_v41 = vcombine.low %v3117_v36, %v3124_v30  ;;  %10192 = vmatprep.subr.bf16.mxu1 %v11183_v6  ;;  %v994_v53 = vcombine.high %v992_v38, %v992_v38  ;;  %v11885_v57 = vrot.slane %v1015_v45, %v11527_v13 }
 0x16e   : > { %v2023_v1 = vunpack.i.h.s16 %v992_v38  ;;  %v2025_v51 = vunpack.i.h.s16 %v993_v52  ;;  %v9221_v9 = vpack.i.b16 %v992_v38, %v2021_v44  ;;  %v11892_v63 = vrot.slane %v1016_v55, %v11527_v13  ;;  %v10889_v44 = vld.sshfl [vmem:[%s11495_s14 + $0x64] sm:$0x1 pattern:$0x75316420] }
 0x16f   : > { %v3133_v59 = vrot.slane %v3125_v49, %v11527_v13  ;;  %v3140_v62 = vrot.slane %v3126_v41, %v11527_v13  ;;  %v2027_v56 = vunpack.i.h.s16 %v994_v53  ;;  %v2701_v2 = vcombine.low %v956_v60, %v9220_v48  ;;  %v11930_v48 = vld [vmem:[%s11495_s14 + $0x68] sm:$0xf] }
 0x170   : > { %v9222_v3 = vpack.i.b16 %v993_v52, %v2023_v1  ;;  %v9223_v7 = vpack.i.b16 %v994_v53, %v2025_v51  ;;  %v2704_v12 = vcombine.low %v11885_v57, %v11892_v63  ;;  %v1852_v54 = vcombine.high %v10885_v47, %v10885_v47 }
 0x171   : > { %v3141_v10 = vcombine.low %v3133_v59, %v3140_v62  ;;  %v9224_v11 = vpack.i.b16 %v1008_v43, %v2027_v56  ;;  %v2711_v14 = vrot.slane %v2701_v2, %v11527_v13  ;;  %v1859_v18 = vrot.slane %v10885_v47, %v11527_v13 }
 0x172   : > { %v2702_v16 = vcombine.low %v9221_v9, %v9222_v3  ;;  %v2732_v60 = vrot.slane %v2704_v12, %v11527_v13  ;;  %v1866_v15 = vrot.slane %v1852_v54, %v11527_v13  ;;  %v2225_v8 = vunpack.i.h.s16 %v11839_v39 }
 0x173   : > { %9656 = vmatprep.subr.bf16.mxu0 %v3141_v10  ;;  %v2703_v5 = vcombine.low %v9223_v7, %v9224_v11  ;;  %v1867_v22 = vcombine.high %v1859_v18, %v1859_v18  ;;  %v1882_v25 = vrot.slane %v10886_v61, %v11527_v13  ;;  %v1890_v26 = vcombine.high %v10887_v37, %v10887_v37 }
 0x174   : > { %v2718_v21 = vrot.slane %v2702_v16, %v11527_v13  ;;  %v1897_v29 = vrot.slane %v10887_v37, %v11527_v13  ;;  %v1868_v30 = vcombine.high %v1866_v15, %v1866_v15  ;;  %v9279_v31 = vpack.i.b16 %v1844_v42, %v2225_v8 }
 0x175   : > { %v2725_v24 = vrot.slane %v2703_v5, %v11527_v13  ;;  %v3339_v33 = vcombine.low %v1866_v15, %v1867_v22  ;;  %v11917_v39 = vrot.slane %v1890_v26, %v11527_v13  ;;  %v1564_v52 = vcombine.high %v11862_v17, %v11862_v17 }
 0x176   : > { %v2733_v19 = vcombine.low %v2711_v14, %v2718_v21  ;;  %v11919_v34 = vcombine.high %v1897_v29, %v1897_v29  ;;  %v2237_v35 = vunpack.i.h.s16 %v1897_v29  ;;  %v9280_v38 = vpack.i.b16 %v1897_v29, %v1882_v25 }
 0x177   : > { %v2734_v58 = vcombine.low %v2725_v24, %v2732_v60  ;;  %v3338_v43 = vcombine.low %v9279_v31, %v1859_v18  ;;  %v3355_v45 = vrot.slane %v3339_v33, %v11527_v13  ;;  %v2239_v47 = vunpack.i.h.s16 %v11917_v39  ;;  %v10890_v18 = vld.sshfl [vmem:[%s11495_s14 + $0x6c] sm:$0x1 pattern:$0x75316420] }
 0x178   : > { %v2741_v36 = vrot.slane %v2733_v19, %v11527_v13  ;;  %v9281_v49 = vpack.i.b16 %v11917_v39, %v2237_v35  ;;  %v3340_v41 = vcombine.low %v1868_v30, %v9280_v38  ;;  %v1585_v55 = vrot.slane %v11911_v28, %v11527_v13 }
 0x179   : > { %v2748_v46 = vrot.slane %v2734_v58, %v11527_v13  ;;  %v3348_v53 = vrot.slane %v3338_v43, %v11527_v13  ;;  %v9282_v1 = vpack.i.b16 %v11919_v34, %v2239_v47  ;;  %v1609_v51 = vrot.slane %v11914_v32, %v11527_v13 }
 0x17a   : > { %v3145_v9 = vcombine.low %v11692_v40, %v11699_v50  ;;  %v3362_v17 = vrot.slane %v3340_v41, %v11527_v13  ;;  %v1578_v37 = vrot.slane %v10888_v27, %v11527_v13  ;;  %v1586_v62 = vcombine.high %v1585_v55, %v1585_v55 }
 0x17b   : > { %v2749_v59 = vcombine.low %v2741_v36, %v2748_v46  ;;  %v3370_v61 = vcombine.low %v3348_v53, %v3355_v45  ;;  %v3341_v56 = vcombine.low %v9281_v49, %v9282_v1  ;;  %v1593_v2 = vrot.slane %v1585_v55, %v11527_v13 }
 0x17c   : > { %v1616_v3 = vrot.slane %v1609_v51, %v11527_v13  ;;  %v3173_v7 = vrot.slane %v3145_v9, %v11527_v13  ;;  %v1600_v11 = vrot.slane %v1586_v62, %v11527_v13  ;;  %v1053_v40 = vrot.slane %v11930_v48, %v11527_v13 }
 0x17d   : > { %9657 = vmatpush3.bf16.msra.mxu0 %v2749_v59  ;;  %v3378_v10 = vrot.slane %v3370_v61, %v11527_v13  ;;  %v3369_v50 = vrot.slane %v3341_v56, %v11527_v13  ;;  %v1601_v12 = vcombine.high %v1593_v2, %v1593_v2  ;;  %v2165_v14 = vunpack.i.h.s16 %v1593_v2 }
 0x17e   : > { %v9260_v16 = vpack.i.b16 %v1593_v2, %v1578_v37  ;;  %v1602_v42 = vcombine.high %v1600_v11, %v1600_v11  ;;  %v2167_v54 = vunpack.i.h.s16 %v1600_v11  ;;  %v1046_v5 = vrot.slane %v10889_v44, %v11527_v13  ;;  %v10891_v44 = vld.sshfl [vmem:[%s11495_s14 + $0x11c] sm:$0x1 pattern:$0x75316420] }
 0x17f   : > { %v1054_v60 = vcombine.high %v1053_v40, %v1053_v40  ;;  %v3371_v21 = vcombine.low %v3362_v17, %v3369_v50  ;;  %v2169_v15 = vunpack.i.h.s16 %v1601_v12  ;;  %v9261_v22 = vpack.i.b16 %v1600_v11, %v2165_v14 }
 0x180   : > { %v3142_v8 = vcombine.low %v1564_v52, %v9260_v16  ;;  %v2171_v24 = vunpack.i.h.s16 %v1602_v42  ;;  %v9262_v25 = vpack.i.b16 %v1601_v12, %v2167_v54  ;;  %v1061_v26 = vrot.slane %v1053_v40, %v11527_v13 }
 0x181   : > { %v1068_v29 = vrot.slane %v1054_v60, %v11527_v13  ;;  %v3385_v27 = vrot.slane %v3371_v21, %v11527_v13  ;;  %v9263_v19 = vpack.i.b16 %v1602_v42, %v2169_v15  ;;  %v1084_v38 = vrot.slane %v10890_v18, %v11527_v13 }
 0x182   : > { %v3152_v30 = vrot.slane %v3142_v8, %v11527_v13  ;;  %v9264_v31 = vpack.i.b16 %v1616_v3, %v2171_v24  ;;  %v3143_v33 = vcombine.low %v9261_v22, %v9262_v25  ;;  %v1069_v58 = vcombine.high %v1061_v26, %v1061_v26  ;;  %v3511_v22 = vld [vmem:[#allocation7] sm:$0xff]  ;;  %v3512_v8 = vld [vmem:[#allocation7 + $0x8] sm:$0xff] }
 0x183   : > { %v1070_v35 = vcombine.high %v1068_v29, %v1068_v29  ;;  %v3386_v36 = vcombine.low %v3378_v10, %v3385_v27  ;;  %v2039_v43 = vunpack.i.h.s16 %v1061_v26  ;;  %v2041_v45 = vunpack.i.h.s16 %v1068_v29  ;;  %v3514_v27 = vld [vmem:[#allocation7 + $0x18] sm:$0xff] }
 0x184   : > { %v3144_v46 = vcombine.low %v9263_v19, %v9264_v31  ;;  %v3159_v47 = vrot.slane %v3143_v33, %v11527_v13  ;;  %v2043_v49 = vunpack.i.h.s16 %v1069_v58  ;;  %v9225_v41 = vpack.i.b16 %v1061_v26, %v1046_v5  ;;  %v3517_v33 = vld [vmem:[#allocation7 + $0x30] sm:$0xff] }
 0x185   : > { %v2045_v52 = vunpack.i.h.s16 %v1070_v35  ;;  %10193 = vmatpush3.bf16.msra.mxu1 %v3386_v36  ;;  %v9226_v53 = vpack.i.b16 %v1068_v29, %v2039_v43  ;;  %v9227_v55 = vpack.i.b16 %v1069_v58, %v2041_v45  ;;  %v9288_v59 = vcombine.high %v11885_v57, %v11892_v63  ;;  %v3513_v29 = vld [vmem:[#allocation7 + $0x10] sm:$0xff]  ;;  %v3518_v58 = vld [vmem:[#allocation7 + $0x38] sm:$0xff]  ;;  %v3519_v36 = vld [vmem:[#allocation7 + $0x40] sm:$0xff] }
 0x186   : > { %v3166_v1 = vrot.slane %v3144_v46, %v11527_v13  ;;  %v3174_v51 = vcombine.low %v3152_v30, %v3159_v47  ;;  %10194 = vmatprep.subr.bf16.mxu1 %v11183_v6  ;;  %v9228_v9 = vpack.i.b16 %v1070_v35, %v2043_v49  ;;  %v1906_v62 = vcombine.high %v11917_v39, %v11917_v39  ;;  %v3516_v30 = vld [vmem:[#allocation7 + $0x28] sm:$0xff]  ;;  %v3521_v45 = vld [vmem:[#allocation7 + $0x50] sm:$0xff]  ;;  %v3522_v46 = vld [vmem:[#allocation7 + $0x58] sm:$0xff] }
 0x187   : > { %v9229_v17 = vpack.i.b16 %v1084_v38, %v2045_v52  ;;  %v2751_v61 = vcombine.low %v9225_v41, %v9226_v53  ;;  %v2760_v37 = vrot.slane %v9288_v59, %v11527_v13  ;;  %v1920_v63 = vrot.slane %v10891_v44, %v11527_v13  ;;  %v3520_v38 = vld [vmem:[#allocation7 + $0x48] sm:$0xff]  ;;  %v3523_v49 = vld [vmem:[#allocation7 + $0x60] sm:$0xff]  ;;  %v3525_v41 = vld [vmem:[#allocation7 + $0x70] sm:$0xff] }
 0x188   : > { %v3175_v56 = vcombine.low %v3166_v1, %v3173_v7  ;;  %v3182_v2 = vrot.slane %v3174_v51, %v11527_v13  ;;  %v2752_v3 = vcombine.low %v9227_v55, %v9228_v9  ;;  %v2241_v11 = vunpack.i.h.s16 %v11919_v34  ;;  %v3524_v52 = vld [vmem:[#allocation7 + $0x68] sm:$0xff]  ;;  %v3526_v53 = vld [vmem:[#allocation7 + $0x78] sm:$0xff] }
 0x189   : > { %v2753_v10 = vcombine.low %v9229_v17, %v11535_v20  ;;  %v2767_v57 = vrot.slane %v2751_v61, %v11527_v13  ;;  %v2243_v40 = vunpack.i.h.s16 %v1906_v62  ;;  %v11184_v18 = vmov 1065369472   ;;  %v3598_v61 = vld [vmem:[#allocation9] sm:$0xff] }
 0x18a   : > { %v3189_v50 = vrot.slane %v3175_v56, %v11527_v13  ;;  %v2774_v12 = vrot.slane %v2752_v3, %v11527_v13  ;;  %v9283_v7 = vpack.i.b16 %v1906_v62, %v2241_v11  ;;  %3462 = vmatprep.mubr.bf16.mxu0 %v11184_v18  ;;  %v10271_v25 = vpack.c.bf16 %v3512_v8, %v3511_v22  ;;  %v3600_v11 = vld [vmem:[#allocation9 + $0x10] sm:$0xff]  ;;  %v10435_v22 = vld [vmem:[#allocation10 + $0xd8] sm:$0xff]  }
 0x18b   : > { %v2781_v14 = vrot.slane %v2753_v10, %v11527_v13  ;;  %v2782_v39 = vcombine.low %v2760_v37, %v2767_v57  ;;  %v9284_v16 = vpack.i.b16 %v1920_v63, %v2243_v40  ;;  %v11186_v26 = vmov 0.0|0.0   ;;  %v3599_v37 = vld [vmem:[#allocation9 + $0x8] sm:$0xff]  ;;  %v3601_v40 = vld [vmem:[#allocation9 + $0x18] sm:$0xff] }
 0x18c   : > { %v3190_v42 = vcombine.low %v3182_v2, %v3189_v50  ;;  %v10274_v19 = vpack.c.bf16 %v3514_v27, %v3513_v29  ;;  %v10280_v35 = vpack.c.bf16 %v3518_v58, %v3517_v33  ;;  %v10283_v43 = vpack.c.bf16 %v3520_v38, %v3519_v36  ;;  %v10434_v8 = vld [vmem:[#allocation10 + $0x58] sm:$0xff]   ;;  %v10438_v29 = vld [vmem:[#allocation10 + $0x60] sm:$0xff]   ;;  %v10445_v33 = vld [vmem:[#allocation10 + $0xa8] sm:$0xff]  }
 0x18d   : > { %v2783_v54 = vcombine.low %v2774_v12, %v2781_v14  ;;  %v2790_v20 = vrot.slane %v2782_v39, %v11527_v13  ;;  %v3387_v5 = vcombine.low %v9283_v7, %v9284_v16  ;;  %v10286_v47 = vpack.c.bf16 %v3522_v46, %v3521_v45  ;;  %v10423_v7 = vld [vmem:[#allocation10 + $0xc0] sm:$0xff]   ;;  %v10446_v58 = vld [vmem:[#allocation10 + $0x70] sm:$0xff]   ;;  %v10450_v45 = vld [vmem:[#allocation10 + $0x78] sm:$0xff]  }
 0x18e   : > { %9658 = vmatprep.subr.bf16.mxu0 %v3190_v42  ;;  %v10289_v44 = vpack.c.bf16 %v3524_v52, %v3523_v49  ;;  %v10292_v55 = vpack.c.bf16 %v3526_v53, %v3525_v41  ;;  %v10295_v57 = vpack.c.bf16 %v3599_v37, %v3598_v61  ;;  %v10298_v50 = vpack.c.bf16 %v3601_v40, %v3600_v11  ;;  %v10422_v16 = vld [vmem:[#allocation10 + $0x40] sm:$0xff]   ;;  %v10448_v36 = vld [vmem:[#allocation10 + $0x30] sm:$0xff]   ;;  %v10453_v46 = vld [vmem:[#allocation10 + $0xb8] sm:$0xff]  }
 0x18f   : > { %v2797_v34 = vrot.slane %v2783_v54, %v11527_v13  ;;  %v3394_v60 = vrot.slane %v3387_v5, %v11527_v13  ;;  %v10425_v42 = vld [vmem:[#allocation10 + $0x80] sm:$0xff]   ;;  %v10428_v5 = vld [vmem:[#allocation10 + $0x8] sm:$0xff]   ;;  %v10449_v38 = vld [vmem:[#allocation10 + $0xb0] sm:$0xff]   ;;  %vm5468_vm8 = vsmask.f32 7938  ;;  %vm5673_vm13 = vcmask 1042432  }
 0x190   : > { %v10424_v54 = vld [vmem:[#allocation10] sm:$0xff]   ;;  %v10706_v40 = vld [vmem:[%s11495_s14 + $0x98] sm:$0xf]  ;;  %vm5474_vm10 = vsmask.f32 256  ;;  %vm12386_vm11 = vmand %vm5467_vm7, %vm5468_vm8  ;;  %vm5674_vm14 = vcmask 1046532  }
 0x191   : > { %v2798_v21 = vcombine.low %v2790_v20, %v2797_v34  ;;  %v3401_v15 = vrot.slane %v3394_v60, %v11527_v13  ;;  %v3515_v13 = vld [vmem:[#allocation7 + $0x20] sm:$0xff]  ;;  %v10429_v20 = vld [vmem:[#allocation10 + $0x88] sm:$0xff]   ;;  %v10431_v34 = vld [vmem:[#allocation10 + $0xd0] sm:$0xff]  }
 0x192   : > { %v10277_v31 = vpack.c.bf16 %v3516_v30, %v3515_v13  ;;  %v10430_v60 = vld [vmem:[#allocation10 + $0x50] sm:$0xff]   ;;  %v10441_v27 = vld [vmem:[#allocation10 + $0xa0] sm:$0xff]   ;;  %v10442_v13 = vld [vmem:[#allocation10 + $0x68] sm:$0xff]  }
 0x193   : > { %9659 = vmatpush3.bf16.msra.mxu0 %v2798_v21  ;;  %v3428_v24 = vsel %vm3426_vm1, %v3401_v15, 0  ;;  %v10433_v21 = vld [vmem:[#allocation10 + $0x90] sm:$0xff]   ;;  %v10443_v30 = vld [vmem:[#allocation10 + $0xe8] sm:$0xff]   ;;  %v10455_v49 = vld [vmem:[#allocation10 + $0x1c0] sm:$0xff]  }
 0x194   : > { %10195 = vmatpush3.bf16.msra.mxu1 %v3428_v24  ;;  %9694 = vmatprep.subr.bf16.mxu0 %v10422_v16  ;;  %v10432_v15 = vld [vmem:[#allocation10 + $0x10] sm:$0xff]   ;;  %v10437_v24 = vld [vmem:[#allocation10 + $0x98] sm:$0xff]   ;;  %v10454_v52 = vld [vmem:[#allocation10 + $0x140] sm:$0xff]  }
 0x195   : > { %10270 = vmatprep.subr.bf16.mxu1 %v11186_v26  ;;  %vm12392_vm12 = vmand %vm5473_vm9, %vm5474_vm10 }
 0x196   : > { %3463 = vmatmul.mubr.bf16.vlgmr.msra.gmra.mrb[0].mxu0 %v11184_v18  ;;  %vm12575_vm15 = vmor %vm5673_vm13, %vm5674_vm14 }
 0x197   : > { %10197 = vmatmul.mubr.msk.bf16.vlgmr.msra.gmra.mrb[0].mxu1 %vm3422_vm2, %v11184_v18  ;;  %9695 = vmatpush3.bf16.msra.mxu0 %v10424_v54  ;;  %v10427_v18 = vld [vmem:[#allocation10 + $0xc8] sm:$0xff]  }
 0x198   : > { %10272 = vmatpush3.bf16.msra.mxu1 %v10271_v25  ;;  %10232 = vmatprep.mubr.msk.f32.mxu1 %vm11185_vm0, %v11183_v6  ;;  %v10436_v25 = vld [vmem:[#allocation10 + $0x18] sm:$0xff]  }
 0x199   : > { %10273 = vmatprep.subr.bf16.mxu1 %v11186_v26 }
 0x19c   : > { %10275 = vmatpush3.bf16.msra.mxu1 %v10274_v19  ;;  %v10440_v19 = vld [vmem:[#allocation10 + $0x20] sm:$0xff]  }
 0x19d   : > { %10276 = vmatprep.subr.bf16.mxu1 %v11186_v26 }
 0x1a0   : > { %10278 = vmatpush3.bf16.msra.mxu1 %v10277_v31  ;;  %v10444_v31 = vld [vmem:[#allocation10 + $0x28] sm:$0xff]  }
 0x1a1   : > { %10279 = vmatprep.subr.bf16.mxu1 %v11186_v26 }
 0x1a4   : > { %10281 = vmatpush3.bf16.msra.mxu1 %v10280_v35  ;;  %v10447_v35 = vld [vmem:[#allocation10 + $0xf0] sm:$0xff]  }
 0x1a5   : > { %10282 = vmatprep.subr.bf16.mxu1 %v11186_v26 }
 0x1a8   : > { %10284 = vmatpush3.bf16.msra.mxu1 %v10283_v43  ;;  %v10451_v43 = vld [vmem:[#allocation10 + $0xf8] sm:$0xff]  }
 0x1a9   : > { %10285 = vmatprep.subr.bf16.mxu1 %v11186_v26 }
 0x1ac   : > { %10287 = vmatpush3.bf16.msra.mxu1 %v10286_v47  ;;  %v10452_v47 = vld [vmem:[#allocation10 + $0x38] sm:$0xff]  }
 0x1ad   : > { %10288 = vmatprep.subr.bf16.mxu1 %v11186_v26 }
 0x1b0   : > { %10290 = vmatpush3.bf16.msra.mxu1 %v10289_v44 }
 0x1b1   : > { %10291 = vmatprep.subr.bf16.mxu1 %v11186_v26 }
 0x1b4   : > { %10293 = vmatpush3.bf16.msra.mxu1 %v10292_v55 }
 0x1b5   : > { %10294 = vmatprep.subr.bf16.mxu1 %v11186_v26 }
 0x269   : > { %v9660_v59 = vpop.f32.mrb[0].mxu0 }
 0x26a   : > { %v9661_v1 = vpop.f32.mrb[1].mxu0  ;;  %v3504_v51 = vpop.f32.mrb[0].mxu1 }
 0x26b   : > { %v9662_v9 = vadd.f32 %v9661_v1, %v9660_v59  ;;  %v9663_v17 = vpop.f32.mrb[2].mxu0  ;;  %v10198_v62 = vpop.f32.mrb[1].mxu1 }
 0x26c   : > { %v9664_v56 = vpop.f32.mrb[3].mxu0  ;;  %v3507_v3 = vpop.f32.mrb[2].mxu1  ;;  %v10702_v62 = vld [vmem:[%s11495_s14 + $0xe0] sm:$0xf] }
 0x26d   : > { %v3505_v2 = vadd.f32 %v9662_v9, %v3504_v51  ;;  %v10199_v10 = vpop.f32.mrb[3].mxu1  ;;  %v3688_v9 = vsub.s32 0, %v11518_v4  ;;  %v10704_v4 = vld [vmem:[%s11495_s14 + $0x90] sm:$0xf] }
 0x26f   : > { %v3510_v63 = vmul.f32 0.00390625, %v3505_v2  ;;  %v10703_v2 = vld [vmem:[%s11495_s14 + $0x50] sm:$0xf] }
 0x271   : > { %10233 = vmatmul.mubr.f32.vlgmr.msra.gmra.mrb[4].mxu1 %v3510_v63  ;;  %v10705_v63 = vld [vmem:[%s11495_s14 + $0x94] sm:$0x1] }
 0x272   : > { %10296 = vmatpush3.bf16.msra.mxu1 %v10295_v57  ;;  %10243 = vmatprep.mubr.msk.f32.mxu1 %vm11185_vm0, %v11183_v6  ;;  %v10426_v6 = vld [vmem:[#allocation10 + $0x48] sm:$0xff]  }
 0x273   : > { %10297 = vmatprep.subr.bf16.mxu1 %v11186_v26  ;;  %9696 = vmatprep.subr.bf16.mxu0 %v10426_v6  ;;  %v10439_v26 = vld [vmem:[#allocation10 + $0xe0] sm:$0xff]  }
 0x274   : > { %9697 = vmatpush3.bf16.msra.mxu0 %v10428_v5 }
 0x275   : > { %9698 = vmatprep.subr.bf16.mxu0 %v10430_v60  ;;  %v10708_v60 = vld [vmem:[%s11495_s14 + $0xe4] sm:$0x1] }
 0x276   : > { %10299 = vmatpush3.bf16.msra.mxu1 %v10298_v50 }
 0x277   : > { %9734 = vmatprep.subr.bf16.mxu1 %v10423_v7 }
 0x278   : > { %9699 = vmatpush3.bf16.msra.mxu0 %v10432_v15 }
 0x279   : > { %9700 = vmatprep.subr.bf16.mxu0 %v10434_v8 }
 0x27c   : > { %9701 = vmatpush3.bf16.msra.mxu0 %v10436_v25 }
 0x27d   : > { %9702 = vmatprep.subr.bf16.mxu0 %v10438_v29 }
 0x280   : > { %9703 = vmatpush3.bf16.msra.mxu0 %v10440_v19 }
 0x281   : > { %9704 = vmatprep.subr.bf16.mxu0 %v10442_v13 }
 0x284   : > { %9705 = vmatpush3.bf16.msra.mxu0 %v10444_v31 }
 0x285   : > { %9706 = vmatprep.subr.bf16.mxu0 %v10446_v58 }
 0x288   : > { %9707 = vmatpush3.bf16.msra.mxu0 %v10448_v36 }
 0x289   : > { %9708 = vmatprep.subr.bf16.mxu0 %v10450_v45 }
 0x28c   : > { %9709 = vmatpush3.bf16.msra.mxu0 %v10452_v47 }
 0x28d   : > { %9774 = vmatprep.subr.bf16.mxu0 %v10454_v52 }
 0x344   : > { %v3593_v12 = vpop.f32.mrb[4].mxu1 }
 0x345   : > { %v3597_v14 = vmax.f32 %v3593_v12, 0.0  ;;  %v10234_v39 = vpop.f32.mrb[5].mxu1  ;;  %v10707_v12 = vld [vmem:[%s11495_s14 + $0x9c] sm:$0x1] }
 0x347   : > { %10244 = vmatmul.mubr.msk.f32.vlgmr.msra.gmra.mrb[6].mxu1 %vm3602_vm3, %v3597_v14 }
 0x348   : > { %9735 = vmatpush3.bf16.msra.mxu1 %v10425_v42 }
 0x349   : > { %9736 = vmatprep.subr.bf16.mxu1 %v10427_v18 }
 0x34c   : > { %9737 = vmatpush3.bf16.msra.mxu1 %v10429_v20 }
 0x34d   : > { %9738 = vmatprep.subr.bf16.mxu1 %v10431_v34 }
 0x350   : > { %9739 = vmatpush3.bf16.msra.mxu1 %v10433_v21 }
 0x351   : > { %9740 = vmatprep.subr.bf16.mxu1 %v10435_v22 }
 0x354   : > { %9741 = vmatpush3.bf16.msra.mxu1 %v10437_v24 }
 0x355   : > { %9742 = vmatprep.subr.bf16.mxu1 %v10439_v26 }
 0x358   : > { %9743 = vmatpush3.bf16.msra.mxu1 %v10441_v27 }
 0x359   : > { %9744 = vmatprep.subr.bf16.mxu1 %v10443_v30 }
 0x35c   : > { %9745 = vmatpush3.bf16.msra.mxu1 %v10445_v33 }
 0x35d   : > { %9746 = vmatprep.subr.bf16.mxu1 %v10447_v35 }
 0x360   : > { %9747 = vmatpush3.bf16.msra.mxu1 %v10449_v38 }
 0x361   : > { %9748 = vmatprep.subr.bf16.mxu1 %v10451_v43 }
 0x364   : > { %9749 = vmatpush3.bf16.msra.mxu1 %v10453_v46 }
 0x365   : > { %9814 = vmatprep.subr.bf16.mxu1 %v10455_v49 }
 0x41a   : > { %v3672_v44 = vpop.f32.mrb[6].mxu1 }
 0x41b   : > { %v9296_v41 = vmul.f32 -1.442695, %v3672_v44  ;;  %v10245_v53 = vpop.f32.mrb[7].mxu1 }
 0x41d   : > { %10634 = vpow2.f32 %v9296_v41 }
 0x427   : > { %v10635_v55 = vpop.eup %10634 }
 0x428   : > { %v3679_v59 = vadd.f32 1.0, %v10635_v55  ;;  %v10709_v55 = vld [vmem:[%s11495_s14 + $0xa0] sm:$0xf] }
 0x42a   : > { %10636 = vrcp.f32 %v3679_v59 }
 0x434   : > { %v10637_v1 = vpop.eup %10636 }
 0x435   : > { %v3682_v51 = vpack.c.bf16 %v10637_v1, %v10637_v1  ;;  %v10710_v1 = vld [vmem:[%s11495_s14 + $0xa4] sm:$0x1] }
 0x437   : > { %v3684_v17 = vpack.i.b16 %v3682_v51, %v3682_v51 }
 0x439   : > { %v3689_v61 = vrot.slane %v3684_v17, %v3688_v9 }
 0x43b   : > { %v11985_v37 = vcombine.low %v3689_v61, %v3689_v61  ;;  %v10456_v61 = vld [vmem:[#allocation10 + $0x100] sm:$0xff]  }
 0x43d   : > { %v11989_v56 = vmul.bf16 %v10702_v62, %v11985_v37  ;;  %v11993_v3 = vmul.bf16 %v10703_v2, %v11985_v37  ;;  %v11997_v10 = vmul.bf16 %v11985_v37, %v11855_v0  ;;  %v3726_v57 = vmul.bf16 %v10704_v4, %v11985_v37  ;;  %v10712_v4 = vld [vmem:[%s11495_s14 + $0xac] sm:$0x1] }
 0x43e   : > { %v3727_v11 = vmul.bf16 %v10705_v63, %v11985_v37  ;;  %v3728_v50 = vmul.bf16 %v10706_v40, %v11985_v37  ;;  %v3729_v14 = vmul.bf16 %v10707_v12, %v11985_v37  ;;  %v12009_v39 = vmul.bf16 %v11985_v37, %v11911_v28  ;;  %v10458_v40 = vld [vmem:[#allocation10 + $0x148] sm:$0xff]  }
 0x43f   : > { %v9310_v0 = vcombine.low %v11993_v3, %v11997_v10  ;;  %v3794_v7 = vshrl.u32 %v3726_v57, 16  ;;  %v3797_v16 = vshll.u32 %v3726_v57, 16  ;;  %v3745_v42 = vmul.bf16 %v11985_v37, %v11914_v32 }
 0x440   : > { %v3803_v54 = vshll.u32 %v3727_v11, 16  ;;  %v3808_v18 = vshrl.u32 %v3728_v50, 16  ;;  %v3811_v6 = vshll.u32 %v3728_v50, 16  ;;  %v3817_v20 = vshll.u32 %v3729_v14, 16 }
 0x441   : > { %5126 = vmatprep.mubr.bf16.mxu1 %v9310_v0  ;;  %v3796_v5 = vrot.slane %v3794_v7, 4  ;;  %v3799_v34 = vrot.slane %v3797_v16, 5  ;;  %v3747_v21 = vmul.bf16 %v10708_v60, %v11985_v37  ;;  %v3926_v28 = vshrl.u32 %v12009_v39, 16  ;;  %v10457_v7 = vld [vmem:[#allocation10 + $0x180] sm:$0xff]   ;;  %v10460_v60 = vld [vmem:[#allocation10 + $0x108] sm:$0xff]  }
 0x442   : > { %v3805_v15 = vrot.slane %v3803_v54, 5  ;;  %v3810_v22 = vrot.slane %v3808_v18, 4  ;;  %v3813_v8 = vrot.slane %v3811_v6, 5  ;;  %v3819_v24 = vrot.slane %v3817_v20, 5 }
 0x443   : > { %v3800_v25 = vor.u32 %v3799_v34, %v3796_v5  ;;  %v3928_v26 = vrot.slane %v3926_v28, 4  ;;  %v3929_v32 = vshll.u32 %v12009_v39, 16  ;;  %v3935_v29 = vshll.u32 %v3745_v42, 16  ;;  %v10459_v34 = vld [vmem:[#allocation10 + $0x1c8] sm:$0xff]  }
 0x444   : > { %v3814_v19 = vor.u32 %v3813_v8, %v3810_v22  ;;  %v3940_v13 = vshrl.u32 %v11989_v56, 16  ;;  %v3943_v30 = vshll.u32 %v11989_v56, 16  ;;  %v3949_v31 = vshll.u32 %v3747_v21, 16  ;;  %v10714_v8 = vld [vmem:[%s11495_s14 + $0xec] sm:$0x1] }
 0x445   : > { %v3801_v33 = vrot.slane %v3800_v25, 4  ;;  %v3931_v58 = vrot.slane %v3929_v32, 5  ;;  %v3937_v35 = vrot.slane %v3935_v29, 5  ;;  %v9298_v36 = vcombine.low %v12009_v39, %v11989_v56  ;;  %v10462_v25 = vld [vmem:[#allocation10 + $0x150] sm:$0xff]  }
 0x446   : > { %v3815_v38 = vrot.slane %v3814_v19, 4  ;;  %v3942_v43 = vrot.slane %v3940_v13, 4  ;;  %v3945_v45 = vrot.slane %v3943_v30, 5  ;;  %v3951_v46 = vrot.slane %v3949_v31, 5  ;;  %v10715_v32 = vld [vmem:[%s11495_s14 + $0xf0] sm:$0xf] }
 0x447   : > { %v3806_v47 = vsel %vm12021_vm6, %v3801_v33, %v3805_v15  ;;  %v3932_v49 = vor.u32 %v3931_v58, %v3928_v26  ;;  %v12033_v52 = vmul.bf16 %v11985_v37, %v11865_v23  ;;  %v12037_v44 = vmul.bf16 %v11985_v37, %v11930_v48  ;;  %v10711_v48 = vld [vmem:[%s11495_s14 + $0xa8] sm:$0xf]  ;;  %v10716_v19 = vld [vmem:[%s11495_s14 + $0xf4] sm:$0x1]  ;;  %v10717_v30 = vld [vmem:[%s11495_s14 + $0x70] sm:$0xf] }
 0x448   : > { %v12041_v41 = vsel %vm12021_vm6, %v3815_v38, %v3819_v24  ;;  %v3946_v53 = vor.u32 %v3945_v45, %v3942_v43  ;;  %v3730_v59 = vmul.bf16 %v10709_v55, %v11985_v37  ;;  %v3731_v51 = vmul.bf16 %v10710_v1, %v11985_v37  ;;  %v10713_v15 = vld [vmem:[%s11495_s14 + $0xe8] sm:$0xf] }
 0x449   : > { %v9302_v9 = vcombine.low %v3806_v47, %v12041_v41  ;;  %v3933_v17 = vrot.slane %v3932_v49, 4  ;;  %v9311_v23 = vcombine.low %v12033_v52, %v12037_v44  ;;  %v3732_v62 = vmul.bf16 %v10711_v48, %v11985_v37  ;;  %v10461_v58 = vld [vmem:[#allocation10 + $0x188] sm:$0xff]   ;;  %v10463_v49 = vld [vmem:[#allocation10 + $0x1d0] sm:$0xff]  }
 0x44a   : > { %v3947_v2 = vrot.slane %v3946_v53, 4  ;;  %v3733_v57 = vmul.bf16 %v10712_v4, %v11985_v37  ;;  %v3822_v63 = vshrl.u32 %v3730_v59, 16  ;;  %v3825_v11 = vshll.u32 %v3730_v59, 16  ;;  %v10464_v53 = vld [vmem:[#allocation10 + $0x110] sm:$0xff]  }
 0x44b   : > { %5061 = vmatprep.mubr.bf16.mxu0 %v9302_v9  ;;  %v3938_v50 = vsel %vm12021_vm6, %v3933_v17, %v3937_v35  ;;  %v3831_v12 = vshll.u32 %v3731_v51, 16  ;;  %v3836_v14 = vshrl.u32 %v3732_v62, 16  ;;  %v3839_v39 = vshll.u32 %v3732_v62, 16  ;;  %v10466_v9 = vld [vmem:[#allocation10 + $0x158] sm:$0xff]  }
 0x44c   : > { %v12058_v0 = vsel %vm12021_vm6, %v3947_v2, %v3951_v46  ;;  %5062 = vmatmul.mubr.bf16.vlgmr.msra.gmra.mrb[4].mxu0 %v9298_v36  ;;  %v3824_v16 = vrot.slane %v3822_v63, 4  ;;  %v3827_v42 = vrot.slane %v3825_v11, 5  ;;  %v3845_v54 = vshll.u32 %v3733_v57, 16  ;;  %v10718_v57 = vld [vmem:[%s11495_s14 + $0x78] sm:$0xf]  ;;  %v10465_v11 = vld [vmem:[#allocation10 + $0x190] sm:$0xff]  }
 0x44d   : > { %v9306_v18 = vcombine.low %v3938_v50, %v12058_v0  ;;  %9775 = vmatpush3.bf16.msra.mxu0 %v10456_v61  ;;  %v3833_v6 = vrot.slane %v3831_v12, 5  ;;  %v3838_v20 = vrot.slane %v3836_v14, 4  ;;  %v3841_v5 = vrot.slane %v3839_v39, 5  ;;  %v10719_v50 = vld [vmem:[%s11495_s14 + $0xb0] sm:$0xf] }
 0x44e   : > { %v3828_v21 = vor.u32 %v3827_v42, %v3824_v16  ;;  %v3847_v28 = vrot.slane %v3845_v54, 5  ;;  %9776 = vmatprep.subr.bf16.mxu0 %v10458_v40  ;;  %v12063_v22 = vmul.bf16 %v10713_v15, %v11985_v37  ;;  %v3749_v24 = vmul.bf16 %v10714_v8, %v11985_v37  ;;  %v10720_v14 = vld [vmem:[%s11495_s14 + $0xb4] sm:$0x1]  ;;  %v10468_v16 = vld [vmem:[#allocation10 + $0x118] sm:$0xff]  }
 0x44f   : > { %5127 = vmatmul.mubr.bf16.vlgmr.msra.gmra.mrb[8].mxu1 %v9306_v18  ;;  %v3842_v26 = vor.u32 %v3841_v5, %v3838_v20  ;;  %v12069_v29 = vmul.bf16 %v10715_v32, %v11985_v37  ;;  %v3751_v13 = vmul.bf16 %v10716_v19, %v11985_v37  ;;  %v12075_v31 = vmul.bf16 %v10717_v30, %v11985_v37  ;;  %v10722_v5 = vld [vmem:[%s11495_s14 + $0xbc] sm:$0x1] }
 0x450   : > { %5134 = vmatprep.mubr.bf16.mxu1 %v9311_v23  ;;  %9815 = vmatpush3.bf16.msra.mxu1 %v10457_v7  ;;  %v3829_v33 = vrot.slane %v3828_v21, 4  ;;  %v3954_v35 = vshrl.u32 %v12063_v22, 16  ;;  %v3957_v36 = vshll.u32 %v12063_v22, 16  ;;  %v3963_v38 = vshll.u32 %v3749_v24, 16  ;;  %v10467_v7 = vld [vmem:[#allocation10 + $0x1d8] sm:$0xff]  }
 0x451   : > { %v3843_v43 = vrot.slane %v3842_v26, 4  ;;  %9816 = vmatprep.subr.bf16.mxu1 %v10459_v34  ;;  %9777 = vmatpush3.bf16.msra.mxu0 %v10460_v60  ;;  %v3968_v45 = vshrl.u32 %v12069_v29, 16  ;;  %v3971_v46 = vshll.u32 %v12069_v29, 16  ;;  %v3977_v47 = vshll.u32 %v3751_v13, 16  ;;  %v10470_v60 = vld [vmem:[#allocation10 + $0x160] sm:$0xff]  }
 0x452   : > { %v12083_v55 = vsel %vm12021_vm6, %v3829_v33, %v3833_v6  ;;  %v3956_v59 = vrot.slane %v3954_v35, 4  ;;  %v3959_v1 = vrot.slane %v3957_v36, 5  ;;  %v3965_v51 = vrot.slane %v3963_v38, 5  ;;  %9778 = vmatprep.subr.bf16.mxu0 %v10462_v25  ;;  %v10721_v6 = vld [vmem:[%s11495_s14 + $0xb8] sm:$0xf] }
 0x453   : > { %v12087_v17 = vsel %vm12021_vm6, %v3843_v43, %v3847_v28  ;;  %v3970_v23 = vrot.slane %v3968_v45, 4  ;;  %v3973_v61 = vrot.slane %v3971_v46, 5  ;;  %v3979_v48 = vrot.slane %v3977_v47, 5  ;;  %v10471_v45 = vld [vmem:[#allocation10 + $0x1e0] sm:$0xff]  }
 0x454   : > { %v9303_v62 = vcombine.low %v12083_v55, %v12087_v17  ;;  %9817 = vmatpush3.bf16.msra.mxu1 %v10461_v58  ;;  %v3960_v2 = vor.u32 %v3959_v1, %v3956_v59  ;;  %v9299_v4 = vcombine.low %v12063_v22, %v12069_v29  ;;  %v12095_v63 = vmul.bf16 %v10718_v57, %v11985_v37  ;;  %v10469_v58 = vld [vmem:[#allocation10 + $0x198] sm:$0xff]   ;;  %v10472_v46 = vld [vmem:[#allocation10 + $0x120] sm:$0xff]   ;;  %v10728_v57 = vld [vmem:[%s11495_s14 + $0x88] sm:$0xf] }
 0x455   : > { %v3974_v40 = vor.u32 %v3973_v61, %v3970_v23  ;;  %9818 = vmatprep.subr.bf16.mxu1 %v10463_v49  ;;  %9779 = vmatpush3.bf16.msra.mxu0 %v10464_v53  ;;  %v3734_v12 = vmul.bf16 %v10719_v50, %v11985_v37  ;;  %v3735_v39 = vmul.bf16 %v10720_v14, %v11985_v37  ;;  %v4218_v42 = vshrl.u32 %v11993_v3, 16  ;;  %v10723_v49 = vld [vmem:[%s11495_s14 + $0xf8] sm:$0xf]  ;;  %v10724_v59 = vld [vmem:[%s11495_s14 + $0xfc] sm:$0x1]  ;;  %v10474_v23 = vld [vmem:[#allocation10 + $0x168] sm:$0xff]  }
 0x456   : > { %5069 = vmatprep.mubr.bf16.mxu0 %v9303_v62  ;;  %v3961_v54 = vrot.slane %v3960_v2, 4  ;;  %v9312_v18 = vcombine.low %v12075_v31, %v12095_v63  ;;  %v3736_v20 = vmul.bf16 %v10721_v6, %v11985_v37  ;;  %v3737_v34 = vmul.bf16 %v10722_v5, %v11985_v37  ;;  %9780 = vmatprep.subr.bf16.mxu0 %v10466_v9  ;;  %v10727_v2 = vld [vmem:[%s11495_s14 + $0x80] sm:$0xf] }
 0x457   : > { %v3975_v21 = vrot.slane %v3974_v40, 4  ;;  %5070 = vmatmul.mubr.bf16.gmra.mrb[8].mxu0 %v9299_v4  ;;  %v3850_v28 = vshrl.u32 %v3734_v12, 16  ;;  %v3853_v15 = vshll.u32 %v3734_v12, 16  ;;  %v3859_v8 = vshll.u32 %v3735_v39, 16  ;;  %v10473_v39 = vld [vmem:[#allocation10 + $0x1a0] sm:$0xff]  }
 0x458   : > { %v12110_v24 = vsel %vm12021_vm6, %v3961_v54, %v3965_v51  ;;  %9819 = vmatpush3.bf16.msra.mxu1 %v10465_v11  ;;  %v3864_v25 = vshrl.u32 %v3736_v20, 16  ;;  %v3867_v26 = vshll.u32 %v3736_v20, 16  ;;  %v3873_v32 = vshll.u32 %v3737_v34, 16  ;;  %v10725_v51 = vld [vmem:[%s11495_s14 + $0x100] sm:$0xf]  ;;  %v10475_v20 = vld [vmem:[#allocation10 + $0x1e8] sm:$0xff]  }
 0x459   : > { %v12114_v19 = vsel %vm12021_vm6, %v3975_v21, %v3979_v48  ;;  %v3852_v13 = vrot.slane %v3850_v28, 4  ;;  %v3855_v30 = vrot.slane %v3853_v15, 5  ;;  %v3861_v33 = vrot.slane %v3859_v8, 5  ;;  %9820 = vmatprep.subr.bf16.mxu1 %v10467_v7  ;;  %9781 = vmatpush3.bf16.msra.mxu0 %v10468_v16  ;;  %v10726_v48 = vld [vmem:[%s11495_s14 + $0x104] sm:$0x1]  ;;  %v10476_v21 = vld [vmem:[#allocation10 + $0x128] sm:$0xff]  }
 0x45a   : > { %v9307_v35 = vcombine.low %v12110_v24, %v12114_v19  ;;  %v3866_v36 = vrot.slane %v3864_v25, 4  ;;  %v3869_v38 = vrot.slane %v3867_v26, 5  ;;  %v3875_v43 = vrot.slane %v3873_v32, 5  ;;  %9782 = vmatprep.subr.bf16.mxu0 %v10470_v60  ;;  %v10478_v26 = vld [vmem:[#allocation10 + $0x170] sm:$0xff]  }
 0x45b   : > { %v3856_v47 = vor.u32 %v3855_v30, %v3852_v13  ;;  %v12120_v53 = vmul.bf16 %v10723_v49, %v11985_v37  ;;  %v3753_v1 = vmul.bf16 %v10724_v59, %v11985_v37  ;;  %v12126_v9 = vmul.bf16 %v10725_v51, %v11985_v37  ;;  %v10479_v49 = vld [vmem:[#allocation10 + $0x1f0] sm:$0xff]  }
 0x45c   : > { %5135 = vmatmul.mubr.bf16.gmra.mrb[12].mxu1 %v9307_v35  ;;  %v3870_v61 = vor.u32 %v3869_v38, %v3866_v36  ;;  %v3755_v62 = vmul.bf16 %v10726_v48, %v11985_v37  ;;  %v12132_v4 = vmul.bf16 %v10727_v2, %v11985_v37  ;;  %v12136_v11 = vmul.bf16 %v10728_v57, %v11985_v37  ;;  %v10729_v36 = vld [vmem:[%s11495_s14 + $0xc0] sm:$0xf]  ;;  %v10734_v48 = vld [vmem:[%s11495_s14 + $0x10c] sm:$0x1]  ;;  %v10480_v2 = vld [vmem:[#allocation10 + $0x130] sm:$0xff]  }
 0x45d   : > { %5142 = vmatprep.mubr.bf16.mxu1 %v9312_v18  ;;  %v3857_v40 = vrot.slane %v3856_v47, 4  ;;  %9821 = vmatpush3.bf16.msra.mxu1 %v10469_v58  ;;  %v3982_v50 = vshrl.u32 %v12120_v53, 16  ;;  %v3985_v12 = vshll.u32 %v12120_v53, 16  ;;  %v3991_v14 = vshll.u32 %v3753_v1, 16  ;;  %v10477_v58 = vld [vmem:[#allocation10 + $0x1a8] sm:$0xff]  }
 0x45e   : > { %v3871_v7 = vrot.slane %v3870_v61, 4  ;;  %v3996_v16 = vshrl.u32 %v12126_v9, 16  ;;  %v3999_v54 = vshll.u32 %v12126_v9, 16  ;;  %v4005_v6 = vshll.u32 %v3755_v62, 16  ;;  %9822 = vmatprep.subr.bf16.mxu1 %v10471_v45  ;;  %9783 = vmatpush3.bf16.msra.mxu0 %v10472_v46  ;;  %v10731_v46 = vld [vmem:[%s11495_s14 + $0xc8] sm:$0xf] }
 0x45f   : > { %v12144_v18 = vsel %vm12021_vm6, %v3857_v40, %v3861_v33  ;;  %v3984_v5 = vrot.slane %v3982_v50, 4  ;;  %v3987_v34 = vrot.slane %v3985_v12, 5  ;;  %v3993_v60 = vrot.slane %v3991_v14, 5  ;;  %9784 = vmatprep.subr.bf16.mxu0 %v10474_v23  ;;  %v10732_v1 = vld [vmem:[%s11495_s14 + $0xcc] sm:$0x1]  ;;  %v10482_v14 = vld [vmem:[#allocation10 + $0x178] sm:$0xff]  }
 0x460   : > { %v12148_v28 = vsel %vm12021_vm6, %v3871_v7, %v3875_v43  ;;  %v3998_v15 = vrot.slane %v3996_v16, 4  ;;  %v4001_v8 = vrot.slane %v3999_v54, 5  ;;  %v4007_v25 = vrot.slane %v4005_v6, 5  ;;  %v10730_v43 = vld [vmem:[%s11495_s14 + $0xc4] sm:$0x1] }
 0x461   : > { %v9304_v32 = vcombine.low %v12144_v18, %v12148_v28  ;;  %v3988_v13 = vor.u32 %v3987_v34, %v3984_v5  ;;  %v9300_v30 = vcombine.low %v12120_v53, %v12126_v9  ;;  %v9313_v33 = vcombine.low %v12132_v4, %v12136_v11  ;;  %9823 = vmatpush3.bf16.msra.mxu1 %v10473_v39  ;;  %v10733_v23 = vld [vmem:[%s11495_s14 + $0x108] sm:$0xf] }
 0x462   : > { %v4002_v35 = vor.u32 %v4001_v8, %v3998_v15  ;;  %v3738_v38 = vmul.bf16 %v10729_v36, %v11985_v37  ;;  %v3739_v45 = vmul.bf16 %v10730_v43, %v11985_v37  ;;  %v3740_v47 = vmul.bf16 %v10731_v46, %v11985_v37  ;;  %9824 = vmatprep.subr.bf16.mxu1 %v10475_v20  ;;  %v10736_v36 = vld [vmem:[%s11495_s14 + $0x114] sm:$0x1]  ;;  %v12188_v43 = vld [vmem:[#allocation10 + $0x200] sm:$0xff]  }
 0x463   : > { %5077 = vmatprep.mubr.bf16.mxu0 %v9304_v32  ;;  %v3989_v59 = vrot.slane %v3988_v13, 4  ;;  %v3741_v51 = vmul.bf16 %v10732_v1, %v11985_v37  ;;  %9785 = vmatpush3.bf16.msra.mxu0 %v10476_v21  ;;  %v12166_v61 = vmul.bf16 %v10733_v23, %v11985_v37  ;;  %v3757_v62 = vmul.bf16 %v10734_v48, %v11985_v37  ;;  %v10481_v21 = vld [vmem:[#allocation10 + $0x1b0] sm:$0xff]   ;;  %v10483_v32 = vld [vmem:[#allocation10 + $0x1f8] sm:$0xff]  }
 0x464   : > { %v4003_v57 = vrot.slane %v4002_v35, 4  ;;  %5078 = vmatmul.mubr.bf16.gmra.mrb[12].mxu0 %v9300_v30  ;;  %v3878_v40 = vshrl.u32 %v3738_v38, 16  ;;  %v3881_v50 = vshll.u32 %v3738_v38, 16  ;;  %v3887_v12 = vshll.u32 %v3739_v45, 16  ;;  %9786 = vmatprep.subr.bf16.mxu0 %v10478_v26  ;;  %v10484_v13 = vld [vmem:[#allocation10 + $0x138] sm:$0xff]  }
 0x465   : > { %v12172_v39 = vsel %vm12021_vm6, %v3989_v59, %v3993_v60  ;;  %v3892_v7 = vshrl.u32 %v3740_v47, 16  ;;  %v3895_v16 = vshll.u32 %v3740_v47, 16  ;;  %v3901_v54 = vshll.u32 %v3741_v51, 16  ;;  %9825 = vmatpush3.bf16.msra.mxu1 %v10477_v58  ;;  %v10735_v58 = vld [vmem:[%s11495_s14 + $0x110] sm:$0xf]  ;;  %v10485_v48 = vld [vmem:[#allocation10 + $0x1b8] sm:$0xff]  }
 0x466   : > { %v12176_v6 = vsel %vm12021_vm6, %v4003_v57, %v4007_v25  ;;  %v9331_v20 = vcombine.low %v12114_v19, %v12172_v39  ;;  %v3880_v5 = vrot.slane %v3878_v40, 4  ;;  %v3883_v34 = vrot.slane %v3881_v50, 5  ;;  %9826 = vmatprep.subr.bf16.mxu1 %v10479_v49  ;;  %v10501_v19 = vld [vmem:[#allocation12 + $0x8] sm:$0xff]  }
 0x467   : > { %v9308_v60 = vcombine.low %v12172_v39, %v12176_v6  ;;  %v3889_v15 = vrot.slane %v3887_v12, 5  ;;  %v3894_v8 = vrot.slane %v3892_v7, 4  ;;  %v3897_v26 = vrot.slane %v3895_v16, 5  ;;  %9787 = vmatpush3.bf16.msra.mxu0 %v10480_v2  ;;  %v10502_v39 = vld [vmem:[#allocation12 + $0xd0] sm:$0xff]  }
 0x468   : > { %v3884_v30 = vor.u32 %v3883_v34, %v3880_v5  ;;  %v3903_v25 = vrot.slane %v3901_v54, 5  ;;  %v12184_v35 = vmul.bf16 %v10735_v58, %v11985_v37  ;;  %v3759_v38 = vmul.bf16 %v10736_v36, %v11985_v37  ;;  %9788 = vmatprep.subr.bf16.mxu0 %v10482_v14 }
 0x469   : > { %5143 = vmatmul.mubr.bf16.gmra.mrb[16].mxu1 %v9308_v60  ;;  %v3898_v45 = vor.u32 %v3897_v26, %v3894_v8  ;;  %v4010_v46 = vshrl.u32 %v12166_v61, 16  ;;  %v4013_v47 = vshll.u32 %v12166_v61, 16  ;;  %v4019_v49 = vshll.u32 %v3757_v62, 16  ;;  %v10737_v60 = vld [vmem:[%s11495_s14 + $0x54] sm:$0x1] }
 0x46a   : > { %5150 = vmatprep.mubr.bf16.mxu1 %v9313_v33  ;;  %v3885_v59 = vrot.slane %v3884_v30, 4  ;;  %v4024_v1 = vshrl.u32 %v12184_v35, 16  ;;  %v4027_v51 = vshll.u32 %v12184_v35, 16  ;;  %v4033_v23 = vshll.u32 %v3759_v38, 16  ;;  %9827 = vmatpush3.bf16.msra.mxu1 %v10481_v21  ;;  %v10738_v8 = vld [vmem:[%s11495_s14 + $0x5c] sm:$0x1] }
 0x46b   : > { %v3899_v2 = vrot.slane %v3898_v45, 4  ;;  %v4012_v57 = vrot.slane %v4010_v46, 4  ;;  %v4015_v40 = vrot.slane %v4013_v47, 5  ;;  %v4021_v50 = vrot.slane %v4019_v49, 5  ;;  %9828 = vmatprep.subr.bf16.mxu1 %v10483_v32  ;;  %9789 = vmatpush3.bf16.msra.mxu0 %v10484_v13 }
 0x46c   : > { %v12196_v62 = vsel %vm12021_vm6, %v3885_v59, %v3889_v15  ;;  %v4026_v33 = vrot.slane %v4024_v1, 4  ;;  %v4029_v12 = vrot.slane %v4027_v51, 5  ;;  %v4035_v14 = vrot.slane %v4033_v23, 5  ;;  %10246 = vmatprep.subr.bf16.mxu0 %v12188_v43  ;;  %v10739_v51 = vld [vmem:[%s11495_s14 + $0x8] sm:$0xf] }
 0x46d   : > { %v12201_v7 = vsel %vm12021_vm6, %v3899_v2, %v3903_v25  ;;  %v4016_v16 = vor.u32 %v4015_v40, %v4012_v57  ;;  %v9301_v54 = vcombine.low %v12166_v61, %v12184_v35  ;;  %v9326_v5 = vcombine.low %v12041_v41, %v12083_v55  ;;  %v10741_v40 = vld [vmem:[%s11495_s14 + $0x10] sm:$0xf] }
 0x46e   : > { %v9305_v34 = vcombine.low %v12196_v62, %v12201_v7  ;;  %v4030_v21 = vor.u32 %v4029_v12, %v4026_v33  ;;  %v3711_v15 = vmul.bf16 %v10737_v60, %v11985_v37  ;;  %v3713_v26 = vmul.bf16 %v10738_v8, %v11985_v37  ;;  %9829 = vmatpush3.bf16.msra.mxu1 %v10485_v48  ;;  %v10740_v48 = vld [vmem:[%s11495_s14 + $0xc] sm:$0x1] }
 0x46f   : > { %v4017_v32 = vrot.slane %v4016_v16, 4  ;;  %v4220_v13 = vrot.slane %v4218_v42, 4  ;;  %v4221_v30 = vshll.u32 %v11993_v3, 16  ;;  %v4232_v25 = vshrl.u32 %v11997_v10, 16 }
 0x470   : > { %5085 = vmatprep.mubr.bf16.mxu0 %v9305_v34  ;;  %v4031_v41 = vrot.slane %v4030_v21, 4  ;;  %v4227_v55 = vshll.u32 %v3711_v15, 16  ;;  %v4235_v58 = vshll.u32 %v11997_v10, 16  ;;  %v4241_v36 = vshll.u32 %v3713_v26, 16 }
 0x471   : > { %v12220_v38 = vsel %vm12021_vm6, %v4017_v32, %v4021_v50  ;;  %5086 = vmatmul.mubr.bf16.gmra.mrb[16].mxu0 %v9301_v54  ;;  %v4223_v45 = vrot.slane %v4221_v30, 5  ;;  %v4234_v42 = vrot.slane %v4232_v25, 4  ;;  %v9322_v3 = vcombine.low %v11989_v56, %v12063_v22  ;;  %v10742_v22 = vld [vmem:[%s11495_s14 + $0x14] sm:$0x1] }
 0x472   : > { %v12226_v46 = vsel %vm12021_vm6, %v4031_v41, %v4035_v14  ;;  %v4229_v47 = vrot.slane %v4227_v55, 5  ;;  %v4237_v49 = vrot.slane %v4235_v58, 5  ;;  %v4243_v10 = vrot.slane %v4241_v36, 5  ;;  %v10744_v36 = vld [vmem:[%s11495_s14 + $0x6c] sm:$0x1] }
 0x473   : > { %v9309_v59 = vcombine.low %v12220_v38, %v12226_v46  ;;  %v4224_v1 = vor.u32 %v4223_v45, %v4220_v13  ;;  %v3694_v23 = vmul.bf16 %v10739_v51, %v11985_v37  ;;  %v3695_v2 = vmul.bf16 %v10740_v48, %v11985_v37 }
 0x474   : > { %v4238_v57 = vor.u32 %v4237_v49, %v4234_v42  ;;  %v3696_v56 = vmul.bf16 %v10741_v40, %v11985_v37  ;;  %v3697_v50 = vmul.bf16 %v10742_v22, %v11985_v37  ;;  %v9327_v33 = vcombine.low %v12087_v17, %v12144_v18 }
 0x475   : > { %5151 = vmatmul.mubr.bf16.gmra.mrb[20].mxu1 %v9309_v59  ;;  %v4225_v12 = vrot.slane %v4224_v1, 4  ;;  %v4086_v14 = vshrl.u32 %v3694_v23, 16  ;;  %v4089_v16 = vshll.u32 %v3694_v23, 16  ;;  %v4095_v54 = vshll.u32 %v3695_v2, 16 }
 0x476   : > { %5256 = vmatprep.mubr.bf16.mxu1 %v9326_v5  ;;  %v4239_v34 = vrot.slane %v4238_v57, 4  ;;  %v4100_v21 = vshrl.u32 %v3696_v56, 16  ;;  %v4103_v60 = vshll.u32 %v3696_v56, 16  ;;  %v4109_v15 = vshll.u32 %v3697_v50, 16  ;;  %v10743_v5 = vld [vmem:[%s11495_s14 + $0x64] sm:$0x1] }
 0x477   : > { %v4230_v8 = vsel %vm12021_vm6, %v4225_v12, %v4229_v47  ;;  %v4088_v26 = vrot.slane %v4086_v14, 4  ;;  %v4091_v32 = vrot.slane %v4089_v16, 5  ;;  %v4097_v13 = vrot.slane %v4095_v54, 5  ;;  %v10745_v16 = vld [vmem:[%s11495_s14 + $0x18] sm:$0xf] }
 0x478   : > { %v4244_v17 = vsel %vm12021_vm6, %v4239_v34, %v4243_v10  ;;  %v4102_v18 = vrot.slane %v4100_v21, 4  ;;  %v4105_v30 = vrot.slane %v4103_v60, 5  ;;  %v4111_v25 = vrot.slane %v4109_v15, 5  ;;  %v10487_v21 = vld [vmem:[#allocation10 + $0x208] sm:$0xff]   ;;  %v10746_v60 = vld [vmem:[%s11495_s14 + $0x1c] sm:$0x1] }
 0x479   : > { %v9318_v41 = vcombine.low %v4230_v8, %v4244_v17  ;;  %v4092_v55 = vor.u32 %v4091_v32, %v4088_v26  ;;  %v3715_v58 = vmul.bf16 %v10743_v5, %v11985_v37  ;;  %v3717_v45 = vmul.bf16 %v10744_v36, %v11985_v37  ;;  %v10747_v8 = vld [vmem:[%s11495_s14 + $0x20] sm:$0xf] }
 0x47a   : > { %v4106_v42 = vor.u32 %v4105_v30, %v4102_v18  ;;  %v4246_v47 = vshrl.u32 %v12033_v52, 16  ;;  %v4249_v49 = vshll.u32 %v12033_v52, 16  ;;  %v4260_v59 = vshrl.u32 %v12037_v44, 16 }
 0x47b   : > { %5191 = vmatprep.mubr.bf16.mxu0 %v9318_v41  ;;  %v4093_v10 = vrot.slane %v4092_v55, 4  ;;  %v4255_v1 = vshll.u32 %v3715_v58, 16  ;;  %v4263_v51 = vshll.u32 %v12037_v44, 16  ;;  %v4269_v23 = vshll.u32 %v3717_v45, 16  ;;  %v10488_v45 = vld [vmem:[#allocation10 + $0x210] sm:$0xff]  }
 0x47c   : > { %v4107_v48 = vrot.slane %v4106_v42, 4  ;;  %v4248_v2 = vrot.slane %v4246_v47, 4  ;;  %v4251_v57 = vrot.slane %v4249_v49, 5  ;;  %v4262_v40 = vrot.slane %v4260_v59, 4 }
 0x47d   : > { %5257 = vmatmul.mubr.bf16.vlgmr.msra.gmra.mrb[24].mxu1 %v9322_v3  ;;  %v4098_v56 = vsel %vm12021_vm6, %v4093_v10, %v4097_v13  ;;  %v4257_v52 = vrot.slane %v4255_v1, 5  ;;  %v4265_v22 = vrot.slane %v4263_v51, 5  ;;  %v4271_v50 = vrot.slane %v4269_v23, 5  ;;  %v10748_v13 = vld [vmem:[%s11495_s14 + $0x24] sm:$0x1] }
 0x47e   : > { %v4112_v12 = vsel %vm12021_vm6, %v4107_v48, %v4111_v25  ;;  %5264 = vmatprep.mubr.bf16.mxu1 %v9327_v33  ;;  %v4252_v44 = vor.u32 %v4251_v57, %v4248_v2  ;;  %v9323_v14 = vcombine.low %v12069_v29, %v12120_v53  ;;  %v3698_v54 = vmul.bf16 %v10745_v16, %v11985_v37  ;;  %v10749_v23 = vld [vmem:[%s11495_s14 + $0x74] sm:$0x1]  ;;  %v10750_v2 = vld [vmem:[%s11495_s14 + $0x7c] sm:$0x1] }
 0x47f   : > { %v9314_v3 = vcombine.low %v4098_v56, %v4112_v12  ;;  %v4266_v34 = vor.u32 %v4265_v22, %v4262_v40  ;;  %v3699_v15 = vmul.bf16 %v10746_v60, %v11985_v37  ;;  %v3700_v26 = vmul.bf16 %v10747_v8, %v11985_v37 }
 0x480   : > { %v4253_v32 = vrot.slane %v4252_v44, 4  ;;  %v3701_v33 = vmul.bf16 %v10748_v13, %v11985_v37  ;;  %v4114_v17 = vshrl.u32 %v3698_v54, 16  ;;  %v4117_v18 = vshll.u32 %v3698_v54, 16 }
 0x481   : > { %5192 = vmatmul.mubr.bf16.vlgmr.msra.gmra.mrb[20].mxu0 %v9314_v3  ;;  %v4267_v29 = vrot.slane %v4266_v34, 4  ;;  %v4123_v53 = vshll.u32 %v3699_v15, 16  ;;  %v4128_v30 = vshrl.u32 %v3700_v26, 16  ;;  %v4131_v25 = vshll.u32 %v3700_v26, 16 }
 0x482   : > { %10247 = vmatpush3.bf16.msra.mxu0 %v12188_v43  ;;  %v4258_v41 = vsel %vm12021_vm6, %v4253_v32, %v4257_v52  ;;  %v4116_v55 = vrot.slane %v4114_v17, 4  ;;  %v4119_v5 = vrot.slane %v4117_v18, 5  ;;  %v4137_v58 = vshll.u32 %v3701_v33, 16  ;;  %v10751_v32 = vld [vmem:[%s11495_s14 + $0x28] sm:$0xf]  ;;  %v10490_v33 = vld [vmem:[#allocation10 + $0x220] sm:$0xff]  }
 0x483   : > { %v4272_v36 = vsel %vm12021_vm6, %v4267_v29, %v4271_v50  ;;  %10248 = vmatprep.subr.bf16.mxu0 %v10487_v21  ;;  %v4125_v42 = vrot.slane %v4123_v53, 5  ;;  %v4130_v47 = vrot.slane %v4128_v30, 4  ;;  %v4133_v49 = vrot.slane %v4131_v25, 5  ;;  %v10752_v17 = vld [vmem:[%s11495_s14 + $0x2c] sm:$0x1] }
 0x484   : > { %v9319_v59 = vcombine.low %v4258_v41, %v4272_v36  ;;  %v4120_v10 = vor.u32 %v4119_v5, %v4116_v55  ;;  %v4139_v1 = vrot.slane %v4137_v58, 5  ;;  %v9328_v43 = vcombine.low %v12148_v28, %v12196_v62  ;;  %v10753_v29 = vld [vmem:[%s11495_s14 + $0x30] sm:$0xf]  ;;  %v10754_v30 = vld [vmem:[%s11495_s14 + $0x34] sm:$0x1] }
 0x485   : > { %5265 = vmatmul.mubr.bf16.gmra.mrb[28].mxu1 %v9323_v14  ;;  %v4134_v51 = vor.u32 %v4133_v49, %v4130_v47  ;;  %v3719_v48 = vmul.bf16 %v10749_v23, %v11985_v37  ;;  %v3721_v57 = vmul.bf16 %v10750_v2, %v11985_v37  ;;  %v4274_v40 = vshrl.u32 %v12075_v31, 16  ;;  %v10489_v14 = vld [vmem:[#allocation10 + $0x218] sm:$0xff]   ;;  %v10755_v41 = vld [vmem:[%s11495_s14 + $0xd0] sm:$0xf] }
 0x486   : > { %5199 = vmatprep.mubr.bf16.mxu0 %v9319_v59  ;;  %10249 = vmatpush3.bf16.msra.mxu0 %v10487_v21  ;;  %v4121_v56 = vrot.slane %v4120_v10, 4  ;;  %v4277_v52 = vshll.u32 %v12075_v31, 16  ;;  %v4288_v22 = vshrl.u32 %v12095_v63, 16  ;;  %v4291_v50 = vshll.u32 %v12095_v63, 16 }
 0x487   : > { %10250 = vmatprep.subr.bf16.mxu0 %v10488_v45  ;;  %v4135_v28 = vrot.slane %v4134_v51, 4  ;;  %5272 = vmatprep.mubr.bf16.mxu1 %v9328_v43  ;;  %v4276_v62 = vrot.slane %v4274_v40, 4  ;;  %v4283_v12 = vshll.u32 %v3719_v48, 16  ;;  %v4297_v44 = vshll.u32 %v3721_v57, 16  ;;  %v10491_v48 = vld [vmem:[#allocation10 + $0x228] sm:$0xff]  }
 0x488   : > { %v4126_v16 = vsel %vm12021_vm6, %v4121_v56, %v4125_v42  ;;  %v4279_v54 = vrot.slane %v4277_v52, 5  ;;  %v4290_v3 = vrot.slane %v4288_v22, 4  ;;  %v4293_v31 = vrot.slane %v4291_v50, 5  ;;  %v10756_v40 = vld [vmem:[%s11495_s14 + $0xd4] sm:$0x1] }
 0x489   : > { %v4140_v34 = vsel %vm12021_vm6, %v4135_v28, %v4139_v1  ;;  %v4285_v63 = vrot.slane %v4283_v12, 5  ;;  %v4299_v21 = vrot.slane %v4297_v44, 5  ;;  %v9324_v60 = vcombine.low %v12126_v9, %v12166_v61  ;;  %v10757_v28 = vld [vmem:[%s11495_s14 + $0x84] sm:$0x1]  ;;  %v10758_v12 = vld [vmem:[%s11495_s14 + $0x8c] sm:$0x1] }
 0x48a   : > { %v9315_v15 = vcombine.low %v4126_v16, %v4140_v34  ;;  %10251 = vmatpush3.bf16.msra.mxu0 %v10488_v45  ;;  %v4280_v8 = vor.u32 %v4279_v54, %v4276_v62  ;;  %v4294_v26 = vor.u32 %v4293_v31, %v4290_v3  ;;  %v3702_v13 = vmul.bf16 %v10751_v32, %v11985_v37 }
 0x48b   : > { %10252 = vmatprep.subr.bf16.mxu0 %v10489_v14  ;;  %v3703_v18 = vmul.bf16 %v10752_v17, %v11985_v37  ;;  %v3704_v53 = vmul.bf16 %v10753_v29, %v11985_v37  ;;  %v3705_v25 = vmul.bf16 %v10754_v30, %v11985_v37  ;;  %v3742_v9 = vmul.bf16 %v10755_v41, %v11985_v37 }
 0x48c   : > { %5200 = vmatmul.mubr.bf16.gmra.mrb[24].mxu0 %v9315_v15  ;;  %v4281_v61 = vrot.slane %v4280_v8, 4  ;;  %v4295_v55 = vrot.slane %v4294_v26, 4  ;;  %v4142_v5 = vshrl.u32 %v3702_v13, 16  ;;  %v4145_v58 = vshll.u32 %v3702_v13, 16 }
 0x48d   : > { %5273 = vmatmul.mubr.bf16.gmra.mrb[32].mxu1 %v9324_v60  ;;  %v4151_v36 = vshll.u32 %v3703_v18, 16  ;;  %v4156_v45 = vshrl.u32 %v3704_v53, 16  ;;  %v4159_v42 = vshll.u32 %v3704_v53, 16  ;;  %v4165_v23 = vshll.u32 %v3705_v25, 16  ;;  %v10492_v60 = vld [vmem:[#allocation10 + $0x230] sm:$0xff]  }
 0x48e   : > { %v4286_v47 = vsel %vm12021_vm6, %v4281_v61, %v4285_v63  ;;  %v4300_v49 = vsel %vm12021_vm6, %v4295_v55, %v4299_v21  ;;  %10253 = vmatpush3.bf16.msra.mxu0 %v10489_v14  ;;  %v4144_v59 = vrot.slane %v4142_v5, 4  ;;  %v4147_v10 = vrot.slane %v4145_v58, 5  ;;  %v10760_v55 = vld [vmem:[%s11495_s14 + $0x38] sm:$0xf] }
 0x48f   : > { %v9320_v1 = vcombine.low %v4286_v47, %v4300_v49  ;;  %10254 = vmatprep.subr.bf16.mxu0 %v10490_v33  ;;  %v4158_v43 = vrot.slane %v4156_v45, 4  ;;  %v4161_v51 = vrot.slane %v4159_v42, 5  ;;  %v4153_v57 = vrot.slane %v4151_v36, 5  ;;  %v10493_v58 = vld [vmem:[#allocation10 + $0x238] sm:$0xff]   ;;  %v10762_v47 = vld [vmem:[%s11495_s14 + $0x40] sm:$0xf] }
 0x490   : > { %v4148_v2 = vor.u32 %v4147_v10, %v4144_v59  ;;  %v3743_v56 = vmul.bf16 %v10756_v40, %v11985_v37  ;;  %v4364_v52 = vshrl.u32 %v3742_v9, 16  ;;  %v4367_v50 = vshll.u32 %v3742_v9, 16  ;;  %v10759_v9 = vld [vmem:[%s11495_s14 + $0x118] sm:$0xf]  ;;  %v10761_v42 = vld [vmem:[%s11495_s14 + $0x3c] sm:$0x1] }
 0x491   : > { %5207 = vmatprep.mubr.bf16.mxu0 %v9320_v1  ;;  %v4162_v22 = vor.u32 %v4161_v51, %v4158_v43  ;;  %v3723_v62 = vmul.bf16 %v10757_v28, %v11985_v37  ;;  %v3725_v44 = vmul.bf16 %v10758_v12, %v11985_v37  ;;  %v4302_v3 = vshrl.u32 %v12132_v4, 16  ;;  %v10763_v43 = vld [vmem:[%s11495_s14 + $0x44] sm:$0x1] }
 0x492   : > { %v4149_v14 = vrot.slane %v4148_v2, 4  ;;  %v4366_v16 = vrot.slane %v4364_v52, 4  ;;  %v4373_v54 = vshll.u32 %v3743_v56, 16  ;;  %10255 = vmatpush3.bf16.msra.mxu0 %v10490_v33  ;;  %v4167_v34 = vrot.slane %v4165_v23, 5 }
 0x493   : > { %v4163_v31 = vrot.slane %v4162_v22, 4  ;;  %v4369_v63 = vrot.slane %v4367_v50, 5  ;;  %v4305_v21 = vshll.u32 %v12132_v4, 16  ;;  %10256 = vmatprep.subr.bf16.mxu0 %v10491_v48  ;;  %v4304_v8 = vrot.slane %v4302_v3, 4 }
 0x494   : > { %v4154_v15 = vsel %vm12021_vm6, %v4149_v14, %v4153_v57  ;;  %v4311_v26 = vshll.u32 %v3723_v62, 16  ;;  %v4316_v32 = vshrl.u32 %v12136_v11, 16  ;;  %v4375_v17 = vrot.slane %v4373_v54, 5 }
 0x495   : > { %v4168_v13 = vsel %vm12021_vm6, %v4163_v31, %v4167_v34  ;;  %v4370_v33 = vor.u32 %v4369_v63, %v4366_v16  ;;  %v4307_v18 = vrot.slane %v4305_v21, 5  ;;  %v4319_v53 = vshll.u32 %v12136_v11, 16 }
 0x496   : > { %v9316_v29 = vcombine.low %v4154_v15, %v4168_v13  ;;  %v4318_v4 = vrot.slane %v4316_v32, 4  ;;  %v4325_v30 = vshll.u32 %v3725_v44, 16  ;;  %10257 = vmatpush3.bf16.msra.mxu0 %v10491_v48  ;;  %v3760_v61 = vmul.bf16 %v10759_v9, %v11985_v37  ;;  %v10494_v9 = vld [vmem:[#allocation12 + $0xc0] sm:$0xff]  }
 0x497   : > { %v4371_v25 = vrot.slane %v4370_v33, 4  ;;  %v4308_v41 = vor.u32 %v4307_v18, %v4304_v8  ;;  %10258 = vmatprep.subr.bf16.mxu0 %v10492_v60  ;;  %v3706_v5 = vmul.bf16 %v10760_v55, %v11985_v37  ;;  %v4313_v36 = vrot.slane %v4311_v26, 5  ;;  %v10764_v18 = vld [vmem:[%s11495_s14 + $0x11c] sm:$0x1]  ;;  %v10497_v55 = vld [vmem:[#allocation12] sm:$0xff]  }
 0x498   : > { %5208 = vmatmul.mubr.bf16.gmra.mrb[28].mxu0 %v9316_v29  ;;  %v4321_v45 = vrot.slane %v4319_v53, 5  ;;  %v3707_v11 = vmul.bf16 %v10761_v42, %v11985_v37  ;;  %v3708_v49 = vmul.bf16 %v10762_v47, %v11985_v37  ;;  %v4327_v1 = vrot.slane %v4325_v30, 5  ;;  %v10506_v42 = vld [vmem:[#allocation12 + $0xd8] sm:$0xff]  }
 0x499   : > { %v4376_v59 = vsel %vm12021_vm6, %v4371_v25, %v4375_v17  ;;  %v4309_v10 = vrot.slane %v4308_v41, 4  ;;  %v3709_v51 = vmul.bf16 %v10763_v43, %v11985_v37  ;;  %v4170_v2 = vshrl.u32 %v3706_v5, 16  ;;  %v10509_v43 = vld [vmem:[#allocation12 + $0x18] sm:$0xff]  }
 0x49a   : > { %v9329_v23 = vcombine.low %v12201_v7, %v4376_v59  ;;  %v4322_v48 = vor.u32 %v4321_v45, %v4318_v4  ;;  %v4173_v57 = vshll.u32 %v3706_v5, 16  ;;  %10259 = vmatpush3.bf16.msra.mxu0 %v10492_v60  ;;  %v9325_v56 = vcombine.low %v12184_v35, %v3760_v61  ;;  %v10498_v5 = vld [vmem:[#allocation12 + $0xc8] sm:$0xff]   ;;  %v10505_v45 = vld [vmem:[#allocation12 + $0x10] sm:$0xff]   ;;  %v10508_v59 = vld [vmem:[#allocation12 + $0x98] sm:$0xff]  }
 0x49b   : > { %v4314_v40 = vsel %vm12021_vm6, %v4309_v10, %v4313_v36  ;;  %v4184_v52 = vshrl.u32 %v3708_v49, 16  ;;  %v4187_v22 = vshll.u32 %v3708_v49, 16  ;;  %10260 = vmatprep.subr.bf16.mxu0 %v10493_v58  ;;  %v4172_v28 = vrot.slane %v4170_v2, 4  ;;  %v10511_v2 = vld [vmem:[#allocation12 + $0x60] sm:$0xff]  }
 0x49c   : > { %5280 = vmatprep.mubr.bf16.mxu1 %v9329_v23  ;;  %v4323_v50 = vrot.slane %v4322_v48, 4  ;;  %v4175_v62 = vrot.slane %v4173_v57, 5  ;;  %v4179_v12 = vshll.u32 %v3707_v11, 16  ;;  %v4193_v14 = vshll.u32 %v3709_v51, 16  ;;  %v10507_v11 = vld [vmem:[#allocation12 + $0x58] sm:$0xff]   ;;  %v10510_v51 = vld [vmem:[#allocation12 + $0xe0] sm:$0xff]  }
 0x49d   : > { %5281 = vmatmul.mubr.bf16.gmra.mrb[36].mxu1 %v9325_v56  ;;  %v4186_v44 = vrot.slane %v4184_v52, 4  ;;  %v4189_v7 = vrot.slane %v4187_v22, 5  ;;  %v4391_v60 = vshrl.u32 %v3760_v61, 16  ;;  %v4394_v15 = vshll.u32 %v3760_v61, 16  ;;  %v10496_v61 = vld [vmem:[#allocation12 + $0x80] sm:$0xff]  }
 0x49e   : > { %v4328_v16 = vsel %vm12021_vm6, %v4323_v50, %v4327_v1  ;;  %v4176_v54 = vor.u32 %v4175_v62, %v4172_v28  ;;  %10261 = vmatpush3.bf16.msra.mxu0 %v10493_v58  ;;  %v4181_v34 = vrot.slane %v4179_v12, 5  ;;  %v4195_v21 = vrot.slane %v4193_v14, 5  ;;  %v10504_v58 = vld [vmem:[#allocation12 + $0x90] sm:$0xff]   ;;  %v10512_v52 = vld [vmem:[#allocation12 + $0xa0] sm:$0xff]   ;;  %v10514_v62 = vld [vmem:[#allocation12 + $0xe8] sm:$0xff]  }
 0x49f   : > { %v9321_v3 = vcombine.low %v4314_v40, %v4328_v16  ;;  %v4190_v31 = vor.u32 %v4189_v7, %v4186_v44  ;;  %v9330_v13 = vcombine.low %v12058_v0, %v12110_v24  ;;  %v4393_v33 = vrot.slane %v4391_v60, 4  ;;  %9906 = vmatprep.subr.bf16.mxu0 %v10494_v9  ;;  %v10513_v28 = vld [vmem:[#allocation12 + $0x20] sm:$0xff]   ;;  %v10515_v12 = vld [vmem:[#allocation12 + $0x68] sm:$0xff]  }
 0x4a0   : > { %v4177_v35 = vrot.slane %v4176_v54, 4  ;;  %v4396_v17 = vrot.slane %v4394_v15, 5  ;;  %v3761_v29 = vmul.bf16 %v10764_v18, %v11985_v37  ;;  %v9332_v30 = vcombine.low %v12176_v6, %v12220_v38  ;;  %v10495_v37 = vld [vmem:[#allocation12 + $0x40] sm:$0xff]   ;;  %v10499_v6 = vld [vmem:[#allocation12 + $0x48] sm:$0xff]   ;;  %v10519_v54 = vld [vmem:[#allocation12 + $0xf0] sm:$0xff]  }
 0x4a1   : > { %5215 = vmatprep.mubr.bf16.mxu0 %v9321_v3  ;;  %v4191_v63 = vrot.slane %v4190_v31, 4  ;;  %9866 = vmatprep.subr.bf16.mxu1 %v10495_v37  ;;  %v10500_v38 = vld [vmem:[#allocation12 + $0x88] sm:$0xff]   ;;  %v10520_v31 = vld [vmem:[#allocation12 + $0x70] sm:$0xff]   ;;  %v10526_v18 = vld [vmem:[#allocation12 + $0xb8] sm:$0xff]  }
 0x4a2   : > { %v4182_v8 = vsel %vm12021_vm6, %v4177_v35, %v4181_v34  ;;  %v4397_v4 = vor.u32 %v4396_v17, %v4393_v33  ;;  %v4400_v53 = vshll.u32 %v3761_v29, 16  ;;  %9867 = vmatpush3.bf16.msra.mxu1 %v10497_v55  ;;  %v10516_v7 = vld [vmem:[#allocation12 + $0xa8] sm:$0xff]   ;;  %v10523_v15 = vld [vmem:[#allocation12 + $0x30] sm:$0xff]  }
 0x4a3   : > { %v4196_v26 = vsel %vm12021_vm6, %v4191_v63, %v4195_v21  ;;  %9868 = vmatprep.subr.bf16.mxu1 %v10499_v6  ;;  %v10517_v16 = vld [vmem:[#allocation12 + $0x28] sm:$0xff]   ;;  %v10522_v21 = vld [vmem:[#allocation12 + $0xb0] sm:$0xff]  }
 0x4a4   : > { %v9317_v32 = vcombine.low %v4182_v8, %v4196_v26  ;;  %v4398_v25 = vrot.slane %v4397_v4, 4  ;;  %v4402_v41 = vrot.slane %v4400_v53, 5  ;;  %v10524_v8 = vld [vmem:[#allocation12 + $0xf8] sm:$0xff]   ;;  %v10528_v53 = vld [vmem:[#allocation12 + $0x1c0] sm:$0xff]  }
 0x4a5   : > { %v10527_v4 = vld [vmem:[#allocation12 + $0x38] sm:$0xff]  }
 0x4a6   : > { %5216 = vmatmul.mubr.bf16.gmra.mrb[32].mxu0 %v9317_v32  ;;  %v4403_v0 = vsel %vm12021_vm6, %v4398_v25, %v4402_v41  ;;  %9869 = vmatpush3.bf16.msra.mxu1 %v10501_v19  ;;  %v10525_v32 = vld [vmem:[#allocation12 + $0x78] sm:$0xff]   ;;  %v10531_v41 = vld [vmem:[#allocation12 + $0x140] sm:$0xff]  }
 0x4a7   : > { %10262 = vmatprep.mubr.bf16.mxu0 %v9330_v13  ;;  %v9333_v24 = vcombine.low %v12226_v46, %v4403_v0  ;;  %v10503_v46 = vld [vmem:[#allocation12 + $0x50] sm:$0xff]  }
 0x4a8   : > { %9870 = vmatprep.subr.bf16.mxu1 %v10503_v46 }
 0x4aa   : > { %9871 = vmatpush3.bf16.msra.mxu1 %v10505_v45 }
 0x4ab   : > { %9872 = vmatprep.subr.bf16.mxu1 %v10507_v11 }
 0x4ae   : > { %10263 = vmatmul.mubr.bf16.vlgmr.msra.gmra.mrb[36].mxu0 %v9331_v20  ;;  %9873 = vmatpush3.bf16.msra.mxu1 %v10509_v43 }
 0x4af   : > { %10266 = vmatprep.mubr.bf16.mxu0 %v9332_v30  ;;  %9907 = vmatpush3.bf16.msra.mxu0 %v10496_v61 }
 0x4b0   : > { %9908 = vmatprep.subr.bf16.mxu0 %v10498_v5  ;;  %9874 = vmatprep.subr.bf16.mxu1 %v10511_v2 }
 0x4b2   : > { %9875 = vmatpush3.bf16.msra.mxu1 %v10513_v28 }
 0x4b3   : > { %9909 = vmatpush3.bf16.msra.mxu0 %v10500_v38  ;;  %9876 = vmatprep.subr.bf16.mxu1 %v10515_v12 }
 0x4b4   : > { %9910 = vmatprep.subr.bf16.mxu0 %v10502_v39 }
 0x4b6   : > { %10267 = vmatmul.mubr.bf16.gmra.mrb[40].mxu0 %v9333_v24  ;;  %9877 = vmatpush3.bf16.msra.mxu1 %v10517_v16 }
 0x4b7   : > { %9911 = vmatpush3.bf16.msra.mxu0 %v10504_v58  ;;  %9878 = vmatprep.subr.bf16.mxu1 %v10520_v31 }
 0x4b8   : > { %9912 = vmatprep.subr.bf16.mxu0 %v10506_v42 }
 0x4ba   : > { %9879 = vmatpush3.bf16.msra.mxu1 %v10523_v15 }
 0x4bb   : > { %9913 = vmatpush3.bf16.msra.mxu0 %v10508_v59  ;;  %9880 = vmatprep.subr.bf16.mxu1 %v10525_v32 }
 0x4bc   : > { %9914 = vmatprep.subr.bf16.mxu0 %v10510_v51 }
 0x4be   : > { %9881 = vmatpush3.bf16.msra.mxu1 %v10527_v4 }
 0x4bf   : > { %9915 = vmatpush3.bf16.msra.mxu0 %v10512_v52  ;;  %9946 = vmatprep.subr.bf16.mxu1 %v10531_v41 }
 0x4c0   : > { %9916 = vmatprep.subr.bf16.mxu0 %v10514_v62 }
 0x4c3   : > { %9917 = vmatpush3.bf16.msra.mxu0 %v10516_v7 }
 0x4c4   : > { %9918 = vmatprep.subr.bf16.mxu0 %v10519_v54 }
 0x4c7   : > { %9919 = vmatpush3.bf16.msra.mxu0 %v10522_v21 }
 0x4c8   : > { %9920 = vmatprep.subr.bf16.mxu0 %v10524_v8 }
 0x4cb   : > { %9921 = vmatpush3.bf16.msra.mxu0 %v10526_v18 }
 0x4cc   : > { %9986 = vmatprep.subr.bf16.mxu0 %v10528_v53 }
 0x51f   : > { %v9710_v20 = vpop.f32.mrb[4].mxu0 }
 0x520   : > { %v9711_v36 = vpop.f32.mrb[5].mxu0 }
 0x521   : > { %v9712_v47 = vadd.f32 %v9711_v36, %v9710_v20  ;;  %v9713_v49 = vpop.f32.mrb[6].mxu0 }
 0x522   : > { %v9750_v10 = vpop.f32.mrb[8].mxu1  ;;  %v9714_v1 = vpop.f32.mrb[7].mxu0 }
 0x523   : > { %v9751_v23 = vpop.f32.mrb[9].mxu1  ;;  %v9715_v48 = vadd.f32 %v9714_v1, %v9713_v49 }
 0x524   : > { %v9752_v57 = vadd.f32 %v9751_v23, %v9750_v10  ;;  %v9753_v40 = vpop.f32.mrb[10].mxu1 }
 0x525   : > { %v9754_v56 = vpop.f32.mrb[11].mxu1 }
 0x526   : > { %v12349_v22 = vadd.f32 %v9752_v57, %v9712_v47  ;;  %v9755_v50 = vadd.f32 %v9754_v56, %v9753_v40 }
 0x528   : > { %v12351_v44 = vadd.f32 %v9755_v50, %v9715_v48 }
 0x52a   : > { %v9716_v14 = vpop.f32.mrb[8].mxu0 }
 0x52b   : > { %v9717_v3 = vpop.f32.mrb[9].mxu0 }
 0x52c   : > { %v9718_v35 = vadd.f32 %v9717_v3, %v9716_v14  ;;  %v9719_v34 = vpop.f32.mrb[10].mxu0 }
 0x52d   : > { %v9720_v63 = vpop.f32.mrb[11].mxu0 }
 0x52e   : > { %v9721_v60 = vadd.f32 %v9720_v63, %v9719_v34 }
 0x52f   : > { %v9756_v26 = vpop.f32.mrb[12].mxu1 }
 0x530   : > { %v9757_v13 = vpop.f32.mrb[13].mxu1 }
 0x531   : > { %v9758_v33 = vadd.f32 %v9757_v13, %v9756_v26  ;;  %v9759_v17 = vpop.f32.mrb[14].mxu1 }
 0x532   : > { %v9760_v29 = vpop.f32.mrb[15].mxu1 }
 0x533   : > { %v12353_v30 = vadd.f32 %v9758_v33, %v9718_v35  ;;  %v9761_v25 = vadd.f32 %v9760_v29, %v9759_v17 }
 0x535   : > { %v12355_v0 = vadd.f32 %v9761_v25, %v9721_v60 }
 0x537   : > { %v9722_v24 = vpop.f32.mrb[12].mxu0 }
 0x538   : > { %v9723_v9 = vpop.f32.mrb[13].mxu0 }
 0x539   : > { %v9724_v37 = vadd.f32 %v9723_v9, %v9722_v24  ;;  %v9725_v61 = vpop.f32.mrb[14].mxu0 }
 0x53a   : > { %v9726_v55 = vpop.f32.mrb[15].mxu0 }
 0x53b   : > { %v9727_v5 = vadd.f32 %v9726_v55, %v9725_v61 }
 0x53c   : > { %v9762_v6 = vpop.f32.mrb[16].mxu1 }
 0x53d   : > { %v9763_v38 = vpop.f32.mrb[17].mxu1 }
 0x53e   : > { %v9764_v19 = vadd.f32 %v9763_v38, %v9762_v6  ;;  %v9765_v39 = vpop.f32.mrb[18].mxu1 }
 0x53f   : > { %v9766_v20 = vpop.f32.mrb[19].mxu1 }
 0x540   : > { %v5145_v46 = vadd.f32 %v9764_v19, %v9724_v37  ;;  %v9767_v58 = vadd.f32 %v9766_v20, %v9765_v39 }
 0x542   : > { %v5148_v36 = vadd.f32 %v9767_v58, %v9727_v5 }
 0x544   : > { %v9728_v45 = vpop.f32.mrb[16].mxu0 }
 0x545   : > { %v9729_v42 = vpop.f32.mrb[17].mxu0 }
 0x546   : > { %v9730_v11 = vadd.f32 %v9729_v42, %v9728_v45  ;;  %v9731_v47 = vpop.f32.mrb[18].mxu0 }
 0x547   : > { %v9732_v49 = vpop.f32.mrb[19].mxu0 }
 0x548   : > { %v9768_v59 = vpop.f32.mrb[20].mxu1  ;;  %v9733_v10 = vadd.f32 %v9732_v49, %v9731_v47 }
 0x549   : > { %v9769_v1 = vpop.f32.mrb[21].mxu1 }
 0x54a   : > { %v9770_v43 = vadd.f32 %v9769_v1, %v9768_v59  ;;  %v9771_v51 = vpop.f32.mrb[22].mxu1 }
 0x54b   : > { %v9772_v23 = vpop.f32.mrb[23].mxu1 }
 0x54c   : > { %v12357_v48 = vadd.f32 %v9770_v43, %v9730_v11  ;;  %v9773_v2 = vadd.f32 %v9772_v23, %v9771_v51  ;;  %v12369_v43 = vld [vmem:[#allocation2] sm:$0xf] }
 0x54e   : > { %v12359_v57 = vadd.f32 %v9773_v2, %v9733_v10 }
 0x550   : > { %v9830_v40 = vpop.f32.mrb[24].mxu1 }
 0x551   : > { %v9831_v56 = vpop.f32.mrb[25].mxu1 }
 0x552   : > { %v9832_v52 = vadd.f32 %v9831_v56, %v9830_v40  ;;  %v9833_v50 = vpop.f32.mrb[26].mxu1 }
 0x553   : > { %v9834_v28 = vpop.f32.mrb[27].mxu1 }
 0x554   : > { %v9790_v62 = vpop.f32.mrb[20].mxu0  ;;  %v9835_v12 = vadd.f32 %v9834_v28, %v9833_v50 }
 0x555   : > { %v9791_v7 = vpop.f32.mrb[21].mxu0 }
 0x556   : > { %v9792_v14 = vadd.f32 %v9791_v7, %v9790_v62  ;;  %v9793_v16 = vpop.f32.mrb[22].mxu0 }
 0x557   : > { %v9794_v54 = vpop.f32.mrb[23].mxu0 }
 0x558   : > { %v5194_v3 = vadd.f32 %v9792_v14, %v12349_v22  ;;  %v9795_v31 = vadd.f32 %v9794_v54, %v9793_v16  ;;  %v9836_v35 = vpop.f32.mrb[28].mxu1 }
 0x559   : > { %v9837_v34 = vpop.f32.mrb[29].mxu1 }
 0x55a   : > { %v5197_v63 = vadd.f32 %v9795_v31, %v12351_v44  ;;  %v9838_v21 = vadd.f32 %v9837_v34, %v9836_v35  ;;  %v9839_v60 = vpop.f32.mrb[30].mxu1  ;;  %v5259_v15 = vadd.f32 %v9832_v52, %v5194_v3  ;;  %v12377_v35 = vld [vmem:[#allocation2 + $0x4] sm:$0x1] }
 0x55b   : > { %v9840_v8 = vpop.f32.mrb[31].mxu1 }
 0x55c   : > { %v9841_v26 = vadd.f32 %v9840_v8, %v9839_v60  ;;  %v5262_v32 = vadd.f32 %v9835_v12, %v5197_v63 }
 0x55f   : > { %v9796_v13 = vpop.f32.mrb[24].mxu0 }
 0x560   : > { %v9797_v33 = vpop.f32.mrb[25].mxu0  ;;  %v9842_v17 = vpop.f32.mrb[32].mxu1 }
 0x561   : > { %v9798_v18 = vadd.f32 %v9797_v33, %v9796_v13  ;;  %v9799_v29 = vpop.f32.mrb[26].mxu0  ;;  %v9843_v4 = vpop.f32.mrb[33].mxu1 }
 0x562   : > { %v9800_v53 = vpop.f32.mrb[27].mxu0  ;;  %v9844_v25 = vadd.f32 %v9843_v4, %v9842_v17  ;;  %v9845_v22 = vpop.f32.mrb[34].mxu1 }
 0x563   : > { %v5202_v41 = vadd.f32 %v9798_v18, %v12353_v30  ;;  %v9801_v24 = vadd.f32 %v9800_v53, %v9799_v29  ;;  %v9846_v9 = vpop.f32.mrb[35].mxu1 }
 0x564   : > { %v9847_v44 = vadd.f32 %v9846_v9, %v9845_v22  ;;  %v5488_v22 = vld [vmem:[#allocation2 + $0x1c] sm:$0x1] }
 0x565   : > { %v5205_v37 = vadd.f32 %v9801_v24, %v12355_v0  ;;  %v5267_v61 = vadd.f32 %v9838_v21, %v5202_v41 }
 0x567   : > { %v5270_v55 = vadd.f32 %v9841_v26, %v5205_v37 }
 0x56b   : > { %v9802_v5 = vpop.f32.mrb[28].mxu0 }
 0x56c   : > { %v9803_v6 = vpop.f32.mrb[29].mxu0 }
 0x56d   : > { %v9804_v38 = vadd.f32 %v9803_v6, %v9802_v5  ;;  %v9805_v19 = vpop.f32.mrb[30].mxu0 }
 0x56e   : > { %v9806_v39 = vpop.f32.mrb[31].mxu0 }
 0x56f   : > { %v5210_v20 = vadd.f32 %v9804_v38, %v5145_v46  ;;  %v9807_v58 = vadd.f32 %v9806_v39, %v9805_v19  ;;  %v5538_v46 = vshrl.u32 %v12369_v43, 16 }
 0x570   : > { %v9848_v45 = vpop.f32.mrb[36].mxu1 }
 0x571   : > { %v5213_v42 = vadd.f32 %v9807_v58, %v5148_v36  ;;  %v9849_v11 = vpop.f32.mrb[37].mxu1  ;;  %v12365_v47 = vadd.f32 %v9844_v25, %v5210_v20  ;;  %v5541_v36 = vshll.u32 %v12369_v43, 16  ;;  %v5540_v62 = vrot.slane %v5538_v46, 4  ;;  %v5485_v25 = vld [vmem:[#allocation2 + $0x18] sm:$0xf] }
 0x572   : > { %v9850_v30 = vadd.f32 %v9849_v11, %v9848_v45  ;;  %v9851_v49 = vpop.f32.mrb[38].mxu1  ;;  %v5476_v20 = vld [vmem:[#allocation2 + $0xc] sm:$0x1] }
 0x573   : > { %v9852_v59 = vpop.f32.mrb[39].mxu1  ;;  %v12367_v10 = vadd.f32 %v9847_v44, %v5213_v42  ;;  %v5543_v12 = vrot.slane %v5541_v36, 5 }
 0x574   : > { %v9853_v0 = vadd.f32 %v9852_v59, %v9851_v49 }
 0x575   : > { %v5544_v60 = vor.u32 %v5543_v12, %v5540_v62  ;;  %v5482_v62 = vld [vmem:[#allocation2 + $0x14] sm:$0x1] }
 0x577   : > { %v12380_v29 = vrot.slane %v5544_v60, 4 }
 0x579   : > { %v9808_v1 = vpop.f32.mrb[32].mxu0 }
 0x57a   : > { %v9809_v51 = vpop.f32.mrb[33].mxu0 }
 0x57b   : > { %v9810_v23 = vadd.f32 %v9809_v51, %v9808_v1  ;;  %v9811_v2 = vpop.f32.mrb[34].mxu0 }
 0x57c   : > { %v9812_v40 = vpop.f32.mrb[35].mxu0 }
 0x57d   : > { %v5218_v56 = vadd.f32 %v9810_v23, %v12357_v48  ;;  %v9813_v52 = vadd.f32 %v9812_v40, %v9811_v2  ;;  %v5547_v48 = vshll.u32 %v12377_v35, 16  ;;  %v5494_v40 = vld [vmem:[#allocation2 + $0x24] sm:$0x1] }
 0x57f   : > { %v5221_v50 = vadd.f32 %v9813_v52, %v12359_v57  ;;  %v5283_v28 = vadd.f32 %v9850_v30, %v5218_v56  ;;  %v12382_v4 = vrot.slane %v5547_v48, 5 }
 0x581   : > { %v10264_v7 = vpop.f32.mrb[36].mxu0  ;;  %v12375_v14 = vadd.f32 %v9853_v0, %v5221_v50  ;;  %v5491_v0 = vld [vmem:[#allocation2 + $0x20] sm:$0xf] }
 0x582   : > { %v5332_v16 = vadd.f32 %v10264_v7, %v5267_v61  ;;  %v5323_v54 = vpop.f32.mrb[37].mxu0  ;;  %v5470_v61 = vld [vmem:[#allocation2 + $0x8] sm:$0xf] }
 0x583   : > { %v5324_v3 = vadd.f32 %v5323_v54, %v5259_v15  ;;  %v10265_v31 = vpop.f32.mrb[38].mxu0 }
 0x584   : > { %v5356_v34 = vmax.f32 %v5332_v16, 0.0  ;;  %v5335_v63 = vadd.f32 %v10265_v31, %v5270_v55  ;;  %v5326_v21 = vpop.f32.mrb[39].mxu0 }
 0x585   : > { %v5354_v8 = vmax.f32 %v5324_v3, 0.0  ;;  %v5327_v57 = vadd.f32 %v5326_v21, %v5262_v32 }
 0x586   : > { %v9636_v26 = vpack.c.bf16 %v5356_v34, %v5356_v34  ;;  %v5357_v13 = vmax.f32 %v5335_v63, 0.0 }
 0x587   : > { %v9634_v33 = vpack.c.bf16 %v5354_v8, %v5354_v8  ;;  %v5355_v17 = vmax.f32 %v5327_v57, 0.0 }
 0x588   : > { %v5403_v15 = vshrl.u32 %v9636_v26, 16  ;;  %v9637_v18 = vpack.c.bf16 %v5357_v13, %v5357_v13  ;;  %v5406_v53 = vshll.u32 %v9636_v26, 16 }
 0x589   : > { %v5387_v41 = vshrl.u32 %v9634_v33, 16  ;;  %v5390_v24 = vshll.u32 %v9634_v33, 16  ;;  %v9635_v32 = vpack.c.bf16 %v5355_v17, %v5355_v17  ;;  %v10268_v9 = vpop.f32.mrb[40].mxu0 }
 0x58a   : > { %v5405_v44 = vrot.slane %v5403_v15, 7  ;;  %v5411_v55 = vshrl.u32 %v9637_v18, 16  ;;  %v5414_v5 = vshll.u32 %v9637_v18, 16  ;;  %v5348_v6 = vadd.f32 %v10268_v9, %v5283_v28  ;;  %v5339_v38 = vpop.f32.mrb[41].mxu0  ;;  %v5479_v28 = vld [vmem:[#allocation2 + $0x10] sm:$0xf] }
 0x58b   : > { %v5389_v39 = vrot.slane %v5387_v41, 7  ;;  %v5395_v58 = vshrl.u32 %v9635_v32, 16  ;;  %v5398_v45 = vshll.u32 %v9635_v32, 16  ;;  %v5340_v42 = vadd.f32 %v5339_v38, %v12365_v47  ;;  %v10269_v11 = vpop.f32.mrb[42].mxu0  ;;  %v5509_v18 = vld [vmem:[#allocation2 + $0x38] sm:$0xf] }
 0x58c   : > { %v5408_v30 = vor.u32 %v5406_v53, %v5405_v44  ;;  %v5409_v49 = vrot.slane %v5405_v44, 4  ;;  %v5413_v59 = vrot.slane %v5411_v55, 7  ;;  %v5360_v1 = vmax.f32 %v5348_v6, 0.0  ;;  %v5342_v51 = vpop.f32.mrb[43].mxu0  ;;  %v5497_v41 = vld [vmem:[#allocation2 + $0x28] sm:$0xf] }
 0x58d   : > { %v5392_v23 = vor.u32 %v5390_v24, %v5389_v39  ;;  %v5393_v2 = vrot.slane %v5389_v39, 4  ;;  %v5397_v46 = vrot.slane %v5395_v58, 7  ;;  %v5358_v36 = vmax.f32 %v5340_v42, 0.0  ;;  %v5500_v24 = vld [vmem:[#allocation2 + $0x2c] sm:$0x1] }
 0x58e   : > { %v5486_v56 = vsel %vm12386_vm11, %v5408_v30, %v5485_v25  ;;  %v5489_v52 = vsel %vm12392_vm12, %v5409_v49, %v5488_v22  ;;  %v5416_v50 = vor.u32 %v5414_v5, %v5413_v59  ;;  %v5417_v47 = vrot.slane %v5413_v59, 4  ;;  %v5512_v22 = vld [vmem:[#allocation2 + $0x3c] sm:$0x1]  ;;  %v5515_v30 = vld [vmem:[#allocation2 + $0x40] sm:$0xf] }
 0x58f   : > { %5487 = vst [vmem:[#allocation2 + $0x18] sm:$0xf] %v5486_v56  ;;  %5490 = vst [vmem:[#allocation2 + $0x1c] sm:$0x1] %v5489_v52  ;;  %v5471_v12 = vsel %vm12386_vm11, %v5392_v23, %v5470_v61  ;;  %v5477_v7 = vsel %vm12392_vm12, %v5393_v2, %v5476_v20  ;;  %v5400_v16 = vor.u32 %v5398_v45, %v5397_v46  ;;  %v5401_v54 = vrot.slane %v5397_v46, 4 }
 0x590   : > { %5472 = vst [vmem:[#allocation2 + $0x8] sm:$0xf] %v5471_v12  ;;  %5478 = vst [vmem:[#allocation2 + $0xc] sm:$0x1] %v5477_v7  ;;  %v5492_v3 = vsel %vm12386_vm11, %v5416_v50, %v5491_v0  ;;  %v5495_v31 = vsel %vm12392_vm12, %v5417_v47, %v5494_v40  ;;  %v9640_v34 = vpack.c.bf16 %v5360_v1, %v5360_v1  ;;  %v5518_v49 = vld [vmem:[#allocation2 + $0x44] sm:$0x1] }
 0x591   : > { %v9638_v63 = vpack.c.bf16 %v5358_v36, %v5358_v36  ;;  %5493 = vst [vmem:[#allocation2 + $0x20] sm:$0xf] %v5492_v3  ;;  %5496 = vst [vmem:[#allocation2 + $0x24] sm:$0x1] %v5495_v31  ;;  %v5480_v21 = vsel %vm12386_vm11, %v5400_v16, %v5479_v28  ;;  %v5483_v60 = vsel %vm12392_vm12, %v5401_v54, %v5482_v62  ;;  %v5503_v59 = vld [vmem:[#allocation2 + $0x30] sm:$0xf] }
 0x592   : > { %v5351_v48 = vadd.f32 %v10269_v11, %v12375_v14  ;;  %v5343_v8 = vadd.f32 %v5342_v51, %v12367_v10  ;;  %5481 = vst [vmem:[#allocation2 + $0x10] sm:$0xf] %v5480_v21  ;;  %5484 = vst [vmem:[#allocation2 + $0x14] sm:$0x1] %v5483_v60  ;;  %v5435_v57 = vshrl.u32 %v9640_v34, 16  ;;  %v5438_v15 = vshll.u32 %v9640_v34, 16 }
 0x593   : > { %v5419_v26 = vshrl.u32 %v9638_v63, 16  ;;  %v5422_v25 = vshll.u32 %v9638_v63, 16  ;;  %v5550_v10 = vsel %vm12021_vm6, %v12380_v29, %v12382_v4  ;;  %v5506_v46 = vld [vmem:[#allocation2 + $0x34] sm:$0x1] }
 0x594   : > { %v5361_v13 = vmax.f32 %v5351_v48, 0.0  ;;  %v5359_v33 = vmax.f32 %v5343_v8, 0.0  ;;  %v5437_v17 = vrot.slane %v5435_v57, 7 }
 0x595   : > { %v5421_v53 = vrot.slane %v5419_v26, 7 }
 0x596   : > { %v9641_v32 = vpack.c.bf16 %v5361_v13, %v5361_v13  ;;  %v9639_v9 = vpack.c.bf16 %v5359_v33, %v5359_v33  ;;  %v5440_v14 = vor.u32 %v5438_v15, %v5437_v17  ;;  %v5441_v44 = vrot.slane %v5437_v17, 4  ;;  %v5524_v48 = vld [vmem:[#allocation2 + $0x18] sm:$0xf]  ;;  %v12464_v29 = vld [vmem:[#allocation2 + $0x1c] sm:$0x1] }
 0x597   : > { %v5424_v61 = vor.u32 %v5422_v25, %v5421_v53  ;;  %v5425_v55 = vrot.slane %v5421_v53, 4  ;;  %v5522_v20 = vld [vmem:[#allocation2 + $0x8] sm:$0xf]  ;;  %v12428_v7 = vld [vmem:[#allocation2 + $0xc] sm:$0x1] }
 0x598   : > { %v5443_v5 = vshrl.u32 %v9641_v32, 16  ;;  %v5446_v6 = vshll.u32 %v9641_v32, 16  ;;  %v5427_v38 = vshrl.u32 %v9639_v9, 16  ;;  %v5430_v39 = vshll.u32 %v9639_v9, 16  ;;  %v5708_v0 = vld [vmem:[#allocation2 + $0x8] sm:$0xf] }
 0x599   : > { %v5510_v58 = vsel %vm12386_vm11, %v5440_v14, %v5509_v18  ;;  %v5513_v45 = vsel %vm12392_vm12, %v5441_v44, %v5512_v22  ;;  %v5498_v42 = vsel %vm12386_vm11, %v5424_v61, %v5497_v41  ;;  %v5501_v11 = vsel %vm12392_vm12, %v5425_v55, %v5500_v24  ;;  %v5709_v40 = vld [vmem:[#allocation2 + $0x10] sm:$0xf]  ;;  %v5710_v33 = vld [vmem:[#allocation2 + $0x18] sm:$0xf]  ;;  %v12441_v53 = vld [vmem:[#allocation2 + $0xc] sm:$0x1] }
 0x59a   : > { %5511 = vst [vmem:[#allocation2 + $0x38] sm:$0xf] %v5510_v58  ;;  %5514 = vst [vmem:[#allocation2 + $0x3c] sm:$0x1] %v5513_v45  ;;  %v5445_v1 = vrot.slane %v5443_v5, 7  ;;  %v5429_v51 = vrot.slane %v5427_v38, 7  ;;  %v9450_v36 = vcombine.low %v12369_v43, %v5522_v20  ;;  %v12438_v17 = vcombine.low %v5708_v0, %v5709_v40 }
 0x59b   : > { %5499 = vst [vmem:[#allocation2 + $0x28] sm:$0xf] %v5498_v42  ;;  %5502 = vst [vmem:[#allocation2 + $0x2c] sm:$0x1] %v5501_v11  ;;  %v5552_v23 = vshrl.u32 %v5522_v20, 16  ;;  %v5555_v2 = vshll.u32 %v5522_v20, 16 }
 0x59c   : > { %v5725_v56 = vshrl.u32 %v5708_v0, 16  ;;  %v5728_v52 = vshll.u32 %v5708_v0, 16  ;;  %v5739_v50 = vshrl.u32 %v5709_v40, 16  ;;  %v5448_v47 = vor.u32 %v5446_v6, %v5445_v1  ;;  %6544 = vmatprep.mubr.bf16.mxu0 %v9450_v36  ;;  %v5523_v34 = vld [vmem:[#allocation2 + $0x10] sm:$0xf]  ;;  %6479 = vmatprep.mubr.bf16.mxu1 %v12438_v17  ;;  %v10534_v0 = vld [vmem:[#allocation12 + $0x1c8] sm:$0xff]  }
 0x59d   : > { %v5449_v28 = vrot.slane %v5445_v1, 4  ;;  %v5432_v62 = vor.u32 %v5430_v39, %v5429_v51  ;;  %v5433_v12 = vrot.slane %v5429_v51, 4  ;;  %v5554_v16 = vrot.slane %v5552_v23, 4  ;;  %v12443_v24 = vld [vmem:[#allocation2 + $0x14] sm:$0x1] }
 0x59e   : > { %v5557_v54 = vrot.slane %v5555_v2, 5  ;;  %v5727_v3 = vrot.slane %v5725_v56, 4  ;;  %v5730_v31 = vrot.slane %v5728_v52, 5  ;;  %v5516_v63 = vsel %vm12386_vm11, %v5448_v47, %v5515_v30  ;;  %v5711_v38 = vld [vmem:[#allocation2 + $0x20] sm:$0xf]  ;;  %v10530_v58 = vld [vmem:[#allocation12 + $0x180] sm:$0xff]  }
 0x59f   : > { %v5519_v43 = vsel %vm12392_vm12, %v5449_v28, %v5518_v49  ;;  %v5504_v21 = vsel %vm12386_vm11, %v5432_v62, %v5503_v59  ;;  %v5507_v60 = vsel %vm12392_vm12, %v5433_v12, %v5506_v46  ;;  %5517 = vst [vmem:[#allocation2 + $0x40] sm:$0xf] %v5516_v63  ;;  %v5741_v26 = vrot.slane %v5739_v50, 4  ;;  %v12457_v1 = vld [vmem:[#allocation2 + $0x14] sm:$0x1] }
 0x5a0   : > { %5520 = vst [vmem:[#allocation2 + $0x44] sm:$0x1] %v5519_v43  ;;  %5505 = vst [vmem:[#allocation2 + $0x30] sm:$0xf] %v5504_v21  ;;  %v5558_v8 = vor.u32 %v5557_v54, %v5554_v16  ;;  %v5731_v57 = vor.u32 %v5730_v31, %v5727_v3  ;;  %v5742_v13 = vshll.u32 %v5709_v40, 16  ;;  %v5561_v15 = vshll.u32 %v12428_v7, 16 }
 0x5a1   : > { %5508 = vst [vmem:[#allocation2 + $0x34] sm:$0x1] %v5507_v60  ;;  %v5566_v18 = vshrl.u32 %v5523_v34, 16  ;;  %v5569_v37 = vshll.u32 %v5523_v34, 16  ;;  %v5580_v41 = vshrl.u32 %v5524_v48, 16  ;;  %v5583_v44 = vshll.u32 %v5524_v48, 16 }
 0x5a2   : > { %v5559_v19 = vrot.slane %v5558_v8, 4  ;;  %v5732_v25 = vrot.slane %v5731_v57, 4  ;;  %v5744_v22 = vrot.slane %v5742_v13, 5  ;;  %v5563_v32 = vrot.slane %v5561_v15, 5  ;;  %v10533_v28 = vld [vmem:[#allocation12 + $0x100] sm:$0xff]   ;;  %v10535_v3 = vld [vmem:[#allocation12 + $0x188] sm:$0xff]  }
 0x5a3   : > { %v5568_v9 = vrot.slane %v5566_v18, 4  ;;  %v5571_v14 = vrot.slane %v5569_v37, 5  ;;  %v5582_v55 = vrot.slane %v5580_v41, 4  ;;  %v9451_v5 = vcombine.low %v5523_v34, %v5524_v48  ;;  %v12471_v12 = vld [vmem:[#allocation2 + $0x28] sm:$0xf]  ;;  %v10536_v31 = vld [vmem:[#allocation12 + $0x148] sm:$0xff]  }
 0x5a4   : > { %v5745_v61 = vor.u32 %v5744_v22, %v5741_v26  ;;  %v5734_v6 = vshll.u32 %v12441_v53, 16  ;;  %v5564_v39 = vsel %vm12021_vm6, %v5559_v19, %v5563_v32  ;;  %v5585_v20 = vrot.slane %v5583_v44, 5  ;;  %v12475_v43 = vld [vmem:[#allocation2 + $0x1c] sm:$0x1]  ;;  %v10538_v8 = vld [vmem:[#allocation12 + $0x1d0] sm:$0xff]  }
 0x5a5   : > { %v5748_v45 = vshll.u32 %v12443_v24, 16  ;;  %v5753_v42 = vshrl.u32 %v5710_v33, 16  ;;  %v12455_v30 = vcombine.low %v5550_v10, %v5564_v39  ;;  %v5756_v59 = vshll.u32 %v5710_v33, 16  ;;  %v12466_v10 = vld [vmem:[#allocation2 + $0x20] sm:$0xf] }
 0x5a6   : > { %v5746_v11 = vrot.slane %v5745_v61, 4  ;;  %v5736_v49 = vrot.slane %v5734_v6, 5  ;;  %v5767_v2 = vshrl.u32 %v5711_v38, 16  ;;  %v5770_v40 = vshll.u32 %v5711_v38, 16  ;;  %v12479_v26 = vld [vmem:[#allocation2 + $0x24] sm:$0x1] }
 0x5a7   : > { %v5750_v51 = vrot.slane %v5748_v45, 5  ;;  %v5755_v23 = vrot.slane %v5753_v42, 4  ;;  %6545 = vmatmul.mubr.bf16.vlgmr.msra.gmra.mrb[44].mxu0 %v12455_v30  ;;  %v5758_v36 = vrot.slane %v5756_v59, 5  ;;  %v12462_v56 = vcombine.low %v5710_v33, %v5711_v38  ;;  %v5712_v37 = vld [vmem:[#allocation2 + $0x28] sm:$0xf]  ;;  %v10540_v38 = vld [vmem:[#allocation12 + $0x190] sm:$0xff]  }
 0x5a8   : > { %v5737_v46 = vsel %vm12021_vm6, %v5732_v25, %v5736_v49  ;;  %v5572_v4 = vor.u32 %v5571_v14, %v5568_v9  ;;  %6552 = vmatprep.mubr.bf16.mxu0 %v9451_v5  ;;  %9987 = vmatpush3.bf16.msra.mxu0 %v10530_v58  ;;  %v5769_v50 = vrot.slane %v5767_v2, 4  ;;  %v5772_v47 = vrot.slane %v5770_v40, 5  ;;  %v10537_v25 = vld [vmem:[#allocation12 + $0x108] sm:$0xff]   ;;  %v5713_v9 = vld [vmem:[#allocation2 + $0x30] sm:$0xf]  ;;  %v10541_v5 = vld [vmem:[#allocation12 + $0x150] sm:$0xff]  }
 0x5a9   : > { %v5751_v52 = vsel %vm12021_vm6, %v5746_v11, %v5750_v51  ;;  %v5575_v62 = vshll.u32 %v12457_v1, 16  ;;  %v5759_v54 = vor.u32 %v5758_v36, %v5755_v23  ;;  %9988 = vmatprep.subr.bf16.mxu0 %v10534_v0  ;;  %v5586_v63 = vor.u32 %v5585_v20, %v5582_v55  ;;  %v10544_v59 = vld [vmem:[#allocation12 + $0x1d8] sm:$0xff]   ;;  %v12496_v0 = vld [vmem:[#allocation2 + $0x24] sm:$0x1] }
 0x5aa   : > { %v12473_v16 = vcombine.low %v5737_v46, %v5751_v52  ;;  %v5573_v34 = vrot.slane %v5572_v4, 4  ;;  %v5773_v21 = vor.u32 %v5772_v47, %v5769_v50  ;;  %v5589_v48 = vshll.u32 %v12464_v29, 16  ;;  %v10543_v46 = vld [vmem:[#allocation12 + $0x110] sm:$0xff]   ;;  %v10546_v36 = vld [vmem:[#allocation12 + $0x158] sm:$0xff]  }
 0x5ab   : > { %v5577_v60 = vrot.slane %v5575_v62, 5  ;;  %v5594_v57 = vshrl.u32 %v12466_v10, 16  ;;  %v5760_v13 = vrot.slane %v5759_v54, 4  ;;  %v5587_v33 = vrot.slane %v5586_v63, 4  ;;  %v12501_v50 = vld [vmem:[#allocation2 + $0x2c] sm:$0x1] }
 0x5ac   : > { %6480 = vmatmul.mubr.bf16.vlgmr.msra.gmra.mrb[40].mxu1 %v12473_v16  ;;  %v5597_v15 = vshll.u32 %v12466_v10, 16  ;;  %v5608_v18 = vshrl.u32 %v12471_v12, 16  ;;  %v5774_v19 = vrot.slane %v5773_v21, 4  ;;  %v5591_v41 = vrot.slane %v5589_v48, 5  ;;  %9989 = vmatpush3.bf16.msra.mxu0 %v10535_v3  ;;  %v10545_v3 = vld [vmem:[#allocation12 + $0x198] sm:$0xff]  }
 0x5ad   : > { %6487 = vmatprep.mubr.bf16.mxu1 %v12462_v56  ;;  %9947 = vmatpush3.bf16.msra.mxu1 %v10533_v28  ;;  %v5578_v22 = vsel %vm12021_vm6, %v5573_v34, %v5577_v60  ;;  %v5596_v32 = vrot.slane %v5594_v57, 4  ;;  %v5611_v61 = vshll.u32 %v12471_v12, 16  ;;  %v9452_v55 = vcombine.low %v12466_v10, %v12471_v12  ;;  %v12503_v28 = vld [vmem:[#allocation2 + $0x30] sm:$0xf]  ;;  %v12510_v34 = vld [vmem:[#allocation2 + $0x38] sm:$0xf] }
 0x5ae   : > { %9948 = vmatprep.subr.bf16.mxu1 %v10536_v31  ;;  %v5599_v14 = vrot.slane %v5597_v15, 5  ;;  %v5610_v44 = vrot.slane %v5608_v18, 4  ;;  %v5592_v6 = vsel %vm12021_vm6, %v5587_v33, %v5591_v41  ;;  %9990 = vmatprep.subr.bf16.mxu0 %v10538_v8  ;;  %v5762_v39 = vshll.u32 %v12475_v43, 16  ;;  %v10547_v60 = vld [vmem:[#allocation12 + $0x118] sm:$0xff]   ;;  %v10548_v57 = vld [vmem:[#allocation12 + $0x1e0] sm:$0xff]  }
 0x5af   : > { %v5776_v20 = vshll.u32 %v12479_v26, 16  ;;  %v5781_v58 = vshrl.u32 %v5712_v37, 16  ;;  %v12494_v45 = vcombine.low %v5578_v22, %v5592_v6  ;;  %v5613_v42 = vrot.slane %v5611_v61, 5  ;;  %v12514_v33 = vld [vmem:[#allocation2 + $0x2c] sm:$0x1]  ;;  %v10550_v6 = vld [vmem:[#allocation12 + $0x1a0] sm:$0xff]  }
 0x5b0   : > { %v5784_v11 = vshll.u32 %v5712_v37, 16  ;;  %v5795_v49 = vshrl.u32 %v5713_v9, 16  ;;  %v5764_v51 = vrot.slane %v5762_v39, 5  ;;  %v5798_v40 = vshll.u32 %v5713_v9, 16  ;;  %9991 = vmatpush3.bf16.msra.mxu0 %v10540_v38  ;;  %v5715_v38 = vld [vmem:[#allocation2 + $0x40] sm:$0xf] }
 0x5b1   : > { %9949 = vmatpush3.bf16.msra.mxu1 %v10537_v25  ;;  %v5778_v23 = vrot.slane %v5776_v20, 5  ;;  %v5783_v2 = vrot.slane %v5781_v58, 4  ;;  %6553 = vmatmul.mubr.bf16.gmra.mrb[48].mxu0 %v12494_v45  ;;  %v12499_v52 = vcombine.low %v5712_v37, %v5713_v9  ;;  %v5600_v47 = vor.u32 %v5599_v14, %v5596_v32  ;;  %v5714_v25 = vld [vmem:[#allocation2 + $0x38] sm:$0xf]  ;;  %v12521_v14 = vld [vmem:[#allocation2 + $0x34] sm:$0x1] }
 0x5b2   : > { %9950 = vmatprep.subr.bf16.mxu1 %v10541_v5  ;;  %v5786_v4 = vrot.slane %v5784_v11, 5  ;;  %v5797_v10 = vrot.slane %v5795_v49, 4  ;;  %6560 = vmatprep.mubr.bf16.mxu0 %v9452_v55  ;;  %v5765_v62 = vsel %vm12021_vm6, %v5760_v13, %v5764_v51  ;;  %v5800_v54 = vrot.slane %v5798_v40, 5  ;;  %v10554_v11 = vld [vmem:[#allocation12 + $0x1e8] sm:$0xff]  }
 0x5b3   : > { %v5779_v12 = vsel %vm12021_vm6, %v5774_v19, %v5778_v23  ;;  %v5603_v31 = vshll.u32 %v12496_v0, 16  ;;  %9992 = vmatprep.subr.bf16.mxu0 %v10544_v59  ;;  %v5601_v48 = vrot.slane %v5600_v47, 4  ;;  %v5614_v8 = vor.u32 %v5613_v42, %v5610_v44  ;;  %v10551_v19 = vld [vmem:[#allocation12 + $0x160] sm:$0xff]  }
 0x5b4   : > { %v12512_v63 = vcombine.low %v5765_v62, %v5779_v12  ;;  %v5787_v21 = vor.u32 %v5786_v4, %v5783_v2  ;;  %v5801_v13 = vor.u32 %v5800_v54, %v5797_v10  ;;  %v5617_v18 = vshll.u32 %v12501_v50, 16  ;;  %9993 = vmatpush3.bf16.msra.mxu0 %v10545_v3  ;;  %v10553_v2 = vld [vmem:[#allocation12 + $0x120] sm:$0xff]   ;;  %v10556_v10 = vld [vmem:[#allocation12 + $0x168] sm:$0xff]  }
 0x5b5   : > { %9951 = vmatpush3.bf16.msra.mxu1 %v10543_v46  ;;  %v5605_v15 = vrot.slane %v5603_v31, 5  ;;  %v5622_v37 = vshrl.u32 %v12503_v28, 16  ;;  %v5615_v41 = vrot.slane %v5614_v8, 4  ;;  %v5625_v32 = vshll.u32 %v12503_v28, 16  ;;  %9994 = vmatprep.subr.bf16.mxu0 %v10548_v57  ;;  %v12535_v47 = vld [vmem:[#allocation2 + $0x34] sm:$0x1] }
 0x5b6   : > { %6488 = vmatmul.mubr.bf16.gmra.mrb[44].mxu1 %v12512_v63  ;;  %v5788_v22 = vrot.slane %v5787_v21, 4  ;;  %9952 = vmatprep.subr.bf16.mxu1 %v10546_v36  ;;  %v5636_v9 = vshrl.u32 %v12510_v34, 16  ;;  %v5802_v44 = vrot.slane %v5801_v13, 4  ;;  %v5619_v55 = vrot.slane %v5617_v18, 5  ;;  %v10555_v3 = vld [vmem:[#allocation12 + $0x1a8] sm:$0xff]   ;;  %v10558_v31 = vld [vmem:[#allocation12 + $0x1f0] sm:$0xff]  }
 0x5b7   : > { %6495 = vmatprep.mubr.bf16.mxu1 %v12499_v52  ;;  %v5606_v61 = vsel %vm12021_vm6, %v5601_v48, %v5605_v15  ;;  %v5624_v5 = vrot.slane %v5622_v37, 4  ;;  %v5627_v39 = vrot.slane %v5625_v32, 5  ;;  %v5639_v58 = vshll.u32 %v12510_v34, 16  ;;  %v12540_v48 = vld [vmem:[#allocation2 + $0x3c] sm:$0x1] }
 0x5b8   : > { %v5638_v20 = vrot.slane %v5636_v9, 4  ;;  %v9453_v42 = vcombine.low %v12503_v28, %v12510_v34  ;;  %v5620_v49 = vsel %vm12021_vm6, %v5615_v41, %v5619_v55  ;;  %v5790_v59 = vshll.u32 %v12514_v33, 16  ;;  %9995 = vmatpush3.bf16.msra.mxu0 %v10550_v6  ;;  %v12542_v57 = vld [vmem:[#allocation2 + $0x3c] sm:$0x1]  ;;  %v10560_v55 = vld [vmem:[#allocation12 + $0x170] sm:$0xff]  }
 0x5b9   : > { %9953 = vmatpush3.bf16.msra.mxu1 %v10547_v60  ;;  %v5804_v51 = vshll.u32 %v12521_v14, 16  ;;  %v5809_v23 = vshrl.u32 %v5714_v25, 16  ;;  %v12533_v40 = vcombine.low %v5606_v61, %v5620_v49  ;;  %v5641_v46 = vrot.slane %v5639_v58, 5  ;;  %9996 = vmatprep.subr.bf16.mxu0 %v10554_v11  ;;  %v10557_v37 = vld [vmem:[#allocation12 + $0x128] sm:$0xff]  }
 0x5ba   : > { %9954 = vmatprep.subr.bf16.mxu1 %v10551_v19  ;;  %v5812_v36 = vshll.u32 %v5714_v25, 16  ;;  %v5823_v4 = vshrl.u32 %v5715_v38, 16  ;;  %v5792_v28 = vrot.slane %v5790_v59, 5  ;;  %v5826_v54 = vshll.u32 %v5715_v38, 16 }
 0x5bb   : > { %v5806_v62 = vrot.slane %v5804_v51, 5  ;;  %v5811_v12 = vrot.slane %v5809_v23, 4  ;;  %6561 = vmatmul.mubr.bf16.gmra.mrb[52].mxu0 %v12533_v40  ;;  %v12538_v60 = vcombine.low %v5714_v25, %v5715_v38  ;;  %v5628_v8 = vor.u32 %v5627_v39, %v5624_v5  ;;  %v12549_v25 = vld [vmem:[#allocation2 + $0x44] sm:$0x1] }
 0x5bc   : > { %v5814_v34 = vrot.slane %v5812_v36, 5  ;;  %v5825_v21 = vrot.slane %v5823_v4, 4  ;;  %6568 = vmatprep.mubr.bf16.mxu0 %v9453_v42  ;;  %v5793_v13 = vsel %vm12021_vm6, %v5788_v22, %v5792_v28  ;;  %v5828_v18 = vrot.slane %v5826_v54, 5  ;;  %9997 = vmatpush3.bf16.msra.mxu0 %v10555_v3  ;;  %v10562_v42 = vld [vmem:[#allocation12 + $0x1f8] sm:$0xff]   ;;  %v10561_v51 = vld [vmem:[#allocation12 + $0x130] sm:$0xff]   ;;  %v10566_v3 = vld [vmem:[#allocation12 + $0x2c0] sm:$0xff]  }
 0x5bd   : > { %v5807_v15 = vsel %vm12021_vm6, %v5802_v44, %v5806_v62  ;;  %9955 = vmatpush3.bf16.msra.mxu1 %v10553_v2  ;;  %v5631_v19 = vshll.u32 %v12535_v47, 16  ;;  %v5629_v9 = vrot.slane %v5628_v8, 4  ;;  %v5642_v61 = vor.u32 %v5641_v46, %v5638_v20  ;;  %v10559_v44 = vld [vmem:[#allocation12 + $0x1b0] sm:$0xff]   ;;  %9998 = vmatprep.subr.bf16.mxu0 %v10558_v31  ;;  %v10564_v2 = vld [vmem:[#allocation12 + $0x178] sm:$0xff]   ;;  %v5837_v31 = vld [vmem:[#allocation2 + $0x10] sm:$0xe] }
 0x5be   : > { %v12551_v41 = vcombine.low %v5793_v13, %v5807_v15  ;;  %v5815_v32 = vor.u32 %v5814_v34, %v5811_v12  ;;  %9956 = vmatprep.subr.bf16.mxu1 %v10556_v10  ;;  %v5829_v5 = vor.u32 %v5828_v18, %v5825_v21  ;;  %v5645_v6 = vshll.u32 %v12540_v48, 16  ;;  %v5649_v46 = vld [vmem:[#allocation2] sm:$0xe]  ;;  %v5650_v36 = vld [vmem:[#allocation2 + $0x8] sm:$0xe] }
 0x5bf   : > { %v5633_v22 = vrot.slane %v5631_v19, 5  ;;  %v5818_v38 = vshll.u32 %v12542_v57, 16  ;;  %v5643_v39 = vrot.slane %v5642_v61, 4  ;;  %v5832_v58 = vshll.u32 %v12549_v25, 16  ;;  %v10563_v28 = vld [vmem:[#allocation12 + $0x1b8] sm:$0xff]   ;;  %v10568_v19 = vld [vmem:[#allocation12 + $0x240] sm:$0xff]  }
 0x5c0   : > { %6496 = vmatmul.mubr.bf16.gmra.mrb[48].mxu1 %v12551_v41  ;;  %v5816_v11 = vrot.slane %v5815_v32, 4  ;;  %v5830_v49 = vrot.slane %v5829_v5, 4  ;;  %v5647_v59 = vrot.slane %v5645_v6, 5  ;;  %9999 = vmatpush3.bf16.msra.mxu0 %v10559_v44  ;;  %v5678_v54 = vrot.slane %v12377_v35, 5  ;;  %v10565_v21 = vld [vmem:[#allocation12 + $0x138] sm:$0xff]   ;;  %v10570_v44 = vld [vmem:[#allocation12 + $0x2c8] sm:$0xff]  }
 0x5c1   : > { %6503 = vmatprep.mubr.bf16.mxu1 %v12538_v60  ;;  %9957 = vmatpush3.bf16.msra.mxu1 %v10557_v37  ;;  %v5634_v20 = vsel %vm12021_vm6, %v5629_v9, %v5633_v22  ;;  %v5834_v23 = vrot.slane %v5832_v58, 5  ;;  %v5820_v10 = vrot.slane %v5818_v38, 5  ;;  %v9414_v8 = vrot.slane %v5649_v46, 9  ;;  %v5836_v37 = vld [vmem:[#allocation2 + $0x8] sm:$0xe]  ;;  %v10567_v22 = vld [vmem:[#allocation12 + $0x280] sm:$0xff]  }
 0x5c2   : > { %9958 = vmatprep.subr.bf16.mxu1 %v10560_v55  ;;  %v5648_v4 = vsel %vm12021_vm6, %v5643_v39, %v5647_v59  ;;  %10000 = vmatprep.subr.bf16.mxu0 %v10562_v42  ;;  %v9415_v13 = vrot.slane %v5650_v36, 9  ;;  %v5682_v15 = vrot.slane %v12428_v7, 5  ;;  %v9423_v32 = vrot.slane %v5837_v31, 9  ;;  %v5652_v38 = vld [vmem:[#allocation2 + $0x18] sm:$0xe]  ;;  %v10569_v42 = vld [vmem:[#allocation12 + $0x200] sm:$0xff]  }
 0x5c3   : > { %v12562_v62 = vcombine.low %v5634_v20, %v5648_v4  ;;  %v5835_v12 = vsel %vm12021_vm6, %v5830_v49, %v5834_v23  ;;  %v5821_v34 = vsel %vm12021_vm6, %v5816_v11, %v5820_v10  ;;  %v5866_v9 = vrot.slane %v12443_v24, 5  ;;  %v5839_v39 = vld [vmem:[#allocation2 + $0x20] sm:$0xe]  ;;  %v5838_v59 = vld [vmem:[#allocation2 + $0x18] sm:$0xe] }
 0x5c4   : > { %v12571_v18 = vcombine.low %v5821_v34, %v5835_v12  ;;  %10001 = vmatpush3.bf16.msra.mxu0 %v10563_v28  ;;  %v5679_v7 = vsel %vm12575_vm15, %v9414_v8, %v5678_v54  ;;  %v5683_v61 = vsel %vm12575_vm15, %v9415_v13, %v5682_v15  ;;  %v9422_v55 = vrot.slane %v5836_v37, 9  ;;  %v10574_v4 = vld [vmem:[#allocation12 + $0x2d0] sm:$0xff]   ;;  %v10578_v34 = vld [vmem:[#allocation12 + $0x2d8] sm:$0xff]   ;;  %v5841_v8 = vld [vmem:[#allocation2 + $0x30] sm:$0xe] }
 0x5c5   : > { %9959 = vmatpush3.bf16.msra.mxu1 %v10561_v51  ;;  %6569 = vmatmul.mubr.bf16.gmra.mrb[56].mxu0 %v12562_v62  ;;  %v5862_v5 = vrot.slane %v12441_v53, 5  ;;  %v5867_v24 = vsel %vm12575_vm15, %v9423_v32, %v5866_v9  ;;  %v9492_v6 = vcombine.low %v5679_v7, %v5683_v61  ;;  %v5686_v49 = vrot.slane %v12457_v1, 5  ;;  %v10572_v53 = vld [vmem:[#allocation12 + $0x248] sm:$0xff]   ;;  %v10576_v12 = vld [vmem:[#allocation12 + $0x250] sm:$0xff]   ;;  %v10580_v32 = vld [vmem:[#allocation12 + $0x258] sm:$0xff]  }
 0x5c6   : > { %9960 = vmatprep.subr.bf16.mxu1 %v10564_v2  ;;  %7279 = vmatprep.mubr.bf16.mxu0 %v12455_v30  ;;  %v5651_v30 = vld [vmem:[#allocation2 + $0x10] sm:$0xe]  ;;  %v10571_v51 = vld [vmem:[#allocation12 + $0x288] sm:$0xff]   ;;  %v9417_v23 = vrot.slane %v5652_v38, 9  ;;  %v5690_v2 = vrot.slane %v12464_v29, 5  ;;  %v9425_v46 = vrot.slane %v5839_v39, 9 }
 0x5c7   : > { %10066 = vmatprep.subr.bf16.mxu0 %v10566_v3  ;;  %v5863_v58 = vsel %vm12575_vm15, %v9422_v55, %v5862_v5  ;;  %v9416_v11 = vrot.slane %v5651_v30, 9  ;;  %v5874_v36 = vrot.slane %v12479_v26, 5  ;;  %v10573_v1 = vld [vmem:[#allocation12 + $0x208] sm:$0xff]   ;;  %v5870_v28 = vrot.slane %v12475_v43, 5  ;;  %v5654_v29 = vld [vmem:[#allocation2 + $0x28] sm:$0xe] }
 0x5c8   : > { %6504 = vmatmul.mubr.bf16.gmra.mrb[52].mxu1 %v12571_v18  ;;  %v12593_v20 = vcombine.low %v5863_v58, %v5867_v24  ;;  %v5691_v26 = vsel %vm12575_vm15, %v9417_v23, %v5690_v2  ;;  %v10575_v54 = vld [vmem:[#allocation12 + $0x290] sm:$0xff]   ;;  %v9419_v15 = vrot.slane %v5654_v29, 9  ;;  %v5698_v37 = vrot.slane %v12501_v50, 5  ;;  %v5840_v9 = vld [vmem:[#allocation2 + $0x28] sm:$0xe]  ;;  %v10582_v50 = vld [vmem:[#allocation12 + $0x2e0] sm:$0xff]  }
 0x5c9   : > { %7214 = vmatprep.mubr.bf16.mxu1 %v12473_v16  ;;  %9961 = vmatpush3.bf16.msra.mxu1 %v10565_v21  ;;  %v5687_v10 = vsel %vm12575_vm15, %v9416_v11, %v5686_v49  ;;  %v5875_v3 = vsel %vm12575_vm15, %v9425_v46, %v5874_v36  ;;  %v5653_v21 = vld [vmem:[#allocation2 + $0x20] sm:$0xe]  ;;  %v10579_v7 = vld [vmem:[#allocation12 + $0x298] sm:$0xff]   ;;  %v5694_v55 = vrot.slane %v12496_v0, 5  ;;  %v9427_v5 = vrot.slane %v5841_v8, 9  ;;  %v10584_v38 = vld [vmem:[#allocation12 + $0x260] sm:$0xff]  }
 0x5ca   : > { %10026 = vmatprep.subr.bf16.mxu1 %v10568_v19  ;;  %v9493_v31 = vcombine.low %v5687_v10, %v5691_v26  ;;  %v10577_v13 = vld [vmem:[#allocation12 + $0x210] sm:$0xff]   ;;  %v9418_v61 = vrot.slane %v5653_v21, 9  ;;  %v5882_v30 = vrot.slane %v12521_v14, 5  ;;  %v10581_v24 = vld [vmem:[#allocation12 + $0x218] sm:$0xff]   ;;  %v5655_v0 = vld [vmem:[#allocation2 + $0x30] sm:$0xe] }
 0x5cb   : > { %v12622_v14 = vld [vmem:[#allocation2 + $0x18] sm:$0xf]  ;;  %v10583_v58 = vld [vmem:[#allocation12 + $0x2a0] sm:$0xff]   ;;  %v5843_v23 = vld [vmem:[#allocation2 + $0x40] sm:$0xe]  ;;  %v5702_v36 = vrot.slane %v12535_v47, 5 }
 0x5cc   : > { %v5695_v39 = vsel %vm12575_vm15, %v9418_v61, %v5694_v55  ;;  %v5656_v11 = vld [vmem:[#allocation2 + $0x38] sm:$0xe]  ;;  %v10585_v46 = vld [vmem:[#allocation12 + $0x220] sm:$0xff]   ;;  %v5927_v10 = vshll.u32 %v12622_v14, 16  ;;  %v5706_v29 = vrot.slane %v12540_v48, 5  ;;  %v5890_v47 = vrot.slane %v12549_v25, 5 }
 0x5cd   : > { %7280 = vmatmul.mubr.bf16.vlgmr.msra.gmra.mrb[60].mxu0 %v9492_v6  ;;  %v9426_v6 = vrot.slane %v5840_v9, 9  ;;  %v10587_v26 = vld [vmem:[#allocation12 + $0x2a8] sm:$0xff]   ;;  %v12641_v8 = vld [vmem:[#allocation2 + $0x28] sm:$0xf]  ;;  %v12651_v9 = vld [vmem:[#allocation2 + $0x14] sm:$0x1] }
 0x5ce   : > { %7287 = vmatprep.mubr.bf16.mxu0 %v12494_v45  ;;  %10067 = vmatpush3.bf16.msra.mxu0 %v10567_v22  ;;  %v9424_v45 = vrot.slane %v5838_v59, 9  ;;  %v12616_v22 = vld [vmem:[#allocation2 + $0x10] sm:$0xf]  ;;  %v10589_v48 = vld [vmem:[#allocation12 + $0x228] sm:$0xff]   ;;  %v5929_v25 = vrot.slane %v5927_v10, 5 }
 0x5cf   : > { %10068 = vmatprep.subr.bf16.mxu0 %v10570_v44  ;;  %v5878_v44 = vrot.slane %v12514_v33, 5  ;;  %v5910_v49 = vshrl.u32 %v12616_v22, 16  ;;  %v10586_v33 = vld [vmem:[#allocation12 + $0x2e8] sm:$0xff]  }
 0x5d0   : > { %7215 = vmatmul.mubr.bf16.vlgmr.msra.gmra.mrb[56].mxu1 %v12593_v20  ;;  %v5871_v43 = vsel %vm12575_vm15, %v9424_v45, %v5870_v28  ;;  %v10588_v28 = vld [vmem:[#allocation12 + $0x268] sm:$0xff]  }
 0x5d1   : > { %7222 = vmatprep.mubr.bf16.mxu1 %v12512_v63  ;;  %10027 = vmatpush3.bf16.msra.mxu1 %v10569_v42  ;;  %v12610_v19 = vcombine.low %v5871_v43, %v5875_v3  ;;  %v5883_v42 = vsel %vm12575_vm15, %v9427_v5, %v5882_v30  ;;  %v5879_v2 = vsel %vm12575_vm15, %v9426_v6, %v5878_v44  ;;  %v5912_v3 = vrot.slane %v5910_v49, 4  ;;  %v12655_v5 = vld [vmem:[#allocation2 + $0x1c] sm:$0x1] }
 0x5d2   : > { %10028 = vmatprep.subr.bf16.mxu1 %v10572_v53  ;;  %10069 = vmatpush3.bf16.msra.mxu0 %v10571_v51  ;;  %v5913_v53 = vshll.u32 %v12616_v22, 16  ;;  %v9420_v51 = vrot.slane %v5655_v0, 9  ;;  %v12635_v45 = vcombine.low %v5879_v2, %v5883_v42  ;;  %v5886_v43 = vrot.slane %v12542_v57, 5  ;;  %v10593_v0 = vld [vmem:[#allocation12 + $0x230] sm:$0xff]   ;;  %v10597_v42 = vld [vmem:[#allocation12 + $0x278] sm:$0xff]  }
 0x5d3   : > { %10070 = vmatprep.subr.bf16.mxu0 %v10574_v4  ;;  %v5842_v4 = vld [vmem:[#allocation2 + $0x38] sm:$0xe]  ;;  %v5952_v57 = vshrl.u32 %v12641_v8, 16  ;;  %v5955_v30 = vshll.u32 %v12641_v8, 16  ;;  %v10767_v35 = vld [vmem:[%s11495_s14 + $0xc] sm:$0x1] }
 0x5d4   : > { %v9428_v21 = vrot.slane %v5842_v4, 9 }
 0x5d5   : > { %10029 = vmatpush3.bf16.msra.mxu1 %v10573_v1  ;;  %7288 = vmatmul.mubr.bf16.gmra.mrb[64].mxu0 %v9493_v31  ;;  %v5924_v1 = vshrl.u32 %v12622_v14, 16  ;;  %v5915_v31 = vrot.slane %v5913_v53, 5  ;;  %v9540_v53 = vcombine.low %v12616_v22, %v12622_v14  ;;  %v12673_v22 = vld [vmem:[#allocation2 + $0x2c] sm:$0x1]  ;;  %v12675_v14 = vld [vmem:[#allocation2 + $0x38] sm:$0xf] }
 0x5d6   : > { %10030 = vmatprep.subr.bf16.mxu1 %v10576_v12  ;;  %7295 = vmatprep.mubr.bf16.mxu0 %v12533_v40  ;;  %v5699_v40 = vsel %vm12575_vm15, %v9419_v15, %v5698_v37  ;;  %v9421_v12 = vrot.slane %v5656_v11, 9  ;;  %v12647_v15 = vld [vmem:[#allocation2 + $0x20] sm:$0xf]  ;;  %v5887_v44 = vsel %vm12575_vm15, %v9428_v21, %v5886_v43  ;;  %v5933_v11 = vshll.u32 %v12655_v5, 16 }
 0x5d7   : > { %10071 = vmatpush3.bf16.msra.mxu0 %v10575_v54  ;;  %v9494_v59 = vcombine.low %v5695_v39, %v5699_v40  ;;  %v9429_v54 = vrot.slane %v5843_v23, 9  ;;  %v5916_v55 = vor.u32 %v5915_v31, %v5912_v3  ;;  %v5938_v40 = vshrl.u32 %v12647_v15, 16  ;;  %v10599_v23 = vld [vmem:[#allocation12 + $0x3c0] sm:$0xff]   ;;  %v10604_v31 = vld [vmem:[#allocation12 + $0x3c8] sm:$0xff]  }
 0x5d8   : > { %7223 = vmatmul.mubr.bf16.gmra.mrb[60].mxu1 %v12610_v19  ;;  %10072 = vmatprep.subr.bf16.mxu0 %v10578_v34  ;;  %v10590_v34 = vld [vmem:[#allocation12 + $0x2f0] sm:$0xff]   ;;  %v5707_v37 = vsel %vm12575_vm15, %v9421_v12, %v5706_v29  ;;  %v5941_v6 = vshll.u32 %v12647_v15, 16  ;;  %v5919_v39 = vshll.u32 %v12651_v9, 16  ;;  %v5935_v10 = vrot.slane %v5933_v11, 5  ;;  %v10600_v12 = vld [vmem:[#allocation12 + $0x380] sm:$0xff]  }
 0x5d9   : > { %7230 = vmatprep.mubr.bf16.mxu1 %v12551_v41  ;;  %10031 = vmatpush3.bf16.msra.mxu1 %v10577_v13  ;;  %v5926_v13 = vrot.slane %v5924_v1, 4  ;;  %v5891_v61 = vsel %vm12575_vm15, %v9429_v54, %v5890_v47  ;;  %v5917_v49 = vrot.slane %v5916_v55, 4  ;;  %v5940_v2 = vrot.slane %v5938_v40, 4  ;;  %v10598_v1 = vld [vmem:[#allocation12 + $0x238] sm:$0xff]   ;;  %v12698_v40 = vld [vmem:[#allocation2 + $0x40] sm:$0xf] }
 0x5da   : > { %10032 = vmatprep.subr.bf16.mxu1 %v10580_v32  ;;  %v10592_v32 = vld [vmem:[#allocation12 + $0x270] sm:$0xff]   ;;  %v5980_v43 = vshrl.u32 %v12675_v14, 16 }
 0x5db   : > { %10073 = vmatpush3.bf16.msra.mxu0 %v10579_v7  ;;  %v10591_v7 = vld [vmem:[#allocation12 + $0x2b0] sm:$0xff]  }
 0x5dc   : > { %10074 = vmatprep.subr.bf16.mxu0 %v10582_v50 }
 0x5dd   : > { %10033 = vmatpush3.bf16.msra.mxu1 %v10581_v24  ;;  %7296 = vmatmul.mubr.bf16.gmra.mrb[68].mxu0 %v9494_v59  ;;  %v10595_v24 = vld [vmem:[#allocation12 + $0x2f8] sm:$0xff]  }
 0x5de   : > { %10034 = vmatprep.subr.bf16.mxu1 %v10584_v38  ;;  %7303 = vmatprep.mubr.bf16.mxu0 %v12562_v62  ;;  %v5703_v62 = vsel %vm12575_vm15, %v9420_v51, %v5702_v36  ;;  %v5930_v38 = vor.u32 %v5929_v25, %v5926_v13  ;;  %v10596_v59 = vld [vmem:[#allocation12 + $0x2b8] sm:$0xff]   ;;  %v5957_v51 = vrot.slane %v5955_v30, 5  ;;  %v12671_v36 = vld [vmem:[#allocation2 + $0x30] sm:$0xf]  ;;  %v5983_v13 = vshll.u32 %v12675_v14, 16 }
 0x5df   : > { %10075 = vmatpush3.bf16.msra.mxu0 %v10583_v58  ;;  %v9495_v50 = vcombine.low %v5703_v62, %v5707_v37  ;;  %v12664_v58 = vcombine.low %v5887_v44, %v5891_v61  ;;  %v5966_v47 = vshrl.u32 %v12671_v36, 16  ;;  %v5969_v3 = vshll.u32 %v12671_v36, 16  ;;  %v10606_v37 = vld [vmem:[#allocation12 + $0x348] sm:$0xff]  }
 0x5e0   : > { %7231 = vmatmul.mubr.bf16.gmra.mrb[64].mxu1 %v12635_v45  ;;  %10076 = vmatprep.subr.bf16.mxu0 %v10586_v33  ;;  %v5954_v33 = vrot.slane %v5952_v57, 4  ;;  %v5931_v4 = vrot.slane %v5930_v38, 4  ;;  %v5961_v62 = vshll.u32 %v12673_v22, 16  ;;  %v10605_v61 = vld [vmem:[#allocation12 + $0x388] sm:$0xff]   ;;  %v5985_v38 = vrot.slane %v5983_v13, 5 }
 0x5e1   : > { %7238 = vmatprep.mubr.bf16.mxu1 %v12571_v18  ;;  %10035 = vmatpush3.bf16.msra.mxu1 %v10585_v46  ;;  %v5943_v46 = vrot.slane %v5941_v6, 5  ;;  %v5968_v57 = vrot.slane %v5966_v47, 4  ;;  %v5971_v30 = vrot.slane %v5969_v3, 5  ;;  %v10607_v6 = vld [vmem:[#allocation12 + $0x308] sm:$0xff]   ;;  %v10614_v47 = vld [vmem:[#allocation12 + $0x398] sm:$0xff]  }
 0x5e2   : > { %10036 = vmatprep.subr.bf16.mxu1 %v10588_v28  ;;  %v10601_v28 = vld [vmem:[#allocation12 + $0x340] sm:$0xff]   ;;  %v5958_v54 = vor.u32 %v5957_v51, %v5954_v33  ;;  %v5936_v21 = vsel %vm12021_vm6, %v5931_v4, %v5935_v10  ;;  %v5963_v44 = vrot.slane %v5961_v62, 5  ;;  %v5994_v33 = vshrl.u32 %v12698_v40, 16  ;;  %v10612_v4 = vld [vmem:[#allocation12 + $0x310] sm:$0xff]   ;;  %v10616_v62 = vld [vmem:[#allocation12 + $0x318] sm:$0xff]  }
 0x5e3   : > { %10077 = vmatpush3.bf16.msra.mxu0 %v10587_v26  ;;  %v12679_v26 = vld [vmem:[#allocation2 + $0x24] sm:$0x1]  ;;  %v5997_v51 = vshll.u32 %v12698_v40, 16 }
 0x5e4   : > { %10078 = vmatprep.subr.bf16.mxu0 %v10590_v34  ;;  %v5944_v34 = vor.u32 %v5943_v46, %v5940_v2  ;;  %v5959_v55 = vrot.slane %v5958_v54, 4  ;;  %v12708_v2 = vld [vmem:[#allocation2 + $0x3c] sm:$0x1]  ;;  %v12723_v13 = vld [vmem:[#allocation2 + $0x44] sm:$0x1] }
 0x5e5   : > { %10037 = vmatpush3.bf16.msra.mxu1 %v10589_v48  ;;  %7304 = vmatmul.mubr.bf16.gmra.mrb[72].mxu0 %v9495_v50  ;;  %v10603_v48 = vld [vmem:[#allocation12 + $0x300] sm:$0xff]   ;;  %v12695_v50 = vld [vmem:[#allocation2 + $0x48] sm:$0xf] }
 0x5e6   : > { %10038 = vmatprep.subr.bf16.mxu1 %v10592_v32  ;;  %8011 = vmatprep.mubr.bf16.mxu0 %v12438_v17  ;;  %v5921_v17 = vrot.slane %v5919_v39, 5  ;;  %v5947_v32 = vshll.u32 %v12679_v26, 16  ;;  %v12700_v39 = vld [vmem:[#allocation2 + $0x34] sm:$0x1]  ;;  %v6011_v11 = vshll.u32 %v12695_v50, 16 }
 0x5e7   : > { %10079 = vmatpush3.bf16.msra.mxu0 %v10591_v7  ;;  %v9541_v7 = vcombine.low %v12647_v15, %v12641_v8  ;;  %v10610_v15 = vld [vmem:[#allocation12 + $0x350] sm:$0xff]  }
 0x5e8   : > { %7239 = vmatmul.mubr.bf16.gmra.mrb[68].mxu1 %v12664_v58  ;;  %10080 = vmatprep.subr.bf16.mxu0 %v10595_v24  ;;  %v5922_v29 = vsel %vm12021_vm6, %v5917_v49, %v5921_v17  ;;  %v10608_v24 = vld [vmem:[#allocation12 + $0x3d0] sm:$0xff]   ;;  %v5949_v8 = vrot.slane %v5947_v32, 5  ;;  %v6013_v54 = vrot.slane %v6011_v11, 5  ;;  %v10618_v32 = vld [vmem:[#allocation12 + $0x3a0] sm:$0xff]  }
 0x5e9   : > { %10039 = vmatpush3.bf16.msra.mxu1 %v10593_v0  ;;  %7946 = vmatprep.mubr.bf16.mxu1 %v9540_v53  ;;  %v12689_v25 = vcombine.low %v5922_v29, %v5936_v21  ;;  %v5982_v0 = vrot.slane %v5980_v43, 4  ;;  %v10609_v49 = vld [vmem:[#allocation12 + $0x390] sm:$0xff]   ;;  %v5964_v53 = vsel %vm12021_vm6, %v5959_v55, %v5963_v44  ;;  %v5999_v21 = vrot.slane %v5997_v51, 5  ;;  %v12721_v43 = vld [vmem:[#allocation2 + $0x4c] sm:$0x1] }
 0x5ea   : > { %10040 = vmatprep.subr.bf16.mxu1 %v10597_v42  ;;  %v6008_v42 = vshrl.u32 %v12695_v50, 16 }
 0x5eb   : > { %10081 = vmatpush3.bf16.msra.mxu0 %v10596_v59  ;;  %v5972_v59 = vor.u32 %v5971_v30, %v5968_v57  ;;  %v5986_v17 = vor.u32 %v5985_v38, %v5982_v0  ;;  %v10622_v30 = vld [vmem:[#allocation12 + $0x3e8] sm:$0xff]   ;;  %v9543_v38 = vcombine.low %v12698_v40, %v12695_v50  ;;  %v10630_v40 = vld [vmem:[#allocation12 + $0x3f8] sm:$0xff]  }
 0x5ec   : > { %10146 = vmatprep.subr.bf16.mxu0 %v10599_v23  ;;  %v10613_v23 = vld [vmem:[#allocation12 + $0x3d8] sm:$0xff]   ;;  %v6010_v29 = vrot.slane %v6008_v42, 4  ;;  %v10624_v0 = vld [vmem:[#allocation12 + $0x368] sm:$0xff]  }
 0x5ed   : > { %10041 = vmatpush3.bf16.msra.mxu1 %v10598_v1  ;;  %v5975_v1 = vshll.u32 %v12700_v39, 16  ;;  %v5973_v3 = vrot.slane %v5972_v59, 4 }
 0x5ee   : > { %8012 = vmatmul.mubr.bf16.vlgmr.msra.gmra.mrb[76].mxu0 %v12473_v16  ;;  %10106 = vmatprep.subr.bf16.mxu1 %v10601_v28  ;;  %v9542_v28 = vcombine.low %v12671_v36, %v12675_v14  ;;  %v5987_v14 = vrot.slane %v5986_v17, 4  ;;  %v6014_v57 = vor.u32 %v6013_v54, %v6010_v29  ;;  %v6022_v17 = vld [vmem:[#allocation2 + $0x18] sm:$0xe]  ;;  %v6047_v29 = vrot.slane %v12651_v9, 5  ;;  %v10633_v54 = vld [vmem:[#allocation12 + $0x338] sm:$0xff]  }
 0x5ef   : > { %8019 = vmatprep.mubr.bf16.mxu0 %v12462_v56  ;;  %10147 = vmatpush3.bf16.msra.mxu0 %v10600_v12  ;;  %v5945_v56 = vrot.slane %v5944_v34, 4  ;;  %v10615_v12 = vld [vmem:[#allocation12 + $0x358] sm:$0xff]   ;;  %v5996_v34 = vrot.slane %v5994_v33, 4  ;;  %v5977_v36 = vrot.slane %v5975_v1, 5  ;;  %v10628_v33 = vld [vmem:[#allocation12 + $0x370] sm:$0xff]  }
 0x5f0   : > { %7947 = vmatmul.mubr.bf16.vlgmr.msra.gmra.mrb[72].mxu1 %v12689_v25  ;;  %10148 = vmatprep.subr.bf16.mxu0 %v10604_v31  ;;  %v5989_v31 = vshll.u32 %v12708_v2, 16  ;;  %v6015_v42 = vrot.slane %v6014_v57, 4  ;;  %v10632_v1 = vld [vmem:[#allocation12 + $0x378] sm:$0xff]  }
 0x5f1   : > { %7954 = vmatprep.mubr.bf16.mxu1 %v9541_v7  ;;  %10107 = vmatpush3.bf16.msra.mxu1 %v10603_v48  ;;  %v5950_v46 = vsel %vm12021_vm6, %v5945_v56, %v5949_v8  ;;  %v10617_v48 = vld [vmem:[#allocation12 + $0x3e0] sm:$0xff]   ;;  %v5978_v7 = vsel %vm12021_vm6, %v5973_v3, %v5977_v36  ;;  %v6000_v55 = vor.u32 %v5999_v21, %v5996_v34  ;;  %v6003_v56 = vshll.u32 %v12723_v13, 16  ;;  %v10623_v8 = vld [vmem:[#allocation12 + $0x3a8] sm:$0xff]   ;;  %v6024_v34 = vld [vmem:[#allocation2 + $0x28] sm:$0xe] }
 0x5f2   : > { %10108 = vmatprep.subr.bf16.mxu1 %v10606_v37  ;;  %v12714_v10 = vcombine.low %v5950_v46, %v5964_v53  ;;  %v6017_v37 = vshll.u32 %v12721_v43, 16  ;;  %v10625_v53 = vld [vmem:[#allocation12 + $0x328] sm:$0xff]   ;;  %v10629_v46 = vld [vmem:[#allocation12 + $0x330] sm:$0xff]   ;;  %v6051_v3 = vrot.slane %v12655_v5, 5 }
 0x5f3   : > { %10149 = vmatpush3.bf16.msra.mxu0 %v10605_v61  ;;  %v5991_v61 = vrot.slane %v5989_v31, 5  ;;  %v6005_v59 = vrot.slane %v6003_v56, 5  ;;  %v6023_v21 = vld [vmem:[#allocation2 + $0x20] sm:$0xe] }
 0x5f4   : > { %10150 = vmatprep.subr.bf16.mxu0 %v10608_v24  ;;  %v6019_v11 = vrot.slane %v6017_v37, 5  ;;  %v9432_v5 = vrot.slane %v6023_v21, 9  ;;  %v6063_v37 = vrot.slane %v12700_v39, 5  ;;  %v10766_v56 = vld [vmem:[%s11495_s14 + $0x10] sm:$0xf] }
 0x5f5   : > { %10109 = vmatpush3.bf16.msra.mxu1 %v10607_v6  ;;  %v5992_v24 = vsel %vm12021_vm6, %v5987_v14, %v5991_v61  ;;  %v10621_v6 = vld [vmem:[#allocation12 + $0x320] sm:$0xff]   ;;  %v6028_v61 = vld [vmem:[#allocation2 + $0x48] sm:$0xe] }
 0x5f6   : > { %8020 = vmatmul.mubr.bf16.gmra.mrb[80].mxu0 %v12512_v63  ;;  %10110 = vmatprep.subr.bf16.mxu1 %v10610_v15  ;;  %v12732_v44 = vcombine.low %v5978_v7, %v5992_v24  ;;  %v6001_v15 = vrot.slane %v6000_v55, 4  ;;  %v6020_v50 = vsel %vm12021_vm6, %v6015_v42, %v6019_v11  ;;  %v6025_v14 = vld [vmem:[#allocation2 + $0x30] sm:$0xe]  ;;  %v6027_v7 = vld [vmem:[#allocation2 + $0x40] sm:$0xe]  ;;  %v6071_v55 = vrot.slane %v12723_v13, 5 }
 0x5f7   : > { %8027 = vmatprep.mubr.bf16.mxu0 %v12499_v52  ;;  %10151 = vmatpush3.bf16.msra.mxu0 %v10609_v49  ;;  %v10619_v52 = vld [vmem:[#allocation12 + $0x360] sm:$0xff]   ;;  %v10626_v49 = vld [vmem:[#allocation12 + $0x3f0] sm:$0xff]   ;;  %v9436_v39 = vrot.slane %v6027_v7, 9  ;;  %v9437_v57 = vrot.slane %v6028_v61, 9  ;;  %v6595_v11 = vshll.u32 %v10767_v35, 16 }
 0x5f8   : > { %7955 = vmatmul.mubr.bf16.gmra.mrb[76].mxu1 %v12714_v10  ;;  %10152 = vmatprep.subr.bf16.mxu0 %v10613_v23  ;;  %v6006_v51 = vsel %vm12021_vm6, %v6001_v15, %v6005_v59  ;;  %v6021_v23 = vld [vmem:[#allocation2 + $0x10] sm:$0xe]  ;;  %v10769_v59 = vld [vmem:[%s11495_s14 + $0x18] sm:$0xf]  ;;  %v10773_v7 = vld [vmem:[%s11495_s14 + $0x30] sm:$0xf] }
 0x5f9   : > { %7962 = vmatprep.mubr.bf16.mxu1 %v9542_v28  ;;  %10111 = vmatpush3.bf16.msra.mxu1 %v10612_v4  ;;  %v9539_v4 = vcombine.low %v6006_v51, %v6020_v50  ;;  %v10631_v28 = vld [vmem:[#allocation12 + $0x3b8] sm:$0xff]   ;;  %v6656_v61 = vshrl.u32 %v10773_v7, 16 }
 0x5fa   : > { %10112 = vmatprep.subr.bf16.mxu1 %v10615_v12  ;;  %v9430_v12 = vrot.slane %v6021_v23, 9 }
 0x5fb   : > { %10153 = vmatpush3.bf16.msra.mxu0 %v10614_v47  ;;  %v9431_v47 = vrot.slane %v6022_v17, 9 }
 0x5fc   : > { %10154 = vmatprep.subr.bf16.mxu0 %v10617_v48  ;;  %v6048_v31 = vsel %vm12575_vm15, %v9430_v12, %v6047_v29  ;;  %v6059_v48 = vrot.slane %v12673_v22, 5  ;;  %v9434_v22 = vrot.slane %v6025_v14, 9 }
 0x5fd   : > { %10113 = vmatpush3.bf16.msra.mxu1 %v10616_v62  ;;  %v6055_v62 = vrot.slane %v12679_v26, 5 }
 0x5fe   : > { %8028 = vmatmul.mubr.bf16.gmra.mrb[84].mxu0 %v12551_v41  ;;  %10114 = vmatprep.subr.bf16.mxu1 %v10619_v52 }
 0x5ff   : > { %8035 = vmatprep.mubr.bf16.mxu0 %v12538_v60  ;;  %10155 = vmatpush3.bf16.msra.mxu0 %v10618_v32  ;;  %v10627_v60 = vld [vmem:[#allocation12 + $0x3b0] sm:$0xff]   ;;  %v6064_v32 = vsel %vm12575_vm15, %v9434_v22, %v6063_v37 }
 0x600   : > { %7963 = vmatmul.mubr.bf16.gmra.mrb[80].mxu1 %v12732_v44  ;;  %10156 = vmatprep.subr.bf16.mxu0 %v10622_v30  ;;  %v6072_v30 = vsel %vm12575_vm15, %v9436_v39, %v6071_v55  ;;  %v6659_v55 = vshll.u32 %v10773_v7, 16 }
 0x601   : > { %7970 = vmatprep.mubr.bf16.mxu1 %v9543_v38  ;;  %10115 = vmatpush3.bf16.msra.mxu1 %v10621_v6 }
 0x602   : > { %10116 = vmatprep.subr.bf16.mxu1 %v10624_v0 }
 0x603   : > { %10157 = vmatpush3.bf16.msra.mxu0 %v10623_v8 }
 0x604   : > { %10158 = vmatprep.subr.bf16.mxu0 %v10626_v49 }
 0x605   : > { %10117 = vmatpush3.bf16.msra.mxu1 %v10625_v53 }
 0x606   : > { %8036 = vmatmul.mubr.bf16.gmra.mrb[88].mxu0 %v12571_v18  ;;  %10118 = vmatprep.subr.bf16.mxu1 %v10628_v33  ;;  %v6614_v33 = vshrl.u32 %v10769_v59, 16 }
 0x607   : > { %10159 = vmatpush3.bf16.msra.mxu0 %v10627_v60  ;;  %8719 = vmatprep.mubr.bf16.mxu0 %v12473_v16  ;;  %v6052_v16 = vsel %vm12575_vm15, %v9431_v47, %v6051_v3  ;;  %v6617_v60 = vshll.u32 %v10769_v59, 16  ;;  %v10771_v3 = vld [vmem:[%s11495_s14 + $0x28] sm:$0xf] }
 0x608   : > { %7971 = vmatmul.mubr.bf16.gmra.mrb[84].mxu1 %v9539_v4  ;;  %10160 = vmatprep.subr.bf16.mxu0 %v10630_v40  ;;  %v9584_v9 = vcombine.low %v6048_v31, %v6052_v16  ;;  %v6597_v40 = vrot.slane %v6595_v11, 5  ;;  %v6642_v31 = vshrl.u32 %v10771_v3, 16  ;;  %v6661_v11 = vrot.slane %v6659_v55, 5 }
 0x609   : > { %10119 = vmatpush3.bf16.msra.mxu1 %v10629_v46  ;;  %8654 = vmatprep.mubr.bf16.mxu1 %v12689_v25  ;;  %v9433_v25 = vrot.slane %v6024_v34, 9  ;;  %v6619_v17 = vrot.slane %v6617_v60, 5  ;;  %v6645_v34 = vshll.u32 %v10771_v3, 16 }
 0x60a   : > { %10120 = vmatprep.subr.bf16.mxu1 %v10632_v1  ;;  %v6616_v1 = vrot.slane %v6614_v33, 4  ;;  %v6644_v37 = vrot.slane %v6642_v31, 4  ;;  %v10776_v33 = vld [vmem:[%s11495_s14 + $0x34] sm:$0x1] }
 0x60b   : > { %10161 = vmatpush3.bf16.msra.mxu0 %v10631_v28  ;;  %v6060_v36 = vsel %vm12575_vm15, %v9433_v25, %v6059_v48  ;;  %v10770_v28 = vld [vmem:[%s11495_s14 + $0x20] sm:$0xf]  ;;  %v10772_v48 = vld [vmem:[%s11495_s14 + $0x1c] sm:$0x1]  ;;  %v6665_v60 = vshll.u32 %v10776_v33, 16 }
 0x60c   : > { %v6628_v12 = vshrl.u32 %v10770_v28, 16  ;;  %v6631_v29 = vshll.u32 %v10770_v28, 16  ;;  %v6620_v14 = vor.u32 %v6619_v17, %v6616_v1  ;;  %v10777_v1 = vld [vmem:[%s11495_s14 + $0x38] sm:$0xf]  ;;  %v10783_v33 = vld [vmem:[%s11495_s14 + $0x68] sm:$0xf] }
 0x60d   : > { %10121 = vmatpush3.bf16.msra.mxu1 %v10633_v54  ;;  %v6670_v17 = vshrl.u32 %v10777_v1, 16  ;;  %v6673_v28 = vshll.u32 %v10777_v1, 16 }
 0x60e   : > { %8720 = vmatmul.mubr.bf16.vlgmr.msra.gmra.mrb[92].mxu0 %v12593_v20  ;;  %v6056_v20 = vsel %vm12575_vm15, %v9432_v5, %v6055_v62  ;;  %v6623_v5 = vshll.u32 %v10772_v48, 16 }
 0x60f   : > { %8727 = vmatprep.mubr.bf16.mxu0 %v12512_v63  ;;  %v9585_v52 = vcombine.low %v6056_v20, %v6060_v36  ;;  %v6026_v63 = vld [vmem:[#allocation2 + $0x38] sm:$0xe]  ;;  %v6630_v20 = vrot.slane %v6628_v12, 4  ;;  %v10778_v12 = vld [vmem:[%s11495_s14 + $0x40] sm:$0xf] }
 0x610   : > { %8655 = vmatmul.mubr.bf16.vlgmr.msra.gmra.mrb[88].mxu1 %v9584_v9  ;;  %v9435_v26 = vrot.slane %v6026_v63, 9 }
 0x611   : > { %8662 = vmatprep.mubr.bf16.mxu1 %v12714_v10  ;;  %v6067_v10 = vrot.slane %v12708_v2, 5  ;;  %v6075_v2 = vrot.slane %v12721_v43, 5  ;;  %v6600_v43 = vshrl.u32 %v10766_v56, 16 }
 0x613   : > { %v6076_v24 = vsel %vm12575_vm15, %v9437_v57, %v6075_v2  ;;  %v6602_v8 = vrot.slane %v6600_v43, 4  ;;  %v6621_v57 = vrot.slane %v6620_v14, 4  ;;  %v6625_v2 = vrot.slane %v6623_v5, 5  ;;  %v10775_v43 = vld [vmem:[%s11495_s14 + $0x2c] sm:$0x1] }
 0x616   : > { %8728 = vmatmul.mubr.bf16.gmra.mrb[96].mxu0 %v12610_v19  ;;  %v6068_v19 = vsel %vm12575_vm15, %v9435_v26, %v6067_v10  ;;  %v6647_v26 = vrot.slane %v6645_v34, 5 }
 0x617   : > { %8735 = vmatprep.mubr.bf16.mxu0 %v12551_v41  ;;  %v9586_v41 = vcombine.low %v6064_v32, %v6068_v19 }
 0x618   : > { %8663 = vmatmul.mubr.bf16.gmra.mrb[92].mxu1 %v9585_v52  ;;  %v6633_v52 = vrot.slane %v6631_v29, 5  ;;  %v6684_v29 = vshrl.u32 %v10778_v12, 16 }
 0x619   : > { %8670 = vmatprep.mubr.bf16.mxu1 %v12732_v44  ;;  %v6603_v44 = vshll.u32 %v10766_v56, 16  ;;  %v6648_v56 = vor.u32 %v6647_v26, %v6644_v37 }
 0x61b   : > { %v6605_v15 = vrot.slane %v6603_v44, 5  ;;  %v6651_v44 = vshll.u32 %v10775_v43, 16 }
 0x61d   : > { %v6606_v49 = vor.u32 %v6605_v15, %v6602_v8 }
 0x61e   : > { %8736 = vmatmul.mubr.bf16.gmra.mrb[100].mxu0 %v12635_v45  ;;  %v9587_v45 = vcombine.low %v6072_v30, %v6076_v24  ;;  %v6634_v30 = vor.u32 %v6633_v52, %v6630_v20  ;;  %v10774_v24 = vld [vmem:[%s11495_s14 + $0x24] sm:$0x1]  ;;  %v6672_v20 = vrot.slane %v6670_v17, 4  ;;  %v6675_v52 = vrot.slane %v6673_v28, 5 }
 0x61f   : > { %8743 = vmatprep.mubr.bf16.mxu0 %v12571_v18  ;;  %v10765_v18 = vld [vmem:[%s11495_s14 + $0x8] sm:$0xf]  ;;  %v6607_v23 = vrot.slane %v6606_v49, 4 }
 0x620   : > { %8671 = vmatmul.mubr.bf16.gmra.mrb[96].mxu1 %v9586_v41  ;;  %v6586_v13 = vshrl.u32 %v10765_v18, 16  ;;  %v6589_v6 = vshll.u32 %v10765_v18, 16 }
 0x621   : > { %8678 = vmatprep.mubr.bf16.mxu1 %v9539_v4 }
 0x622   : > { %v6588_v0 = vrot.slane %v6586_v13, 4  ;;  %v6591_v38 = vrot.slane %v6589_v6, 5 }
 0x624   : > { %v6592_v42 = vor.u32 %v6591_v38, %v6588_v0  ;;  %v6658_v38 = vrot.slane %v6656_v61, 4 }
 0x626   : > { %8744 = vmatmul.mubr.bf16.gmra.mrb[104].mxu0 %v12664_v58  ;;  %v10768_v58 = vld [vmem:[%s11495_s14 + $0x14] sm:$0x1]  ;;  %v6593_v50 = vrot.slane %v6592_v42, 4  ;;  %v6662_v34 = vor.u32 %v6661_v11, %v6658_v38 }
 0x627   : > { %v6609_v53 = vshll.u32 %v10768_v58, 16  ;;  %v6626_v58 = vsel %vm12021_vm6, %v6621_v57, %v6625_v2 }
 0x628   : > { %8679 = vmatmul.mubr.bf16.gmra.mrb[100].mxu1 %v9587_v45  ;;  %v6598_v25 = vsel %vm12021_vm6, %v6593_v50, %v6597_v40  ;;  %v6637_v45 = vshll.u32 %v10774_v24, 16  ;;  %v6663_v7 = vrot.slane %v6662_v34, 4  ;;  %v10785_v34 = vld [vmem:[%s11495_s14 + $0x5c] sm:$0x1] }
 0x629   : > { %v6611_v46 = vrot.slane %v6609_v53, 5  ;;  %v6705_v32 = vunpack.c.l.bf16 %v6598_v25  ;;  %v6635_v53 = vrot.slane %v6634_v30, 4  ;;  %v6667_v25 = vrot.slane %v6665_v60, 5 }
 0x62a   : > { %v6639_v59 = vrot.slane %v6637_v45, 5  ;;  %v10781_v45 = vld [vmem:[%s11495_s14 + $0x44] sm:$0x1]  ;;  %v7363_v60 = vshrl.u32 %v10783_v33, 16 }
 0x62b   : > { %v6612_v36 = vsel %vm12021_vm6, %v6607_v23, %v6611_v46  ;;  %v6649_v23 = vrot.slane %v6648_v56, 4  ;;  %v6653_v46 = vrot.slane %v6651_v44, 5  ;;  %v6676_v56 = vor.u32 %v6675_v52, %v6672_v20 }
 0x62c   : > { %v6706_v39 = vunpack.c.l.bf16 %v6612_v36  ;;  %v10779_v36 = vld [vmem:[%s11495_s14 + $0x3c] sm:$0x1] }
 0x62d   : > { %v6679_v14 = vshll.u32 %v10779_v36, 16  ;;  %v6677_v17 = vrot.slane %v6676_v56, 4 }
 0x62f   : > { %v12817_v43 = vrot.slane %v6679_v14, 5 }
 0x67a   : > { %v9922_v51 = vpop.f32.mrb[44].mxu0 }
 0x67b   : > { %v9923_v4 = vpop.f32.mrb[45].mxu0 }
 0x67c   : > { %v9924_v54 = vadd.f32 %v9923_v4, %v9922_v51  ;;  %v9925_v47 = vpop.f32.mrb[46].mxu0 }
 0x67d   : > { %v9926_v16 = vpop.f32.mrb[47].mxu0 }
 0x67e   : > { %v9927_v21 = vadd.f32 %v9926_v16, %v9925_v47 }
 0x67f   : > { %v9882_v9 = vpop.f32.mrb[40].mxu1 }
 0x680   : > { %v9883_v62 = vpop.f32.mrb[41].mxu1 }
 0x681   : > { %v9884_v63 = vadd.f32 %v9883_v62, %v9882_v9  ;;  %v9885_v22 = vpop.f32.mrb[42].mxu1  ;;  %v6707_v9 = vunpack.c.l.bf16 %v6626_v58  ;;  %v6654_v62 = vsel %vm12021_vm6, %v6649_v23, %v6653_v46 }
 0x682   : > { %v9886_v10 = vpop.f32.mrb[43].mxu1 }
 0x683   : > { %v6547_v19 = vadd.f32 %v9924_v54, %v9884_v63  ;;  %v9887_v41 = vadd.f32 %v9886_v10, %v9885_v22  ;;  %v6687_v54 = vshll.u32 %v10778_v12, 16  ;;  %v6686_v63 = vrot.slane %v6684_v29, 4  ;;  %v10784_v12 = vld [vmem:[%s11495_s14 + $0x60] sm:$0xf] }
 0x684   : > { %v9928_v6 = vpop.f32.mrb[48].mxu0  ;;  %v7349_v29 = vshrl.u32 %v10784_v12, 16 }
 0x685   : > { %v6577_v18 = vmax.f32 %v6547_v19, 0.0  ;;  %v6550_v13 = vadd.f32 %v9927_v21, %v9887_v41  ;;  %v9929_v0 = vpop.f32.mrb[49].mxu0  ;;  %v6640_v21 = vsel %vm12021_vm6, %v6635_v53, %v6639_v59  ;;  %v6689_v22 = vrot.slane %v6687_v54, 5  ;;  %v10780_v41 = vld [vmem:[%s11495_s14 + $0x58] sm:$0xf] }
 0x686   : > { %v9930_v15 = vadd.f32 %v9929_v0, %v9928_v6  ;;  %v9931_v42 = vpop.f32.mrb[50].mxu0  ;;  %v6708_v19 = vunpack.c.l.bf16 %v6640_v21  ;;  %v7338_v55 = vshll.u32 %v10780_v41, 16  ;;  %v6709_v6 = vunpack.c.l.bf16 %v6654_v62 }
 0x687   : > { %v6578_v8 = vmax.f32 %v6550_v13, 0.0  ;;  %v12793_v35 = vadd.f32 %v6705_v32, %v6577_v18  ;;  %v9932_v49 = vpop.f32.mrb[51].mxu0  ;;  %v6693_v18 = vshll.u32 %v10781_v45, 16  ;;  %v6690_v44 = vor.u32 %v6689_v22, %v6686_v63 }
 0x688   : > { %v9933_v50 = vadd.f32 %v9932_v49, %v9931_v42  ;;  %v10782_v42 = vld [vmem:[%s11495_s14 + $0x50] sm:$0xf]  ;;  %v7340_v53 = vrot.slane %v7338_v55, 5  ;;  %v7352_v54 = vshll.u32 %v10784_v12, 16  ;;  %v6682_v63 = vsel %vm12021_vm6, %v6677_v17, %v12817_v43 }
 0x689   : > { %v9888_v51 = vpop.f32.mrb[44].mxu1  ;;  %6721 = vadd.xlane.f32.xlu0 %v12793_v35  ;;  %v12799_v40 = vadd.f32 %v6706_v39, %v6578_v8  ;;  %v6745_v32 = vmul.f32 %v12793_v35, %v12793_v35  ;;  %v7335_v39 = vshrl.u32 %v10780_v41, 16  ;;  %v7321_v11 = vshrl.u32 %v10782_v42, 16  ;;  %v10786_v41 = vld [vmem:[%s11495_s14 + $0x54] sm:$0x1] }
 0x68a   : > { %v9889_v4 = vpop.f32.mrb[45].mxu1  ;;  %v7324_v59 = vshll.u32 %v10782_v42, 16  ;;  %v6695_v46 = vrot.slane %v6693_v18, 5  ;;  %v6691_v28 = vrot.slane %v6690_v44, 4  ;;  %v10787_v18 = vld [vmem:[%s11495_s14 + $0x6c] sm:$0x1] }
 0x68b   : > { %v9890_v47 = vadd.f32 %v9889_v4, %v9888_v51  ;;  %v9891_v3 = vpop.f32.mrb[46].mxu1  ;;  %v6746_v31 = vmul.f32 %v12799_v40, %v12799_v40  ;;  %v7337_v58 = vrot.slane %v7335_v39, 4  ;;  %v7366_v4 = vshll.u32 %v10783_v33, 16  ;;  %v10788_v42 = vld [vmem:[%s11495_s14 + $0x64] sm:$0x1] }
 0x68c   : > { %v9892_v16 = vpop.f32.mrb[47].mxu1  ;;  %v7323_v21 = vrot.slane %v7321_v11, 4  ;;  %v6696_v22 = vsel %vm12021_vm6, %v6691_v28, %v6695_v46  ;;  %v7330_v39 = vshll.u32 %v10786_v41, 16  ;;  %v7358_v11 = vshll.u32 %v10788_v42, 16 }
 0x68d   : > { %v6555_v48 = vadd.f32 %v9930_v15, %v9890_v47  ;;  %v9893_v5 = vadd.f32 %v9892_v16, %v9891_v3  ;;  %6755 = vadd.xlane.f32.xlu1 %v6746_v31  ;;  %6723 = vadd.xlane.f32.xlu0 %v12799_v40  ;;  %v6668_v15 = vsel %vm12021_vm6, %v6663_v7, %v6667_v25  ;;  %v7344_v16 = vshll.u32 %v10785_v34, 16 }
 0x68e   : > { %v9934_v10 = vpop.f32.mrb[52].mxu0  ;;  %v6710_v31 = vunpack.c.l.bf16 %v6668_v15  ;;  %v7326_v25 = vrot.slane %v7324_v59, 5  ;;  %v7368_v20 = vrot.slane %v7366_v4, 5  ;;  %v6712_v59 = vunpack.c.l.bf16 %v6696_v22 }
 0x68f   : > { %v6579_v37 = vmax.f32 %v6555_v48, 0.0  ;;  %v6558_v26 = vadd.f32 %v9933_v50, %v9893_v5  ;;  %v9935_v61 = vpop.f32.mrb[53].mxu0  ;;  %v7365_v48 = vrot.slane %v7363_v60, 4 }
 0x690   : > { %v9936_v2 = vadd.f32 %v9935_v61, %v9934_v10  ;;  %v9937_v30 = vpop.f32.mrb[54].mxu0  ;;  %v7327_v45 = vor.u32 %v7326_v25, %v7323_v21 }
 0x691   : > { %v6580_v57 = vmax.f32 %v6558_v26, 0.0  ;;  %v12814_v24 = vadd.f32 %v6707_v9, %v6579_v37  ;;  %6753 = vadd.xlane.f32.xlu0 %v6745_v32  ;;  %v9938_v13 = vpop.f32.mrb[55].mxu0  ;;  %v7341_v9 = vor.u32 %v7340_v53, %v7337_v58  ;;  %v7351_v37 = vrot.slane %v7349_v29, 4 }
 0x692   : > { %v9939_v38 = vadd.f32 %v9938_v13, %v9937_v30  ;;  %v7354_v26 = vrot.slane %v7352_v54, 5  ;;  %v7346_v30 = vrot.slane %v7344_v16, 5  ;;  %v7372_v13 = vshll.u32 %v10787_v18, 16 }
 0x693   : > { %v9894_v0 = vpop.f32.mrb[48].mxu1  ;;  %6725 = vadd.xlane.f32.xlu1 %v12814_v24  ;;  %v6747_v8 = vmul.f32 %v12814_v24, %v12814_v24  ;;  %v12826_v23 = vadd.f32 %v6708_v19, %v6580_v57  ;;  %v7328_v60 = vrot.slane %v7327_v45, 4  ;;  %v7360_v54 = vrot.slane %v7358_v11, 5 }
 0x694   : > { %v9895_v49 = vpop.f32.mrb[49].mxu1  ;;  %v7355_v15 = vor.u32 %v7354_v26, %v7351_v37 }
 0x695   : > { %v9896_v51 = vadd.f32 %v9895_v49, %v9894_v0  ;;  %v9897_v50 = vpop.f32.mrb[50].mxu1  ;;  %6757 = vadd.xlane.f32.xlu0 %v6747_v8  ;;  %v6748_v14 = vmul.f32 %v12826_v23, %v12826_v23  ;;  %v6711_v8 = vunpack.c.l.bf16 %v6682_v63 }
 0x696   : > { %v9898_v1 = vpop.f32.mrb[51].mxu1  ;;  %v7356_v29 = vrot.slane %v7355_v15, 4 }
 0x697   : > { %v6563_v47 = vadd.f32 %v9936_v2, %v9896_v51  ;;  %v9899_v3 = vadd.f32 %v9898_v1, %v9897_v50  ;;  %6727 = vadd.xlane.f32.xlu1 %v12826_v23  ;;  %v7342_v2 = vrot.slane %v7341_v9, 4  ;;  %v7332_v51 = vrot.slane %v7330_v39, 5  ;;  %v10791_v39 = vld [vmem:[%s11495_s14 + $0x7c] sm:$0x1] }
 0x698   : > { %v9940_v36 = vpop.f32.mrb[56].mxu0  ;;  %v7374_v50 = vrot.slane %v7372_v13, 5  ;;  %v10792_v13 = vld [vmem:[%s11495_s14 + $0x74] sm:$0x1] }
 0x699   : > { %v6581_v5 = vmax.f32 %v6563_v47, 0.0  ;;  %v6566_v62 = vadd.f32 %v9939_v38, %v9899_v3  ;;  %v9941_v52 = vpop.f32.mrb[57].mxu0  ;;  %v7369_v38 = vor.u32 %v7368_v20, %v7365_v48  ;;  %v7347_v33 = vsel %vm12021_vm6, %v7342_v2, %v7346_v30  ;;  %v10789_v47 = vld [vmem:[%s11495_s14 + $0x78] sm:$0xf]  ;;  %v10790_v48 = vld [vmem:[%s11495_s14 + $0x70] sm:$0xf] }
 0x69a   : > { %v9942_v32 = vadd.f32 %v9941_v52, %v9940_v36  ;;  %v9943_v61 = vpop.f32.mrb[58].mxu0  ;;  %v7391_v3 = vshrl.u32 %v10789_v47, 16  ;;  %v7333_v20 = vsel %vm12021_vm6, %v7328_v60, %v7332_v51  ;;  %v7380_v52 = vshll.u32 %v10790_v48, 16 }
 0x69b   : > { %v6582_v10 = vmax.f32 %v6566_v62, 0.0  ;;  %v9900_v7 = vpop.f32.mrb[52].mxu1  ;;  %6759 = vadd.xlane.f32.xlu1 %v6748_v14  ;;  %v12838_v19 = vadd.f32 %v6709_v6, %v6581_v5  ;;  %v9944_v57 = vpop.f32.mrb[59].mxu0  ;;  %v7370_v28 = vrot.slane %v7369_v38, 4  ;;  %v7377_v5 = vshrl.u32 %v10790_v48, 16 }
 0x69c   : > { %v9901_v55 = vpop.f32.mrb[53].mxu1  ;;  %v9945_v43 = vadd.f32 %v9944_v57, %v9943_v61  ;;  %v7441_v14 = vunpack.c.l.bf16 %v7347_v33  ;;  %v7393_v61 = vrot.slane %v7391_v3, 4  ;;  %v7382_v18 = vrot.slane %v7380_v52, 5 }
 0x69d   : > { %v9902_v56 = vadd.f32 %v9901_v55, %v9900_v7  ;;  %v9903_v44 = vpop.f32.mrb[54].mxu1  ;;  %6729 = vadd.xlane.f32.xlu0 %v12838_v19  ;;  %v12843_v0 = vadd.f32 %v6710_v31, %v6582_v10  ;;  %v6749_v53 = vmul.f32 %v12838_v19, %v12838_v19  ;;  %v7394_v31 = vshll.u32 %v10789_v47, 16 }
 0x69e   : > { %v9904_v6 = vpop.f32.mrb[55].mxu1  ;;  %v7375_v10 = vsel %vm12021_vm6, %v7370_v28, %v7374_v50  ;;  %v7361_v7 = vsel %vm12021_vm6, %v7356_v29, %v7360_v54  ;;  %v7400_v55 = vshll.u32 %v10791_v39, 16  ;;  %v7379_v45 = vrot.slane %v7377_v5, 4  ;;  %v10798_v39 = vld [vmem:[%s11495_s14 + $0x84] sm:$0x1] }
 0x69f   : > { %v6571_v49 = vadd.f32 %v9942_v32, %v9902_v56  ;;  %v9905_v58 = vadd.f32 %v9904_v6, %v9903_v44  ;;  %6731 = vadd.xlane.f32.xlu1 %v12843_v0  ;;  %v6750_v17 = vmul.f32 %v12843_v0, %v12843_v0  ;;  %v7396_v41 = vrot.slane %v7394_v31, 5 }
 0x6a0   : > { %v10002_v1 = vpop.f32.mrb[60].mxu0  ;;  %v7386_v56 = vshll.u32 %v10792_v13, 16  ;;  %v7440_v11 = vunpack.c.l.bf16 %v7333_v20  ;;  %v7383_v29 = vor.u32 %v7382_v18, %v7379_v45 }
 0x6a1   : > { %v6583_v46 = vmax.f32 %v6571_v49, 0.0  ;;  %v6574_v4 = vadd.f32 %v9945_v43, %v9905_v58  ;;  %6761 = vadd.xlane.f32.xlu0 %v6749_v53  ;;  %v10003_v12 = vpop.f32.mrb[61].mxu0  ;;  %v10793_v43 = vld [vmem:[%s11495_s14 + $0x88] sm:$0xf]  ;;  %v12874_v58 = vunpack.c.l.bf16 %v7375_v10  ;;  %v12876_v53 = vunpack.c.l.bf16 %v7361_v7 }
 0x6a2   : > { %v10004_v16 = vadd.f32 %v10003_v12, %v10002_v1  ;;  %v10005_v21 = vpop.f32.mrb[62].mxu0  ;;  %v7419_v44 = vshrl.u32 %v10793_v43, 16  ;;  %v7422_v38 = vshll.u32 %v10793_v43, 16  ;;  %v7397_v1 = vor.u32 %v7396_v41, %v7393_v61  ;;  %v10797_v61 = vld [vmem:[%s11495_s14 + $0x8c] sm:$0x1] }
 0x6a3   : > { %v6584_v34 = vmax.f32 %v6574_v4, 0.0  ;;  %v9962_v9 = vpop.f32.mrb[56].mxu1  ;;  %6763 = vadd.xlane.f32.xlu1 %v6750_v17  ;;  %v12854_v25 = vadd.f32 %v6711_v8, %v6583_v46  ;;  %v10006_v36 = vpop.f32.mrb[63].mxu0  ;;  %v12879_v17 = vrot.slane %v7400_v55, 5  ;;  %v12881_v54 = vrot.slane %v7386_v56, 5 }
 0x6a4   : > { %v9963_v62 = vpop.f32.mrb[57].mxu1  ;;  %v10007_v22 = vadd.f32 %v10006_v36, %v10005_v21  ;;  %v7421_v47 = vrot.slane %v7419_v44, 4  ;;  %v7424_v3 = vrot.slane %v7422_v38, 5  ;;  %v10795_v36 = vld [vmem:[%s11495_s14 + $0xa0] sm:$0xf]  ;;  %v7384_v7 = vrot.slane %v7383_v29, 4 }
 0x6a5   : > { %v9964_v63 = vadd.f32 %v9963_v62, %v9962_v9  ;;  %v9965_v37 = vpop.f32.mrb[58].mxu1  ;;  %6733 = vadd.xlane.f32.xlu0 %v12854_v25  ;;  %v12860_v26 = vadd.f32 %v6712_v59, %v6584_v34  ;;  %v6751_v30 = vmul.f32 %v12854_v25, %v12854_v25  ;;  %v10794_v59 = vld [vmem:[%s11495_s14 + $0x80] sm:$0xf]  ;;  %v8067_v20 = vshrl.u32 %v10795_v36, 16 }
 0x6a6   : > { %v9966_v32 = vpop.f32.mrb[59].mxu1  ;;  %v7405_v33 = vshrl.u32 %v10794_v59, 16  ;;  %v7408_v60 = vshll.u32 %v10794_v59, 16  ;;  %v8070_v52 = vshll.u32 %v10795_v36, 16  ;;  %v7428_v41 = vshll.u32 %v10797_v61, 16 }
 0x6a7   : > { %v7282_v57 = vadd.f32 %v10004_v16, %v9964_v63  ;;  %v9967_v2 = vadd.f32 %v9966_v32, %v9965_v37  ;;  %6735 = vadd.xlane.f32.xlu1 %v12860_v26  ;;  %v6752_v42 = vmul.f32 %v12860_v26, %v12860_v26  ;;  %v10796_v37 = vld [vmem:[%s11495_s14 + $0x98] sm:$0xf]  ;;  %v7398_v32 = vrot.slane %v7397_v1, 4 }
 0x6a8   : > { %v10008_v15 = vpop.f32.mrb[64].mxu0  ;;  %v7407_v5 = vrot.slane %v7405_v33, 4  ;;  %v7410_v62 = vrot.slane %v7408_v60, 5  ;;  %v8053_v10 = vshrl.u32 %v10796_v37, 16  ;;  %v7414_v55 = vshll.u32 %v10798_v39, 16 }
 0x6a9   : > { %v7312_v6 = vmax.f32 %v7282_v57, 0.0  ;;  %v7285_v8 = vadd.f32 %v10007_v22, %v9967_v2  ;;  %6765 = vadd.xlane.f32.xlu0 %v6751_v30  ;;  %v10009_v49 = vpop.f32.mrb[65].mxu0  ;;  %v7425_v56 = vor.u32 %v7424_v3, %v7421_v47  ;;  %v8069_v44 = vrot.slane %v8067_v20, 4 }
 0x6aa   : > { %v10010_v50 = vadd.f32 %v10009_v49, %v10008_v15  ;;  %v10011_v4 = vpop.f32.mrb[66].mxu0  ;;  %v7411_v43 = vor.u32 %v7410_v62, %v7407_v5  ;;  %v8072_v38 = vrot.slane %v8070_v52, 5  ;;  %v7403_v60 = vsel %vm12021_vm6, %v7398_v32, %v12879_v17  ;;  %v10800_v62 = vld [vmem:[%s11495_s14 + $0x9c] sm:$0x1] }
 0x6ab   : > { %v7313_v51 = vmax.f32 %v7285_v8, 0.0  ;;  %v9968_v46 = vpop.f32.mrb[60].mxu1  ;;  %6767 = vadd.xlane.f32.xlu1 %v6752_v42  ;;  %v10012_v12 = vpop.f32.mrb[67].mxu0  ;;  %v12885_v21 = vadd.f32 %v7440_v11, %v7312_v6  ;;  %v8055_v11 = vrot.slane %v8053_v10, 4  ;;  %v7426_v3 = vrot.slane %v7425_v56, 4 }
 0x6ac   : > { %v9969_v28 = vpop.f32.mrb[61].mxu1  ;;  %v10013_v34 = vadd.f32 %v10012_v12, %v10011_v4  ;;  %v8073_v17 = vor.u32 %v8072_v38, %v8069_v44  ;;  %v8062_v36 = vshll.u32 %v10800_v62, 16  ;;  %v10802_v44 = vld [vmem:[%s11495_s14 + $0xa8] sm:$0xf] }
 0x6ad   : > { %v9970_v31 = vadd.f32 %v9969_v28, %v9968_v46  ;;  %v9971_v16 = vpop.f32.mrb[62].mxu1  ;;  %v12883_v9 = vadd.f32 %v7441_v14, %v7313_v51  ;;  %v8056_v14 = vshll.u32 %v10796_v37, 16  ;;  %v7480_v45 = vmul.f32 %v12885_v21, %v12885_v21 }
 0x6ae   : > { %v9972_v48 = vpop.f32.mrb[63].mxu1  ;;  %v7389_v51 = vsel %vm12021_vm6, %v7384_v7, %v12881_v54  ;;  %v7416_v46 = vrot.slane %v7414_v55, 5  ;;  %v8074_v7 = vrot.slane %v8073_v17, 4  ;;  %v8081_v38 = vshrl.u32 %v10802_v44, 16 }
 0x6af   : > { %v7290_v63 = vadd.f32 %v10010_v50, %v9970_v31  ;;  %v9973_v22 = vadd.f32 %v9972_v48, %v9971_v16  ;;  %7458 = vadd.xlane.f32.xlu0 %v12883_v9  ;;  %7456 = vadd.xlane.f32.xlu1 %v12885_v21  ;;  %v7481_v18 = vmul.f32 %v12883_v9, %v12883_v9  ;;  %v8058_v49 = vrot.slane %v8056_v14, 5 }
 0x6b0   : > { %v10014_v30 = vpop.f32.mrb[68].mxu0  ;;  %v7430_v50 = vrot.slane %v7428_v41, 5  ;;  %v7412_v31 = vrot.slane %v7411_v43, 4  ;;  %v7444_v20 = vunpack.c.l.bf16 %v7389_v51 }
 0x6b1   : > { %v7314_v57 = vmax.f32 %v7290_v63, 0.0  ;;  %v7293_v2 = vadd.f32 %v10013_v34, %v9973_v22  ;;  %v10015_v13 = vpop.f32.mrb[69].mxu0  ;;  %v10799_v34 = vld [vmem:[%s11495_s14 + $0xa4] sm:$0x1]  ;;  %v8059_v5 = vor.u32 %v8058_v49, %v8055_v11 }
 0x6b2   : > { %v10016_v8 = vadd.f32 %v10015_v13, %v10014_v30  ;;  %v10017_v42 = vpop.f32.mrb[70].mxu0  ;;  %v8076_v16 = vshll.u32 %v10799_v34, 16  ;;  %v7431_v14 = vsel %vm12021_vm6, %v7426_v3, %v7430_v50  ;;  %v7417_v32 = vsel %vm12021_vm6, %v7412_v31, %v7416_v46  ;;  %v10801_v13 = vld [vmem:[%s11495_s14 + $0xb0] sm:$0xf] }
 0x6b3   : > { %v7315_v6 = vmax.f32 %v7293_v2, 0.0  ;;  %v9974_v15 = vpop.f32.mrb[64].mxu1  ;;  %7488 = vadd.xlane.f32.xlu0 %v7480_v45  ;;  %7490 = vadd.xlane.f32.xlu1 %v7481_v18  ;;  %v10018_v33 = vpop.f32.mrb[71].mxu0  ;;  %v12907_v29 = vadd.f32 %v12876_v53, %v7314_v57  ;;  %v8060_v2 = vrot.slane %v8059_v5, 4  ;;  %v8064_v30 = vrot.slane %v8062_v36, 5 }
 0x6b4   : > { %v9975_v59 = vpop.f32.mrb[65].mxu1  ;;  %v10019_v1 = vadd.f32 %v10018_v33, %v10017_v42  ;;  %v8078_v61 = vrot.slane %v8076_v16, 5  ;;  %v8095_v56 = vshrl.u32 %v10801_v13, 16  ;;  %v8098_v43 = vshll.u32 %v10801_v13, 16  ;;  %v10803_v5 = vld [vmem:[%s11495_s14 + $0xc0] sm:$0xf] }
 0x6b5   : > { %v9976_v4 = vadd.f32 %v9975_v59, %v9974_v15  ;;  %v9977_v28 = vpop.f32.mrb[66].mxu1  ;;  %v12904_v12 = vadd.f32 %v12874_v58, %v7315_v6  ;;  %v7445_v58 = vunpack.c.l.bf16 %v7403_v60  ;;  %v7482_v22 = vmul.f32 %v12907_v29, %v12907_v29 }
 0x6b6   : > { %v9978_v47 = vpop.f32.mrb[67].mxu1  ;;  %v8084_v6 = vshll.u32 %v10802_v44, 16  ;;  %v7447_v33 = vunpack.c.l.bf16 %v7431_v14  ;;  %v8079_v60 = vsel %vm12021_vm6, %v8074_v7, %v8078_v61  ;;  %v7446_v46 = vunpack.c.l.bf16 %v7417_v32  ;;  %v10806_v32 = vld [vmem:[%s11495_s14 + $0xac] sm:$0x1] }
 0x6b7   : > { %v7298_v48 = vadd.f32 %v10016_v8, %v9976_v4  ;;  %v9979_v54 = vadd.f32 %v9978_v47, %v9977_v28  ;;  %7462 = vadd.xlane.f32.xlu0 %v12904_v12  ;;  %7460 = vadd.xlane.f32.xlu1 %v12907_v29  ;;  %v7483_v37 = vmul.f32 %v12904_v12, %v12904_v12  ;;  %v8100_v28 = vrot.slane %v8098_v43, 5 }
 0x6b8   : > { %v10020_v63 = vpop.f32.mrb[72].mxu0  ;;  %v8065_v4 = vsel %vm12021_vm6, %v8060_v2, %v8064_v30  ;;  %v8083_v47 = vrot.slane %v8081_v38, 4  ;;  %v8086_v3 = vrot.slane %v8084_v6, 5  ;;  %v8123_v62 = vshrl.u32 %v10803_v5, 16 }
 0x6b9   : > { %v7316_v52 = vmax.f32 %v7298_v48, 0.0  ;;  %v7301_v53 = vadd.f32 %v10019_v1, %v9979_v54  ;;  %v10021_v10 = vpop.f32.mrb[73].mxu0  ;;  %v8097_v1 = vrot.slane %v8095_v56, 4  ;;  %v8126_v36 = vshll.u32 %v10803_v5, 16 }
 0x6ba   : > { %v10022_v39 = vadd.f32 %v10021_v10, %v10020_v63  ;;  %v10023_v57 = vpop.f32.mrb[74].mxu0  ;;  %v10805_v10 = vld [vmem:[%s11495_s14 + $0xb4] sm:$0x1]  ;;  %v8090_v7 = vshll.u32 %v10806_v32, 16  ;;  %v8087_v2 = vor.u32 %v8086_v3, %v8083_v47  ;;  %v8125_v44 = vrot.slane %v8123_v62, 4 }
 0x6bb   : > { %v7317_v41 = vmax.f32 %v7301_v53, 0.0  ;;  %v9980_v55 = vpop.f32.mrb[68].mxu1  ;;  %7492 = vadd.xlane.f32.xlu0 %v7482_v22  ;;  %7494 = vadd.xlane.f32.xlu1 %v7483_v37  ;;  %v10024_v18 = vpop.f32.mrb[75].mxu0  ;;  %v12925_v49 = vadd.f32 %v7444_v20, %v7316_v52  ;;  %v8104_v14 = vshll.u32 %v10805_v10, 16  ;;  %v8128_v38 = vrot.slane %v8126_v36, 5 }
 0x6bc   : > { %v9981_v45 = vpop.f32.mrb[69].mxu1  ;;  %v10025_v15 = vadd.f32 %v10024_v18, %v10023_v57  ;;  %v8101_v57 = vor.u32 %v8100_v28, %v8097_v1 }
 0x6bd   : > { %v9982_v8 = vadd.f32 %v9981_v45, %v9980_v55  ;;  %v9983_v42 = vpop.f32.mrb[70].mxu1  ;;  %v12923_v11 = vadd.f32 %v7445_v58, %v7317_v41  ;;  %v7484_v16 = vmul.f32 %v12925_v49, %v12925_v49  ;;  %v10804_v58 = vld [vmem:[%s11495_s14 + $0xb8] sm:$0xf]  ;;  %v8172_v55 = vunpack.c.l.bf16 %v8065_v4  ;;  %v10808_v4 = vld [vmem:[%s11495_s14 + $0xbc] sm:$0x1] }
 0x6be   : > { %v9984_v59 = vpop.f32.mrb[71].mxu1  ;;  %v8109_v20 = vshrl.u32 %v10804_v58, 16  ;;  %v8112_v52 = vshll.u32 %v10804_v58, 16  ;;  %v8118_v1 = vshll.u32 %v10808_v4, 16 }
 0x6bf   : > { %v7306_v51 = vadd.f32 %v10022_v39, %v9982_v8  ;;  %v9985_v50 = vadd.f32 %v9984_v59, %v9983_v42  ;;  %7466 = vadd.xlane.f32.xlu0 %v12923_v11  ;;  %7464 = vadd.xlane.f32.xlu1 %v12925_v49  ;;  %v7485_v48 = vmul.f32 %v12923_v11, %v12923_v11  ;;  %v8173_v39 = vunpack.c.l.bf16 %v8079_v60 }
 0x6c0   : > { %v8111_v6 = vrot.slane %v8109_v20, 4  ;;  %v8114_v8 = vrot.slane %v8112_v52, 5  ;;  %v8106_v59 = vrot.slane %v8104_v14, 5  ;;  %v8092_v60 = vrot.slane %v8090_v7, 5 }
 0x6c1   : > { %v7318_v31 = vmax.f32 %v7306_v51, 0.0  ;;  %v7309_v17 = vadd.f32 %v10025_v15, %v9985_v50  ;;  %v10082_v34 = vpop.f32.mrb[76].mxu0  ;;  %v8102_v51 = vrot.slane %v8101_v57, 4  ;;  %v10807_v50 = vld [vmem:[%s11495_s14 + $0xc4] sm:$0x1] }
 0x6c2   : > { %v10083_v54 = vpop.f32.mrb[77].mxu0 }
 0x6c3   : > { %v7319_v53 = vmax.f32 %v7309_v17, 0.0  ;;  %v10084_v63 = vadd.f32 %v10083_v54, %v10082_v34  ;;  %v10042_v22 = vpop.f32.mrb[72].mxu1  ;;  %v10085_v37 = vpop.f32.mrb[78].mxu0  ;;  %7496 = vadd.xlane.f32.xlu0 %v7484_v16  ;;  %7498 = vadd.xlane.f32.xlu1 %v7485_v48  ;;  %v12943_v56 = vadd.f32 %v7446_v46, %v7318_v31  ;;  %v8132_v46 = vshll.u32 %v10807_v50, 16  ;;  %v10809_v54 = vld [vmem:[%s11495_s14 + $0xd0] sm:$0xf] }
 0x6c4   : > { %v10043_v61 = vpop.f32.mrb[73].mxu1  ;;  %v10086_v41 = vpop.f32.mrb[79].mxu0  ;;  %v8129_v16 = vor.u32 %v8128_v38, %v8125_v44  ;;  %v8115_v48 = vor.u32 %v8114_v8, %v8111_v6  ;;  %v8151_v5 = vshrl.u32 %v10809_v54, 16  ;;  %v8154_v62 = vshll.u32 %v10809_v54, 16 }
 0x6c5   : > { %v10044_v30 = vadd.f32 %v10043_v61, %v10042_v22  ;;  %v10087_v45 = vadd.f32 %v10086_v41, %v10085_v37  ;;  %v10045_v18 = vpop.f32.mrb[74].mxu1  ;;  %v12941_v13 = vadd.f32 %v7447_v33, %v7319_v53  ;;  %v8088_v33 = vrot.slane %v8087_v2, 4  ;;  %v10810_v53 = vld [vmem:[%s11495_s14 + $0xc8] sm:$0xf] }
 0x6c6   : > { %v10046_v43 = vpop.f32.mrb[75].mxu1  ;;  %v7486_v31 = vmul.f32 %v12943_v56, %v12943_v56  ;;  %v8140_v22 = vshll.u32 %v10810_v53, 16  ;;  %v8107_v14 = vsel %vm12021_vm6, %v8102_v51, %v8106_v59  ;;  %v8134_v7 = vrot.slane %v8132_v46, 5 }
 0x6c7   : > { %v8014_v15 = vadd.f32 %v10084_v63, %v10044_v30  ;;  %v10047_v42 = vadd.f32 %v10046_v43, %v10045_v18  ;;  %7470 = vadd.xlane.f32.xlu0 %v12941_v13  ;;  %7468 = vadd.xlane.f32.xlu1 %v12943_v56  ;;  %v7487_v17 = vmul.f32 %v12941_v13, %v12941_v13  ;;  %v8137_v63 = vshrl.u32 %v10810_v53, 16 }
 0x6c8   : > { %v8093_v32 = vsel %vm12021_vm6, %v8088_v33, %v8092_v60  ;;  %v8120_v61 = vrot.slane %v8118_v1, 5  ;;  %v8130_v43 = vrot.slane %v8129_v16, 4  ;;  %v8116_v44 = vrot.slane %v8115_v48, 4 }
 0x6c9   : > { %v8044_v28 = vmax.f32 %v8014_v15, 0.0  ;;  %v8017_v47 = vadd.f32 %v10087_v45, %v10047_v42  ;;  %v10088_v3 = vpop.f32.mrb[80].mxu0  ;;  %v8153_v38 = vrot.slane %v8151_v5, 4  ;;  %v8156_v6 = vrot.slane %v8154_v62, 5 }
 0x6ca   : > { %v10089_v34 = vpop.f32.mrb[81].mxu0  ;;  %v8139_v42 = vrot.slane %v8137_v63, 4  ;;  %v8142_v59 = vrot.slane %v8140_v22, 5  ;;  %v8175_v60 = vunpack.c.l.bf16 %v8107_v14  ;;  %v8135_v1 = vsel %vm12021_vm6, %v8130_v43, %v8134_v7  ;;  %v10814_v63 = vld [vmem:[%s11495_s14 + $0xe0] sm:$0xf] }
 0x6cb   : > { %v8045_v36 = vmax.f32 %v8017_v47, 0.0  ;;  %v10090_v58 = vadd.f32 %v10089_v34, %v10088_v3  ;;  %v10048_v20 = vpop.f32.mrb[76].mxu1  ;;  %v10091_v52 = vpop.f32.mrb[82].mxu0  ;;  %7500 = vadd.xlane.f32.xlu0 %v7486_v31  ;;  %7502 = vadd.xlane.f32.xlu1 %v7487_v17  ;;  %v12961_v45 = vadd.f32 %v8172_v55, %v8044_v28  ;;  %v8121_v28 = vsel %vm12021_vm6, %v8116_v44, %v8120_v61  ;;  %v10811_v47 = vld [vmem:[%s11495_s14 + $0xd4] sm:$0x1] }
 0x6cc   : > { %v10049_v37 = vpop.f32.mrb[77].mxu1  ;;  %v10092_v10 = vpop.f32.mrb[83].mxu0  ;;  %v8160_v3 = vshll.u32 %v10811_v47, 16  ;;  %v10812_v31 = vld [vmem:[%s11495_s14 + $0xcc] sm:$0x1]  ;;  %v8157_v5 = vor.u32 %v8156_v6, %v8153_v38  ;;  %v8143_v62 = vor.u32 %v8142_v59, %v8139_v42  ;;  %v8761_v22 = vshrl.u32 %v10814_v63, 16 }
 0x6cd   : > { %v10050_v41 = vadd.f32 %v10049_v37, %v10048_v20  ;;  %v10093_v57 = vadd.f32 %v10092_v10, %v10091_v52  ;;  %v10051_v2 = vpop.f32.mrb[78].mxu1  ;;  %v12959_v30 = vadd.f32 %v8173_v39, %v8045_v36  ;;  %v8174_v39 = vunpack.c.l.bf16 %v8093_v32  ;;  %v10813_v20 = vld [vmem:[%s11495_s14 + $0xe8] sm:$0xf]  ;;  %v10816_v47 = vld [vmem:[%s11495_s14 + $0xf0] sm:$0xf] }
 0x6ce   : > { %v10052_v18 = vpop.f32.mrb[79].mxu1  ;;  %v8212_v50 = vmul.f32 %v12961_v45, %v12961_v45  ;;  %v8146_v17 = vshll.u32 %v10812_v31, 16  ;;  %v8775_v52 = vshrl.u32 %v10813_v20, 16  ;;  %v8778_v53 = vshll.u32 %v10813_v20, 16 }
 0x6cf   : > { %v8022_v8 = vadd.f32 %v10090_v58, %v10050_v41  ;;  %v10053_v15 = vadd.f32 %v10052_v18, %v10051_v2  ;;  %8190 = vadd.xlane.f32.xlu0 %v12959_v30  ;;  %8188 = vadd.xlane.f32.xlu1 %v12961_v45  ;;  %v8213_v46 = vmul.f32 %v12959_v30, %v12959_v30  ;;  %v8764_v37 = vshll.u32 %v10814_v63, 16  ;;  %v10818_v63 = vld [vmem:[%s11495_s14 + $0xe4] sm:$0x1] }
 0x6d0   : > { %v8176_v2 = vunpack.c.l.bf16 %v8121_v28  ;;  %v8162_v18 = vrot.slane %v8160_v3, 5  ;;  %v8148_v43 = vrot.slane %v8146_v17, 5  ;;  %v8158_v6 = vrot.slane %v8157_v5, 4  ;;  %v10817_v5 = vld [vmem:[%s11495_s14 + $0xec] sm:$0x1] }
 0x6d1   : > { %v8046_v51 = vmax.f32 %v8022_v8, 0.0  ;;  %v8025_v55 = vadd.f32 %v10093_v57, %v10053_v15  ;;  %v10094_v33 = vpop.f32.mrb[84].mxu0  ;;  %v8177_v57 = vunpack.c.l.bf16 %v8135_v1  ;;  %v8144_v8 = vrot.slane %v8143_v62, 4 }
 0x6d2   : > { %v10095_v4 = vpop.f32.mrb[85].mxu0  ;;  %v8777_v15 = vrot.slane %v8775_v52, 4  ;;  %v8780_v42 = vrot.slane %v8778_v53, 5  ;;  %v8763_v59 = vrot.slane %v8761_v22, 4  ;;  %v8789_v3 = vshrl.u32 %v10816_v47, 16 }
 0x6d3   : > { %v8047_v34 = vmax.f32 %v8025_v55, 0.0  ;;  %v10096_v16 = vadd.f32 %v10095_v4, %v10094_v33  ;;  %v10054_v48 = vpop.f32.mrb[80].mxu1  ;;  %v10097_v54 = vpop.f32.mrb[86].mxu0  ;;  %8220 = vadd.xlane.f32.xlu0 %v8212_v50  ;;  %8222 = vadd.xlane.f32.xlu1 %v8213_v46  ;;  %v12979_v61 = vadd.f32 %v8174_v39, %v8046_v51  ;;  %v10815_v4 = vld [vmem:[%s11495_s14 + $0xf8] sm:$0xf]  ;;  %v8792_v31 = vshll.u32 %v10816_v47, 16 }
 0x6d4   : > { %v10055_v36 = vpop.f32.mrb[81].mxu1  ;;  %v10098_v58 = vpop.f32.mrb[87].mxu0  ;;  %v8803_v1 = vshrl.u32 %v10815_v4, 16  ;;  %v8806_v28 = vshll.u32 %v10815_v4, 16  ;;  %v8784_v62 = vshll.u32 %v10817_v5, 16  ;;  %v8149_v20 = vsel %vm12021_vm6, %v8144_v8, %v8148_v43 }
 0x6d5   : > { %v10056_v10 = vadd.f32 %v10055_v36, %v10054_v48  ;;  %v10099_v14 = vadd.f32 %v10098_v58, %v10097_v54  ;;  %v10057_v32 = vpop.f32.mrb[82].mxu1  ;;  %v12977_v7 = vadd.f32 %v8175_v60, %v8047_v34  ;;  %v8766_v60 = vrot.slane %v8764_v37, 5  ;;  %v10821_v5 = vld [vmem:[%s11495_s14 + $0x108] sm:$0xf] }
 0x6d6   : > { %v10058_v41 = vpop.f32.mrb[83].mxu1  ;;  %v8214_v33 = vmul.f32 %v12979_v61, %v12979_v61  ;;  %v8163_v54 = vsel %vm12021_vm6, %v8158_v6, %v8162_v18  ;;  %v8781_v52 = vor.u32 %v8780_v42, %v8777_v15  ;;  %v8770_v22 = vshll.u32 %v10818_v63, 16  ;;  %v10822_v63 = vld [vmem:[%s11495_s14 + $0x100] sm:$0xf] }
 0x6d7   : > { %v8030_v44 = vadd.f32 %v10096_v16, %v10056_v10  ;;  %v10059_v38 = vadd.f32 %v10058_v41, %v10057_v32  ;;  %8194 = vadd.xlane.f32.xlu0 %v12977_v7  ;;  %8192 = vadd.xlane.f32.xlu1 %v12979_v61  ;;  %v8215_v50 = vmul.f32 %v12977_v7, %v12977_v7  ;;  %v8805_v18 = vrot.slane %v8803_v1, 4 }
 0x6d8   : > { %v8767_v53 = vor.u32 %v8766_v60, %v8763_v59  ;;  %v8791_v6 = vrot.slane %v8789_v3, 4  ;;  %v8179_v43 = vunpack.c.l.bf16 %v8163_v54  ;;  %v8178_v8 = vunpack.c.l.bf16 %v8149_v20 }
 0x6d9   : > { %v8048_v39 = vmax.f32 %v8030_v44, 0.0  ;;  %v8033_v51 = vadd.f32 %v10099_v14, %v10059_v38  ;;  %v10100_v55 = vpop.f32.mrb[88].mxu0  ;;  %v8808_v38 = vrot.slane %v8806_v28, 5  ;;  %v8782_v15 = vrot.slane %v8781_v52, 4  ;;  %v10819_v28 = vld [vmem:[%s11495_s14 + $0xfc] sm:$0x1] }
 0x6da   : > { %v10101_v46 = vpop.f32.mrb[89].mxu0  ;;  %v8768_v42 = vrot.slane %v8767_v53, 4  ;;  %v8812_v47 = vshll.u32 %v10819_v28, 16 }
 0x6db   : > { %v8049_v17 = vmax.f32 %v8033_v51, 0.0  ;;  %v10102_v34 = vadd.f32 %v10101_v46, %v10100_v55  ;;  %v10060_v16 = vpop.f32.mrb[84].mxu1  ;;  %v10103_v48 = vpop.f32.mrb[90].mxu0  ;;  %8224 = vadd.xlane.f32.xlu0 %v8214_v33  ;;  %8226 = vadd.xlane.f32.xlu1 %v8215_v50  ;;  %v12997_v41 = vadd.f32 %v8176_v2, %v8048_v39  ;;  %v8794_v51 = vrot.slane %v8792_v31, 5  ;;  %v10820_v31 = vld [vmem:[%s11495_s14 + $0xf4] sm:$0x1] }
 0x6dc   : > { %v10061_v36 = vpop.f32.mrb[85].mxu1  ;;  %v10104_v58 = vpop.f32.mrb[91].mxu0  ;;  %v8772_v2 = vrot.slane %v8770_v22, 5  ;;  %v8809_v1 = vor.u32 %v8808_v38, %v8805_v18  ;;  %v8817_v22 = vshrl.u32 %v10822_v63, 16 }
 0x6dd   : > { %v10062_v37 = vadd.f32 %v10061_v36, %v10060_v16  ;;  %v10105_v10 = vadd.f32 %v10104_v58, %v10103_v48  ;;  %v10063_v14 = vpop.f32.mrb[86].mxu1  ;;  %v12995_v32 = vadd.f32 %v8177_v57, %v8049_v17  ;;  %v8786_v57 = vrot.slane %v8784_v62, 5 }
 0x6de   : > { %v10064_v44 = vpop.f32.mrb[87].mxu1  ;;  %v8216_v50 = vmul.f32 %v12997_v41, %v12997_v41  ;;  %v8795_v3 = vor.u32 %v8794_v51, %v8791_v6  ;;  %v8798_v17 = vshll.u32 %v10820_v31, 16  ;;  %v8831_v62 = vshrl.u32 %v10821_v5, 16 }
 0x6df   : > { %v8038_v55 = vadd.f32 %v10102_v34, %v10062_v37  ;;  %v10065_v33 = vadd.f32 %v10064_v44, %v10063_v14  ;;  %8198 = vadd.xlane.f32.xlu0 %v12995_v32  ;;  %8196 = vadd.xlane.f32.xlu1 %v12997_v41  ;;  %v8217_v46 = vmul.f32 %v12995_v32, %v12995_v32  ;;  %v8834_v36 = vshll.u32 %v10821_v5, 16 }
 0x6e0   : > { %v8787_v52 = vsel %vm12021_vm6, %v8782_v15, %v8786_v57  ;;  %v8773_v53 = vsel %vm12021_vm6, %v8768_v42, %v8772_v2  ;;  %v8820_v37 = vshll.u32 %v10822_v63, 16  ;;  %v8810_v51 = vrot.slane %v8809_v1, 4 }
 0x6e1   : > { %v8050_v59 = vmax.f32 %v8038_v55, 0.0  ;;  %v8041_v60 = vadd.f32 %v10105_v10, %v10065_v33  ;;  %v10162_v39 = vpop.f32.mrb[92].mxu0  ;;  %v8814_v55 = vrot.slane %v8812_v47, 5  ;;  %v8796_v33 = vrot.slane %v8795_v3, 4 }
 0x6e2   : > { %v10163_v4 = vpop.f32.mrb[93].mxu0  ;;  %v8833_v57 = vrot.slane %v8831_v62, 4  ;;  %v8836_v42 = vrot.slane %v8834_v36, 5  ;;  %v8881_v2 = vunpack.c.l.bf16 %v8787_v52 }
 0x6e3   : > { %v8051_v34 = vmax.f32 %v8041_v60, 0.0  ;;  %v10164_v16 = vadd.f32 %v10163_v4, %v10162_v39  ;;  %v10122_v48 = vpop.f32.mrb[88].mxu1  ;;  %v10165_v54 = vpop.f32.mrb[94].mxu0  ;;  %8228 = vadd.xlane.f32.xlu0 %v8216_v50  ;;  %8230 = vadd.xlane.f32.xlu1 %v8217_v46  ;;  %v13015_v38 = vadd.f32 %v8178_v8, %v8050_v59  ;;  %v8800_v60 = vrot.slane %v8798_v17, 5  ;;  %v10823_v17 = vld [vmem:[%s11495_s14 + $0x10c] sm:$0x1] }
 0x6e4   : > { %v10123_v58 = vpop.f32.mrb[89].mxu1  ;;  %v10166_v20 = vpop.f32.mrb[95].mxu0  ;;  %v8819_v50 = vrot.slane %v8817_v22, 4  ;;  %v8822_v8 = vrot.slane %v8820_v37, 5  ;;  %v8815_v3 = vsel %vm12021_vm6, %v8810_v51, %v8814_v55 }
 0x6e5   : > { %v10124_v10 = vadd.f32 %v10123_v58, %v10122_v48  ;;  %v10167_v14 = vadd.f32 %v10166_v20, %v10165_v54  ;;  %v10125_v44 = vpop.f32.mrb[90].mxu1  ;;  %v13013_v18 = vadd.f32 %v8179_v43, %v8051_v34  ;;  %v8880_v43 = vunpack.c.l.bf16 %v8773_v53  ;;  %v10825_v20 = vld [vmem:[%s11495_s14 + $0x118] sm:$0xf] }
 0x6e6   : > { %v10126_v6 = vpop.f32.mrb[91].mxu1  ;;  %v8218_v1 = vmul.f32 %v13015_v38, %v13015_v38  ;;  %v8801_v31 = vsel %vm12021_vm6, %v8796_v33, %v8800_v60  ;;  %v8840_v34 = vshll.u32 %v10823_v17, 16  ;;  %v8837_v58 = vor.u32 %v8836_v42, %v8833_v57 }
 0x6e7   : > { %v8722_v39 = vadd.f32 %v10164_v16, %v10124_v10  ;;  %v10127_v15 = vadd.f32 %v10126_v6, %v10125_v44  ;;  %8202 = vadd.xlane.f32.xlu0 %v13013_v18  ;;  %8200 = vadd.xlane.f32.xlu1 %v13015_v38  ;;  %v8219_v28 = vmul.f32 %v13013_v18, %v13013_v18  ;;  %v10824_v16 = vld [vmem:[%s11495_s14 + $0x104] sm:$0x1]  ;;  %v8859_v52 = vshrl.u32 %v10825_v20, 16  ;;  %v10826_v10 = vld [vmem:[%s11495_s14 + $0x110] sm:$0xf] }
 0x6e8   : > { %v8826_v48 = vshll.u32 %v10824_v16, 16  ;;  %v8823_v22 = vor.u32 %v8822_v8, %v8819_v50  ;;  %v8862_v37 = vshll.u32 %v10825_v20, 16  ;;  %v8848_v44 = vshll.u32 %v10826_v10, 16 }
 0x6e9   : > { %v8752_v59 = vmax.f32 %v8722_v39, 0.0  ;;  %v8725_v46 = vadd.f32 %v10167_v14, %v10127_v15  ;;  %v10168_v4 = vpop.f32.mrb[96].mxu0  ;;  %v8845_v14 = vshrl.u32 %v10826_v10, 16  ;;  %v8883_v15 = vunpack.c.l.bf16 %v8815_v3  ;;  %v10828_v10 = vld [vmem:[%s11495_s14 + $0x114] sm:$0x1] }
 0x6ea   : > { %v10169_v47 = vpop.f32.mrb[97].mxu0  ;;  %v8842_v57 = vrot.slane %v8840_v34, 5  ;;  %v8828_v42 = vrot.slane %v8826_v48, 5  ;;  %v8838_v50 = vrot.slane %v8837_v58, 4  ;;  %v8861_v8 = vrot.slane %v8859_v52, 4 }
 0x6eb   : > { %v8753_v54 = vmax.f32 %v8725_v46, 0.0  ;;  %v10170_v5 = vadd.f32 %v10169_v47, %v10168_v4  ;;  %v10128_v62 = vpop.f32.mrb[92].mxu1  ;;  %v10171_v36 = vpop.f32.mrb[98].mxu0  ;;  %8232 = vadd.xlane.f32.xlu0 %v8218_v1  ;;  %8234 = vadd.xlane.f32.xlu1 %v8219_v28  ;;  %v13033_v60 = vadd.f32 %v8880_v43, %v8752_v59  ;;  %v8882_v46 = vunpack.c.l.bf16 %v8801_v31  ;;  %v10827_v58 = vld [vmem:[%s11495_s14 + $0x11c] sm:$0x1] }
 0x6ec   : > { %v10129_v53 = vpop.f32.mrb[93].mxu1  ;;  %v10172_v63 = vpop.f32.mrb[99].mxu0  ;;  %v8824_v28 = vrot.slane %v8823_v22, 4  ;;  %v8864_v47 = vrot.slane %v8862_v37, 5  ;;  %v8850_v17 = vrot.slane %v8848_v44, 5  ;;  %v8868_v20 = vshll.u32 %v10827_v58, 16 }
 0x6ed   : > { %v10130_v6 = vadd.f32 %v10129_v53, %v10128_v62  ;;  %v10173_v51 = vadd.f32 %v10172_v63, %v10171_v36  ;;  %v10131_v55 = vpop.f32.mrb[94].mxu1  ;;  %v13031_v33 = vadd.f32 %v8881_v2, %v8753_v54  ;;  %v8847_v2 = vrot.slane %v8845_v14, 4 }
 0x6ee   : > { %v10132_v39 = vpop.f32.mrb[95].mxu1  ;;  %v8920_v3 = vmul.f32 %v13033_v60, %v13033_v60  ;;  %v8843_v36 = vsel %vm12021_vm6, %v8838_v50, %v8842_v57  ;;  %v8829_v63 = vsel %vm12021_vm6, %v8824_v28, %v8828_v42  ;;  %v8865_v22 = vor.u32 %v8864_v47, %v8861_v8 }
 0x6ef   : > { %v8730_v4 = vadd.f32 %v10170_v5, %v10130_v6  ;;  %v10133_v1 = vadd.f32 %v10132_v39, %v10131_v55  ;;  %8898 = vadd.xlane.f32.xlu0 %v13031_v33  ;;  %8896 = vadd.xlane.f32.xlu1 %v13033_v60  ;;  %v8921_v31 = vmul.f32 %v13031_v33, %v13031_v33  ;;  %v8854_v14 = vshll.u32 %v10828_v10, 16 }
 0x6f0   : > { %v8851_v37 = vor.u32 %v8850_v17, %v8847_v2  ;;  %v8885_v50 = vunpack.c.l.bf16 %v8843_v36  ;;  %v8870_v42 = vrot.slane %v8868_v20, 5  ;;  %v8884_v8 = vunpack.c.l.bf16 %v8829_v63 }
 0x6f1   : > { %v8754_v43 = vmax.f32 %v8730_v4, 0.0  ;;  %v8733_v59 = vadd.f32 %v10173_v51, %v10133_v1  ;;  %v10174_v16 = vpop.f32.mrb[100].mxu0  ;;  %v8866_v28 = vrot.slane %v8865_v22, 4  ;;  %v8856_v2 = vrot.slane %v8854_v14, 5 }
 0x6f2   : > { %v10175_v34 = vpop.f32.mrb[101].mxu0  ;;  %v8852_v47 = vrot.slane %v8851_v37, 4 }
 0x6f3   : > { %v8755_v48 = vmax.f32 %v8733_v59, 0.0  ;;  %v10176_v54 = vadd.f32 %v10175_v34, %v10174_v16  ;;  %v10134_v5 = vpop.f32.mrb[96].mxu1  ;;  %v10177_v62 = vpop.f32.mrb[102].mxu0  ;;  %8928 = vadd.xlane.f32.xlu0 %v8920_v3  ;;  %8930 = vadd.xlane.f32.xlu1 %v8921_v31  ;;  %v13049_v39 = vadd.f32 %v8882_v46, %v8754_v43 }
 0x6f4   : > { %v10135_v52 = vpop.f32.mrb[97].mxu1  ;;  %v10178_v53 = vpop.f32.mrb[103].mxu0  ;;  %v8857_v36 = vsel %vm12021_vm6, %v8852_v47, %v8856_v2 }
 0x6f5   : > { %v10136_v44 = vadd.f32 %v10135_v52, %v10134_v5  ;;  %v10179_v6 = vadd.f32 %v10178_v53, %v10177_v62  ;;  %v10137_v51 = vpop.f32.mrb[98].mxu1  ;;  %v13047_v55 = vadd.f32 %v8883_v15, %v8755_v48  ;;  %v8922_v15 = vmul.f32 %v13049_v39, %v13049_v39 }
 0x6f6   : > { %v10138_v4 = vpop.f32.mrb[99].mxu1  ;;  %v8871_v62 = vsel %vm12021_vm6, %v8866_v28, %v8870_v42 }
 0x6f7   : > { %v8738_v57 = vadd.f32 %v10176_v54, %v10136_v44  ;;  %v10139_v1 = vadd.f32 %v10138_v4, %v10137_v51  ;;  %8902 = vadd.xlane.f32.xlu0 %v13047_v55  ;;  %8900 = vadd.xlane.f32.xlu1 %v13049_v39  ;;  %v8923_v46 = vmul.f32 %v13047_v55, %v13047_v55  ;;  %v8887_v14 = vunpack.c.l.bf16 %v8871_v62 }
 0x6f8   : > { %v8886_v44 = vunpack.c.l.bf16 %v8857_v36 }
 0x6f9   : > { %v8756_v17 = vmax.f32 %v8738_v57, 0.0  ;;  %v8741_v59 = vadd.f32 %v10179_v6, %v10139_v1  ;;  %v10180_v16 = vpop.f32.mrb[104].mxu0 }
 0x6fa   : > { %v10181_v43 = vpop.f32.mrb[105].mxu0 }
 0x6fb   : > { %v8757_v3 = vmax.f32 %v8741_v59, 0.0  ;;  %v10182_v31 = vadd.f32 %v10181_v43, %v10180_v16  ;;  %v10140_v34 = vpop.f32.mrb[100].mxu1  ;;  %v10183_v48 = vpop.f32.mrb[106].mxu0  ;;  %8932 = vadd.xlane.f32.xlu0 %v8922_v15  ;;  %8934 = vadd.xlane.f32.xlu1 %v8923_v46  ;;  %v13063_v63 = vadd.f32 %v8884_v8, %v8756_v17 }
 0x6fc   : > { %v10141_v54 = vpop.f32.mrb[101].mxu1  ;;  %v10184_v5 = vpop.f32.mrb[107].mxu0 }
 0x6fd   : > { %v10142_v58 = vadd.f32 %v10141_v54, %v10140_v34  ;;  %v10185_v20 = vadd.f32 %v10184_v5, %v10183_v48  ;;  %v10143_v52 = vpop.f32.mrb[102].mxu1  ;;  %v13061_v53 = vadd.f32 %v8885_v50, %v8757_v3  ;;  %v8924_v27 = vmul.f32 %v13063_v63, %v13063_v63 }
 0x6fe   : > { %v10144_v22 = vpop.f32.mrb[103].mxu1 }
 0x6ff   : > { %v8746_v37 = vadd.f32 %v10182_v31, %v10142_v58  ;;  %v10145_v10 = vadd.f32 %v10144_v22, %v10143_v52  ;;  %8906 = vadd.xlane.f32.xlu0 %v13061_v53  ;;  %8904 = vadd.xlane.f32.xlu1 %v13063_v63  ;;  %v8925_v4 = vmul.f32 %v13061_v53, %v13061_v53 }
 0x701   : > { %v8758_v6 = vmax.f32 %v8746_v37, 0.0  ;;  %v8749_v51 = vadd.f32 %v10185_v20, %v10145_v10 }
 0x703   : > { %v8759_v57 = vmax.f32 %v8749_v51, 0.0  ;;  %8936 = vadd.xlane.f32.xlu0 %v8924_v27  ;;  %8938 = vadd.xlane.f32.xlu1 %v8925_v4  ;;  %v13073_v50 = vadd.f32 %v8886_v44, %v8758_v6 }
 0x705   : > { %v13071_v1 = vadd.f32 %v8887_v14, %v8759_v57  ;;  %v8926_v42 = vmul.f32 %v13073_v50, %v13073_v50 }
 0x707   : > { %8910 = vadd.xlane.f32.xlu0 %v13071_v1  ;;  %8908 = vadd.xlane.f32.xlu1 %v13073_v50  ;;  %v8927_v8 = vmul.f32 %v13071_v1, %v13071_v1 }
 0x70b   : > { %8940 = vadd.xlane.f32.xlu0 %v8926_v42  ;;  %8942 = vadd.xlane.f32.xlu1 %v8927_v8 }
 0x716   : > { %v6722_v28 = vpop.xlane.xlu0 %6721 }
 0x717   : > { %v6737_v17 = vmul.f32 0.0078125, %v6722_v28  ;;  %v13084_v28 = vld [vmem:[#allocation13] ss:$0 sm:$0xff] }
 0x719   : > { %v6777_v43 = vmul.f32 %v6737_v17, %v6737_v17 }
 0x71a   : > { %v6756_v47 = vpop.xlane.xlu1 %6755  ;;  %v6724_v2 = vpop.xlane.xlu0 %6723 }
 0x71b   : > { %v6738_v59 = vmul.f32 0.0078125, %v6724_v2  ;;  %v6770_v16 = vmul.f32 0.0078125, %v6756_v47 }
 0x71d   : > { %v6778_v15 = vmul.f32 %v6738_v59, %v6738_v59  ;;  %v6794_v57 = vsub.f32 %v12799_v40, %v6738_v59 }
 0x71e   : > { %v6754_v46 = vpop.xlane.xlu0 %6753 }
 0x71f   : > { %v6786_v3 = vsub.f32 %v6770_v16, %v6778_v15  ;;  %v6769_v31 = vmul.f32 0.0078125, %v6754_v46  ;;  %v6793_v16 = vsub.f32 %v12793_v35, %v6737_v17 }
 0x720   : > { %v6726_v34 = vpop.xlane.xlu1 %6725 }
 0x721   : > { %v6802_v48 = vadd.f32 1e-05, %v6786_v3  ;;  %v6739_v54 = vmul.f32 0.0078125, %v6726_v34  ;;  %v6785_v5 = vsub.f32 %v6769_v31, %v6777_v43  ;;  %v13089_v3 = vld [vmem:[#allocation15] ss:$0 sm:$0xff] }
 0x722   : > { %v6758_v62 = vpop.xlane.xlu0 %6757 }
 0x723   : > { %10638 = vrsqrt.f32 %v6802_v48  ;;  %v6801_v36 = vadd.f32 1e-05, %v6785_v5  ;;  %v6779_v58 = vmul.f32 %v6739_v54, %v6739_v54  ;;  %v6771_v52 = vmul.f32 0.0078125, %v6758_v62 }
 0x724   : > { %v6728_v20 = vpop.xlane.xlu1 %6727 }
 0x725   : > { %10640 = vrsqrt.f32 %v6801_v36  ;;  %v6740_v22 = vmul.f32 0.0078125, %v6728_v20  ;;  %v6787_v37 = vsub.f32 %v6771_v52, %v6779_v58  ;;  %v6795_v20 = vsub.f32 %v12814_v24, %v6739_v54 }
 0x727   : > { %v6803_v10 = vadd.f32 1e-05, %v6787_v37  ;;  %v6780_v44 = vmul.f32 %v6740_v22, %v6740_v22 }
 0x728   : > { %v6760_v14 = vpop.xlane.xlu1 %6759 }
 0x729   : > { %v6772_v6 = vmul.f32 0.0078125, %v6760_v14  ;;  %10642 = vrsqrt.f32 %v6803_v10 }
 0x72a   : > { %v6730_v51 = vpop.xlane.xlu0 %6729 }
 0x72b   : > { %v6788_v27 = vsub.f32 %v6772_v6, %v6780_v44  ;;  %v13081_v4 = vmul.f32 0.0078125, %v6730_v51 }
 0x72c   : > { %v6732_v42 = vpop.xlane.xlu1 %6731 }
 0x72d   : > { %v10639_v8 = vpop.eup %10638  ;;  %v6804_v47 = vadd.f32 1e-05, %v6788_v27  ;;  %v13086_v2 = vmul.f32 0.0078125, %v6732_v42  ;;  %v6781_v31 = vmul.f32 %v13081_v4, %v13081_v4 }
 0x72e   : > { %v6818_v15 = vmul.f32 %v10639_v8, %v6794_v57  ;;  %v6762_v46 = vpop.xlane.xlu0 %6761 }
 0x72f   : > { %v10641_v43 = vpop.eup %10640  ;;  %10644 = vrsqrt.f32 %v6804_v47  ;;  %v6773_v40 = vmul.f32 0.0078125, %v6762_v46  ;;  %v6782_v5 = vmul.f32 %v13086_v2, %v13086_v2  ;;  %v6796_v47 = vsub.f32 %v12826_v23, %v6740_v22 }
 0x730   : > { %v6832_v59 = vmul.f32 %v13084_v28, %v6818_v15  ;;  %v6817_v34 = vmul.f32 %v10641_v43, %v6793_v16  ;;  %v6764_v48 = vpop.xlane.xlu1 %6763 }
 0x731   : > { %v6789_v62 = vsub.f32 %v6773_v40, %v6781_v31  ;;  %v6774_v35 = vmul.f32 0.0078125, %v6764_v48 }
 0x732   : > { %v6846_v17 = vadd.f32 %v13089_v3, %v6832_v59  ;;  %v6831_v36 = vmul.f32 %v13084_v28, %v6817_v34  ;;  %v6734_v58 = vpop.xlane.xlu0 %6733 }
 0x733   : > { %v6805_v52 = vadd.f32 1e-05, %v6789_v62  ;;  %v6790_v37 = vsub.f32 %v6774_v35, %v6782_v5  ;;  %v13099_v10 = vmul.f32 0.0078125, %v6734_v58  ;;  %v10643_v14 = vpop.eup %10642  ;;  %v6797_v58 = vsub.f32 %v12838_v19, %v13081_v4 }
 0x734   : > { %6854 = vst [vmem:[%s11514_s23 + $0x8] sm:$0xff] %v6846_v17  ;;  %v6845_v44 = vadd.f32 %v13089_v3, %v6831_v36  ;;  %v6736_v6 = vpop.xlane.xlu1 %6735  ;;  %v6819_v51 = vmul.f32 %v10643_v14, %v6795_v20 }
 0x735   : > { %10646 = vrsqrt.f32 %v6805_v52  ;;  %v6806_v27 = vadd.f32 1e-05, %v6790_v37  ;;  %v13104_v57 = vmul.f32 0.0078125, %v6736_v6  ;;  %v6783_v24 = vmul.f32 %v13099_v10, %v13099_v10 }
 0x736   : > { %6853 = vst [vmem:[%s11514_s23] sm:$0xff] %v6845_v44  ;;  %v6766_v42 = vpop.xlane.xlu0 %6765  ;;  %v6833_v8 = vmul.f32 %v13084_v28, %v6819_v51  ;;  %v6798_v37 = vsub.f32 %v12843_v0, %v13086_v2 }
 0x737   : > { %10648 = vrsqrt.f32 %v6806_v27  ;;  %v6775_v54 = vmul.f32 0.0078125, %v6766_v42  ;;  %v6784_v43 = vmul.f32 %v13104_v57, %v13104_v57 }
 0x738   : > { %v6768_v16 = vpop.xlane.xlu1 %6767  ;;  %v6847_v46 = vadd.f32 %v13089_v3, %v6833_v8 }
 0x739   : > { %v10645_v15 = vpop.eup %10644  ;;  %v6791_v31 = vsub.f32 %v6775_v54, %v6783_v24  ;;  %v6776_v40 = vmul.f32 0.0078125, %v6768_v16 }
 0x73a   : > { %v6820_v59 = vmul.f32 %v10645_v15, %v6796_v47  ;;  %6855 = vst [vmem:[%s11514_s23 + $0x10] sm:$0xff] %v6847_v46 }
 0x73b   : > { %v6807_v34 = vadd.f32 1e-05, %v6791_v31  ;;  %v6792_v48 = vsub.f32 %v6776_v40, %v6784_v43 }
 0x73c   : > { %v6834_v5 = vmul.f32 %v13084_v28, %v6820_v59  ;;  %v7459_v62 = vpop.xlane.xlu0 %7458  ;;  %v7457_v35 = vpop.xlane.xlu1 %7456  ;;  %v6799_v59 = vsub.f32 %v12854_v25, %v13099_v10 }
 0x73d   : > { %10650 = vrsqrt.f32 %v6807_v34  ;;  %v6808_v23 = vadd.f32 1e-05, %v6792_v48  ;;  %v13115_v22 = vmul.f32 0.0078125, %v7459_v62  ;;  %v13117_v17 = vmul.f32 0.0078125, %v7457_v35 }
 0x73e   : > { %v6848_v36 = vadd.f32 %v13089_v3, %v6834_v5  ;;  %v6800_v5 = vsub.f32 %v12860_v26, %v13104_v57 }
 0x73f   : > { %v10647_v20 = vpop.eup %10646  ;;  %10652 = vrsqrt.f32 %v6808_v23  ;;  %v7512_v52 = vmul.f32 %v13117_v17, %v13117_v17  ;;  %v7513_v27 = vmul.f32 %v13115_v22, %v13115_v22 }
 0x740   : > { %6856 = vst [vmem:[%s11514_s23 + $0x18] sm:$0xff] %v6848_v36  ;;  %v6821_v14 = vmul.f32 %v10647_v20, %v6797_v58  ;;  %v7489_v44 = vpop.xlane.xlu0 %7488  ;;  %v7491_v6 = vpop.xlane.xlu1 %7490 }
 0x741   : > { %v10649_v51 = vpop.eup %10648  ;;  %v7504_v42 = vmul.f32 0.0078125, %v7489_v44  ;;  %v7505_v8 = vmul.f32 0.0078125, %v7491_v6 }
 0x742   : > { %v6835_v19 = vmul.f32 %v13084_v28, %v6821_v14  ;;  %v6822_v4 = vmul.f32 %v10649_v51, %v6798_v37 }
 0x743   : > { %v7520_v24 = vsub.f32 %v7504_v42, %v7512_v52  ;;  %v7521_v54 = vsub.f32 %v7505_v8, %v7513_v27 }
 0x744   : > { %v6849_v47 = vadd.f32 %v13089_v3, %v6835_v19  ;;  %v6836_v0 = vmul.f32 %v13084_v28, %v6822_v4  ;;  %v7463_v2 = vpop.xlane.xlu0 %7462  ;;  %v7461_v16 = vpop.xlane.xlu1 %7460 }
 0x745   : > { %v7536_v15 = vadd.f32 1e-05, %v7520_v24  ;;  %v7537_v46 = vadd.f32 1e-05, %v7521_v54  ;;  %v13132_v43 = vmul.f32 0.0078125, %v7463_v2  ;;  %v13134_v31 = vmul.f32 0.0078125, %v7461_v16 }
 0x746   : > { %6857 = vst [vmem:[%s11514_s23 + $0x20] sm:$0xff] %v6849_v47  ;;  %v6850_v40 = vadd.f32 %v13089_v3, %v6836_v0  ;;  %v7528_v24 = vsub.f32 %v12885_v21, %v13117_v17  ;;  %v7529_v2 = vsub.f32 %v12883_v9, %v13115_v22 }
 0x747   : > { %v10651_v34 = vpop.eup %10650  ;;  %10654 = vrsqrt.f32 %v7536_v15  ;;  %v7514_v48 = vmul.f32 %v13134_v31, %v13134_v31  ;;  %v7515_v58 = vmul.f32 %v13132_v43, %v13132_v43 }
 0x748   : > { %6858 = vst [vmem:[%s11514_s23 + $0x28] sm:$0xff] %v6850_v40  ;;  %v6823_v62 = vmul.f32 %v10651_v34, %v6799_v59  ;;  %10656 = vrsqrt.f32 %v7537_v46  ;;  %v7493_v35 = vpop.xlane.xlu0 %7492  ;;  %v7495_v23 = vpop.xlane.xlu1 %7494 }
 0x749   : > { %v10653_v36 = vpop.eup %10652  ;;  %v7506_v20 = vmul.f32 0.0078125, %v7493_v35  ;;  %v7507_v25 = vmul.f32 0.0078125, %v7495_v23 }
 0x74a   : > { %v6837_v10 = vmul.f32 %v13084_v28, %v6823_v62  ;;  %v6824_v52 = vmul.f32 %v10653_v36, %v6800_v5 }
 0x74b   : > { %v7522_v37 = vsub.f32 %v7506_v20, %v7514_v48  ;;  %v7523_v14 = vsub.f32 %v7507_v25, %v7515_v58  ;;  %v7530_v25 = vsub.f32 %v12907_v29, %v13134_v31 }
 0x74c   : > { %v6851_v44 = vadd.f32 %v13089_v3, %v6837_v10  ;;  %v6838_v26 = vmul.f32 %v13084_v28, %v6824_v52  ;;  %v7467_v57 = vpop.xlane.xlu0 %7466  ;;  %v7465_v6 = vpop.xlane.xlu1 %7464 }
 0x74d   : > { %v7538_v51 = vadd.f32 1e-05, %v7522_v37  ;;  %v7539_v27 = vadd.f32 1e-05, %v7523_v14  ;;  %v13150_v42 = vmul.f32 0.0078125, %v7467_v57  ;;  %v13152_v8 = vmul.f32 0.0078125, %v7465_v6 }
 0x74e   : > { %6859 = vst [vmem:[%s11514_s23 + $0x30] sm:$0xff] %v6851_v44  ;;  %v6852_v19 = vadd.f32 %v13089_v3, %v6838_v26  ;;  %v7531_v44 = vsub.f32 %v12904_v12, %v13132_v43 }
 0x74f   : > { %10658 = vrsqrt.f32 %v7538_v51  ;;  %v7516_v4 = vmul.f32 %v13152_v8, %v13152_v8  ;;  %v7517_v16 = vmul.f32 %v13150_v42, %v13150_v42 }
 0x750   : > { %6860 = vst [vmem:[%s11514_s23 + $0x38] sm:$0xff] %v6852_v19  ;;  %10660 = vrsqrt.f32 %v7539_v27  ;;  %v7497_v54 = vpop.xlane.xlu0 %7496  ;;  %v7499_v47 = vpop.xlane.xlu1 %7498 }
 0x751   : > { %v10655_v0 = vpop.eup %10654  ;;  %v7508_v15 = vmul.f32 0.0078125, %v7497_v54  ;;  %v7509_v46 = vmul.f32 0.0078125, %v7499_v47 }
 0x752   : > { %v10657_v40 = vpop.eup %10656  ;;  %v7552_v59 = vmul.f32 %v10655_v0, %v7528_v24 }
 0x753   : > { %v7553_v34 = vmul.f32 %v10657_v40, %v7529_v2  ;;  %v7524_v48 = vsub.f32 %v7508_v15, %v7516_v4  ;;  %v7525_v5 = vsub.f32 %v7509_v46, %v7517_v16  ;;  %v7532_v46 = vsub.f32 %v12925_v49, %v13152_v8 }
 0x754   : > { %v7560_v21 = vmul.f32 %v13084_v28, %v7552_v59  ;;  %v7471_v17 = vpop.xlane.xlu0 %7470  ;;  %v7469_v62 = vpop.xlane.xlu1 %7468 }
 0x755   : > { %v7561_v35 = vmul.f32 %v13084_v28, %v7553_v34  ;;  %v7540_v23 = vadd.f32 1e-05, %v7524_v48  ;;  %v7541_v9 = vadd.f32 1e-05, %v7525_v5  ;;  %v13167_v22 = vmul.f32 0.0078125, %v7471_v17 }
 0x756   : > { %v7568_v36 = vadd.f32 %v13089_v3, %v7560_v21  ;;  %v13170_v58 = vmul.f32 0.0078125, %v7469_v62  ;;  %v7533_v5 = vsub.f32 %v12923_v11, %v13150_v42 }
 0x757   : > { %v7569_v20 = vadd.f32 %v13089_v3, %v7561_v35  ;;  %10662 = vrsqrt.f32 %v7540_v23  ;;  %v7519_v26 = vmul.f32 %v13167_v22, %v13167_v22 }
 0x758   : > { %9528 = vst [vmem:[%s11514_s23 + $0x40] sm:$0xff] %v7568_v36  ;;  %10664 = vrsqrt.f32 %v7541_v9  ;;  %v7518_v10 = vmul.f32 %v13170_v58, %v13170_v58  ;;  %v7501_v52 = vpop.xlane.xlu0 %7500  ;;  %v7503_v37 = vpop.xlane.xlu1 %7502 }
 0x759   : > { %v10659_v14 = vpop.eup %10658  ;;  %9529 = vst [vmem:[%s11514_s23 + $0x48] sm:$0xff] %v7569_v20  ;;  %v7510_v57 = vmul.f32 0.0078125, %v7501_v52  ;;  %v7511_v6 = vmul.f32 0.0078125, %v7503_v37 }
 0x75a   : > { %v10661_v51 = vpop.eup %10660  ;;  %v7554_v27 = vmul.f32 %v10659_v14, %v7530_v25 }
 0x75b   : > { %v7555_v29 = vmul.f32 %v10661_v51, %v7531_v44  ;;  %v7526_v31 = vsub.f32 %v7510_v57, %v7518_v10  ;;  %v7527_v19 = vsub.f32 %v7511_v6, %v7519_v26  ;;  %v7534_v26 = vsub.f32 %v12943_v56, %v13170_v58 }
 0x75c   : > { %v7562_v4 = vmul.f32 %v13084_v28, %v7554_v27  ;;  %v8191_v24 = vpop.xlane.xlu0 %8190  ;;  %v8189_v54 = vpop.xlane.xlu1 %8188 }
 0x75d   : > { %v7563_v47 = vmul.f32 %v13084_v28, %v7555_v29  ;;  %v7542_v0 = vadd.f32 1e-05, %v7526_v31  ;;  %v7543_v12 = vadd.f32 1e-05, %v7527_v19  ;;  %v13185_v43 = vmul.f32 0.0078125, %v8191_v24 }
 0x75e   : > { %v7570_v2 = vadd.f32 %v13089_v3, %v7562_v4  ;;  %v13188_v16 = vmul.f32 0.0078125, %v8189_v54  ;;  %v7535_v29 = vsub.f32 %v12941_v13, %v13167_v22 }
 0x75f   : > { %v7571_v15 = vadd.f32 %v13089_v3, %v7563_v47  ;;  %10666 = vrsqrt.f32 %v7542_v0  ;;  %v8245_v21 = vmul.f32 %v13185_v43, %v13185_v43 }
 0x760   : > { %9530 = vst [vmem:[%s11514_s23 + $0x50] sm:$0xff] %v7570_v2  ;;  %10668 = vrsqrt.f32 %v7543_v12  ;;  %v8244_v40 = vmul.f32 %v13188_v16, %v13188_v16  ;;  %v8221_v59 = vpop.xlane.xlu0 %8220  ;;  %v8223_v34 = vpop.xlane.xlu1 %8222 }
 0x761   : > { %v10663_v48 = vpop.eup %10662  ;;  %9531 = vst [vmem:[%s11514_s23 + $0x58] sm:$0xff] %v7571_v15  ;;  %v8236_v17 = vmul.f32 0.0078125, %v8221_v59  ;;  %v8237_v62 = vmul.f32 0.0078125, %v8223_v34 }
 0x762   : > { %v10665_v35 = vpop.eup %10664  ;;  %v7556_v23 = vmul.f32 %v10663_v48, %v7532_v46  ;;  %v8260_v48 = vsub.f32 %v12961_v45, %v13188_v16 }
 0x763   : > { %v7557_v49 = vmul.f32 %v10665_v35, %v7533_v5  ;;  %v8252_v8 = vsub.f32 %v8236_v17, %v8244_v40  ;;  %v8253_v9 = vsub.f32 %v8237_v62, %v8245_v21  ;;  %v8261_v35 = vsub.f32 %v12959_v30, %v13185_v43 }
 0x764   : > { %v7564_v36 = vmul.f32 %v13084_v28, %v7556_v23  ;;  %v8195_v20 = vpop.xlane.xlu0 %8194  ;;  %v8193_v25 = vpop.xlane.xlu1 %8192 }
 0x765   : > { %v7565_v10 = vmul.f32 %v13084_v28, %v7557_v49  ;;  %v8268_v52 = vadd.f32 1e-05, %v8252_v8  ;;  %v8269_v11 = vadd.f32 1e-05, %v8253_v9  ;;  %v13203_v42 = vmul.f32 0.0078125, %v8195_v20 }
 0x766   : > { %v7572_v37 = vadd.f32 %v13089_v3, %v7564_v36  ;;  %v13206_v14 = vmul.f32 0.0078125, %v8193_v25 }
 0x767   : > { %v7573_v44 = vadd.f32 %v13089_v3, %v7565_v10  ;;  %10670 = vrsqrt.f32 %v8268_v52  ;;  %v8247_v31 = vmul.f32 %v13203_v42, %v13203_v42 }
 0x768   : > { %9532 = vst [vmem:[%s11514_s23 + $0x60] sm:$0xff] %v7572_v37  ;;  %10672 = vrsqrt.f32 %v8269_v11  ;;  %v8246_v57 = vmul.f32 %v13206_v14, %v13206_v14  ;;  %v8225_v6 = vpop.xlane.xlu0 %8224  ;;  %v8227_v51 = vpop.xlane.xlu1 %8226 }
 0x769   : > { %v10667_v27 = vpop.eup %10666  ;;  %9533 = vst [vmem:[%s11514_s23 + $0x68] sm:$0xff] %v7573_v44  ;;  %v8238_v19 = vmul.f32 0.0078125, %v8225_v6  ;;  %v8239_v4 = vmul.f32 0.0078125, %v8227_v51  ;;  %v8262_v6 = vsub.f32 %v12979_v61, %v13206_v14 }
 0x76a   : > { %v10669_v24 = vpop.eup %10668  ;;  %v7558_v54 = vmul.f32 %v10667_v27, %v7534_v26 }
 0x76b   : > { %v7559_v56 = vmul.f32 %v10669_v24, %v7535_v29  ;;  %v8254_v58 = vsub.f32 %v8238_v19, %v8246_v57  ;;  %v8255_v47 = vsub.f32 %v8239_v4, %v8247_v31  ;;  %v8263_v19 = vsub.f32 %v12977_v7, %v13203_v42 }
 0x76c   : > { %v7566_v0 = vmul.f32 %v13084_v28, %v7558_v54  ;;  %v8199_v12 = vpop.xlane.xlu0 %8198  ;;  %v8197_v2 = vpop.xlane.xlu1 %8196 }
 0x76d   : > { %v7567_v15 = vmul.f32 %v13084_v28, %v7559_v56  ;;  %v8270_v46 = vadd.f32 1e-05, %v8254_v58  ;;  %v8271_v13 = vadd.f32 1e-05, %v8255_v47  ;;  %v13221_v22 = vmul.f32 0.0078125, %v8199_v12 }
 0x76e   : > { %v7574_v40 = vadd.f32 %v13089_v3, %v7566_v0  ;;  %v13224_v59 = vmul.f32 0.0078125, %v8197_v2 }
 0x76f   : > { %v7575_v34 = vadd.f32 %v13089_v3, %v7567_v15  ;;  %10674 = vrsqrt.f32 %v8270_v46  ;;  %v8249_v23 = vmul.f32 %v13221_v22, %v13221_v22 }
 0x770   : > { %9534 = vst [vmem:[%s11514_s23 + $0x70] sm:$0xff] %v7574_v40  ;;  %10676 = vrsqrt.f32 %v8271_v13  ;;  %v8248_v5 = vmul.f32 %v13224_v59, %v13224_v59  ;;  %v8229_v21 = vpop.xlane.xlu0 %8228  ;;  %v8231_v17 = vpop.xlane.xlu1 %8230 }
 0x771   : > { %v10671_v62 = vpop.eup %10670  ;;  %9535 = vst [vmem:[%s11514_s23 + $0x78] sm:$0xff] %v7575_v34  ;;  %v8240_v49 = vmul.f32 0.0078125, %v8229_v21  ;;  %v8241_v8 = vmul.f32 0.0078125, %v8231_v17 }
 0x772   : > { %v10673_v9 = vpop.eup %10672  ;;  %v8284_v36 = vmul.f32 %v10671_v62, %v8260_v48  ;;  %v8264_v48 = vsub.f32 %v12997_v41, %v13224_v59 }
 0x773   : > { %v8285_v45 = vmul.f32 %v10673_v9, %v8261_v35  ;;  %v8256_v16 = vsub.f32 %v8240_v49, %v8248_v5  ;;  %v8257_v20 = vsub.f32 %v8241_v8, %v8249_v23  ;;  %v8265_v35 = vsub.f32 %v12995_v32, %v13221_v22 }
 0x774   : > { %v8292_v25 = vmul.f32 %v13084_v28, %v8284_v36  ;;  %v8203_v10 = vpop.xlane.xlu0 %8202  ;;  %v8201_v52 = vpop.xlane.xlu1 %8200 }
 0x775   : > { %v8293_v11 = vmul.f32 %v13084_v28, %v8285_v45  ;;  %v8272_v37 = vadd.f32 1e-05, %v8256_v16  ;;  %v8273_v30 = vadd.f32 1e-05, %v8257_v20  ;;  %v13239_v43 = vmul.f32 0.0078125, %v8203_v10 }
 0x776   : > { %v8300_v44 = vadd.f32 %v13089_v3, %v8292_v25  ;;  %v13242_v26 = vmul.f32 0.0078125, %v8201_v52 }
 0x777   : > { %v8301_v57 = vadd.f32 %v13089_v3, %v8293_v11  ;;  %10678 = vrsqrt.f32 %v8272_v37  ;;  %v8251_v4 = vmul.f32 %v13239_v43, %v13239_v43 }
 0x778   : > { %9576 = vst [vmem:[%s11514_s23 + $0x80] sm:$0xff] %v8300_v44  ;;  %10680 = vrsqrt.f32 %v8273_v30  ;;  %v8250_v51 = vmul.f32 %v13242_v26, %v13242_v26  ;;  %v8233_v27 = vpop.xlane.xlu0 %8232  ;;  %v8235_v29 = vpop.xlane.xlu1 %8234  ;;  %v8266_v44 = vsub.f32 %v13015_v38, %v13242_v26 }
 0x779   : > { %v10675_v31 = vpop.eup %10674  ;;  %9577 = vst [vmem:[%s11514_s23 + $0x88] sm:$0xff] %v8301_v57  ;;  %v8242_v24 = vmul.f32 0.0078125, %v8233_v27  ;;  %v8243_v54 = vmul.f32 0.0078125, %v8235_v29  ;;  %v8267_v29 = vsub.f32 %v13013_v18, %v13239_v43 }
 0x77a   : > { %v10677_v56 = vpop.eup %10676  ;;  %v8286_v58 = vmul.f32 %v10675_v31, %v8262_v6 }
 0x77b   : > { %v8287_v61 = vmul.f32 %v10677_v56, %v8263_v19  ;;  %v8258_v14 = vsub.f32 %v8242_v24, %v8250_v51  ;;  %v8259_v47 = vsub.f32 %v8243_v54, %v8251_v4 }
 0x77c   : > { %v8294_v0 = vmul.f32 %v13084_v28, %v8286_v58  ;;  %v8899_v12 = vpop.xlane.xlu0 %8898  ;;  %v8897_v2 = vpop.xlane.xlu1 %8896 }
 0x77d   : > { %v8295_v15 = vmul.f32 %v13084_v28, %v8287_v61  ;;  %v8274_v46 = vadd.f32 1e-05, %v8258_v14  ;;  %v8275_v7 = vadd.f32 1e-05, %v8259_v47  ;;  %v13257_v42 = vmul.f32 0.0078125, %v8899_v12 }
 0x77e   : > { %v8302_v13 = vadd.f32 %v13089_v3, %v8294_v0  ;;  %v13260_v40 = vmul.f32 0.0078125, %v8897_v2 }
 0x77f   : > { %v8303_v34 = vadd.f32 %v13089_v3, %v8295_v15  ;;  %10682 = vrsqrt.f32 %v8274_v46  ;;  %v8953_v23 = vmul.f32 %v13257_v42, %v13257_v42 }
 0x780   : > { %9578 = vst [vmem:[%s11514_s23 + $0x90] sm:$0xff] %v8302_v13  ;;  %10684 = vrsqrt.f32 %v8275_v7  ;;  %v8952_v5 = vmul.f32 %v13260_v40, %v13260_v40  ;;  %v8929_v21 = vpop.xlane.xlu0 %8928  ;;  %v8931_v17 = vpop.xlane.xlu1 %8930  ;;  %v8968_v46 = vsub.f32 %v13033_v60, %v13260_v40 }
 0x781   : > { %v10679_v62 = vpop.eup %10678  ;;  %9579 = vst [vmem:[%s11514_s23 + $0x98] sm:$0xff] %v8303_v34  ;;  %v8944_v49 = vmul.f32 0.0078125, %v8929_v21  ;;  %v8945_v8 = vmul.f32 0.0078125, %v8931_v17 }
 0x782   : > { %v10681_v9 = vpop.eup %10680  ;;  %v8288_v36 = vmul.f32 %v10679_v62, %v8264_v48 }
 0x783   : > { %v8289_v41 = vmul.f32 %v10681_v9, %v8265_v35  ;;  %v8960_v59 = vsub.f32 %v8944_v49, %v8952_v5  ;;  %v8961_v45 = vsub.f32 %v8945_v8, %v8953_v23  ;;  %v8969_v5 = vsub.f32 %v13031_v33, %v13257_v42 }
 0x784   : > { %v8296_v16 = vmul.f32 %v13084_v28, %v8288_v36  ;;  %v8903_v20 = vpop.xlane.xlu0 %8902  ;;  %v8901_v25 = vpop.xlane.xlu1 %8900 }
 0x785   : > { %v8297_v10 = vmul.f32 %v13084_v28, %v8289_v41  ;;  %v8976_v52 = vadd.f32 1e-05, %v8960_v59  ;;  %v8977_v32 = vadd.f32 1e-05, %v8961_v45  ;;  %v13275_v22 = vmul.f32 0.0078125, %v8903_v20 }
 0x786   : > { %v8304_v11 = vadd.f32 %v13089_v3, %v8296_v16  ;;  %v13278_v37 = vmul.f32 0.0078125, %v8901_v25 }
 0x787   : > { %v8305_v30 = vadd.f32 %v13089_v3, %v8297_v10  ;;  %10686 = vrsqrt.f32 %v8976_v52  ;;  %v8955_v31 = vmul.f32 %v13275_v22, %v13275_v22 }
 0x788   : > { %9580 = vst [vmem:[%s11514_s23 + $0xa0] sm:$0xff] %v8304_v11  ;;  %10688 = vrsqrt.f32 %v8977_v32  ;;  %v8954_v57 = vmul.f32 %v13278_v37, %v13278_v37  ;;  %v8933_v6 = vpop.xlane.xlu0 %8932  ;;  %v8935_v51 = vpop.xlane.xlu1 %8934  ;;  %v8970_v25 = vsub.f32 %v13049_v39, %v13278_v37 }
 0x789   : > { %v10683_v27 = vpop.eup %10682  ;;  %9581 = vst [vmem:[%s11514_s23 + $0xa8] sm:$0xff] %v8305_v30  ;;  %v8946_v19 = vmul.f32 0.0078125, %v8933_v6  ;;  %v8947_v4 = vmul.f32 0.0078125, %v8935_v51  ;;  %v8971_v30 = vsub.f32 %v13047_v55, %v13275_v22 }
 0x78a   : > { %v10685_v24 = vpop.eup %10684  ;;  %v8290_v54 = vmul.f32 %v10683_v27, %v8266_v44 }
 0x78b   : > { %v8291_v38 = vmul.f32 %v10685_v24, %v8267_v29  ;;  %v8962_v26 = vsub.f32 %v8946_v19, %v8954_v57  ;;  %v8963_v56 = vsub.f32 %v8947_v4, %v8955_v31 }
 0x78c   : > { %v8298_v58 = vmul.f32 %v13084_v28, %v8290_v54  ;;  %v8907_v61 = vpop.xlane.xlu0 %8906  ;;  %v8905_v14 = vpop.xlane.xlu1 %8904 }
 0x78d   : > { %v8299_v47 = vmul.f32 %v13084_v28, %v8291_v38  ;;  %v8978_v0 = vadd.f32 1e-05, %v8962_v26  ;;  %v8979_v18 = vadd.f32 1e-05, %v8963_v56  ;;  %v13293_v43 = vmul.f32 0.0078125, %v8907_v61 }
 0x78e   : > { %v8306_v12 = vadd.f32 %v13089_v3, %v8298_v58  ;;  %v13296_v2 = vmul.f32 0.0078125, %v8905_v14 }
 0x78f   : > { %v8307_v15 = vadd.f32 %v13089_v3, %v8299_v47  ;;  %10690 = vrsqrt.f32 %v8978_v0  ;;  %v8957_v21 = vmul.f32 %v13293_v43, %v13293_v43  ;;  %v8973_v26 = vsub.f32 %v13061_v53, %v13293_v43 }
 0x790   : > { %9582 = vst [vmem:[%s11514_s23 + $0xb0] sm:$0xff] %v8306_v12  ;;  %10692 = vrsqrt.f32 %v8979_v18  ;;  %v8956_v7 = vmul.f32 %v13296_v2, %v13296_v2  ;;  %v8937_v13 = vpop.xlane.xlu0 %8936  ;;  %v8939_v34 = vpop.xlane.xlu1 %8938  ;;  %v8972_v22 = vsub.f32 %v13063_v63, %v13296_v2 }
 0x791   : > { %v10687_v48 = vpop.eup %10686  ;;  %9583 = vst [vmem:[%s11514_s23 + $0xb8] sm:$0xff] %v8307_v15  ;;  %v8948_v17 = vmul.f32 0.0078125, %v8937_v13  ;;  %v8949_v62 = vmul.f32 0.0078125, %v8939_v34 }
 0x792   : > { %v10689_v35 = vpop.eup %10688  ;;  %v8992_v23 = vmul.f32 %v10687_v48, %v8968_v46 }
 0x793   : > { %v8993_v60 = vmul.f32 %v10689_v35, %v8969_v5  ;;  %v8964_v40 = vsub.f32 %v8948_v17, %v8956_v7  ;;  %v8965_v49 = vsub.f32 %v8949_v62, %v8957_v21 }
 0x794   : > { %v9000_v8 = vmul.f32 %v13084_v28, %v8992_v23  ;;  %v8911_v9 = vpop.xlane.xlu0 %8910  ;;  %v8909_v36 = vpop.xlane.xlu1 %8908 }
 0x795   : > { %v9001_v41 = vmul.f32 %v13084_v28, %v8993_v60  ;;  %v8980_v59 = vadd.f32 1e-05, %v8964_v40  ;;  %v8981_v33 = vadd.f32 1e-05, %v8965_v49  ;;  %v8919_v42 = vmul.f32 0.0078125, %v8911_v9 }
 0x796   : > { %v9008_v45 = vadd.f32 %v13089_v3, %v9000_v8  ;;  %v8918_v16 = vmul.f32 0.0078125, %v8909_v36 }
 0x797   : > { %v9009_v20 = vadd.f32 %v13089_v3, %v9001_v41  ;;  %10694 = vrsqrt.f32 %v8980_v59  ;;  %v8959_v44 = vmul.f32 %v8919_v42, %v8919_v42  ;;  %v8975_v53 = vsub.f32 %v13071_v1, %v8919_v42 }
 0x798   : > { %9620 = vst [vmem:[%s11514_s23 + $0xc0] sm:$0xff] %v9008_v45  ;;  %10696 = vrsqrt.f32 %v8981_v33  ;;  %v8958_v10 = vmul.f32 %v8918_v16, %v8918_v16  ;;  %v8941_v52 = vpop.xlane.xlu0 %8940  ;;  %v8943_v32 = vpop.xlane.xlu1 %8942  ;;  %v8974_v63 = vsub.f32 %v13073_v50, %v8918_v16 }
 0x799   : > { %v10691_v11 = vpop.eup %10690  ;;  %9621 = vst [vmem:[%s11514_s23 + $0xc8] sm:$0xff] %v9009_v20  ;;  %v8950_v57 = vmul.f32 0.0078125, %v8941_v52  ;;  %v8951_v6 = vmul.f32 0.0078125, %v8943_v32 }
 0x79a   : > { %v10693_v51 = vpop.eup %10692  ;;  %v8994_v27 = vmul.f32 %v10691_v11, %v8970_v25 }
 0x79b   : > { %v8995_v29 = vmul.f32 %v10693_v51, %v8971_v30  ;;  %v8966_v31 = vsub.f32 %v8950_v57, %v8958_v10  ;;  %v8967_v19 = vsub.f32 %v8951_v6, %v8959_v44 }
 0x79c   : > { %v9002_v39 = vmul.f32 %v13084_v28, %v8994_v27 }
 0x79d   : > { %v9003_v37 = vmul.f32 %v13084_v28, %v8995_v29  ;;  %v8982_v4 = vadd.f32 1e-05, %v8966_v31  ;;  %v8983_v24 = vadd.f32 1e-05, %v8967_v19 }
 0x79e   : > { %v9010_v54 = vadd.f32 %v13089_v3, %v9002_v39 }
 0x79f   : > { %v9011_v55 = vadd.f32 %v13089_v3, %v9003_v37  ;;  %10698 = vrsqrt.f32 %v8982_v4 }
 0x7a0   : > { %9622 = vst [vmem:[%s11514_s23 + $0xd0] sm:$0xff] %v9010_v54  ;;  %10700 = vrsqrt.f32 %v8983_v24 }
 0x7a1   : > { %v10695_v38 = vpop.eup %10694  ;;  %9623 = vst [vmem:[%s11514_s23 + $0xd8] sm:$0xff] %v9011_v55 }
 0x7a2   : > { %v10697_v56 = vpop.eup %10696  ;;  %v8996_v58 = vmul.f32 %v10695_v38, %v8972_v22 }
 0x7a3   : > { %v8997_v61 = vmul.f32 %v10697_v56, %v8973_v26 }
 0x7a4   : > { %v9004_v14 = vmul.f32 %v13084_v28, %v8996_v58 }
 0x7a5   : > { %v9005_v47 = vmul.f32 %v13084_v28, %v8997_v61 }
 0x7a6   : > { %v9012_v0 = vadd.f32 %v13089_v3, %v9004_v14 }
 0x7a7   : > { %v9013_v18 = vadd.f32 %v13089_v3, %v9005_v47 }
 0x7a8   : > { %9624 = vst [vmem:[%s11514_s23 + $0xe0] sm:$0xff] %v9012_v0 }
 0x7a9   : > { %v10699_v12 = vpop.eup %10698  ;;  %9625 = vst [vmem:[%s11514_s23 + $0xe8] sm:$0xff] %v9013_v18 }
 0x7aa   : > { %v10701_v43 = vpop.eup %10700  ;;  %v8998_v2 = vmul.f32 %v10699_v12, %v8974_v63 }
 0x7ab   : > { %v8999_v15 = vmul.f32 %v10701_v43, %v8975_v53 }
 0x7ac   : > { %v9006_v46 = vmul.f32 %v13084_v28, %v8998_v2 }
 0x7ad   : > { %v9007_v7 = vmul.f32 %v13084_v28, %v8999_v15 }
 0x7ae   : > { %v9014_v13 = vadd.f32 %v13089_v3, %v9006_v46 }
 0x7af   : > { %v9015_v1 = vadd.f32 %v13089_v3, %v9007_v7 }
 0x7b0   : > { %9626 = vst [vmem:[%s11514_s23 + $0xf0] sm:$0xff] %v9014_v13 }
 0x7b1   : > { %9627 = vst [vmem:[%s11514_s23 + $0xf8] sm:$0xff] %v9015_v1 }
 0x7b2   : > { %11103 = shalt.err (!%p11100_p8)
}
 0x7b3   : > { %s11104_s19 = scalar_lea.hbm %s13345_s9, 4096  ;;  %s11108_s10 = scalar_lea.hbm %s13401_s7, 8192 }
 0x7b4   : > { %p11105_p10 = scmp.ne.s32.totalorder %s13345_s9, %s11104_s19  ;;  %p11109_p7 = scmp.lt.u32.totalorder %s13345_s9, %s13401_s7 }
 0x7b5   : > { %p11110_p2 = scmp.lt.u32.totalorder %s11108_s10, %s11104_s19  ;;  %p11112_p6 = scmp.lt.u32.totalorder %s11104_s19, %s13345_s9 }
 0x7b6   : > { %p11106_p3 = pnand %p11105_p10, %p13441_p5 }
 0x7b7   : > { %p11111_p0 = por %p11110_p2, %p11109_p7 }
 0x7b8   : > { %p11107_p4 = pneg %p11106_p3 }
 0x7b9   : > { %p11113_p1 = por %p11112_p6, %p11111_p0 }
 0x7bb   : > { %p11114_p11 = pnand %p11113_p1, %p11107_p4 }
 0x7bd   : > { %11117 = shalt.err (!%p11114_p11)
}
 0x7be   : > { %s11188_s23 = smov 128   ;;  %s11189_s28 = smov 8  }
 0x7bf   : > { %10329 = dma.vmem_to_hbm [thread:$0]  (%p13441_p5), %s13347_s18, 4096, %s13345_s9, %s9026_s30, %s11188_s23, %s11188_s23, %s11189_s28  }
 0x7c0 PF: > { %s9055_s20 = sand.u32 1, %s11156_s24   ;;  %p13442_p12 = scmp.ne.s32.totalorder %s13423_s29, 0 }
 0x7c1   : > { %p13443_p13 = scmp.ge.s32.totalorder %s11168_s27, 2  ;;  %s9056_s13 = scalar_lea.sflag [#allocation6], %s9055_s20 }
 0x7c3   : > { %p10355_p9 = pnand %p13443_p13, %p13442_p12 }
 0x7c5   : > { %11151 = dma.done.wait (!%p10355_p9), %s9056_s13, 4096  }
 0x7c6   : > { %11153 = vsyncadd (!%p10355_p9), %s9056_s13, 4294963200  ;;  %p23_p8 = scmp.ge.s32.totalorder %s11415_s11, 4   ;;  %s13444_s24 = smov %s11160_s25 }
 0x7c7   : > { %s13445_s25 = smov %s11164_s26  ;;  %s13446_s26 = smov %s11426_s16 }
 0x7c8   : > { %s13447_s27 = smov %s11415_s11  ;;  %25 = sbr.rel (!%p23_p8) target bundleno = 12 (0xc), region = 129 }
 0x7cf   :  { %9061 = vsyncpa [#allocation5], 1 }
 0x7d0   :  { %9063 = vsyncpa [#allocation5 + $0x1], 1 }
 0x7d1   :  { %9064 = vsyncpa [#allocation8], 1 }
 0x7d2   :  { %9065 = vsyncpa [#allocation11], 1 }
 0x7d3   :  { %9066 = vsyncpa [#allocation14], 1 }
 0x7d4   :  { %9067 = vsyncpa [#allocation6], 1 }
 0x7d5   :  { %9069 = vsyncpa [#allocation6 + $0x1], 1 }

</bundles_post_ra>
